<compile_context>
chip_gen: v7x
topology: tpu7x:2x2x1
jax: 0.10.0
libtpu: 0.0.40
codegen_flags: <defaults>
</compile_context>

<pallas_src>
import functools

import jax
import jax.numpy as jnp
from jax.experimental import pallas as pl
from jax.experimental.pallas import tpu as pltpu


# ----------------------------------------------------------------------------
# Kernel
# ----------------------------------------------------------------------------
def _fused_pyramid_kernel(xpad_ref, w_ref, pw_ref, scale_ref, shift_ref, o_ref,
                          *, H, W, TH, dilations, dmax):
    """One (batch, row-tile) grid step of the fused 4-branch pyramid block.

    xpad_ref : (1, H+2*dmax, W+2*dmax, Cin)  whole padded image (compute dtype)
    w_ref    : (3, 9*Cin, Cout)              dilated-branch weights, im2col layout
    pw_ref   : (Cin, Cout)                   pooled-branch 1x1 weight (bias-free)
    scale_ref: (1, 4*Cout) f32               folded BN scale, all branches concatenated
    shift_ref: (1, 4*Cout) f32               folded BN shift (+ conv bias), all branches
    o_ref    : (1, TH, W, 4*Cout) f32        row tile of the concatenated output
    """
    cin = xpad_ref.shape[-1]
    cout = pw_ref.shape[-1]
    m_rows = TH * W

    h = pl.program_id(1)
    row0 = pl.multiple_of(h * TH, TH)          # first output row of this tile

    branch_outs = []
    for bi, d in enumerate(dilations):
        # im2col: 9 shifted (TH, W, Cin) taps -> (TH*W, 9*Cin); K = 9*Cin per matmul.
        taps = []
        for kh in range(3):
            r0 = row0 + (dmax - d) + kh * d    # dynamic row-tile base + static offset
            for kw in range(3):
                c0 = (dmax - d) + kw * d       # static column offset
                tap = xpad_ref[0, pl.ds(r0, TH), c0:c0 + W, :]
                taps.append(tap.reshape(m_rows, cin))
        cols = jnp.concatenate(taps, axis=-1)                          # (TH*W, 9*Cin)
        branch_outs.append(
            jnp.dot(cols, w_ref[bi], preferred_element_type=jnp.float32))

    # Global-average-pool branch: the zero halo contributes nothing to the sum, so the
    # mean over the valid H*W pixels can be taken over the whole resident padded tile.
    xf = xpad_ref[0].astype(jnp.float32)
    pooled = (jnp.sum(xf, axis=(0, 1)) * (1.0 / (H * W))).reshape(1, cin)
    p = jnp.dot(pooled.astype(pw_ref.dtype), pw_ref[...],
                preferred_element_type=jnp.float32)                    # (1, Cout)
    branch_outs.append(jnp.broadcast_to(p, (m_rows, cout)))

    # Fused epilogue: single FMA (conv bias already folded into shift) + ReLU,
    # lane-dense (4*Cout)-wide store.
    out = jnp.concatenate(branch_outs, axis=-1)                        # (TH*W, 4*Cout)
    out = jnp.maximum(out * scale_ref[0] + shift_ref[0], 0.0)
    o_ref[0] = out.reshape(TH, W, 4 * cout).astype(o_ref.dtype)


# ----------------------------------------------------------------------------
# Wrapper (pallas_call plumbing)
# ----------------------------------------------------------------------------
def fused_pyramid_block(x_nhwc, params, dilations=(1, 2, 3), *, tile_h=8,
                        compute_dtype=jnp.bfloat16):
    """Fused forward pass. x_nhwc: (N, H, W, Cin) f32 -> (N, H, W, 4*(Cin//4)) f32."""
    N, H, W, cin = x_nhwc.shape
    cout = params["pool"]["w"].shape[-1]
    dmax = max(dilations)
    tile_h = min(tile_h, H)
    if H % tile_h != 0:
        raise ValueError(f"H={H} must be divisible by tile_h={tile_h}")

    # Pad ONCE to the maximum dilation; every branch offsets its taps inside the kernel.
    xpad = jnp.pad(x_nhwc.astype(compute_dtype),
                   ((0, 0), (dmax, dmax), (dmax, dmax), (0, 0)))
    hp, wp = H + 2 * dmax, W + 2 * dmax

    # Weights in im2col layout (9*Cin, Cout); the three branches stacked on a lead axis.
    w_stack = jnp.stack(
        [params[f"d{i + 1}"]["w"].reshape(9 * cin, cout) for i in range(3)]
    ).astype(compute_dtype)
    pw = params["pool"]["w"].astype(compute_dtype)

    # Fold conv bias into the BN shift and concatenate per-branch scale/shift so the
    # kernel epilogue is a single FMA over the fused (4*Cout) channel axis.
    scales, shifts = [], []
    for i in range(3):
        p = params[f"d{i + 1}"]
        scales.append(p["scale"])
        shifts.append(p["shift"] + p["b"] * p["scale"])
    scales.append(params["pool"]["scale"])
    shifts.append(params["pool"]["shift"])
    scale_all = jnp.concatenate(scales).reshape(1, 4 * cout).astype(jnp.float32)
    shift_all = jnp.concatenate(shifts).reshape(1, 4 * cout).astype(jnp.float32)

    kernel = functools.partial(_fused_pyramid_kernel, H=H, W=W, TH=tile_h,
                               dilations=tuple(dilations), dmax=dmax)
    return pl.pallas_call(
        kernel,
        out_shape=jax.ShapeDtypeStruct((N, H, W, 4 * cout), jnp.float32),
        grid=(N, H // tile_h),
        in_specs=[
            # Whole padded image; the block index is constant along the row-tile axis
            # so the pipeline keeps the resident copy instead of re-DMAing it.
            pl.BlockSpec((1, hp, wp, cin), lambda n, h: (n, 0, 0, 0)),
            pl.BlockSpec((3, 9 * cin, cout), lambda n, h: (0, 0, 0)),
            pl.BlockSpec((cin, cout), lambda n, h: (0, 0)),
            pl.BlockSpec((1, 4 * cout), lambda n, h: (0, 0)),
            pl.BlockSpec((1, 4 * cout), lambda n, h: (0, 0)),
        ],
        out_specs=pl.BlockSpec((1, tile_h, W, 4 * cout), lambda n, h: (n, h, 0, 0)),
        compiler_params=pltpu.CompilerParams(
            dimension_semantics=("parallel", "arbitrary"),
            vmem_limit_bytes=48 * 1024 * 1024),
    )(xpad, w_stack, pw, scale_all, shift_all)


def fused_pyramid_block_nchw(x_nchw, params, **kwargs):
    """PyTorch-layout adapter (one transpose in/out); prefer the NHWC entry point."""
    y = fused_pyramid_block(jnp.transpose(x_nchw, (0, 2, 3, 1)), params, **kwargs)
    return jnp.transpose(y, (0, 3, 1, 2))


# ----------------------------------------------------------------------------
# Deterministic synthetic parameters (conv + eval-mode BN folded to scale/shift)
# ----------------------------------------------------------------------------
def _fold_bn(gamma, beta, mean, var, eps=1e-5):
    scale = gamma / jnp.sqrt(var + eps)
    return scale, beta - mean * scale


def make_params(key, in_ch):
    out_ch = in_ch // 4
    params = {}
    for i, name in enumerate(("d1", "d2", "d3")):
        ks = jax.random.split(jax.random.fold_in(key, i), 6)
        w = 0.1 * jax.random.normal(ks[0], (3, 3, in_ch, out_ch), jnp.float32)
        b = 0.05 * jax.random.normal(ks[1], (out_ch,), jnp.float32)
        gamma = 1.0 + 0.1 * jax.random.normal(ks[2], (out_ch,), jnp.float32)
        beta = 0.05 * jax.random.normal(ks[3], (out_ch,), jnp.float32)
        mean = 0.05 * jax.random.normal(ks[4], (out_ch,), jnp.float32)
        var = 1.0 + 0.1 * jnp.abs(jax.random.normal(ks[5], (out_ch,), jnp.float32))
        scale, shift = _fold_bn(gamma, beta, mean, var)
        params[name] = dict(w=w, b=b, scale=scale, shift=shift)
    ks = jax.random.split(jax.random.fold_in(key, 3), 5)
    w = 0.1 * jax.random.normal(ks[0], (in_ch, out_ch), jnp.float32)
    gamma = 1.0 + 0.1 * jax.random.normal(ks[1], (out_ch,), jnp.float32)
    beta = 0.05 * jax.random.normal(ks[2], (out_ch,), jnp.float32)
    mean = 0.05 * jax.random.normal(ks[3], (out_ch,), jnp.float32)
    var = 1.0 + 0.1 * jnp.abs(jax.random.normal(ks[4], (out_ch,), jnp.float32))
    scale, shift = _fold_bn(gamma, beta, mean, var)
    params["pool"] = dict(w=w, scale=scale, shift=shift)
    return params


# ----------------------------------------------------------------------------
# Pure-JAX reference (same bf16-cast inputs, f32 accumulation)
# ----------------------------------------------------------------------------
def pyramid_reference(x_nhwc, params, dilations=(1, 2, 3),
                      compute_dtype=jnp.bfloat16):
    x = x_nhwc.astype(compute_dtype)
    outs = []
    for i, d in enumerate(dilations):
        p = params[f"d{i + 1}"]
        y = jax.lax.conv_general_dilated(
            x, p["w"].astype(compute_dtype), window_strides=(1, 1),
            padding=((d, d), (d, d)), rhs_dilation=(d, d),
            dimension_numbers=("NHWC", "HWIO", "NHWC"),
            precision=jax.lax.Precision.HIGHEST,
            preferred_element_type=jnp.float32)
        y = (y + p["b"]) * p["scale"] + p["shift"]
        outs.append(jnp.maximum(y, 0.0))
    pp = params["pool"]
    m = jnp.mean(x.astype(jnp.float32), axis=(1, 2))               # (N, Cin)
    y = jnp.dot(m.astype(compute_dtype), pp["w"].astype(compute_dtype),
                precision=jax.lax.Precision.HIGHEST,
                preferred_element_type=jnp.float32)                # (N, Cout)
    y = jnp.maximum(y * pp["scale"] + pp["shift"], 0.0)
    n, h, w = x.shape[0], x.shape[1], x.shape[2]
    outs.append(jnp.broadcast_to(y[:, None, None, :], (n, h, w, y.shape[-1])))
    return jnp.concatenate(outs, axis=-1)


if __name__ == "__main__":
    key = jax.random.PRNGKey(0)
    k_x, k_p = jax.random.split(key)

    # Small demo shapes; Cin=128 makes the fused output channel dim 4*(Cin//4)=128,
    # i.e. exactly lane-dense.
    N, cin, H, W = 2, 128, 16, 16
    x = jax.random.normal(k_x, (N, H, W, cin), jnp.float32)        # NHWC at the boundary
    params = make_params(k_p, cin)

    out = jax.block_until_ready(jax.jit(fused_pyramid_block)(x, params))
    ref = jax.block_until_ready(jax.jit(pyramid_reference)(x, params))

    assert out.shape == (N, H, W, cin), out.shape
    max_err = float(jnp.max(jnp.abs(out - ref)))
    assert jnp.allclose(out, ref, rtol=5e-3, atol=5e-3), max_err
    print("KERNEL_OK")
</pallas_src>

<mosaic_0001>
module attributes {stable_mosaic.version = 11 : i64} {
  func.func @_fused_pyramid_kernel(%arg0: i32, %arg1: i32, %arg2: memref<1x22x22x128xbf16, #tpu.memory_space<vmem>>, %arg3: memref<3x1152x32xbf16, #tpu.memory_space<vmem>>, %arg4: memref<128x32xbf16, #tpu.memory_space<vmem>>, %arg5: memref<1x128xf32, #tpu.memory_space<vmem>>, %arg6: memref<1x128xf32, #tpu.memory_space<vmem>>, %arg7: memref<1x8x16x128xf32, #tpu.memory_space<vmem>>) attributes {dimension_semantics = [#tpu.dimension_semantics<parallel>, #tpu.dimension_semantics<arbitrary>], iteration_bounds = array<i64: 2, 2>, scalar_prefetch = 0 : i64, scratch_operands = 0 : i64, tpu.core_type = #tpu.core_type<tc>, window_params = [{transform_indices = @transform_0, window_bounds = array<i64: 1, 22, 22, 128>}, {pipeline_mode = #tpu.pipeline_mode<synchronous>, transform_indices = @transform_1, window_bounds = array<i64: 3, 1152, 32>}, {pipeline_mode = #tpu.pipeline_mode<synchronous>, transform_indices = @transform_2, window_bounds = array<i64: 128, 32>}, {pipeline_mode = #tpu.pipeline_mode<synchronous>, transform_indices = @transform_3, window_bounds = array<i64: 1, 128>}, {pipeline_mode = #tpu.pipeline_mode<synchronous>, transform_indices = @transform_4, window_bounds = array<i64: 1, 128>}, {transform_indices = @transform_5, window_bounds = array<i64: 1, 8, 16, 128>}]} {
    %c8_i32 = arith.constant 8 : i32
    %0 = arith.muli %arg1, %c8_i32 : i32
    %1 = tpu.assume_multiple %0, 8 : i32
    %c2_i32 = arith.constant 2 : i32
    %2 = arith.addi %1, %c2_i32 : i32
    %c0_i32 = arith.constant 0 : i32
    %3 = arith.addi %2, %c0_i32 : i32
    %c0 = arith.constant 0 : index
    %4 = arith.index_cast %3 : i32 to index
    %c2 = arith.constant 2 : index
    %c0_0 = arith.constant 0 : index
    %5 = vector.load %arg2[%c0, %4, %c2, %c0_0] : memref<1x22x22x128xbf16, #tpu.memory_space<vmem>>, vector<1x8x16x128xbf16>
    %6 = vector.shape_cast %5 : vector<1x8x16x128xbf16> to vector<8x16x128xbf16>
    %7 = vector.shape_cast %6 : vector<8x16x128xbf16> to vector<128x128xbf16>
    %c0_1 = arith.constant 0 : index
    %8 = arith.index_cast %3 : i32 to index
    %c3 = arith.constant 3 : index
    %c0_2 = arith.constant 0 : index
    %9 = vector.load %arg2[%c0_1, %8, %c3, %c0_2] : memref<1x22x22x128xbf16, #tpu.memory_space<vmem>>, vector<1x8x16x128xbf16>
    %10 = vector.shape_cast %9 : vector<1x8x16x128xbf16> to vector<8x16x128xbf16>
    %11 = vector.shape_cast %10 : vector<8x16x128xbf16> to vector<128x128xbf16>
    %c0_3 = arith.constant 0 : index
    %12 = arith.index_cast %3 : i32 to index
    %c4 = arith.constant 4 : index
    %c0_4 = arith.constant 0 : index
    %13 = vector.load %arg2[%c0_3, %12, %c4, %c0_4] : memref<1x22x22x128xbf16, #tpu.memory_space<vmem>>, vector<1x8x16x128xbf16>
    %14 = vector.shape_cast %13 : vector<1x8x16x128xbf16> to vector<8x16x128xbf16>
    %15 = vector.shape_cast %14 : vector<8x16x128xbf16> to vector<128x128xbf16>
    %c2_i32_5 = arith.constant 2 : i32
    %16 = arith.addi %1, %c2_i32_5 : i32
    %c1_i32 = arith.constant 1 : i32
    %17 = arith.addi %16, %c1_i32 : i32
    %c0_6 = arith.constant 0 : index
    %18 = arith.index_cast %17 : i32 to index
    %c2_7 = arith.constant 2 : index
    %c0_8 = arith.constant 0 : index
    %19 = vector.load %arg2[%c0_6, %18, %c2_7, %c0_8] : memref<1x22x22x128xbf16, #tpu.memory_space<vmem>>, vector<1x8x16x128xbf16>
    %20 = vector.shape_cast %19 : vector<1x8x16x128xbf16> to vector<8x16x128xbf16>
    %21 = vector.shape_cast %20 : vector<8x16x128xbf16> to vector<128x128xbf16>
    %c0_9 = arith.constant 0 : index
    %22 = arith.index_cast %17 : i32 to index
    %c3_10 = arith.constant 3 : index
    %c0_11 = arith.constant 0 : index
    %23 = vector.load %arg2[%c0_9, %22, %c3_10, %c0_11] : memref<1x22x22x128xbf16, #tpu.memory_space<vmem>>, vector<1x8x16x128xbf16>
    %24 = vector.shape_cast %23 : vector<1x8x16x128xbf16> to vector<8x16x128xbf16>
    %25 = vector.shape_cast %24 : vector<8x16x128xbf16> to vector<128x128xbf16>
    %c0_12 = arith.constant 0 : index
    %26 = arith.index_cast %17 : i32 to index
    %c4_13 = arith.constant 4 : index
    %c0_14 = arith.constant 0 : index
    %27 = vector.load %arg2[%c0_12, %26, %c4_13, %c0_14] : memref<1x22x22x128xbf16, #tpu.memory_space<vmem>>, vector<1x8x16x128xbf16>
    %28 = vector.shape_cast %27 : vector<1x8x16x128xbf16> to vector<8x16x128xbf16>
    %29 = vector.shape_cast %28 : vector<8x16x128xbf16> to vector<128x128xbf16>
    %c2_i32_15 = arith.constant 2 : i32
    %30 = arith.addi %1, %c2_i32_15 : i32
    %c2_i32_16 = arith.constant 2 : i32
    %31 = arith.addi %30, %c2_i32_16 : i32
    %c0_17 = arith.constant 0 : index
    %32 = arith.index_cast %31 : i32 to index
    %c2_18 = arith.constant 2 : index
    %c0_19 = arith.constant 0 : index
    %33 = vector.load %arg2[%c0_17, %32, %c2_18, %c0_19] : memref<1x22x22x128xbf16, #tpu.memory_space<vmem>>, vector<1x8x16x128xbf16>
    %34 = vector.shape_cast %33 : vector<1x8x16x128xbf16> to vector<8x16x128xbf16>
    %35 = vector.shape_cast %34 : vector<8x16x128xbf16> to vector<128x128xbf16>
    %c0_20 = arith.constant 0 : index
    %36 = arith.index_cast %31 : i32 to index
    %c3_21 = arith.constant 3 : index
    %c0_22 = arith.constant 0 : index
    %37 = vector.load %arg2[%c0_20, %36, %c3_21, %c0_22] : memref<1x22x22x128xbf16, #tpu.memory_space<vmem>>, vector<1x8x16x128xbf16>
    %38 = vector.shape_cast %37 : vector<1x8x16x128xbf16> to vector<8x16x128xbf16>
    %39 = vector.shape_cast %38 : vector<8x16x128xbf16> to vector<128x128xbf16>
    %c0_23 = arith.constant 0 : index
    %40 = arith.index_cast %31 : i32 to index
    %c4_24 = arith.constant 4 : index
    %c0_25 = arith.constant 0 : index
    %41 = vector.load %arg2[%c0_23, %40, %c4_24, %c0_25] : memref<1x22x22x128xbf16, #tpu.memory_space<vmem>>, vector<1x8x16x128xbf16>
    %42 = vector.shape_cast %41 : vector<1x8x16x128xbf16> to vector<8x16x128xbf16>
    %43 = vector.shape_cast %42 : vector<8x16x128xbf16> to vector<128x128xbf16>
    %44 = tpu.concatenate %7, %11, %15, %21, %25, %29, %35, %39, %43 in 1 : vector<128x128xbf16>, vector<128x128xbf16>, vector<128x128xbf16>, vector<128x128xbf16>, vector<128x128xbf16>, vector<128x128xbf16>, vector<128x128xbf16>, vector<128x128xbf16>, vector<128x128xbf16> -> vector<128x1152xbf16>
    %c0_26 = arith.constant 0 : index
    %c0_27 = arith.constant 0 : index
    %c0_28 = arith.constant 0 : index
    %45 = vector.load %arg3[%c0_26, %c0_27, %c0_28] : memref<3x1152x32xbf16, #tpu.memory_space<vmem>>, vector<1x1152x32xbf16>
    %46 = vector.shape_cast %45 : vector<1x1152x32xbf16> to vector<1152x32xbf16>
    %cst = arith.constant dense<0.000000e+00> : vector<128x32xf32>
    %47 = tpu.matmul %44, %46, %cst {dimension_numbers = #tpu.dot_dimension_numbers<[1], [0], [0], [1], [0, 0, 1, 1], [], []>} : vector<128x1152xbf16>, vector<1152x32xbf16>, vector<128x32xf32> -> vector<128x32xf32>
    %c1_i32_29 = arith.constant 1 : i32
    %48 = arith.addi %1, %c1_i32_29 : i32
    %c0_i32_30 = arith.constant 0 : i32
    %49 = arith.addi %48, %c0_i32_30 : i32
    %c0_31 = arith.constant 0 : index
    %50 = arith.index_cast %49 : i32 to index
    %c1 = arith.constant 1 : index
    %c0_32 = arith.constant 0 : index
    %51 = vector.load %arg2[%c0_31, %50, %c1, %c0_32] : memref<1x22x22x128xbf16, #tpu.memory_space<vmem>>, vector<1x8x16x128xbf16>
    %52 = vector.shape_cast %51 : vector<1x8x16x128xbf16> to vector<8x16x128xbf16>
    %53 = vector.shape_cast %52 : vector<8x16x128xbf16> to vector<128x128xbf16>
    %c0_33 = arith.constant 0 : index
    %54 = arith.index_cast %49 : i32 to index
    %c3_34 = arith.constant 3 : index
    %c0_35 = arith.constant 0 : index
    %55 = vector.load %arg2[%c0_33, %54, %c3_34, %c0_35] : memref<1x22x22x128xbf16, #tpu.memory_space<vmem>>, vector<1x8x16x128xbf16>
    %56 = vector.shape_cast %55 : vector<1x8x16x128xbf16> to vector<8x16x128xbf16>
    %57 = vector.shape_cast %56 : vector<8x16x128xbf16> to vector<128x128xbf16>
    %c0_36 = arith.constant 0 : index
    %58 = arith.index_cast %49 : i32 to index
    %c5 = arith.constant 5 : index
    %c0_37 = arith.constant 0 : index
    %59 = vector.load %arg2[%c0_36, %58, %c5, %c0_37] : memref<1x22x22x128xbf16, #tpu.memory_space<vmem>>, vector<1x8x16x128xbf16>
    %60 = vector.shape_cast %59 : vector<1x8x16x128xbf16> to vector<8x16x128xbf16>
    %61 = vector.shape_cast %60 : vector<8x16x128xbf16> to vector<128x128xbf16>
    %c1_i32_38 = arith.constant 1 : i32
    %62 = arith.addi %1, %c1_i32_38 : i32
    %c2_i32_39 = arith.constant 2 : i32
    %63 = arith.addi %62, %c2_i32_39 : i32
    %c0_40 = arith.constant 0 : index
    %64 = arith.index_cast %63 : i32 to index
    %c1_41 = arith.constant 1 : index
    %c0_42 = arith.constant 0 : index
    %65 = vector.load %arg2[%c0_40, %64, %c1_41, %c0_42] : memref<1x22x22x128xbf16, #tpu.memory_space<vmem>>, vector<1x8x16x128xbf16>
    %66 = vector.shape_cast %65 : vector<1x8x16x128xbf16> to vector<8x16x128xbf16>
    %67 = vector.shape_cast %66 : vector<8x16x128xbf16> to vector<128x128xbf16>
    %c0_43 = arith.constant 0 : index
    %68 = arith.index_cast %63 : i32 to index
    %c3_44 = arith.constant 3 : index
    %c0_45 = arith.constant 0 : index
    %69 = vector.load %arg2[%c0_43, %68, %c3_44, %c0_45] : memref<1x22x22x128xbf16, #tpu.memory_space<vmem>>, vector<1x8x16x128xbf16>
    %70 = vector.shape_cast %69 : vector<1x8x16x128xbf16> to vector<8x16x128xbf16>
    %71 = vector.shape_cast %70 : vector<8x16x128xbf16> to vector<128x128xbf16>
    %c0_46 = arith.constant 0 : index
    %72 = arith.index_cast %63 : i32 to index
    %c5_47 = arith.constant 5 : index
    %c0_48 = arith.constant 0 : index
    %73 = vector.load %arg2[%c0_46, %72, %c5_47, %c0_48] : memref<1x22x22x128xbf16, #tpu.memory_space<vmem>>, vector<1x8x16x128xbf16>
    %74 = vector.shape_cast %73 : vector<1x8x16x128xbf16> to vector<8x16x128xbf16>
    %75 = vector.shape_cast %74 : vector<8x16x128xbf16> to vector<128x128xbf16>
    %c1_i32_49 = arith.constant 1 : i32
    %76 = arith.addi %1, %c1_i32_49 : i32
    %c4_i32 = arith.constant 4 : i32
    %77 = arith.addi %76, %c4_i32 : i32
    %c0_50 = arith.constant 0 : index
    %78 = arith.index_cast %77 : i32 to index
    %c1_51 = arith.constant 1 : index
    %c0_52 = arith.constant 0 : index
    %79 = vector.load %arg2[%c0_50, %78, %c1_51, %c0_52] : memref<1x22x22x128xbf16, #tpu.memory_space<vmem>>, vector<1x8x16x128xbf16>
    %80 = vector.shape_cast %79 : vector<1x8x16x128xbf16> to vector<8x16x128xbf16>
    %81 = vector.shape_cast %80 : vector<8x16x128xbf16> to vector<128x128xbf16>
    %c0_53 = arith.constant 0 : index
    %82 = arith.index_cast %77 : i32 to index
    %c3_54 = arith.constant 3 : index
    %c0_55 = arith.constant 0 : index
    %83 = vector.load %arg2[%c0_53, %82, %c3_54, %c0_55] : memref<1x22x22x128xbf16, #tpu.memory_space<vmem>>, vector<1x8x16x128xbf16>
    %84 = vector.shape_cast %83 : vector<1x8x16x128xbf16> to vector<8x16x128xbf16>
    %85 = vector.shape_cast %84 : vector<8x16x128xbf16> to vector<128x128xbf16>
    %c0_56 = arith.constant 0 : index
    %86 = arith.index_cast %77 : i32 to index
    %c5_57 = arith.constant 5 : index
    %c0_58 = arith.constant 0 : index
    %87 = vector.load %arg2[%c0_56, %86, %c5_57, %c0_58] : memref<1x22x22x128xbf16, #tpu.memory_space<vmem>>, vector<1x8x16x128xbf16>
    %88 = vector.shape_cast %87 : vector<1x8x16x128xbf16> to vector<8x16x128xbf16>
    %89 = vector.shape_cast %88 : vector<8x16x128xbf16> to vector<128x128xbf16>
    %90 = tpu.concatenate %53, %57, %61, %67, %71, %75, %81, %85, %89 in 1 : vector<128x128xbf16>, vector<128x128xbf16>, vector<128x128xbf16>, vector<128x128xbf16>, vector<128x128xbf16>, vector<128x128xbf16>, vector<128x128xbf16>, vector<128x128xbf16>, vector<128x128xbf16> -> vector<128x1152xbf16>
    %c1_59 = arith.constant 1 : index
    %c0_60 = arith.constant 0 : index
    %c0_61 = arith.constant 0 : index
    %91 = vector.load %arg3[%c1_59, %c0_60, %c0_61] : memref<3x1152x32xbf16, #tpu.memory_space<vmem>>, vector<1x1152x32xbf16>
    %92 = vector.shape_cast %91 : vector<1x1152x32xbf16> to vector<1152x32xbf16>
    %cst_62 = arith.constant dense<0.000000e+00> : vector<128x32xf32>
    %93 = tpu.matmul %90, %92, %cst_62 {dimension_numbers = #tpu.dot_dimension_numbers<[1], [0], [0], [1], [0, 0, 1, 1], [], []>} : vector<128x1152xbf16>, vector<1152x32xbf16>, vector<128x32xf32> -> vector<128x32xf32>
    %c0_i32_63 = arith.constant 0 : i32
    %94 = arith.addi %1, %c0_i32_63 : i32
    %c0_i32_64 = arith.constant 0 : i32
    %95 = arith.addi %94, %c0_i32_64 : i32
    %c0_65 = arith.constant 0 : index
    %96 = arith.index_cast %95 : i32 to index
    %c0_66 = arith.constant 0 : index
    %c0_67 = arith.constant 0 : index
    %97 = vector.load %arg2[%c0_65, %96, %c0_66, %c0_67] : memref<1x22x22x128xbf16, #tpu.memory_space<vmem>>, vector<1x8x16x128xbf16>
    %98 = vector.shape_cast %97 : vector<1x8x16x128xbf16> to vector<8x16x128xbf16>
    %99 = vector.shape_cast %98 : vector<8x16x128xbf16> to vector<128x128xbf16>
    %c0_68 = arith.constant 0 : index
    %100 = arith.index_cast %95 : i32 to index
    %c3_69 = arith.constant 3 : index
    %c0_70 = arith.constant 0 : index
    %101 = vector.load %arg2[%c0_68, %100, %c3_69, %c0_70] : memref<1x22x22x128xbf16, #tpu.memory_space<vmem>>, vector<1x8x16x128xbf16>
    %102 = vector.shape_cast %101 : vector<1x8x16x128xbf16> to vector<8x16x128xbf16>
    %103 = vector.shape_cast %102 : vector<8x16x128xbf16> to vector<128x128xbf16>
    %c0_71 = arith.constant 0 : index
    %104 = arith.index_cast %95 : i32 to index
    %c6 = arith.constant 6 : index
    %c0_72 = arith.constant 0 : index
    %105 = vector.load %arg2[%c0_71, %104, %c6, %c0_72] : memref<1x22x22x128xbf16, #tpu.memory_space<vmem>>, vector<1x8x16x128xbf16>
    %106 = vector.shape_cast %105 : vector<1x8x16x128xbf16> to vector<8x16x128xbf16>
    %107 = vector.shape_cast %106 : vector<8x16x128xbf16> to vector<128x128xbf16>
    %c0_i32_73 = arith.constant 0 : i32
    %108 = arith.addi %1, %c0_i32_73 : i32
    %c3_i32 = arith.constant 3 : i32
    %109 = arith.addi %108, %c3_i32 : i32
    %c0_74 = arith.constant 0 : index
    %110 = arith.index_cast %109 : i32 to index
    %c0_75 = arith.constant 0 : index
    %c0_76 = arith.constant 0 : index
    %111 = vector.load %arg2[%c0_74, %110, %c0_75, %c0_76] : memref<1x22x22x128xbf16, #tpu.memory_space<vmem>>, vector<1x8x16x128xbf16>
    %112 = vector.shape_cast %111 : vector<1x8x16x128xbf16> to vector<8x16x128xbf16>
    %113 = vector.shape_cast %112 : vector<8x16x128xbf16> to vector<128x128xbf16>
    %c0_77 = arith.constant 0 : index
    %114 = arith.index_cast %109 : i32 to index
    %c3_78 = arith.constant 3 : index
    %c0_79 = arith.constant 0 : index
    %115 = vector.load %arg2[%c0_77, %114, %c3_78, %c0_79] : memref<1x22x22x128xbf16, #tpu.memory_space<vmem>>, vector<1x8x16x128xbf16>
    %116 = vector.shape_cast %115 : vector<1x8x16x128xbf16> to vector<8x16x128xbf16>
    %117 = vector.shape_cast %116 : vector<8x16x128xbf16> to vector<128x128xbf16>
    %c0_80 = arith.constant 0 : index
    %118 = arith.index_cast %109 : i32 to index
    %c6_81 = arith.constant 6 : index
    %c0_82 = arith.constant 0 : index
    %119 = vector.load %arg2[%c0_80, %118, %c6_81, %c0_82] : memref<1x22x22x128xbf16, #tpu.memory_space<vmem>>, vector<1x8x16x128xbf16>
    %120 = vector.shape_cast %119 : vector<1x8x16x128xbf16> to vector<8x16x128xbf16>
    %121 = vector.shape_cast %120 : vector<8x16x128xbf16> to vector<128x128xbf16>
    %c0_i32_83 = arith.constant 0 : i32
    %122 = arith.addi %1, %c0_i32_83 : i32
    %c6_i32 = arith.constant 6 : i32
    %123 = arith.addi %122, %c6_i32 : i32
    %c0_84 = arith.constant 0 : index
    %124 = arith.index_cast %123 : i32 to index
    %c0_85 = arith.constant 0 : index
    %c0_86 = arith.constant 0 : index
    %125 = vector.load %arg2[%c0_84, %124, %c0_85, %c0_86] : memref<1x22x22x128xbf16, #tpu.memory_space<vmem>>, vector<1x8x16x128xbf16>
    %126 = vector.shape_cast %125 : vector<1x8x16x128xbf16> to vector<8x16x128xbf16>
    %127 = vector.shape_cast %126 : vector<8x16x128xbf16> to vector<128x128xbf16>
    %c0_87 = arith.constant 0 : index
    %128 = arith.index_cast %123 : i32 to index
    %c3_88 = arith.constant 3 : index
    %c0_89 = arith.constant 0 : index
    %129 = vector.load %arg2[%c0_87, %128, %c3_88, %c0_89] : memref<1x22x22x128xbf16, #tpu.memory_space<vmem>>, vector<1x8x16x128xbf16>
    %130 = vector.shape_cast %129 : vector<1x8x16x128xbf16> to vector<8x16x128xbf16>
    %131 = vector.shape_cast %130 : vector<8x16x128xbf16> to vector<128x128xbf16>
    %c0_90 = arith.constant 0 : index
    %132 = arith.index_cast %123 : i32 to index
    %c6_91 = arith.constant 6 : index
    %c0_92 = arith.constant 0 : index
    %133 = vector.load %arg2[%c0_90, %132, %c6_91, %c0_92] : memref<1x22x22x128xbf16, #tpu.memory_space<vmem>>, vector<1x8x16x128xbf16>
    %134 = vector.shape_cast %133 : vector<1x8x16x128xbf16> to vector<8x16x128xbf16>
    %135 = vector.shape_cast %134 : vector<8x16x128xbf16> to vector<128x128xbf16>
    %136 = tpu.concatenate %99, %103, %107, %113, %117, %121, %127, %131, %135 in 1 : vector<128x128xbf16>, vector<128x128xbf16>, vector<128x128xbf16>, vector<128x128xbf16>, vector<128x128xbf16>, vector<128x128xbf16>, vector<128x128xbf16>, vector<128x128xbf16>, vector<128x128xbf16> -> vector<128x1152xbf16>
    %c2_93 = arith.constant 2 : index
    %c0_94 = arith.constant 0 : index
    %c0_95 = arith.constant 0 : index
    %137 = vector.load %arg3[%c2_93, %c0_94, %c0_95] : memref<3x1152x32xbf16, #tpu.memory_space<vmem>>, vector<1x1152x32xbf16>
    %138 = vector.shape_cast %137 : vector<1x1152x32xbf16> to vector<1152x32xbf16>
    %cst_96 = arith.constant dense<0.000000e+00> : vector<128x32xf32>
    %139 = tpu.matmul %136, %138, %cst_96 {dimension_numbers = #tpu.dot_dimension_numbers<[1], [0], [0], [1], [0, 0, 1, 1], [], []>} : vector<128x1152xbf16>, vector<1152x32xbf16>, vector<128x32xf32> -> vector<128x32xf32>
    %c0_97 = arith.constant 0 : index
    %c0_98 = arith.constant 0 : index
    %c0_99 = arith.constant 0 : index
    %c0_100 = arith.constant 0 : index
    %140 = vector.load %arg2[%c0_97, %c0_98, %c0_99, %c0_100] : memref<1x22x22x128xbf16, #tpu.memory_space<vmem>>, vector<1x22x22x128xbf16>
    %141 = vector.shape_cast %140 : vector<1x22x22x128xbf16> to vector<22x22x128xbf16>
    %142 = arith.extf %141 : vector<22x22x128xbf16> to vector<22x22x128xf32>
    %cst_101 = arith.constant dense<0.000000e+00> : vector<128xf32>
    %143 = vector.multi_reduction <add>, %142, %cst_101 [0, 1] : vector<22x22x128xf32> to vector<128xf32>
    %cst_102 = arith.constant 3.906250e-03 : f32
    %144 = vector.broadcast %cst_102 : f32 to vector<128xf32>
    %145 = arith.mulf %143, %144 : vector<128xf32>
    %146 = vector.shape_cast %145 : vector<128xf32> to vector<1x128xf32>
    %147 = arith.truncf %146 : vector<1x128xf32> to vector<1x128xbf16>
    %c0_103 = arith.constant 0 : index
    %c0_104 = arith.constant 0 : index
    %148 = vector.load %arg4[%c0_103, %c0_104] : memref<128x32xbf16, #tpu.memory_space<vmem>>, vector<128x32xbf16>
    %cst_105 = arith.constant dense<0.000000e+00> : vector<1x32xf32>
    %149 = tpu.matmul %147, %148, %cst_105 {dimension_numbers = #tpu.dot_dimension_numbers<[1], [0], [0], [1], [0, 0, 1, 1], [], []>} : vector<1x128xbf16>, vector<128x32xbf16>, vector<1x32xf32> -> vector<1x32xf32>
    %150 = vector.shape_cast %149 : vector<1x32xf32> to vector<1x32xf32>
    %151 = vector.broadcast %150 : vector<1x32xf32> to vector<128x32xf32>
    %152 = tpu.concatenate %47, %93, %139, %151 in 1 : vector<128x32xf32>, vector<128x32xf32>, vector<128x32xf32>, vector<128x32xf32> -> vector<128x128xf32>
    %c0_106 = arith.constant 0 : index
    %c0_107 = arith.constant 0 : index
    %153 = vector.load %arg5[%c0_106, %c0_107] : memref<1x128xf32, #tpu.memory_space<vmem>>, vector<1x128xf32>
    %154 = vector.shape_cast %153 : vector<1x128xf32> to vector<128xf32>
    %155 = vector.shape_cast %154 : vector<128xf32> to vector<1x128xf32>
    %156 = vector.broadcast %155 : vector<1x128xf32> to vector<128x128xf32>
    %157 = arith.mulf %152, %156 : vector<128x128xf32>
    %c0_108 = arith.constant 0 : index
    %c0_109 = arith.constant 0 : index
    %158 = vector.load %arg6[%c0_108, %c0_109] : memref<1x128xf32, #tpu.memory_space<vmem>>, vector<1x128xf32>
    %159 = vector.shape_cast %158 : vector<1x128xf32> to vector<128xf32>
    %160 = vector.shape_cast %159 : vector<128xf32> to vector<1x128xf32>
    %161 = vector.broadcast %160 : vector<1x128xf32> to vector<128x128xf32>
    %162 = arith.addf %157, %161 : vector<128x128xf32>
    %cst_110 = arith.constant 0.000000e+00 : f32
    %163 = vector.broadcast %cst_110 : f32 to vector<128x128xf32>
    %164 = arith.maximumf %162, %163 : vector<128x128xf32>
    %165 = vector.shape_cast %164 : vector<128x128xf32> to vector<8x16x128xf32>
    %c0_111 = arith.constant 0 : index
    %c0_112 = arith.constant 0 : index
    %c0_113 = arith.constant 0 : index
    %c0_114 = arith.constant 0 : index
    %166 = vector.load %arg7[%c0_111, %c0_112, %c0_113, %c0_114] : memref<1x8x16x128xf32, #tpu.memory_space<vmem>>, vector<1x8x16x128xf32>
    %167 = vector.shape_cast %166 : vector<1x8x16x128xf32> to vector<8x16x128xf32>
    %168 = vector.shape_cast %165 : vector<8x16x128xf32> to vector<1x8x16x128xf32>
    tpu.vector_store %arg7[%c0_111, %c0_112, %c0_113, %c0_114], %168 {strides = array<i32>} : memref<1x8x16x128xf32, #tpu.memory_space<vmem>>, vector<1x8x16x128xf32>,
    return
  }
  func.func @transform_0(%arg0: i32, %arg1: i32) -> (i32, i32, i32, i32) {
    %c0_i32 = arith.constant 0 : i32
    %c0_i32_0 = arith.constant 0 : i32
    %c0_i32_1 = arith.constant 0 : i32
    %c0_i32_2 = arith.constant 0 : i32
    return %arg0, %c0_i32, %c0_i32_0, %c0_i32_1 : i32, i32, i32, i32
  }
  func.func @transform_1(%arg0: i32, %arg1: i32) -> (i32, i32, i32) {
    %c0_i32 = arith.constant 0 : i32
    %c0_i32_0 = arith.constant 0 : i32
    %c0_i32_1 = arith.constant 0 : i32
    %c0_i32_2 = arith.constant 0 : i32
    return %c0_i32, %c0_i32_0, %c0_i32_1 : i32, i32, i32
  }
  func.func @transform_2(%arg0: i32, %arg1: i32) -> (i32, i32) {
    %c0_i32 = arith.constant 0 : i32
    %c0_i32_0 = arith.constant 0 : i32
    %c0_i32_1 = arith.constant 0 : i32
    return %c0_i32, %c0_i32_0 : i32, i32
  }
  func.func @transform_3(%arg0: i32, %arg1: i32) -> (i32, i32) {
    %c0_i32 = arith.constant 0 : i32
    %c0_i32_0 = arith.constant 0 : i32
    %c0_i32_1 = arith.constant 0 : i32
    return %c0_i32, %c0_i32_0 : i32, i32
  }
  func.func @transform_4(%arg0: i32, %arg1: i32) -> (i32, i32) {
    %c0_i32 = arith.constant 0 : i32
    %c0_i32_0 = arith.constant 0 : i32
    %c0_i32_1 = arith.constant 0 : i32
    return %c0_i32, %c0_i32_0 : i32, i32
  }
  func.func @transform_5(%arg0: i32, %arg1: i32) -> (i32, i32, i32, i32) {
    %c0_i32 = arith.constant 0 : i32
    %c0_i32_0 = arith.constant 0 : i32
    %c0_i32_1 = arith.constant 0 : i32
    return %arg0, %arg1, %c0_i32, %c0_i32_0 : i32, i32, i32, i32
  }
}

</mosaic_0001>

<bundles_post_ra>
// kernel: fused_pyramid_block.1
= control target key start
LH: loop header
LB: loop body
LE: loop exit
PB: predicated region body
PF: predicated region fallthrough
CT: control target
= control target key end

     0   :  { %10 = vsyncpa [#allocation3], 0  ;;  %s15309_s0 = inlined_call_operand.vmem [shape: bf16[2,22,22,128], index: 0, kind: input, shape index: {}]   ;;  %s15310_s1 = inlined_call_operand.vmem [shape: bf16[3,1152,32], index: 1, kind: input, shape index: {}]   ;;  %s15311_s2 = inlined_call_operand.vmem [shape: bf16[128,32], index: 2, kind: input, shape index: {}]   ;;  %s15312_s3 = inlined_call_operand.vmem [shape: f32[1,128], index: 3, kind: input, shape index: {}]   ;;  %s15313_s4 = inlined_call_operand.vmem [shape: f32[1,128], index: 4, kind: input, shape index: {}]   ;;  %s15314_s5 = inlined_call_operand.hbm [shape: f32[2,16,16,128], index: 5, kind: output, shape index: {}]  }
   0x1   :  { %12 = vsyncpa [#allocation3 + $0x1], 0  ;;  %s11295_s18 = smov 0   ;;  %s11297_s19 = smov 0  }
   0x2   :  { %s11299_s20 = smov 0   ;;  %s11301_s21 = smov 0  }
   0x3   :  { %s11303_s22 = smov 0   ;;  %s11305_s23 = smov 0  }
   0x4   :  { %s11307_s24 = smov 0   ;;  %s11309_s25 = smov 0  }
   0x5 LB: > { %s8650_s26 = sadd.s32 4294967295, %s11255_s25   ;;  %s8651_s27 = sadd.s32 4294967294, %s11255_s25   ;;  %s11255_s25 = sphi %s11309_s25, %s18_s25   ;;  %s11251_s24 = sphi %s11307_s24, %s15802_s24   ;;  %s11247_s23 = sphi %s11305_s23, %s15801_s23   ;;  %s11243_s22 = sphi %s11303_s22, %s15800_s22   ;;  %s11239_s21 = sphi %s11301_s21, %s15799_s21   ;;  %s11235_s20 = sphi %s11299_s20, %s15798_s20   ;;  %s11231_s19 = sphi %s11297_s19, %s15797_s19   ;;  %s11227_s18 = sphi %s11295_s18, %s15796_s18  }
   0x6   : > { %s27_s28 = sadd.s32 1, %s11247_s23  ;;  %s30_s29 = sadd.s32 1, %s11251_s24 }
   0x7   : > { %p28_p0 = scmp.ge.s32.totalorder %s27_s28, 2  ;;  %p159_p1 = scmp.ne.s32.totalorder %s11235_s20, %s11231_s19 }
   0x8   : > { %p160_p2 = scmp.eq.s32.totalorder %s8650_s26, 3  ;;  %p165_p5 = scmp.ne.s32.totalorder %s11231_s19, %s11227_s18 }
   0x9   : > { %s15804_s28 = smov (%p28_p0, %s27_s28), 0  ;;  %s15806_s29 = smov (!%p28_p0, %s30_s29), %s11251_s24 }
   0xa   : > { %s145_s30 = ssub.s32 %s11247_s23, %s15804_s28  ;;  %p11346_p3 = por %p160_p2, %p159_p1 }
   0xb   : > { %p32_p4 = scmp.ge.s32.totalorder %s15806_s29, 2  ;;  %p166_p6 = scmp.eq.s32.totalorder %s8651_s27, 3 }
   0xc   : > { %p8654_p7 = scmp.ge.s32.totalorder %s11255_s25, 1  ;;  %p204_p9 = scmp.lt.s32.totalorder %s11255_s25, 5 }
   0xd   : > { %s15808_s29 = smov (%p32_p4, %s15806_s29), 0  ;;  %p11355_p8 = por %p166_p6, %p165_p5 }
   0xe   : > { %s144_s8 = ssub.s32 %s11251_s24, %s15808_s29  ;;  %s149_s9 = sadd.s32 1, %s11235_s20 }
   0xf   : > { %s146_s10 = sor.u32 %s145_s30, %s144_s8  ;;  %p205_p10 = pnand %p8654_p7, %p204_p9 }
  0x10   : > { %p147_p11 = scmp.eq.s32.totalorder %s146_s10, 0 }
  0x11   : > { %208 = sbr.rel (%p205_p10) target bundleno = 1231 (0x4cf), region = 40 }
  0x12   : > { %s11364_s11 = scalar_select %p147_p11, %s11235_s20, %s149_s9  }
  0x18   : > { %v10861_v0 = vld [vmem:[%s15310_s1 + $0x40] sm:$0xff]   ;;  %v10865_v4 = vld [vmem:[%s15310_s1 + $0x48] sm:$0xff]   ;;  %v10869_v8 = vld [vmem:[%s15310_s1 + $0x50] sm:$0xff]   ;;  %p232_p12 = scmp.lt.s32.totalorder %s11243_s22, 1  ;;  %s8659_s27 = smul.u32 96, %s11239_s21  ;;  %vm292_vm0 = vcmask 1042432  }
  0x19   : > { %v10862_v1 = vld [vmem:[%s15310_s1 + $0xc0] sm:$0xff]   ;;  %9841 = vmatprep.subr.bf16.mxu0 %v10861_v0  ;;  %v10866_v5 = vld [vmem:[%s15310_s1 + $0xc8] sm:$0xff]   ;;  %v10870_v9 = vld [vmem:[%s15310_s1 + $0xd0] sm:$0xff]   ;;  %vm293_vm1 = vcmask 1046532   ;;  %vm610_vm2 = vcmask 1041408   ;;  %vm611_vm3 = vcmask 1045508  }
  0x1a   : > { %v10863_v2 = vld [vmem:[%s15310_s1] sm:$0xff]   ;;  %9905 = vmatprep.subr.bf16.mxu1 %v10862_v1  ;;  %v10867_v6 = vld [vmem:[%s15310_s1 + $0x8] sm:$0xff]   ;;  %v10871_v10 = vld [vmem:[%s15310_s1 + $0x10] sm:$0xff]   ;;  %s233_s14 = scalar_select %p232_p12, %s11243_s22, 1  ;;  %vm359_vm4 = vsmask.f32 2304 }
  0x1b   : > { %v10864_v3 = vld [vmem:[%s15310_s1 + $0x80] sm:$0xff]   ;;  %9842 = vmatpush3.bf16.msra.mxu0 %v10863_v2  ;;  %v10868_v7 = vld [vmem:[%s15310_s1 + $0x88] sm:$0xff]   ;;  %v10872_v11 = vld [vmem:[%s15310_s1 + $0x90] sm:$0xff]   ;;  %vm360_vm5 = vsmask.f32 6416  ;;  %vm6073_vm15 = vcmask 1040384  }
  0x1c   : > { %9906 = vmatpush3.bf16.msra.mxu1 %v10864_v3  ;;  %9843 = vmatprep.subr.bf16.mxu0 %v10865_v4  ;;  %v10873_v12 = vld [vmem:[%s15310_s1 + $0x58] sm:$0xff]   ;;  %v10877_v16 = vld [vmem:[%s15310_s1 + $0x60] sm:$0xff]   ;;  %v10881_v20 = vld [vmem:[%s15310_s1 + $0x68] sm:$0xff]   ;;  %s10782_s10 = smul.u32 264, %s233_s14  ;;  %vm2886_vm9 = vsmask.f32 3328 }
  0x1d   : > { %9907 = vmatprep.subr.bf16.mxu1 %v10866_v5  ;;  %v10874_v13 = vld [vmem:[%s15310_s1 + $0xd8] sm:$0xff]   ;;  %v10878_v17 = vld [vmem:[%s15310_s1 + $0xe0] sm:$0xff]   ;;  %v10882_v21 = vld [vmem:[%s15310_s1 + $0xe8] sm:$0xff]   ;;  %vm2887_vm10 = vsmask.f32 7440  ;;  %s11261_s26 = smov 96  }
  0x1e   : > { %v10875_v14 = vld [vmem:[%s15310_s1 + $0x18] sm:$0xff]   ;;  %v10879_v18 = vld [vmem:[%s15310_s1 + $0x20] sm:$0xff]   ;;  %v10883_v22 = vld [vmem:[%s15310_s1 + $0x28] sm:$0xff]   ;;  %s11453_s12 = scalar_lea.vmem %s15309_s0, %s10782_s10  ;;  %vm3297_vm12 = vsmask.f32 1280  ;;  %s229_s14 = sand.u32 1, %s11231_s19  }
  0x1f   : > { %9844 = vmatpush3.bf16.msra.mxu0 %v10867_v6  ;;  %v10876_v15 = vld [vmem:[%s15310_s1 + $0x98] sm:$0xff]   ;;  %v10880_v19 = vld [vmem:[%s15310_s1 + $0xa0] sm:$0xff]   ;;  %v10884_v23 = vld [vmem:[%s15310_s1 + $0xa8] sm:$0xff]   ;;  %s11465_s8 = scalar_lea.vmem %s11453_s12, %s8659_s27  ;;  %vm3298_vm13 = vsmask.f32 5392  ;;  %s15218_s9 = sshll.u32 %s229_s14, 7 }
  0x20   : > { %9908 = vmatpush3.bf16.msra.mxu1 %v10868_v7  ;;  %9845 = vmatprep.subr.bf16.mxu0 %v10869_v8  ;;  %v10885_v24 = vld [vmem:[%s15310_s1 + $0x70] sm:$0xff]   ;;  %v10889_v28 = vld [vmem:[%s15310_s1 + $0x78] sm:$0xff]   ;;  %v11480_v34 = vld [vmem:[%s11465_s8 + $0x20] sm:$0x3]  ;;  %s9786_s15 = sshll.u32 %s11239_s21, 4  ;;  %s9781_s16 = sshll.u32 %s11243_s22, 5 }
  0x21   : > { %9909 = vmatprep.subr.bf16.mxu1 %v10870_v9  ;;  %v10886_v25 = vld [vmem:[%s15310_s1 + $0xf0] sm:$0xff]   ;;  %v10890_v29 = vld [vmem:[%s15310_s1 + $0xf8] sm:$0xff]   ;;  %v382_v39 = vshrl.u32 %v11480_v34, 16  ;;  %v385_v40 = vshll.u32 %v11480_v34, 16  ;;  %v8718_v41 = vld [vmem:[%s11465_s8 + $0x24] sm:$0xe]  ;;  %s15225_s17 = sadd.s32 %s9786_s15, %s9781_s16 }
  0x22   : > { %v10887_v26 = vld [vmem:[%s15310_s1 + $0x30] sm:$0xff]   ;;  %v10891_v30 = vld [vmem:[%s15310_s1 + $0x38] sm:$0xff]   ;;  %v11490_v44 = vld [vmem:[%s11465_s8 + $0x28] sm:$0xf]  ;;  %v8742_v52 = vrot.slane %v8718_v41, 9  ;;  %v786_v59 = vshrl.u32 %v8718_v41, 16 }
  0x23   : > { %9846 = vmatpush3.bf16.msra.mxu0 %v10871_v10  ;;  %v10888_v27 = vld [vmem:[%s15310_s1 + $0xb0] sm:$0xff]   ;;  %v10892_v31 = vld [vmem:[%s15310_s1 + $0xb8] sm:$0xff]   ;;  %v8720_v45 = vld [vmem:[%s11465_s8 + $0x2c] sm:$0x1]  ;;  %v384_v48 = vrot.slane %v382_v39, 5  ;;  %v387_v49 = vrot.slane %v385_v40, 6 }
  0x24   : > { %9910 = vmatpush3.bf16.msra.mxu1 %v10872_v11  ;;  %9847 = vmatprep.subr.bf16.mxu0 %v10873_v12  ;;  %v11474_v32 = vld [vmem:[%s11465_s8 + $0x18] sm:$0xe]  ;;  %v11477_v33 = vld [vmem:[%s11465_s8 + $0x1c] sm:$0xf]  ;;  %vm11495_vm6 = vmor %vm292_vm0, %vm293_vm1  ;;  %v723_v53 = vrot.slane %v11490_v44, 5  ;;  %v726_v54 = vrot.slane %v8720_v45, 5 }
  0x25   : > { %9911 = vmatprep.subr.bf16.mxu1 %v10874_v13  ;;  %v363_v35 = vshrl.u32 %v11474_v32, 16  ;;  %v366_v36 = vshll.u32 %v11474_v32, 16  ;;  %v372_v37 = vshrl.u32 %v11477_v33, 16  ;;  %v375_v38 = vshll.u32 %v11477_v33, 16  ;;  %v10893_v55 = vld [vmem:[%s15310_s1 + $0x140] sm:$0xff]   ;;  %vm11505_vm7 = vmor %vm359_vm4, %vm360_vm5  ;;  %s9782_s21 = sshll.u32 %s15225_s17, 7 }
  0x26   : > { %v388_v58 = vor.u32 %v387_v49, %v384_v48  ;;  %v789_v60 = vshll.u32 %v8718_v41, 16  ;;  %v8662_v61 = vld [vmem:[%s11465_s8 + $0x20] sm:$0x1]  ;;  %v8700_v62 = vld [vmem:[%s11465_s8 + $0x18] sm:$0xc]  ;;  %v724_v0 = vsel %vm11495_vm6, %v8742_v52, %v723_v53  ;;  %v725_v1 = vrot.slane %v723_v53, 4  ;;  %vm11537_vm8 = vmor %vm610_vm2, %vm611_vm3  ;;  %s15239_s30 = scalar_lea.hbm %s15314_s5, %s9782_s21 }
  0x27   : > { %9848 = vmatpush3.bf16.msra.mxu0 %v10875_v14  ;;  %v365_v42 = vrot.slane %v363_v35, 5  ;;  %v368_v43 = vrot.slane %v366_v36, 6  ;;  %v374_v46 = vrot.slane %v372_v37, 5  ;;  %v377_v47 = vrot.slane %v375_v38, 6  ;;  %v8722_v35 = vld [vmem:[%s11465_s8 + $0x34] sm:$0xf]  ;;  %vm12396_vm11 = vmor %vm2886_vm9, %vm2887_vm10 }
  0x28   : > { %9912 = vmatpush3.bf16.msra.mxu1 %v10876_v15  ;;  %9849 = vmatprep.subr.bf16.mxu0 %v10877_v16  ;;  %v11514_v2 = vshrl.u32 %v11490_v44, 16  ;;  %v788_v4 = vrot.slane %v786_v59, 5  ;;  %v791_v5 = vrot.slane %v789_v60, 6  ;;  %v11517_v6 = vshll.u32 %v11490_v44, 16  ;;  %v11528_v15 = vld [vmem:[%s11465_s8 + $0x24] sm:$0xe]  ;;  %vm12661_vm14 = vmor %vm3297_vm12, %vm3298_vm13 }
  0x29   : > { %9913 = vmatprep.subr.bf16.mxu1 %v10878_v17  ;;  %v369_v51 = vor.u32 %v368_v43, %v365_v42  ;;  %v378_v57 = vor.u32 %v377_v47, %v374_v46  ;;  %v727_v8 = vsel %vm11495_vm6, %v725_v1, %v726_v54  ;;  %v3507_v9 = vshll.u32 %v8720_v45, 16  ;;  %v11531_v16 = vld [vmem:[%s11465_s8 + $0x28] sm:$0xf]  ;;  %v8723_v39 = vld [vmem:[%s11465_s8 + $0x38] sm:$0x1]  ;;  %s15229_s22 = scalar_lea.vmem [#allocation2], %s15218_s9 }
  0x2a   : > { %v8684_v10 = vrot.slane %v11474_v32, 9  ;;  %v792_v12 = vor.u32 %v791_v5, %v788_v4  ;;  %v8856_v13 = vcombine.low %v724_v0, %v727_v8  ;;  %v297_v14 = vrot.slane %v11477_v33, 5  ;;  %v10895_v43 = vld [vmem:[%s15310_s1 + $0x148] sm:$0xff]   ;;  %v8701_v60 = vld [vmem:[%s11465_s8 + $0x24] sm:$0xc]  ;;  %s15257_s10 = scalar_lea.sflag [#allocation3], %s229_s14 }
  0x2b   : > { %9850 = vmatpush3.bf16.msra.mxu0 %v10879_v18  ;;  %v370_v63 = vrot.slane %v369_v51, 4  ;;  %v380_v3 = vrot.slane %v378_v57, 4  ;;  %v11533_v18 = vrot.slane %v3507_v9, 5  ;;  %v400_v32 = vshrl.u32 %v11531_v16, 16  ;;  %v8665_v54 = vld [vmem:[%s11465_s8 + $0x2c] sm:$0x1] }
  0x2c   : > { %9914 = vmatpush3.bf16.msra.mxu1 %v10880_v19  ;;  %9851 = vmatprep.subr.bf16.mxu0 %v10881_v20  ;;  %v300_v19 = vrot.slane %v8662_v61, 5  ;;  %v403_v38 = vshll.u32 %v11531_v16, 16  ;;  %v730_v53 = vrot.slane %v8722_v35, 5  ;;  %v733_v59 = vrot.slane %v8723_v39, 5  ;;  %v10896_v61 = vld [vmem:[%s15310_s1 + $0x108] sm:$0xff]   ;;  %v10901_v4 = vld [vmem:[%s15310_s1 + $0x1c0] sm:$0xff]  }
  0x2d   : > { %9915 = vmatprep.subr.bf16.mxu1 %v10882_v21  ;;  %v379_v7 = vsel %vm11505_vm7, %v370_v63, %v378_v57  ;;  %v389_v11 = vsel %vm11505_vm7, %v380_v3, %v388_v58  ;;  %v8708_v21 = vrot.slane %v8700_v62, 10  ;;  %2502 = vmatprep.mubr.bf16.mxu1 %v8856_v13  ;;  %v402_v42 = vrot.slane %v400_v32, 5  ;;  %v10897_v3 = vld [vmem:[%s15310_s1 + $0x150] sm:$0xff]   ;;  %v8725_v35 = vld [vmem:[%s11465_s8 + $0x40] sm:$0xf]  ;;  %s11262_s13 = smov [#allocation2]  }
  0x2e   : > { %v8840_v17 = vcombine.low %v379_v7, %v389_v11  ;;  %v405_v46 = vrot.slane %v403_v38, 6  ;;  %v732_v0 = vrot.slane %v730_v53, 4  ;;  %v8685_v1 = vrot.slane %v11528_v15, 9  ;;  %v10902_v11 = vld [vmem:[%s15310_s1 + $0x180] sm:$0xff]   ;;  %s11165_s27 = sshll.u32 %s11262_s13, 4  ;;  %s11166_s27 = int_to_ptr.vmem [resolvable:$false] %s11165_s27 }
  0x2f   : > { %9852 = vmatpush3.bf16.msra.mxu0 %v10883_v22  ;;  %v11542_v22 = vld [vmem:[%s11465_s8 + $0x2c] sm:$0x3]  ;;  %v304_v8 = vrot.slane %v11531_v16, 5  ;;  %v307_v9 = vrot.slane %v8665_v54, 5  ;;  %vm6074_vm0 = vcmask 1044484   ;;  %vm11258_vm2 = vmmov 0  }
  0x30   : > { %9916 = vmatpush3.bf16.msra.mxu1 %v10884_v23  ;;  %9853 = vmatprep.subr.bf16.mxu0 %v10885_v24  ;;  %v11544_v23 = vrot.slane %v792_v12, 4  ;;  %v298_v24 = vsel %vm11495_vm6, %v8684_v10, %v297_v14  ;;  %v410_v47 = vshrl.u32 %v11542_v22, 16  ;;  %v413_v48 = vshll.u32 %v11542_v22, 16  ;;  %v10898_v10 = vld [vmem:[%s15310_s1 + $0x110] sm:$0xff]   ;;  %vm13737_vm1 = vmor %vm6073_vm15, %vm6074_vm0  ;;  %s11167_s15 = scalar_lea.vmem %s11166_s27, 4096 }
  0x31   : > { %9917 = vmatprep.subr.bf16.mxu1 %v10886_v25  ;;  %v299_v25 = vrot.slane %v297_v14, 4  ;;  %2405 = vmatprep.mubr.bf16.mxu0 %v8840_v17  ;;  %v734_v13 = vsel %vm11495_vm6, %v732_v0, %v733_v59  ;;  %v8709_v14 = vrot.slane %v8701_v60, 10  ;;  %v11598_v17 = vld [vmem:[%s11465_s8 + $0x30] sm:$0xe]  ;;  %v625_v32 = vrot.slane %v11542_v22, 6 }
  0x32   : > { %v412_v57 = vrot.slane %v410_v47, 5  ;;  %v415_v58 = vrot.slane %v413_v48, 6  ;;  %v422_v38 = vshll.u32 %v11598_v17, 16  ;;  %v737_v59 = vrot.slane %v8725_v35, 5 }
  0x33   : > { %9854 = vmatpush3.bf16.msra.mxu0 %v10887_v26  ;;  %v615_v26 = vrot.slane %v11477_v33, 6  ;;  %v301_v36 = vsel %vm11495_vm6, %v299_v25, %v300_v19  ;;  %v11601_v19 = vld [vmem:[%s11465_s8 + $0x34] sm:$0xf]  ;;  %v305_v25 = vsel %vm11495_vm6, %v8685_v1, %v304_v8  ;;  %vm8067_vm3 = vcmask 1045504  }
  0x34   : > { %9918 = vmatpush3.bf16.msra.mxu1 %v10888_v27  ;;  %9855 = vmatprep.subr.bf16.mxu0 %v10889_v28  ;;  %v10894_v27 = vld [vmem:[%s15310_s1 + $0x100] sm:$0xff]   ;;  %v8721_v28 = vld [vmem:[%s11465_s8 + $0x30] sm:$0xe]  ;;  %v8832_v40 = vcombine.low %v298_v24, %v301_v36  ;;  %v416_v7 = vor.u32 %v415_v58, %v412_v57  ;;  %v428_v39 = vshrl.u32 %v11601_v19, 16  ;;  %v424_v47 = vrot.slane %v422_v38, 6 }
  0x35   : > { %9919 = vmatprep.subr.bf16.mxu1 %v10890_v29  ;;  %v618_v29 = vrot.slane %v11480_v34, 6  ;;  %v616_v33 = vsel %vm11537_vm8, %v8708_v21, %v615_v26  ;;  %v617_v37 = vrot.slane %v615_v26, 4  ;;  %v8743_v52 = vrot.slane %v8721_v28, 9  ;;  %v8724_v28 = vld [vmem:[%s11465_s8 + $0x3c] sm:$0xe]  ;;  %v10903_v57 = vld [vmem:[%s15310_s1 + $0x160] sm:$0xff]  }
  0x36   : > { %v306_v26 = vrot.slane %v304_v8, 4  ;;  %v8726_v36 = vld [vmem:[%s11465_s8 + $0x44] sm:$0x1]  ;;  %v430_v48 = vrot.slane %v428_v39, 5  ;;  %v311_v1 = vrot.slane %v11601_v19, 5  ;;  %vm8402_vm4 = vcmask 261120  }
  0x37   : > { %9856 = vmatpush3.bf16.msra.mxu0 %v10891_v30  ;;  %v391_v30 = vshrl.u32 %v11528_v15, 16  ;;  %v619_v45 = vsel %vm11537_vm8, %v617_v37, %v618_v29  ;;  %v731_v63 = vsel %vm11495_vm6, %v8743_v52, %v730_v53  ;;  %v419_v37 = vshrl.u32 %v11598_v17, 16 }
  0x38   : > { %9920 = vmatpush3.bf16.msra.mxu1 %v10892_v31  ;;  %9969 = vmatprep.subr.bf16.mxu0 %v10893_v55  ;;  %v394_v31 = vshll.u32 %v11528_v15, 16  ;;  %v8848_v49 = vcombine.low %v616_v33, %v619_v45  ;;  %v406_v55 = vor.u32 %v405_v46, %v402_v42  ;;  %v622_v15 = vrot.slane %v11531_v16, 6  ;;  %v10899_v16 = vld [vmem:[%s15310_s1 + $0x158] sm:$0xff]  }
  0x39   : > { %v393_v34 = vrot.slane %v391_v30, 5  ;;  %10033 = vmatprep.subr.bf16.mxu1 %v10901_v4  ;;  %v8857_v24 = vcombine.low %v731_v63, %v734_v13  ;;  %v308_v33 = vsel %vm11495_vm6, %v306_v26, %v307_v9  ;;  %v421_v46 = vrot.slane %v419_v37, 5  ;;  %v11646_v4 = vld [vmem:[%s11465_s8 + $0x3c] sm:$0xe]  ;;  %v10909_v37 = vld [vmem:[%s15310_s1 + $0x128] sm:$0xff]  }
  0x3a   : > { %v396_v41 = vrot.slane %v394_v31, 6  ;;  %2406 = vmatmul.mubr.bf16.vlgmr.msra.gmra.mrb[0].mxu0 %v8832_v40  ;;  %v408_v5 = vrot.slane %v406_v55, 4  ;;  %v623_v30 = vsel %vm11537_vm8, %v8709_v14, %v622_v15  ;;  %v624_v31 = vrot.slane %v622_v15, 4  ;;  %v10900_v40 = vld [vmem:[%s15310_s1 + $0x118] sm:$0xff]  }
  0x3b   : > { %9970 = vmatpush3.bf16.msra.mxu0 %v10894_v27  ;;  %2503 = vmatmul.mubr.bf16.vlgmr.msra.gmra.mrb[0].mxu1 %v8848_v49  ;;  %v11608_v27 = vld [vmem:[%s11465_s8 + $0x38] sm:$0x3]  ;;  %v8833_v22 = vcombine.low %v305_v25, %v308_v33  ;;  %v8702_v49 = vld [vmem:[%s11465_s8 + $0x30] sm:$0xc]  ;;  %v425_v58 = vor.u32 %v424_v47, %v421_v46  ;;  %v740_v60 = vrot.slane %v8726_v36, 5  ;;  %v739_v9 = vrot.slane %v737_v59, 4 }
  0x3c   : > { %v397_v51 = vor.u32 %v396_v41, %v393_v34  ;;  %9971 = vmatprep.subr.bf16.mxu0 %v10895_v43  ;;  %v417_v21 = vsel %vm11505_vm7, %v408_v5, %v416_v7  ;;  %10034 = vmatpush3.bf16.msra.mxu1 %v10902_v11  ;;  %v626_v34 = vsel %vm11537_vm8, %v624_v31, %v625_v32  ;;  %v431_v41 = vshll.u32 %v11601_v19, 16  ;;  %v8668_v43 = vld [vmem:[%s11465_s8 + $0x38] sm:$0x1]  ;;  %v10904_v5 = vld [vmem:[%s15310_s1 + $0x120] sm:$0xff]   ;;  %v10907_v25 = vld [vmem:[%s15310_s1 + $0x168] sm:$0xff]  }
  0x3d   : > { %2510 = vmatprep.mubr.bf16.mxu1 %v8857_v24  ;;  %v438_v42 = vshrl.u32 %v11608_v27, 16  ;;  %v8849_v45 = vcombine.low %v623_v30, %v626_v34  ;;  %v441_v54 = vshll.u32 %v11608_v27, 16  ;;  %v426_v7 = vrot.slane %v425_v58, 4  ;;  %v11654_v11 = vld [vmem:[%s11465_s8 + $0x40] sm:$0xf] }
  0x3e   : > { %v398_v62 = vrot.slane %v397_v51, 4  ;;  %v10905_v51 = vld [vmem:[%s15310_s1 + $0x1c8] sm:$0xff]   ;;  %v433_v52 = vrot.slane %v431_v41, 6  ;;  %v447_v35 = vshrl.u32 %v11646_v4, 16  ;;  %v8729_v33 = vld [vmem:[%s11465_s8 + $0x50] sm:$0x1] }
  0x3f   : > { %9972 = vmatpush3.bf16.msra.mxu0 %v10896_v61  ;;  %v440_v53 = vrot.slane %v438_v42, 5  ;;  %v8686_v61 = vrot.slane %v11598_v17, 9  ;;  %10035 = vmatprep.subr.bf16.mxu1 %v10905_v51  ;;  %v443_v0 = vrot.slane %v441_v54, 6  ;;  %v313_v17 = vrot.slane %v311_v1, 4  ;;  %v8727_v24 = vld [vmem:[%s11465_s8 + $0x48] sm:$0xe] }
  0x40   : > { %v407_v12 = vsel %vm11505_vm7, %v398_v62, %v406_v55  ;;  %9973 = vmatprep.subr.bf16.mxu0 %v10897_v3  ;;  %v8744_v55 = vrot.slane %v8724_v28, 9  ;;  %v10906_v62 = vld [vmem:[%s15310_s1 + $0x188] sm:$0xff]   ;;  %v434_v63 = vor.u32 %v433_v52, %v430_v48  ;;  %v314_v3 = vrot.slane %v8668_v43, 5  ;;  %v10911_v48 = vld [vmem:[%s15310_s1 + $0x1d8] sm:$0xff]   ;;  %v8671_v54 = vld [vmem:[%s11465_s8 + $0x44] sm:$0x1] }
  0x41   : > { %v8841_v29 = vcombine.low %v407_v12, %v417_v21  ;;  %10036 = vmatpush3.bf16.msra.mxu1 %v10906_v62  ;;  %v10908_v12 = vld [vmem:[%s15310_s1 + $0x1d0] sm:$0xff]   ;;  %v444_v14 = vor.u32 %v443_v0, %v440_v53  ;;  %v312_v15 = vsel %vm11495_vm6, %v8686_v61, %v311_v1  ;;  %v11662_v21 = vld [vmem:[%s11465_s8 + $0x44] sm:$0x3]  ;;  %v741_v28 = vsel %vm11495_vm6, %v739_v9, %v740_v60  ;;  %v8728_v36 = vld [vmem:[%s11465_s8 + $0x4c] sm:$0xf] }
  0x42   : > { %v738_v8 = vsel %vm11495_vm6, %v8744_v55, %v737_v59  ;;  %v436_v13 = vrot.slane %v434_v63, 4  ;;  %v435_v26 = vsel %vm11505_vm7, %v426_v7, %v434_v63  ;;  %10037 = vmatprep.subr.bf16.mxu1 %v10908_v12  ;;  %v315_v32 = vsel %vm11495_vm6, %v313_v17, %v314_v3  ;;  %v10912_v55 = vld [vmem:[%s15310_s1 + $0x198] sm:$0xff]   ;;  %v11709_v9 = vld [vmem:[%s11465_s8 + $0x48] sm:$0xe]  ;;  %v10913_v17 = vld [vmem:[%s15310_s1 + $0x170] sm:$0xff]  }
  0x43   : > { %2413 = vmatprep.mubr.bf16.mxu0 %v8841_v29  ;;  %9974 = vmatpush3.bf16.msra.mxu0 %v10898_v10  ;;  %v8710_v10 = vrot.slane %v8702_v49, 10  ;;  %v632_v29 = vrot.slane %v11608_v27, 6  ;;  %v8858_v31 = vcombine.low %v738_v8, %v741_v28  ;;  %v450_v34 = vshll.u32 %v11646_v4, 16  ;;  %v8703_v1 = vld [vmem:[%s11465_s8 + $0x3c] sm:$0xc] }
  0x44   : > { %2414 = vmatmul.mubr.bf16.gmra.mrb[4].mxu0 %v8833_v22  ;;  %9975 = vmatprep.subr.bf16.mxu0 %v10899_v16  ;;  %v629_v16 = vrot.slane %v11601_v19, 6  ;;  %v445_v30 = vsel %vm11505_vm7, %v436_v13, %v444_v14  ;;  %v8834_v19 = vcombine.low %v312_v15, %v315_v32  ;;  %v449_v22 = vrot.slane %v447_v35, 5  ;;  %v11717_v15 = vld [vmem:[%s11465_s8 + $0x50] sm:$0x3] }
  0x45   : > { %2511 = vmatmul.mubr.bf16.gmra.mrb[4].mxu1 %v8849_v45  ;;  %v8842_v38 = vcombine.low %v435_v26, %v445_v30  ;;  %v456_v41 = vshrl.u32 %v11654_v11, 16  ;;  %v459_v42 = vshll.u32 %v11654_v11, 16  ;;  %v466_v45 = vshrl.u32 %v11662_v21, 16 }
  0x46   : > { %v630_v27 = vsel %vm11537_vm8, %v8710_v10, %v629_v16  ;;  %v631_v39 = vrot.slane %v629_v16, 4  ;;  %2518 = vmatprep.mubr.bf16.mxu1 %v8858_v31  ;;  %v469_v46 = vshll.u32 %v11662_v21, 16  ;;  %v8745_v47 = vrot.slane %v8727_v24, 9  ;;  %v11712_v10 = vld [vmem:[%s11465_s8 + $0x4c] sm:$0xf] }
  0x47   : > { %9976 = vmatpush3.bf16.msra.mxu0 %v10900_v40  ;;  %v10910_v40 = vld [vmem:[%s15310_s1 + $0x190] sm:$0xff]   ;;  %2421 = vmatprep.mubr.bf16.mxu0 %v8842_v38  ;;  %v452_v51 = vrot.slane %v450_v34, 6  ;;  %v458_v52 = vrot.slane %v456_v41, 5  ;;  %v461_v53 = vrot.slane %v459_v42, 6  ;;  %v744_v59 = vrot.slane %v8728_v36, 5 }
  0x48   : > { %9977 = vmatprep.subr.bf16.mxu0 %v10903_v57  ;;  %v633_v43 = vsel %vm11537_vm8, %v631_v39, %v632_v29  ;;  %10038 = vmatpush3.bf16.msra.mxu1 %v10910_v40  ;;  %v468_v57 = vrot.slane %v466_v45, 5  ;;  %v471_v58 = vrot.slane %v469_v46, 6  ;;  %v747_v60 = vrot.slane %v8729_v33, 5  ;;  %v8730_v16 = vld [vmem:[%s11465_s8 + $0x54] sm:$0xe]  ;;  %v10914_v29 = vld [vmem:[%s15310_s1 + $0x1e0] sm:$0xff]  }
  0x49   : > { %v8850_v49 = vcombine.low %v630_v27, %v633_v43  ;;  %10039 = vmatprep.subr.bf16.mxu1 %v10911_v48  ;;  %v453_v61 = vor.u32 %v452_v51, %v449_v22  ;;  %v462_v62 = vor.u32 %v461_v53, %v458_v52  ;;  %v8687_v63 = vrot.slane %v11646_v4, 9  ;;  %v8731_v36 = vld [vmem:[%s11465_s8 + $0x58] sm:$0xf]  ;;  %v8732_v38 = vld [vmem:[%s11465_s8 + $0x5c] sm:$0x1]  ;;  %v10916_v45 = vld [vmem:[%s15310_s1 + $0x1a0] sm:$0xff]  }
  0x4a   : > { %v318_v0 = vrot.slane %v11654_v11, 5  ;;  %v472_v3 = vor.u32 %v471_v58, %v468_v57  ;;  %v746_v7 = vrot.slane %v744_v59, 4  ;;  %v321_v8 = vrot.slane %v8671_v54, 5  ;;  %v10917_v51 = vld [vmem:[%s15310_s1 + $0x1e8] sm:$0xff]   ;;  %v8674_v57 = vld [vmem:[%s11465_s8 + $0x50] sm:$0x1] }
  0x4b   : > { %9978 = vmatpush3.bf16.msra.mxu0 %v10904_v5  ;;  %v745_v5 = vsel %vm11495_vm6, %v8745_v47, %v744_v59  ;;  %v454_v12 = vrot.slane %v453_v61, 4  ;;  %v464_v13 = vrot.slane %v462_v62, 4  ;;  %v636_v26 = vrot.slane %v11654_v11, 6 }
  0x4c   : > { %9979 = vmatprep.subr.bf16.mxu0 %v10907_v25  ;;  %2422 = vmatmul.mubr.bf16.gmra.mrb[8].mxu0 %v8834_v19  ;;  %v319_v4 = vsel %vm11495_vm6, %v8687_v63, %v318_v0  ;;  %v320_v14 = vrot.slane %v318_v0, 4  ;;  %v748_v24 = vsel %vm11495_vm6, %v746_v7, %v747_v60  ;;  %v8711_v25 = vrot.slane %v8703_v1, 10  ;;  %v10915_v19 = vld [vmem:[%s15310_s1 + $0x130] sm:$0xff]   ;;  %v10918_v63 = vld [vmem:[%s15310_s1 + $0x1a8] sm:$0xff]   ;;  %v10919_v7 = vld [vmem:[%s15310_s1 + $0x178] sm:$0xff]  }
  0x4d   : > { %2519 = vmatmul.mubr.bf16.gmra.mrb[8].mxu1 %v8850_v49  ;;  %v639_v28 = vrot.slane %v11662_v21, 6  ;;  %v463_v30 = vsel %vm11505_vm7, %v454_v12, %v462_v62  ;;  %v473_v31 = vsel %vm11505_vm7, %v464_v13, %v472_v3  ;;  %v8859_v32 = vcombine.low %v745_v5, %v748_v24  ;;  %v8704_v62 = vld [vmem:[%s11465_s8 + $0x48] sm:$0xc] }
  0x4e   : > { %10040 = vmatpush3.bf16.msra.mxu1 %v10912_v55  ;;  %v322_v35 = vsel %vm11495_vm6, %v320_v14, %v321_v8  ;;  %v8843_v11 = vcombine.low %v463_v30, %v473_v31  ;;  %v637_v21 = vsel %vm11537_vm8, %v8711_v25, %v636_v26  ;;  %v475_v27 = vshrl.u32 %v11709_v9, 16  ;;  %v10920_v14 = vld [vmem:[%s15310_s1 + $0x1f0] sm:$0xff]  }
  0x4f   : > { %9980 = vmatpush3.bf16.msra.mxu0 %v10909_v37  ;;  %v8835_v33 = vcombine.low %v319_v4, %v322_v35  ;;  %v638_v37 = vrot.slane %v636_v26, 4  ;;  %10041 = vmatprep.subr.bf16.mxu1 %v10914_v29  ;;  %v478_v39 = vshll.u32 %v11709_v9, 16  ;;  %v484_v40 = vshrl.u32 %v11712_v10, 16  ;;  %v11772_v4 = vld [vmem:[%s11465_s8 + $0x54] sm:$0xe] }
  0x50   : > { %9981 = vmatprep.subr.bf16.mxu0 %v10913_v17  ;;  %2526 = vmatprep.mubr.bf16.mxu1 %v8859_v32  ;;  %v487_v22 = vshll.u32 %v11712_v10, 16  ;;  %v494_v41 = vshrl.u32 %v11717_v15, 16  ;;  %v497_v42 = vshll.u32 %v11717_v15, 16  ;;  %v8746_v43 = vrot.slane %v8730_v16, 9  ;;  %v10921_v16 = vld [vmem:[%s15310_s1 + $0x138] sm:$0xff]  }
  0x51   : > { %2429 = vmatprep.mubr.bf16.mxu0 %v8843_v11  ;;  %v640_v34 = vsel %vm11537_vm8, %v638_v37, %v639_v28  ;;  %v477_v47 = vrot.slane %v475_v27, 5  ;;  %v480_v48 = vrot.slane %v478_v39, 6  ;;  %v486_v49 = vrot.slane %v484_v40, 5  ;;  %v11781_v28 = vld [vmem:[%s11465_s8 + $0x58] sm:$0xf] }
  0x52   : > { %v8851_v46 = vcombine.low %v637_v21, %v640_v34  ;;  %v489_v52 = vrot.slane %v487_v22, 6  ;;  %v496_v53 = vrot.slane %v494_v41, 5  ;;  %v499_v54 = vrot.slane %v497_v42, 6  ;;  %10042 = vmatpush3.bf16.msra.mxu1 %v10916_v45  ;;  %v8733_v35 = vld [vmem:[%s11465_s8 + $0x60] sm:$0xe]  ;;  %v10924_v41 = vld [vmem:[%s15310_s1 + $0x1b8] sm:$0xff]  }
  0x53   : > { %9982 = vmatpush3.bf16.msra.mxu0 %v10915_v19  ;;  %v751_v55 = vrot.slane %v8731_v36, 5  ;;  %v481_v58 = vor.u32 %v480_v48, %v477_v47  ;;  %v754_v59 = vrot.slane %v8732_v38, 5  ;;  %v8688_v60 = vrot.slane %v11709_v9, 9  ;;  %10043 = vmatprep.subr.bf16.mxu1 %v10917_v51  ;;  %v10922_v36 = vld [vmem:[%s15310_s1 + $0x1b0] sm:$0xff]   ;;  %v8734_v38 = vld [vmem:[%s11465_s8 + $0x64] sm:$0xf] }
  0x54   : > { %2430 = vmatmul.mubr.bf16.gmra.mrb[12].mxu0 %v8835_v33  ;;  %v325_v61 = vrot.slane %v11712_v10, 5  ;;  %v490_v0 = vor.u32 %v489_v52, %v486_v49  ;;  %v500_v1 = vor.u32 %v499_v54, %v496_v53  ;;  %v328_v13 = vrot.slane %v8674_v57, 5  ;;  %9983 = vmatprep.subr.bf16.mxu0 %v10919_v7  ;;  %v10923_v19 = vld [vmem:[%s15310_s1 + $0x1f8] sm:$0xff]   ;;  %v8705_v47 = vld [vmem:[%s11465_s8 + $0x54] sm:$0xc]  ;;  %v11823_v48 = vld [vmem:[%s15310_s1 + $0x200] sm:$0xff]  }
  0x55   : > { %2527 = vmatmul.mubr.bf16.gmra.mrb[12].mxu1 %v8851_v46  ;;  %v752_v3 = vsel %vm11495_vm6, %v8746_v43, %v751_v55  ;;  %v753_v5 = vrot.slane %v751_v55, 4  ;;  %v482_v8 = vrot.slane %v481_v58, 4  ;;  %v8712_v25 = vrot.slane %v8704_v62, 10  ;;  %v8677_v34 = vld [vmem:[%s11465_s8 + $0x5c] sm:$0x1] }
  0x56   : > { %v326_v9 = vsel %vm11495_vm6, %v8688_v60, %v325_v61  ;;  %v327_v12 = vrot.slane %v325_v61, 4  ;;  %v492_v17 = vrot.slane %v490_v0, 4  ;;  %v643_v26 = vrot.slane %v11712_v10, 6  ;;  %10044 = vmatpush3.bf16.msra.mxu1 %v10918_v63  ;;  %v11792_v10 = vld [vmem:[%s11465_s8 + $0x5c] sm:$0x3] }
  0x57   : > { %v755_v24 = vsel %vm11495_vm6, %v753_v5, %v754_v59  ;;  %v491_v29 = vsel %vm11505_vm7, %v482_v8, %v490_v0  ;;  %v646_v32 = vrot.slane %v11717_v15, 6  ;;  %10045 = vmatprep.subr.bf16.mxu1 %v10920_v14  ;;  %v8735_v15 = vld [vmem:[%s11465_s8 + $0x68] sm:$0x1]  ;;  %9984 = vmatpush3.bf16.msra.mxu0 %v10921_v16  ;;  %v503_v39 = vshrl.u32 %v11772_v4, 16  ;;  %v8678_v16 = vld [vmem:[%s11465_s8 + $0x60] sm:$0xe] }
  0x58   : > { %v8860_v30 = vcombine.low %v752_v3, %v755_v24  ;;  %v329_v31 = vsel %vm11495_vm6, %v327_v12, %v328_v13  ;;  %v501_v11 = vsel %vm11505_vm7, %v492_v17, %v500_v1  ;;  %v644_v21 = vsel %vm11537_vm8, %v8712_v25, %v643_v26  ;;  %10666 = vmatprep.subr.bf16.mxu0 %v11823_v48  ;;  %v10929_v17 = vld [vmem:[%s15310_s1 + $0x280] sm:$0xff]  }
  0x59   : > { %v8836_v33 = vcombine.low %v326_v9, %v329_v31  ;;  %v645_v37 = vrot.slane %v643_v26, 4  ;;  %v8844_v27 = vcombine.low %v491_v29, %v501_v11  ;;  %v506_v40 = vshll.u32 %v11772_v4, 16  ;;  %v8736_v11 = vld [vmem:[%s11465_s8 + $0x6c] sm:$0xe] }
  0x5a   : > { %2534 = vmatprep.mubr.bf16.mxu1 %v8860_v30  ;;  %v512_v22 = vshrl.u32 %v11781_v28, 16  ;;  %v515_v43 = vshll.u32 %v11781_v28, 16  ;;  %v522_v45 = vshrl.u32 %v11792_v10, 16  ;;  %v525_v46 = vshll.u32 %v11792_v10, 16  ;;  %10046 = vmatpush3.bf16.msra.mxu1 %v10922_v36  ;;  %v11851_v36 = vld [vmem:[%s11465_s8 + $0x68] sm:$0x3] }
  0x5b   : > { %v647_v42 = vsel %vm11537_vm8, %v645_v37, %v646_v32  ;;  %2437 = vmatprep.mubr.bf16.mxu0 %v8844_v27  ;;  %v505_v51 = vrot.slane %v503_v39, 5  ;;  %v508_v52 = vrot.slane %v506_v40, 6  ;;  %10047 = vmatprep.subr.bf16.mxu1 %v10923_v19  ;;  %v8747_v58 = vrot.slane %v8733_v35, 9  ;;  %v8679_v35 = vld [vmem:[%s11465_s8 + $0x64] sm:$0xf] }
  0x5c   : > { %v8852_v49 = vcombine.low %v644_v21, %v647_v42  ;;  %v514_v53 = vrot.slane %v512_v22, 5  ;;  %2438 = vmatmul.mubr.bf16.gmra.mrb[16].mxu0 %v8836_v33  ;;  %v517_v54 = vrot.slane %v515_v43, 6  ;;  %v524_v55 = vrot.slane %v522_v45, 5  ;;  %v8738_v40 = vld [vmem:[%s11465_s8 + $0x74] sm:$0x1] }
  0x5d   : > { %v527_v57 = vrot.slane %v525_v46, 6  ;;  %v509_v59 = vor.u32 %v508_v52, %v505_v51  ;;  %v758_v60 = vrot.slane %v8734_v38, 5  ;;  %v761_v61 = vrot.slane %v8735_v15, 5  ;;  %v8737_v38 = vld [vmem:[%s11465_s8 + $0x70] sm:$0xf] }
  0x5e   : > { %2535 = vmatmul.mubr.bf16.gmra.mrb[16].mxu1 %v8852_v49  ;;  %v8689_v62 = vrot.slane %v11772_v4, 9  ;;  %v518_v63 = vor.u32 %v517_v54, %v514_v53  ;;  %v332_v1 = vrot.slane %v11781_v28, 5  ;;  %v335_v3 = vrot.slane %v8677_v34, 5  ;;  %v8680_v43 = vld [vmem:[%s11465_s8 + $0x68] sm:$0x1] }
  0x5f   : > { %v528_v0 = vor.u32 %v527_v57, %v524_v55  ;;  %10048 = vmatpush3.bf16.msra.mxu1 %v10924_v41  ;;  %v510_v5 = vrot.slane %v509_v59, 4  ;;  %v759_v7 = vsel %vm11495_vm6, %v8747_v58, %v758_v60  ;;  %v760_v8 = vrot.slane %v758_v60, 4  ;;  %v8706_v51 = vld [vmem:[%s11465_s8 + $0x60] sm:$0xc] }
  0x60   : > { %v8713_v9 = vrot.slane %v8705_v47, 10  ;;  %v520_v12 = vrot.slane %v518_v63, 4  ;;  %v333_v13 = vsel %vm11495_vm6, %v8689_v62, %v332_v1  ;;  %v334_v4 = vrot.slane %v332_v1, 4  ;;  %10113 = vmatprep.subr.bf16.mxu1 %v10929_v17 }
  0x61   : > { %v650_v14 = vrot.slane %v11781_v28, 6  ;;  %v519_v24 = vsel %vm11505_vm7, %v510_v5, %v518_v63  ;;  %v762_v25 = vsel %vm11495_vm6, %v760_v8, %v761_v61  ;;  %v653_v26 = vrot.slane %v11792_v10, 6 }
  0x62   : > { %v1035_v29 = vrot.slane %v11490_v44, 6  ;;  %v529_v30 = vsel %vm11505_vm7, %v520_v12, %v528_v0  ;;  %v8861_v28 = vcombine.low %v759_v7, %v762_v25  ;;  %v336_v31 = vsel %vm11495_vm6, %v334_v4, %v335_v3 }
  0x63   : > { %v651_v32 = vsel %vm11537_vm8, %v8713_v9, %v650_v14  ;;  %v8845_v10 = vcombine.low %v519_v24, %v529_v30  ;;  %v8837_v33 = vcombine.low %v333_v13, %v336_v31  ;;  %v652_v21 = vrot.slane %v650_v14, 4  ;;  %v8682_v31 = vld [vmem:[%s11465_s8 + $0x70] sm:$0xf] }
  0x64   : > { %v531_v37 = vshrl.u32 %v8678_v16, 16  ;;  %2542 = vmatprep.mubr.bf16.mxu1 %v8861_v28  ;;  %v534_v15 = vshll.u32 %v8678_v16, 16  ;;  %v540_v19 = vshrl.u32 %v8679_v35, 16  ;;  %v543_v27 = vshll.u32 %v8679_v35, 16  ;;  %v8681_v28 = vld [vmem:[%s11465_s8 + $0x6c] sm:$0xe] }
  0x65   : > { %v550_v39 = vshrl.u32 %v11851_v36, 16  ;;  %2445 = vmatprep.mubr.bf16.mxu0 %v8845_v10  ;;  %v654_v22 = vsel %vm11537_vm8, %v652_v21, %v653_v26  ;;  %v553_v41 = vshll.u32 %v11851_v36, 16  ;;  %v8748_v42 = vrot.slane %v8736_v11, 9 }
  0x66   : > { %v533_v34 = vrot.slane %v531_v37, 5  ;;  %2446 = vmatmul.mubr.bf16.gmra.mrb[20].mxu0 %v8837_v33  ;;  %v8853_v45 = vcombine.low %v651_v32, %v654_v22  ;;  %v536_v46 = vrot.slane %v534_v15, 6  ;;  %v542_v47 = vrot.slane %v540_v19, 5  ;;  %v8699_v32 = vld [vmem:[%s11465_s8 + $0x74] sm:$0x3] }
  0x67   : > { %v545_v49 = vrot.slane %v543_v27, 6  ;;  %v552_v52 = vrot.slane %v550_v39, 5  ;;  %v555_v53 = vrot.slane %v553_v41, 6  ;;  %v765_v54 = vrot.slane %v8737_v38, 5  ;;  %v8739_v37 = vld [vmem:[%s11465_s8 + $0x78] sm:$0xe] }
  0x68   : > { %v768_v55 = vrot.slane %v8738_v40, 5  ;;  %2543 = vmatmul.mubr.bf16.gmra.mrb[20].mxu1 %v8853_v45  ;;  %v537_v57 = vor.u32 %v536_v46, %v533_v34  ;;  %v8690_v59 = vrot.slane %v8678_v16, 9  ;;  %v339_v60 = vrot.slane %v8679_v35, 5  ;;  %v8740_v39 = vld [vmem:[%s11465_s8 + $0x7c] sm:$0xf] }
  0x69   : > { %v546_v58 = vor.u32 %v545_v49, %v542_v47  ;;  %v556_v61 = vor.u32 %v555_v53, %v552_v52  ;;  %v766_v62 = vsel %vm11495_vm6, %v8748_v42, %v765_v54  ;;  %v767_v63 = vrot.slane %v765_v54, 4  ;;  %v8741_v41 = vld [vmem:[%s11465_s8 + $0x80] sm:$0x1]  ;;  %v8683_v49 = vld [vmem:[%s11465_s8 + $0x74] sm:$0x1] }
  0x6a   : > { %v342_v0 = vrot.slane %v8680_v43, 5  ;;  %v538_v1 = vrot.slane %v537_v57, 4  ;;  %v340_v5 = vsel %vm11495_vm6, %v8690_v59, %v339_v60  ;;  %v341_v7 = vrot.slane %v339_v60, 4 }
  0x6b   : > { %v548_v3 = vrot.slane %v546_v58, 4  ;;  %v769_v8 = vsel %vm11495_vm6, %v767_v63, %v768_v55  ;;  %v8714_v9 = vrot.slane %v8706_v51, 10  ;;  %v657_v12 = vrot.slane %v8679_v35, 6  ;;  %v8707_v55 = vld [vmem:[%s11465_s8 + $0x6c] sm:$0xc] }
  0x6c   : > { %v660_v13 = vrot.slane %v11851_v36, 6  ;;  %v547_v4 = vsel %vm11505_vm7, %v538_v1, %v546_v58  ;;  %v8862_v17 = vcombine.low %v766_v62, %v769_v8  ;;  %v343_v24 = vsel %vm11495_vm6, %v341_v7, %v342_v0 }
  0x6d   : > { %v557_v14 = vsel %vm11505_vm7, %v548_v3, %v556_v61  ;;  %v8838_v26 = vcombine.low %v340_v5, %v343_v24  ;;  %v658_v16 = vsel %vm11537_vm8, %v8714_v9, %v657_v12  ;;  %v659_v30 = vrot.slane %v657_v12, 4  ;;  %v8750_v24 = vld [vmem:[%s11465_s8 + $0x2c] sm:$0x3] }
  0x6e   : > { %v8846_v25 = vcombine.low %v547_v4, %v557_v14  ;;  %2550 = vmatprep.mubr.bf16.mxu1 %v8862_v17  ;;  %v559_v35 = vshrl.u32 %v8681_v28, 16  ;;  %v562_v36 = vshll.u32 %v8681_v28, 16  ;;  %v568_v10 = vshrl.u32 %v8682_v31, 16 }
  0x6f   : > { %v661_v11 = vsel %vm11537_vm8, %v659_v30, %v660_v13  ;;  %v571_v33 = vshll.u32 %v8682_v31, 16  ;;  %v578_v21 = vshrl.u32 %v8699_v32, 16  ;;  %v581_v27 = vshll.u32 %v8699_v32, 16  ;;  %v8758_v30 = vld [vmem:[%s11465_s8 + $0x24] sm:$0xc] }
  0x70   : > { %2453 = vmatprep.mubr.bf16.mxu0 %v8846_v25  ;;  %v8854_v38 = vcombine.low %v658_v16, %v661_v11  ;;  %v561_v15 = vrot.slane %v559_v35, 5  ;;  %v564_v19 = vrot.slane %v562_v36, 6  ;;  %v570_v40 = vrot.slane %v568_v10, 5  ;;  %v8776_v36 = vld [vmem:[%s11465_s8 + $0x30] sm:$0xe] }
  0x71   : > { %2454 = vmatmul.mubr.bf16.gmra.mrb[24].mxu0 %v8838_v26  ;;  %v573_v22 = vrot.slane %v571_v33, 6  ;;  %v580_v34 = vrot.slane %v578_v21, 5  ;;  %v8749_v42 = vrot.slane %v8739_v37, 9  ;;  %v583_v45 = vrot.slane %v581_v27, 6  ;;  %v8777_v11 = vld [vmem:[%s11465_s8 + $0x34] sm:$0xf] }
  0x72   : > { %2551 = vmatmul.mubr.bf16.gmra.mrb[24].mxu1 %v8854_v38  ;;  %v565_v43 = vor.u32 %v564_v19, %v561_v15  ;;  %v772_v46 = vrot.slane %v8740_v39, 5  ;;  %v775_v47 = vrot.slane %v8741_v41, 5  ;;  %v8691_v52 = vrot.slane %v8681_v28, 9  ;;  %v8808_v37 = vld [vmem:[%s11465_s8 + $0x38] sm:$0x3] }
  0x73   : > { %v574_v51 = vor.u32 %v573_v22, %v570_v40  ;;  %v346_v53 = vrot.slane %v8682_v31, 5  ;;  %v349_v54 = vrot.slane %v8683_v49, 5  ;;  %v584_v58 = vor.u32 %v583_v45, %v580_v34 }
  0x74   : > { %v566_v57 = vrot.slane %v565_v43, 4  ;;  %v773_v59 = vsel %vm11495_vm6, %v8749_v42, %v772_v46  ;;  %v774_v60 = vrot.slane %v772_v46, 4  ;;  %v8715_v0 = vrot.slane %v8707_v55, 10  ;;  %v8778_v42 = vld [vmem:[%s11465_s8 + $0x38] sm:$0x1] }
  0x75   : > { %v576_v61 = vrot.slane %v574_v51, 4  ;;  %v347_v62 = vsel %vm11495_vm6, %v8691_v52, %v346_v53  ;;  %v348_v63 = vrot.slane %v346_v53, 4  ;;  %v664_v5 = vrot.slane %v8682_v31, 6  ;;  %v8759_v52 = vld [vmem:[%s11465_s8 + $0x30] sm:$0xc] }
  0x76   : > { %v575_v1 = vsel %vm11505_vm7, %v566_v57, %v574_v51  ;;  %v776_v3 = vsel %vm11495_vm6, %v774_v60, %v775_v47  ;;  %v667_v7 = vrot.slane %v8699_v32, 6  ;;  %v805_v26 = vshrl.u32 %v8750_v24, 16 }
  0x77   : > { %v585_v8 = vsel %vm11505_vm7, %v576_v61, %v584_v58  ;;  %v8863_v9 = vcombine.low %v773_v59, %v776_v3  ;;  %v350_v12 = vsel %vm11495_vm6, %v348_v63, %v349_v54  ;;  %v665_v14 = vsel %vm11537_vm8, %v8715_v0, %v664_v5  ;;  %v11109_v3 = vld [vmem:[%s11465_s8 + $0x34] sm:$0xf] }
  0x78   : > { %v8847_v13 = vcombine.low %v575_v1, %v585_v8  ;;  %v8839_v4 = vcombine.low %v347_v62, %v350_v12  ;;  %v666_v17 = vrot.slane %v664_v5, 4  ;;  %v808_v16 = vshll.u32 %v8750_v24, 16  ;;  %v11923_v62 = vld [vmem:[%s11465_s8 + $0x3c] sm:$0xe] }
  0x79   : > { %2558 = vmatprep.mubr.bf16.mxu1 %v8863_v9  ;;  %v1037_v28 = vrot.slane %v1035_v29, 4  ;;  %v8766_v32 = vrot.slane %v8758_v30, 10  ;;  %v1038_v35 = vrot.slane %v8750_v24, 6  ;;  %v807_v10 = vrot.slane %v805_v26, 5  ;;  %v11942_v26 = vld [vmem:[%s11465_s8 + $0x44] sm:$0x3] }
  0x7a   : > { %2461 = vmatprep.mubr.bf16.mxu0 %v8847_v13  ;;  %v668_v25 = vsel %vm11537_vm8, %v666_v17, %v667_v7  ;;  %v810_v33 = vrot.slane %v808_v16, 6  ;;  %v8800_v21 = vrot.slane %v8776_v36, 9  ;;  %v1206_v38 = vshrl.u32 %v8776_v36, 16  ;;  %v11932_v13 = vld [vmem:[%s11465_s8 + $0x40] sm:$0xf] }
  0x7b   : > { %2462 = vmatmul.mubr.bf16.gmra.mrb[28].mxu0 %v8839_v4  ;;  %v8855_v31 = vcombine.low %v665_v14, %v668_v25  ;;  %v1036_v15 = vsel %vm11537_vm8, %v8766_v32, %v1035_v29  ;;  %v1039_v19 = vsel %vm11537_vm8, %v1037_v28, %v1038_v35  ;;  %v1209_v27 = vshll.u32 %v8776_v36, 16  ;;  %v11937_v17 = vld [vmem:[%s11465_s8 + $0x38] sm:$0x3] }
  0x7c   : > { %v1215_v39 = vshrl.u32 %v8777_v11, 16  ;;  %v811_v40 = vor.u32 %v810_v33, %v807_v10  ;;  %v8872_v22 = vcombine.low %v1036_v15, %v1039_v19  ;;  %v1208_v34 = vrot.slane %v1206_v38, 5  ;;  %v10930_v38 = vld [vmem:[%s15310_s1 + $0x240] sm:$0xff]  }
  0x7d   : > { %2559 = vmatmul.mubr.bf16.gmra.mrb[28].mxu1 %v8855_v31  ;;  %v1218_v41 = vshll.u32 %v8777_v11, 16  ;;  %v1211_v43 = vrot.slane %v1209_v27, 6  ;;  %v1225_v46 = vshrl.u32 %v8808_v37, 16  ;;  %v1228_v47 = vshll.u32 %v8808_v37, 16 }
  0x7e   : > { %v1217_v45 = vrot.slane %v1215_v39, 5  ;;  %2599 = vmatprep.mubr.bf16.mxu0 %v8872_v22  ;;  %v797_v29 = vrot.slane %v11514_v2, 5  ;;  %v800_v49 = vrot.slane %v11517_v6, 6  ;;  %v1143_v51 = vrot.slane %v8777_v11, 5  ;;  %v10926_v11 = vld [vmem:[%s15310_s1 + $0x208] sm:$0xff]  }
  0x7f   : > { %v1220_v44 = vrot.slane %v1218_v41, 6  ;;  %v1212_v53 = vor.u32 %v1211_v43, %v1208_v34  ;;  %v1227_v54 = vrot.slane %v1225_v46, 5  ;;  %v1230_v55 = vrot.slane %v1228_v47, 6 }
  0x80   : > { %v1146_v57 = vrot.slane %v8778_v42, 5  ;;  %v801_v59 = vor.u32 %v800_v49, %v797_v29  ;;  %v1144_v60 = vsel %vm11495_vm6, %v8800_v21, %v1143_v51  ;;  %v1145_v61 = vrot.slane %v1143_v51, 4  ;;  %v11110_v42 = vld [vmem:[%s11465_s8 + $0x30] sm:$0xe] }
  0x81   : > { %v1221_v58 = vor.u32 %v1220_v44, %v1217_v45  ;;  %v1213_v63 = vrot.slane %v1212_v53, 4  ;;  %v1231_v0 = vor.u32 %v1230_v55, %v1227_v54  ;;  %v8767_v1 = vrot.slane %v8759_v52, 10  ;;  %v10927_v29 = vld [vmem:[%s15310_s1 + $0x210] sm:$0xff]   ;;  %v8781_v53 = vld [vmem:[%s11465_s8 + $0x44] sm:$0x1]  ;;  %v10933_v54 = vld [vmem:[%s15310_s1 + $0x248] sm:$0xff]  }
  0x82   : > { %v1042_v5 = vrot.slane %v11109_v3, 6  ;;  %v802_v8 = vsel %vm11505_vm7, %v11544_v23, %v801_v59  ;;  %v803_v9 = vrot.slane %v801_v59, 4  ;;  %v1147_v12 = vsel %vm11495_vm6, %v1145_v61, %v1146_v57  ;;  %v10928_v61 = vld [vmem:[%s15310_s1 + $0x218] sm:$0xff]  }
  0x83   : > { %v1223_v7 = vrot.slane %v1221_v58, 4  ;;  %v1222_v4 = vsel %vm11505_vm7, %v1213_v63, %v1221_v58  ;;  %v8880_v14 = vcombine.low %v1144_v60, %v1147_v12  ;;  %v1045_v30 = vrot.slane %v11937_v17, 6  ;;  %v8760_v60 = vld [vmem:[%s11465_s8 + $0x3c] sm:$0xc]  ;;  %v10935_v63 = vld [vmem:[%s15310_s1 + $0x290] sm:$0xff]  }
  0x84   : > { %v1043_v24 = vsel %vm11537_vm8, %v8767_v1, %v1042_v5  ;;  %v1044_v25 = vrot.slane %v1042_v5, 4  ;;  %v812_v16 = vsel %vm11505_vm7, %v803_v9, %v811_v40  ;;  %v1234_v28 = vshrl.u32 %v11923_v62, 16  ;;  %v10932_v40 = vld [vmem:[%s15310_s1 + $0x288] sm:$0xff]  }
  0x85   : > { %v1232_v23 = vsel %vm11505_vm7, %v1223_v7, %v1231_v0  ;;  %v11950_v32 = vcombine.low %v802_v8, %v812_v16  ;;  %v1237_v35 = vshll.u32 %v11923_v62, 16  ;;  %v1243_v36 = vshrl.u32 %v11932_v13, 16  ;;  %v11995_v7 = vld [vmem:[%s11465_s8 + $0x48] sm:$0xe]  ;;  %v10936_v8 = vld [vmem:[%s15310_s1 + $0x250] sm:$0xff]  }
  0x86   : > { %v8888_v31 = vcombine.low %v1222_v4, %v1232_v23  ;;  %v1046_v10 = vsel %vm11537_vm8, %v1044_v25, %v1045_v30  ;;  %v1236_v33 = vrot.slane %v1234_v28, 5  ;;  %v1246_v21 = vshll.u32 %v11932_v13, 16  ;;  %v12010_v30 = vld [vmem:[%s11465_s8 + $0x44] sm:$0x3] }
  0x87   : > { %15346 = vst [vmem:[#allocation5_spill] sm:$0xff] %v11950_v32  ;;  %v1253_v37 = vshrl.u32 %v11942_v26, 16  ;;  %2600 = vmatmul.mubr.bf16.vlgmr.msra.gmra.mrb[32].mxu0 %v11950_v32  ;;  %v8873_v15 = vcombine.low %v1043_v24, %v1046_v10  ;;  %v1239_v19 = vrot.slane %v1237_v35, 6  ;;  %v1245_v27 = vrot.slane %v1243_v36, 5  ;;  %v11111_v10 = vld [vmem:[%s11465_s8 + $0x40] sm:$0xf] }
  0x88   : > { %2696 = vmatprep.mubr.bf16.mxu1 %v8888_v31  ;;  %v1256_v39 = vshll.u32 %v11942_v26, 16  ;;  %10667 = vmatpush3.bf16.msra.mxu0 %v11823_v48  ;;  %v1248_v22 = vrot.slane %v1246_v21, 6  ;;  %v1465_v41 = vrot.slane %v11942_v26, 6  ;;  %v814_v43 = vshrl.u32 %v11110_v42, 16  ;;  %v12016_v21 = vld [vmem:[%s11465_s8 + $0x4c] sm:$0xf] }
  0x89   : > { %2697 = vmatmul.mubr.bf16.vlgmr.msra.gmra.mrb[32].mxu1 %v8880_v14  ;;  %v1255_v34 = vrot.slane %v1253_v37, 5  ;;  %2607 = vmatprep.mubr.bf16.mxu0 %v8873_v15  ;;  %v1240_v45 = vor.u32 %v1239_v19, %v1236_v33  ;;  %v817_v47 = vshll.u32 %v11110_v42, 16  ;;  %v11972_v44 = vshrl.u32 %v11109_v3, 16  ;;  %v8810_v19 = vld [vmem:[%s11465_s8 + $0x50] sm:$0x3] }
  0x8a   : > { %v1258_v46 = vrot.slane %v1256_v39, 6  ;;  %10668 = vmatprep.subr.bf16.mxu0 %v10926_v11  ;;  %v1249_v48 = vor.u32 %v1248_v22, %v1245_v27  ;;  %v816_v49 = vrot.slane %v814_v43, 5  ;;  %v11977_v51 = vshll.u32 %v11109_v3, 16  ;;  %10114 = vmatpush3.bf16.msra.mxu1 %v10930_v38  ;;  %v10931_v39 = vld [vmem:[%s15310_s1 + $0x220] sm:$0xff]   ;;  %v10938_v43 = vld [vmem:[%s15310_s1 + $0x258] sm:$0xff]  }
  0x8b   : > { %v833_v52 = vshrl.u32 %v11937_v17, 16  ;;  %v1241_v55 = vrot.slane %v1240_v45, 4  ;;  %v819_v58 = vrot.slane %v817_v47, 6  ;;  %v825_v59 = vrot.slane %v11972_v44, 5  ;;  %10115 = vmatprep.subr.bf16.mxu1 %v10932_v40 }
  0x8c   : > { %v1259_v57 = vor.u32 %v1258_v46, %v1255_v34  ;;  %v1251_v0 = vrot.slane %v1249_v48, 4  ;;  %v828_v1 = vrot.slane %v11977_v51, 6  ;;  %v836_v5 = vshll.u32 %v11937_v17, 16  ;;  %10669 = vmatpush3.bf16.msra.mxu0 %v10926_v11  ;;  %v10937_v17 = vld [vmem:[%s15310_s1 + $0x298] sm:$0xff]  }
  0x8d   : > { %v835_v3 = vrot.slane %v833_v52, 5  ;;  %v1250_v9 = vsel %vm11505_vm7, %v1241_v55, %v1249_v48  ;;  %v820_v12 = vor.u32 %v819_v58, %v816_v49  ;;  %v8801_v4 = vrot.slane %v11923_v62, 9  ;;  %10670 = vmatprep.subr.bf16.mxu0 %v10927_v29  ;;  %v10940_v48 = vld [vmem:[%s15310_s1 + $0x2a0] sm:$0xff]   ;;  %v10934_v55 = vld [vmem:[%s15310_s1 + $0x228] sm:$0xff]  }
  0x8e   : > { %v1150_v14 = vrot.slane %v11932_v13, 5  ;;  %v1260_v24 = vsel %vm11505_vm7, %v1251_v0, %v1259_v57  ;;  %v829_v25 = vor.u32 %v828_v1, %v825_v59  ;;  %v838_v23 = vrot.slane %v836_v5, 6  ;;  %10116 = vmatpush3.bf16.msra.mxu1 %v10933_v54  ;;  %v10941_v0 = vld [vmem:[%s15310_s1 + $0x260] sm:$0xff]  }
  0x8f   : > { %v1153_v16 = vrot.slane %v8781_v53, 5  ;;  %v8889_v28 = vcombine.low %v1250_v9, %v1260_v24  ;;  %v821_v62 = vrot.slane %v820_v12, 4  ;;  %10117 = vmatprep.subr.bf16.mxu1 %v10935_v63  ;;  %v8768_v11 = vrot.slane %v8760_v60, 10  ;;  %v11112_v60 = vld [vmem:[%s11465_s8 + $0x3c] sm:$0xe]  ;;  %v10942_v24 = vld [vmem:[%s15310_s1 + $0x2a8] sm:$0xff]  }
  0x90   : > { %v1151_v13 = vsel %vm11495_vm6, %v8801_v4, %v1150_v14  ;;  %v1152_v31 = vrot.slane %v1150_v14, 4  ;;  %v831_v35 = vrot.slane %v829_v25, 4  ;;  %v839_v36 = vor.u32 %v838_v23, %v835_v3  ;;  %10671 = vmatpush3.bf16.msra.mxu0 %v10927_v29  ;;  %v8784_v14 = vld [vmem:[%s11465_s8 + $0x50] sm:$0x1] }
  0x91   : > { %v1049_v33 = vrot.slane %v11111_v10, 6  ;;  %2704 = vmatprep.mubr.bf16.mxu1 %v8889_v28  ;;  %v830_v37 = vsel %vm11505_vm7, %v821_v62, %v829_v25  ;;  %v1052_v15 = vrot.slane %v12010_v30, 6  ;;  %v1262_v27 = vshrl.u32 %v11995_v7, 16  ;;  %10672 = vmatprep.subr.bf16.mxu0 %v10928_v61 }
  0x92   : > { %v1154_v38 = vsel %vm11495_vm6, %v1152_v31, %v1153_v16  ;;  %v840_v40 = vsel %vm11505_vm7, %v831_v35, %v839_v36  ;;  %10118 = vmatpush3.bf16.msra.mxu1 %v10936_v8  ;;  %v1265_v47 = vshll.u32 %v11995_v7, 16  ;;  %v1271_v29 = vshrl.u32 %v12016_v21, 16  ;;  %v8761_v36 = vld [vmem:[%s11465_s8 + $0x48] sm:$0xc] }
  0x93   : > { %v8881_v22 = vcombine.low %v1151_v13, %v1154_v38  ;;  %v1050_v34 = vsel %vm11537_vm8, %v8768_v11, %v1049_v33  ;;  %v1051_v42 = vrot.slane %v1049_v33, 4  ;;  %v12035_v45 = vcombine.low %v830_v37, %v840_v40  ;;  %10119 = vmatprep.subr.bf16.mxu1 %v10937_v17  ;;  %v10939_v17 = vld [vmem:[%s15310_s1 + $0x230] sm:$0xff]   ;;  %v10943_v38 = vld [vmem:[%s15310_s1 + $0x268] sm:$0xff]  }
  0x94   : > { %v1264_v46 = vrot.slane %v1262_v27, 5  ;;  %v1274_v52 = vshll.u32 %v12016_v21, 16  ;;  %v1281_v53 = vshrl.u32 %v8810_v19, 16  ;;  %v1284_v54 = vshll.u32 %v8810_v19, 16  ;;  %10673 = vmatpush3.bf16.msra.mxu0 %v10928_v61  ;;  %v12080_v40 = vld [vmem:[%s11465_s8 + $0x50] sm:$0x3] }
  0x95   : > { %15347 = vst [vmem:[#allocation6_spill] sm:$0xff] %v12035_v45  ;;  %2705 = vmatmul.mubr.bf16.gmra.mrb[36].mxu1 %v8881_v22  ;;  %v1053_v49 = vsel %vm11537_vm8, %v1051_v42, %v1052_v15  ;;  %2608 = vmatmul.mubr.bf16.gmra.mrb[36].mxu0 %v12035_v45  ;;  %v1267_v58 = vrot.slane %v1265_v47, 6  ;;  %v1273_v59 = vrot.slane %v1271_v29, 5  ;;  %v842_v63 = vshrl.u32 %v11112_v60, 16  ;;  %v10945_v15 = vld [vmem:[%s15310_s1 + $0x2b0] sm:$0xff]  }
  0x96   : > { %v8874_v57 = vcombine.low %v1050_v34, %v1053_v49  ;;  %10674 = vmatprep.subr.bf16.mxu0 %v10931_v39  ;;  %v1276_v1 = vrot.slane %v1274_v52, 6  ;;  %v1283_v3 = vrot.slane %v1281_v53, 5  ;;  %v1286_v61 = vrot.slane %v1284_v54, 6  ;;  %10120 = vmatpush3.bf16.msra.mxu1 %v10938_v43  ;;  %v8811_v49 = vld [vmem:[%s11465_s8 + $0x5c] sm:$0x3] }
  0x97   : > { %v845_v5 = vshll.u32 %v11112_v60, 16  ;;  %v1268_v8 = vor.u32 %v1267_v58, %v1264_v46  ;;  %v844_v9 = vrot.slane %v842_v63, 5  ;;  %v12053_v12 = vshrl.u32 %v11111_v10, 16  ;;  %10121 = vmatprep.subr.bf16.mxu1 %v10940_v48  ;;  %v12088_v46 = vld [vmem:[%s11465_s8 + $0x58] sm:$0xf] }
  0x98   : > { %2615 = vmatprep.mubr.bf16.mxu0 %v8874_v57  ;;  %v12055_v4 = vshll.u32 %v11111_v10, 16  ;;  %v1277_v25 = vor.u32 %v1276_v1, %v1273_v59  ;;  %v1287_v23 = vor.u32 %v1286_v61, %v1283_v3  ;;  %v861_v28 = vshrl.u32 %v12010_v30, 16  ;;  %10675 = vmatpush3.bf16.msra.mxu0 %v10931_v39  ;;  %v10944_v52 = vld [vmem:[%s15310_s1 + $0x238] sm:$0xff]   ;;  %v11113_v57 = vld [vmem:[%s11465_s8 + $0x4c] sm:$0xf]  ;;  %v10946_v59 = vld [vmem:[%s15310_s1 + $0x270] sm:$0xff]  }
  0x99   : > { %v847_v16 = vrot.slane %v845_v5, 6  ;;  %v1269_v62 = vrot.slane %v1268_v8, 4  ;;  %v853_v13 = vrot.slane %v12053_v12, 5  ;;  %v864_v35 = vshll.u32 %v12010_v30, 16  ;;  %10676 = vmatprep.subr.bf16.mxu0 %v10934_v55  ;;  %v10947_v3 = vld [vmem:[%s15310_s1 + $0x2b8] sm:$0xff]  }
  0x9a   : > { %v856_v31 = vrot.slane %v12055_v4, 6  ;;  %v1279_v11 = vrot.slane %v1277_v25, 4  ;;  %v863_v33 = vrot.slane %v861_v28, 5  ;;  %v8802_v37 = vrot.slane %v11995_v7, 9  ;;  %10122 = vmatpush3.bf16.msra.mxu1 %v10941_v0  ;;  %v12083_v7 = vld [vmem:[%s11465_s8 + $0x54] sm:$0xe] }
  0x9b   : > { %v848_v10 = vor.u32 %v847_v16, %v844_v9  ;;  %v1278_v30 = vsel %vm11505_vm7, %v1269_v62, %v1277_v25  ;;  %v866_v27 = vrot.slane %v864_v35, 6  ;;  %v1157_v39 = vrot.slane %v12016_v21, 5  ;;  %10123 = vmatprep.subr.bf16.mxu1 %v10942_v24  ;;  %v10949_v28 = vld [vmem:[%s15310_s1 + $0x300] sm:$0xff]  }
  0x9c   : > { %v857_v19 = vor.u32 %v856_v31, %v853_v13  ;;  %v1288_v22 = vsel %vm11505_vm7, %v1279_v11, %v1287_v23  ;;  %v1160_v42 = vrot.slane %v8784_v14, 5  ;;  %v8769_v43 = vrot.slane %v8761_v36, 10  ;;  %10677 = vmatpush3.bf16.msra.mxu0 %v10934_v55  ;;  %v10948_v14 = vld [vmem:[%s15310_s1 + $0x278] sm:$0xff]   ;;  %v10963_v35 = vld [vmem:[%s15310_s1 + $0x380] sm:$0xff]  }
  0x9d   : > { %v849_v34 = vrot.slane %v848_v10, 4  ;;  %v8890_v47 = vcombine.low %v1278_v30, %v1288_v22  ;;  %v867_v48 = vor.u32 %v866_v27, %v863_v33  ;;  %v1158_v21 = vsel %vm11495_vm6, %v8802_v37, %v1157_v39  ;;  %10678 = vmatprep.subr.bf16.mxu0 %v10939_v17  ;;  %v11114_v10 = vld [vmem:[%s11465_s8 + $0x48] sm:$0xe] }
  0x9e   : > { %v859_v29 = vrot.slane %v857_v19, 4  ;;  %v1159_v54 = vrot.slane %v1157_v39, 4  ;;  %v1056_v58 = vrot.slane %v11113_v57, 6  ;;  %v1059_v55 = vrot.slane %v12080_v40, 6  ;;  %10124 = vmatpush3.bf16.msra.mxu1 %v10943_v38 }
  0x9f   : > { %v858_v53 = vsel %vm11505_vm7, %v849_v34, %v857_v19  ;;  %2712 = vmatprep.mubr.bf16.mxu1 %v8890_v47  ;;  %v1290_v63 = vshrl.u32 %v12083_v7, 16  ;;  %v1293_v0 = vshll.u32 %v12083_v7, 16  ;;  %v1299_v1 = vshrl.u32 %v12088_v46, 16  ;;  %10125 = vmatprep.subr.bf16.mxu1 %v10945_v15 }
  0xa0   : > { %v868_v60 = vsel %vm11505_vm7, %v859_v29, %v867_v48  ;;  %v1161_v5 = vsel %vm11495_vm6, %v1159_v54, %v1160_v42  ;;  %v1057_v8 = vsel %vm11537_vm8, %v8769_v43, %v1056_v58  ;;  %v1058_v9 = vrot.slane %v1056_v58, 4  ;;  %10679 = vmatpush3.bf16.msra.mxu0 %v10939_v17  ;;  %v8787_v48 = vld [vmem:[%s11465_s8 + $0x5c] sm:$0x1]  ;;  %v8762_v54 = vld [vmem:[%s11465_s8 + $0x54] sm:$0xc] }
  0xa1   : > { %v12111_v61 = vcombine.low %v858_v53, %v868_v60  ;;  %v8882_v24 = vcombine.low %v1158_v21, %v1161_v5  ;;  %v1292_v25 = vrot.slane %v1290_v63, 5  ;;  %v1295_v23 = vrot.slane %v1293_v0, 6  ;;  %10680 = vmatprep.subr.bf16.mxu0 %v10944_v52  ;;  %v12146_v60 = vld [vmem:[%s11465_s8 + $0x60] sm:$0xe]  ;;  %v12150_v5 = vld [vmem:[%s11465_s8 + $0x64] sm:$0xf] }
  0xa2   : > { %v1301_v16 = vrot.slane %v1299_v1, 5  ;;  %v1060_v62 = vsel %vm11537_vm8, %v1058_v9, %v1059_v55  ;;  %v1302_v17 = vshll.u32 %v12088_v46, 16  ;;  %v1309_v13 = vshrl.u32 %v8811_v49, 16  ;;  %10126 = vmatpush3.bf16.msra.mxu1 %v10946_v59 }
  0xa3   : > { %15348 = vst [vmem:[#allocation7_spill] sm:$0xff] %v12111_v61  ;;  %2616 = vmatmul.mubr.bf16.gmra.mrb[40].mxu0 %v12111_v61  ;;  %v1312_v31 = vshll.u32 %v8811_v49, 16  ;;  %2713 = vmatmul.mubr.bf16.gmra.mrb[40].mxu1 %v8882_v24  ;;  %v8875_v36 = vcombine.low %v1057_v8, %v1060_v62  ;;  %v1296_v11 = vor.u32 %v1295_v23, %v1292_v25  ;;  %v870_v33 = vshrl.u32 %v11114_v10, 16  ;;  %v12157_v24 = vld [vmem:[%s11465_s8 + $0x68] sm:$0x3] }
  0xa4   : > { %v873_v37 = vshll.u32 %v11114_v10, 16  ;;  %10127 = vmatprep.subr.bf16.mxu1 %v10947_v3  ;;  %v1304_v38 = vrot.slane %v1302_v17, 6  ;;  %v1311_v15 = vrot.slane %v1309_v13, 5  ;;  %v12131_v19 = vshrl.u32 %v11113_v57, 16  ;;  %10681 = vmatpush3.bf16.msra.mxu0 %v10944_v52  ;;  %v11115_v62 = vld [vmem:[%s11465_s8 + $0x58] sm:$0xf] }
  0xa5   : > { %v1314_v30 = vrot.slane %v1312_v31, 6  ;;  %2623 = vmatprep.mubr.bf16.mxu0 %v8875_v36  ;;  %v1297_v27 = vrot.slane %v1296_v11, 4  ;;  %v872_v39 = vrot.slane %v870_v33, 5  ;;  %v12133_v34 = vshll.u32 %v11113_v57, 16  ;;  %10177 = vmatprep.subr.bf16.mxu0 %v10949_v28 }
  0xa6   : > { %v875_v22 = vrot.slane %v873_v37, 6  ;;  %v1305_v42 = vor.u32 %v1304_v38, %v1301_v16  ;;  %v881_v47 = vrot.slane %v12131_v19, 5  ;;  %v889_v29 = vshrl.u32 %v12080_v40, 16  ;;  %10128 = vmatpush3.bf16.msra.mxu1 %v10948_v14 }
  0xa7   : > { %v1315_v43 = vor.u32 %v1314_v30, %v1311_v15  ;;  %v884_v49 = vrot.slane %v12133_v34, 6  ;;  %v892_v52 = vshll.u32 %v12080_v40, 16  ;;  %v8803_v53 = vrot.slane %v12083_v7, 9  ;;  %10241 = vmatprep.subr.bf16.mxu1 %v10963_v35  ;;  %v8754_v40 = vld [vmem:[%s11465_s8 + $0x5c] sm:$0x3] }
  0xa8   : > { %v876_v21 = vor.u32 %v875_v22, %v872_v39  ;;  %v1306_v57 = vsel %vm11505_vm7, %v1297_v27, %v1305_v42  ;;  %v1307_v58 = vrot.slane %v1305_v42, 4  ;;  %v891_v55 = vrot.slane %v889_v29, 5 }
  0xa9   : > { %v1164_v59 = vrot.slane %v12088_v46, 5  ;;  %v885_v0 = vor.u32 %v884_v49, %v881_v47  ;;  %v894_v1 = vrot.slane %v892_v52, 6  ;;  %v1167_v3 = vrot.slane %v8787_v48, 5  ;;  %v11116_v47 = vld [vmem:[%s11465_s8 + $0x54] sm:$0xe] }
  0xaa   : > { %v877_v63 = vrot.slane %v876_v21, 4  ;;  %v1316_v7 = vsel %vm11505_vm7, %v1307_v58, %v1315_v43  ;;  %v8770_v14 = vrot.slane %v8762_v54, 10  ;;  %v1063_v17 = vrot.slane %v11115_v62, 6 }
  0xab   : > { %v1165_v8 = vsel %vm11495_vm6, %v8803_v53, %v1164_v59  ;;  %v1166_v9 = vrot.slane %v1164_v59, 4  ;;  %v8891_v46 = vcombine.low %v1306_v57, %v1316_v7  ;;  %v887_v23 = vrot.slane %v885_v0, 4 }
  0xac   : > { %v886_v25 = vsel %vm11505_vm7, %v877_v63, %v885_v0  ;;  %v895_v16 = vor.u32 %v894_v1, %v891_v55  ;;  %v1066_v13 = vrot.slane %v8754_v40, 6  ;;  %v1318_v31 = vshrl.u32 %v12146_v60, 16 }
  0xad   : > { %v1168_v28 = vsel %vm11495_vm6, %v1166_v9, %v1167_v3  ;;  %2720 = vmatprep.mubr.bf16.mxu1 %v8891_v46  ;;  %v1321_v11 = vshll.u32 %v12146_v60, 16  ;;  %v1327_v10 = vshrl.u32 %v12150_v5, 16  ;;  %v1064_v37 = vsel %vm11537_vm8, %v8770_v14, %v1063_v17  ;;  %v8790_v3 = vld [vmem:[%s11465_s8 + $0x68] sm:$0x1]  ;;  %v8763_v46 = vld [vmem:[%s11465_s8 + $0x60] sm:$0xc] }
  0xae   : > { %v896_v35 = vsel %vm11505_vm7, %v887_v23, %v895_v16  ;;  %v8883_v36 = vcombine.low %v1165_v8, %v1168_v28  ;;  %v1065_v38 = vrot.slane %v1063_v17, 4  ;;  %v1320_v15 = vrot.slane %v1318_v31, 5  ;;  %v12191_v17 = vld [vmem:[%s11465_s8 + $0x6c] sm:$0xe] }
  0xaf   : > { %v12169_v33 = vcombine.low %v886_v25, %v896_v35  ;;  %v1323_v30 = vrot.slane %v1321_v11, 6  ;;  %v1329_v27 = vrot.slane %v1327_v10, 5  ;;  %v1330_v39 = vshll.u32 %v12150_v5, 16 }
  0xb0   : > { %2721 = vmatmul.mubr.bf16.gmra.mrb[44].mxu1 %v8883_v36  ;;  %v1337_v22 = vshrl.u32 %v12157_v24, 16  ;;  %v1067_v42 = vsel %vm11537_vm8, %v1065_v38, %v1066_v13  ;;  %v1340_v43 = vshll.u32 %v12157_v24, 16  ;;  %v898_v29 = vshrl.u32 %v11116_v47, 16  ;;  %v12199_v36 = vld [vmem:[%s11465_s8 + $0x68] sm:$0x3] }
  0xb1   : > { %15349 = vst [vmem:[#allocation8_spill] sm:$0xff] %v12169_v33  ;;  %2624 = vmatmul.mubr.bf16.gmra.mrb[44].mxu0 %v12169_v33  ;;  %v901_v48 = vshll.u32 %v11116_v47, 16  ;;  %v8876_v21 = vcombine.low %v1064_v37, %v1067_v42  ;;  %v1324_v49 = vor.u32 %v1323_v30, %v1320_v15  ;;  %v1332_v52 = vrot.slane %v1330_v39, 6 }
  0xb2   : > { %v1339_v53 = vrot.slane %v1337_v22, 5  ;;  %v1342_v54 = vrot.slane %v1340_v43, 6  ;;  %v900_v57 = vrot.slane %v898_v29, 5  ;;  %v12180_v55 = vshrl.u32 %v11115_v62, 16  ;;  %v12206_v22 = vld [vmem:[%s11465_s8 + $0x74] sm:$0x3] }
  0xb3   : > { %v903_v58 = vrot.slane %v901_v48, 6  ;;  %2631 = vmatprep.mubr.bf16.mxu0 %v8876_v21  ;;  %v1325_v59 = vrot.slane %v1324_v49, 4  ;;  %v1333_v63 = vor.u32 %v1332_v52, %v1329_v27  ;;  %v12182_v0 = vshll.u32 %v11115_v62, 16  ;;  %v12194_v62 = vld [vmem:[%s11465_s8 + $0x70] sm:$0xf] }
  0xb4   : > { %v917_v1 = vshrl.u32 %v8754_v40, 16  ;;  %v1343_v7 = vor.u32 %v1342_v54, %v1339_v53  ;;  %v909_v9 = vrot.slane %v12180_v55, 5  ;;  %v920_v14 = vshll.u32 %v8754_v40, 16  ;;  %v11117_v43 = vld [vmem:[%s11465_s8 + $0x64] sm:$0xf] }
  0xb5   : > { %v904_v8 = vor.u32 %v903_v58, %v900_v57  ;;  %v1334_v25 = vsel %vm11505_vm7, %v1325_v59, %v1333_v63  ;;  %v1335_v23 = vrot.slane %v1333_v63, 4  ;;  %v912_v16 = vrot.slane %v12182_v0, 6 }
  0xb6   : > { %v919_v28 = vrot.slane %v917_v1, 5  ;;  %v922_v31 = vrot.slane %v920_v14, 6  ;;  %v8804_v35 = vrot.slane %v12146_v60, 9  ;;  %v1171_v40 = vrot.slane %v12150_v5, 5 }
  0xb7   : > { %v905_v13 = vrot.slane %v904_v8, 4  ;;  %v1344_v11 = vsel %vm11505_vm7, %v1335_v23, %v1343_v7  ;;  %v913_v10 = vor.u32 %v912_v16, %v909_v9  ;;  %v1174_v37 = vrot.slane %v8790_v3, 5  ;;  %v11118_v23 = vld [vmem:[%s11465_s8 + $0x60] sm:$0xe] }
  0xb8   : > { %v8771_v38 = vrot.slane %v8763_v46, 10  ;;  %v8892_v15 = vcombine.low %v1334_v25, %v1344_v11  ;;  %v923_v30 = vor.u32 %v922_v31, %v919_v28  ;;  %v1172_v27 = vsel %vm11495_vm6, %v8804_v35, %v1171_v40  ;;  %v8793_v11 = vld [vmem:[%s11465_s8 + $0x74] sm:$0x1] }
  0xb9   : > { %v1173_v39 = vrot.slane %v1171_v40, 4  ;;  %v914_v60 = vsel %vm11505_vm7, %v905_v13, %v913_v10  ;;  %v915_v42 = vrot.slane %v913_v10, 4  ;;  %v1070_v47 = vrot.slane %v11117_v43, 6 }
  0xba   : > { %v1073_v29 = vrot.slane %v12199_v36, 6  ;;  %2728 = vmatprep.mubr.bf16.mxu1 %v8892_v15  ;;  %v1346_v21 = vshrl.u32 %v12191_v17, 16  ;;  %v1349_v49 = vshll.u32 %v12191_v17, 16  ;;  %v1355_v52 = vshrl.u32 %v12194_v62, 16 }
  0xbb   : > { %v1175_v48 = vsel %vm11495_vm6, %v1173_v39, %v1174_v37  ;;  %v924_v53 = vsel %vm11505_vm7, %v915_v42, %v923_v30  ;;  %v1071_v57 = vsel %vm11537_vm8, %v8771_v38, %v1070_v47  ;;  %v1072_v58 = vrot.slane %v1070_v47, 4  ;;  %v8764_v30 = vld [vmem:[%s11465_s8 + $0x6c] sm:$0xc] }
  0xbc   : > { %v8884_v54 = vcombine.low %v1172_v27, %v1175_v48  ;;  %v12221_v59 = vcombine.low %v914_v60, %v924_v53  ;;  %v1348_v63 = vrot.slane %v1346_v21, 5  ;;  %v1351_v1 = vrot.slane %v1349_v49, 6  ;;  %v12242_v49 = vld [vmem:[%s11465_s8 + $0x78] sm:$0xe] }
  0xbd   : > { %v1357_v3 = vrot.slane %v1355_v52, 5  ;;  %v1074_v7 = vsel %vm11537_vm8, %v1072_v58, %v1073_v29  ;;  %v1358_v8 = vshll.u32 %v12194_v62, 16  ;;  %v1365_v9 = vshrl.u32 %v12206_v22, 16 }
  0xbe   : > { %15350 = vst [vmem:[#allocation9_spill] sm:$0xff] %v12221_v59  ;;  %2729 = vmatmul.mubr.bf16.gmra.mrb[48].mxu1 %v8884_v54  ;;  %v1368_v14 = vshll.u32 %v12206_v22, 16  ;;  %2632 = vmatmul.mubr.bf16.gmra.mrb[48].mxu0 %v12221_v59  ;;  %v8877_v46 = vcombine.low %v1071_v57, %v1074_v7  ;;  %v1352_v25 = vor.u32 %v1351_v1, %v1348_v63  ;;  %v926_v16 = vshrl.u32 %v11118_v23, 16  ;;  %v12248_v57 = vld [vmem:[%s11465_s8 + $0x7c] sm:$0xf] }
  0xbf   : > { %v929_v28 = vshll.u32 %v11118_v23, 16  ;;  %v1360_v13 = vrot.slane %v1358_v8, 6  ;;  %v1367_v31 = vrot.slane %v1365_v9, 5  ;;  %v12230_v40 = vshrl.u32 %v11117_v43, 16  ;;  %v8756_v23 = vld [vmem:[%s11465_s8 + $0x74] sm:$0x3] }
  0xc0   : > { %v1370_v35 = vrot.slane %v1368_v14, 6  ;;  %2639 = vmatprep.mubr.bf16.mxu0 %v8877_v46  ;;  %v1353_v10 = vrot.slane %v1352_v25, 4  ;;  %v928_v37 = vrot.slane %v926_v16, 5  ;;  %v12233_v15 = vshll.u32 %v11117_v43, 16 }
  0xc1   : > { %v931_v38 = vrot.slane %v929_v28, 6  ;;  %v1361_v27 = vor.u32 %v1360_v13, %v1357_v3  ;;  %v937_v60 = vrot.slane %v12230_v40, 5  ;;  %v945_v42 = vshrl.u32 %v12199_v36, 16  ;;  %v11119_v28 = vld [vmem:[%s11465_s8 + $0x70] sm:$0xf] }
  0xc2   : > { %v1371_v39 = vor.u32 %v1370_v35, %v1367_v31  ;;  %v940_v29 = vrot.slane %v12233_v15, 6  ;;  %v948_v48 = vshll.u32 %v12199_v36, 16  ;;  %v8805_v21 = vrot.slane %v12191_v17, 9  ;;  %v12261_v35 = vld [vmem:[%s11465_s8 + $0x80] sm:$0x3] }
  0xc3   : > { %v932_v47 = vor.u32 %v931_v38, %v928_v37  ;;  %v1362_v43 = vsel %vm11505_vm7, %v1353_v10, %v1361_v27  ;;  %v1363_v52 = vrot.slane %v1361_v27, 4  ;;  %v947_v53 = vrot.slane %v945_v42, 5 }
  0xc4   : > { %v1178_v54 = vrot.slane %v12194_v62, 5  ;;  %v941_v63 = vor.u32 %v940_v29, %v937_v60  ;;  %v950_v1 = vrot.slane %v948_v48, 6  ;;  %v1181_v36 = vrot.slane %v8793_v11, 5 }
  0xc5   : > { %v933_v58 = vrot.slane %v932_v47, 4  ;;  %v1372_v17 = vsel %vm11505_vm7, %v1363_v52, %v1371_v39  ;;  %v8772_v8 = vrot.slane %v8764_v30, 10  ;;  %v1077_v13 = vrot.slane %v11119_v28, 6 }
  0xc6   : > { %v1179_v3 = vsel %vm11495_vm6, %v8805_v21, %v1178_v54  ;;  %v1180_v7 = vrot.slane %v1178_v54, 4  ;;  %v8893_v9 = vcombine.low %v1362_v43, %v1372_v17  ;;  %v943_v46 = vrot.slane %v941_v63, 4 }
  0xc7   : > { %v942_v14 = vsel %vm11505_vm7, %v933_v58, %v941_v63  ;;  %v951_v25 = vor.u32 %v950_v1, %v947_v53  ;;  %v1080_v31 = vrot.slane %v8756_v23, 6  ;;  %v1374_v11 = vshrl.u32 %v12242_v49, 16  ;;  %v11120_v53 = vld [vmem:[%s11465_s8 + $0x6c] sm:$0xe] }
  0xc8   : > { %v1182_v16 = vsel %vm11495_vm6, %v1180_v7, %v1181_v36  ;;  %2736 = vmatprep.mubr.bf16.mxu1 %v8893_v9  ;;  %v1377_v38 = vshll.u32 %v12242_v49, 16  ;;  %v1383_v30 = vshrl.u32 %v12248_v57, 16  ;;  %v1078_v39 = vsel %vm11537_vm8, %v8772_v8, %v1077_v13 }
  0xc9   : > { %v952_v10 = vsel %vm11505_vm7, %v943_v46, %v951_v25  ;;  %v8885_v37 = vcombine.low %v1179_v3, %v1182_v16  ;;  %v1079_v60 = vrot.slane %v1077_v13, 4  ;;  %v1376_v42 = vrot.slane %v1374_v11, 5  ;;  %v8765_v46 = vld [vmem:[%s11465_s8 + $0x78] sm:$0xc] }
  0xca   : > { %v12268_v27 = vcombine.low %v942_v14, %v952_v10  ;;  %v1379_v47 = vrot.slane %v1377_v38, 6  ;;  %v1385_v29 = vrot.slane %v1383_v30, 5  ;;  %v1386_v48 = vshll.u32 %v12248_v57, 16  ;;  %v8796_v14 = vld [vmem:[%s11465_s8 + $0x80] sm:$0x1] }
  0xcb   : > { %2737 = vmatmul.mubr.bf16.gmra.mrb[52].mxu1 %v8885_v37  ;;  %v1393_v21 = vshrl.u32 %v12261_v35, 16  ;;  %v1081_v43 = vsel %vm11537_vm8, %v1079_v60, %v1080_v31  ;;  %v1396_v52 = vshll.u32 %v12261_v35, 16  ;;  %v954_v54 = vshrl.u32 %v11120_v53, 16 }
  0xcc   : > { %15351 = vst [vmem:[#allocation10_spill] sm:$0xff] %v12268_v27  ;;  %2640 = vmatmul.mubr.bf16.gmra.mrb[52].mxu0 %v12268_v27  ;;  %v957_v58 = vshll.u32 %v11120_v53, 16  ;;  %v8878_v63 = vcombine.low %v1078_v39, %v1081_v43  ;;  %v1380_v1 = vor.u32 %v1379_v47, %v1376_v42  ;;  %v1388_v36 = vrot.slane %v1386_v48, 6  ;;  %v12294_v53 = vld [vmem:[%s11465_s8 + $0x84] sm:$0xe] }
  0xcd   : > { %v1395_v17 = vrot.slane %v1393_v21, 5  ;;  %v1398_v3 = vrot.slane %v1396_v52, 6  ;;  %v956_v7 = vrot.slane %v954_v54, 5  ;;  %v12279_v9 = vshrl.u32 %v11119_v28, 16  ;;  %v12297_v54 = vld [vmem:[%s11465_s8 + $0x88] sm:$0xf] }
  0xce   : > { %v959_v8 = vrot.slane %v957_v58, 6  ;;  %2647 = vmatprep.mubr.bf16.mxu0 %v8878_v63  ;;  %v1381_v25 = vrot.slane %v1380_v1, 4  ;;  %v1389_v16 = vor.u32 %v1388_v36, %v1385_v29  ;;  %v12283_v13 = vshll.u32 %v11119_v28, 16 }
  0xcf   : > { %v973_v31 = vshrl.u32 %v8756_v23, 16  ;;  %v1399_v11 = vor.u32 %v1398_v3, %v1395_v17  ;;  %v965_v37 = vrot.slane %v12279_v9, 5  ;;  %v976_v38 = vshll.u32 %v8756_v23, 16 }
  0xd0   : > { %v960_v10 = vor.u32 %v959_v8, %v956_v7  ;;  %v1390_v30 = vsel %vm11505_vm7, %v1381_v25, %v1389_v16  ;;  %v1391_v39 = vrot.slane %v1389_v16, 4  ;;  %v968_v60 = vrot.slane %v12283_v13, 6  ;;  %v11121_v7 = vld [vmem:[%s11465_s8 + $0x7c] sm:$0xf]  ;;  %v12308_v25 = vld [vmem:[%s11465_s8 + $0x8c] sm:$0x3] }
  0xd1   : > { %v975_v42 = vrot.slane %v973_v31, 5  ;;  %v978_v29 = vrot.slane %v976_v38, 6  ;;  %v8806_v28 = vrot.slane %v12242_v49, 9  ;;  %v1185_v48 = vrot.slane %v12248_v57, 5  ;;  %v8757_v49 = vld [vmem:[%s11465_s8 + $0x80] sm:$0x3] }
  0xd2   : > { %v961_v47 = vrot.slane %v960_v10, 4  ;;  %v1400_v21 = vsel %vm11505_vm7, %v1391_v39, %v1399_v11  ;;  %v969_v43 = vor.u32 %v968_v60, %v965_v37  ;;  %v1188_v23 = vrot.slane %v8796_v14, 5 }
  0xd3   : > { %v8773_v52 = vrot.slane %v8765_v46, 10  ;;  %v8894_v58 = vcombine.low %v1390_v30, %v1400_v21  ;;  %v979_v63 = vor.u32 %v978_v29, %v975_v42  ;;  %v1186_v1 = vsel %vm11495_vm6, %v8806_v28, %v1185_v48 }
  0xd4   : > { %v1187_v36 = vrot.slane %v1185_v48, 4  ;;  %v970_v17 = vsel %vm11505_vm7, %v961_v47, %v969_v43  ;;  %v971_v3 = vrot.slane %v969_v43, 4  ;;  %v1084_v8 = vrot.slane %v11121_v7, 6 }
  0xd5   : > { %v1087_v14 = vrot.slane %v8757_v49, 6  ;;  %2744 = vmatprep.mubr.bf16.mxu1 %v8894_v58  ;;  %v1402_v16 = vshrl.u32 %v12294_v53, 16  ;;  %v1405_v31 = vshll.u32 %v12294_v53, 16  ;;  %v1411_v11 = vshrl.u32 %v12297_v54, 16 }
  0xd6   : > { %v1189_v46 = vsel %vm11495_vm6, %v1187_v36, %v1188_v23  ;;  %v980_v10 = vsel %vm11505_vm7, %v971_v3, %v979_v63  ;;  %v1085_v38 = vsel %vm11537_vm8, %v8773_v52, %v1084_v8  ;;  %v1086_v30 = vrot.slane %v1084_v8, 4  ;;  %v11122_v52 = vld [vmem:[%s11465_s8 + $0x78] sm:$0xe] }
  0xd7   : > { %v8886_v37 = vcombine.low %v1186_v1, %v1189_v46  ;;  %v12317_v39 = vcombine.low %v970_v17, %v980_v10  ;;  %v1404_v60 = vrot.slane %v1402_v16, 5  ;;  %v1407_v42 = vrot.slane %v1405_v31, 6 }
  0xd8   : > { %v1413_v47 = vrot.slane %v1411_v11, 5  ;;  %v1088_v29 = vsel %vm11537_vm8, %v1086_v30, %v1087_v14  ;;  %v1414_v28 = vshll.u32 %v12297_v54, 16  ;;  %v1421_v48 = vshrl.u32 %v12308_v25, 16 }
  0xd9   : > { %15352 = vst [vmem:[#allocation11_spill] sm:$0xff] %v12317_v39  ;;  %2745 = vmatmul.mubr.bf16.gmra.mrb[56].mxu1 %v8886_v37  ;;  %v1424_v21 = vshll.u32 %v12308_v25, 16  ;;  %2648 = vmatmul.mubr.bf16.gmra.mrb[56].mxu0 %v12317_v39  ;;  %v8879_v43 = vcombine.low %v1085_v38, %v1088_v29  ;;  %v1408_v23 = vor.u32 %v1407_v42, %v1404_v60  ;;  %v982_v58 = vshrl.u32 %v11122_v52, 16  ;;  %v8799_v38 = vld [vmem:[%s11465_s8 + $0x8c] sm:$0x1] }
  0xda   : > { %v985_v63 = vshll.u32 %v11122_v52, 16  ;;  %v1416_v1 = vrot.slane %v1414_v28, 6  ;;  %v1423_v36 = vrot.slane %v1421_v48, 5  ;;  %v12326_v3 = vshrl.u32 %v11121_v7, 16  ;;  %v8816_v28 = vld [vmem:[%s11465_s8 + $0x30] sm:$0xc] }
  0xdb   : > { %v1426_v17 = vrot.slane %v1424_v21, 6  ;;  %2655 = vmatprep.mubr.bf16.mxu0 %v8879_v43  ;;  %v1409_v8 = vrot.slane %v1408_v23, 4  ;;  %v984_v14 = vrot.slane %v982_v58, 5  ;;  %v12328_v16 = vshll.u32 %v11121_v7, 16 }
  0xdc   : > { %15353 = vst [vmem:[#allocation12_spill] sm:$0xff] %v12326_v3  ;;  %v987_v46 = vrot.slane %v985_v63, 6  ;;  %v1417_v31 = vor.u32 %v1416_v1, %v1413_v47  ;;  %v993_v10 = vrot.slane %v12326_v3, 5  ;;  %v1001_v37 = vshrl.u32 %v8757_v49, 16 }
  0xdd   : > { %15354 = vst [vmem:[#allocation13_spill] sm:$0xff] %v12328_v16  ;;  %v1427_v11 = vor.u32 %v1426_v17, %v1423_v36  ;;  %v996_v60 = vrot.slane %v12328_v16, 6  ;;  %v1004_v42 = vshll.u32 %v8757_v49, 16  ;;  %v8807_v29 = vrot.slane %v12294_v53, 9  ;;  %v8979_v49 = vld [vmem:[%s11465_s8 + $0x10] sm:$0xf] }
  0xde   : > { %v988_v30 = vor.u32 %v987_v46, %v984_v14  ;;  %v1418_v7 = vsel %vm11505_vm7, %v1409_v8, %v1417_v31  ;;  %v1419_v48 = vrot.slane %v1417_v31, 4  ;;  %v1003_v47 = vrot.slane %v1001_v37, 5  ;;  %v9002_v17 = vld [vmem:[%s11465_s8 + $0xc] sm:$0xe]  ;;  %v9003_v8 = vld [vmem:[%s11465_s8 + $0x14] sm:$0x3] }
  0xdf   : > { %v1192_v21 = vrot.slane %v12297_v54, 5  ;;  %v997_v23 = vor.u32 %v996_v60, %v993_v10  ;;  %v1006_v52 = vrot.slane %v1004_v42, 6  ;;  %v1195_v58 = vrot.slane %v8799_v38, 5  ;;  %v8817_v37 = vld [vmem:[%s11465_s8 + $0x3c] sm:$0xc] }
  0xe0   : > { %v989_v43 = vrot.slane %v988_v30, 4  ;;  %v1428_v53 = vsel %vm11505_vm7, %v1419_v48, %v1427_v11  ;;  %v8824_v36 = vrot.slane %v8816_v28, 10  ;;  %v11123_v30 = vld [vmem:[%s11465_s8 + $0x34] sm:$0xf]  ;;  %v11124_v60 = vld [vmem:[%s11465_s8 + $0x38] sm:$0x3] }
  0xe1   : > { %v1193_v63 = vsel %vm11495_vm6, %v8807_v29, %v1192_v21  ;;  %v1194_v1 = vrot.slane %v1192_v21, 4  ;;  %v8895_v14 = vcombine.low %v1418_v7, %v1428_v53  ;;  %v999_v31 = vrot.slane %v997_v23, 4  ;;  %v8983_v16 = vld [vmem:[%s11465_s8 + $0x20] sm:$0x1] }
  0xe2   : > { %v998_v46 = vsel %vm11505_vm7, %v989_v43, %v997_v23  ;;  %v1007_v10 = vor.u32 %v1006_v52, %v1003_v47  ;;  %v1455_v11 = vrot.slane %v11123_v30, 6  ;;  %v1458_v42 = vrot.slane %v11124_v60, 6  ;;  %v8978_v52 = vld [vmem:[%s11465_s8 + $0xc] sm:$0xf]  ;;  %v11125_v30 = vld [vmem:[%s11465_s8 + $0x40] sm:$0xf] }
  0xe3   : > { %v1196_v38 = vsel %vm11495_vm6, %v1194_v1, %v1195_v58  ;;  %v12352_v29 = vshll.u32 %v8979_v49, 16  ;;  %2752 = vmatprep.mubr.bf16.mxu1 %v8895_v14  ;;  %v12356_v48 = vshrl.u32 %v8979_v49, 16  ;;  %v3098_v21 = vshrl.u32 %v9002_v17, 16 }
  0xe4   : > { %v1008_v28 = vsel %vm11505_vm7, %v999_v31, %v1007_v10  ;;  %v8887_v7 = vcombine.low %v1193_v63, %v1196_v38  ;;  %v1456_v50 = vsel %vm11537_vm8, %v8824_v36, %v1455_v11  ;;  %v1457_v43 = vrot.slane %v1455_v11, 4  ;;  %v8980_v36 = vld [vmem:[%s11465_s8 + $0x14] sm:$0x1] }
  0xe5   : > { %v12358_v47 = vcombine.low %v998_v46, %v1008_v28  ;;  %v3101_v23 = vshll.u32 %v9002_v17, 16  ;;  %v3100_v58 = vrot.slane %v3098_v21, 5  ;;  %v3106_v53 = vrot.slane %v12356_v48, 5 }
  0xe6   : > { %2753 = vmatmul.mubr.bf16.gmra.mrb[60].mxu1 %v8887_v7  ;;  %v3107_v1 = vrot.slane %v12352_v29, 6  ;;  %v3112_v63 = vshrl.u32 %v9003_v8, 16  ;;  %v1459_v49 = vsel %vm11537_vm8, %v1457_v43, %v1458_v42  ;;  %v3115_v46 = vshll.u32 %v9003_v8, 16 }
  0xe7   : > { %15355 = vst [vmem:[#allocation14_spill] sm:$0xff] %v12358_v47  ;;  %2656 = vmatmul.mubr.bf16.gmra.mrb[60].mxu0 %v12358_v47  ;;  %v3103_v14 = vrot.slane %v3101_v23, 6  ;;  %v8825_v31 = vrot.slane %v8817_v37, 10  ;;  %v8896_v10 = vcombine.low %v1456_v50, %v1459_v49  ;;  %v1462_v11 = vrot.slane %v11125_v30, 6 }
  0xe8   : > { %v3108_v17 = vor.u32 %v3107_v1, %v3106_v53  ;;  %v3114_v38 = vrot.slane %v3112_v63, 5  ;;  %v3117_v28 = vrot.slane %v3115_v46, 6  ;;  %v2890_v8 = vshrl.u32 %v8978_v52, 16  ;;  %v8818_v53 = vld [vmem:[%s11465_s8 + $0x48] sm:$0xc] }
  0xe9   : > { %v3104_v60 = vor.u32 %v3103_v14, %v3100_v58  ;;  %10682 = vmatprep.mubr.bf16.mxu0 %v8896_v10  ;;  %v1463_v42 = vsel %vm11537_vm8, %v8825_v31, %v1462_v11  ;;  %v1464_v21 = vrot.slane %v1462_v11, 4  ;;  %v2893_v43 = vshll.u32 %v8978_v52, 16  ;;  %v10950_v14 = vld [vmem:[%s15310_s1 + $0x2c0] sm:$0xff]   ;;  %v8982_v46 = vld [vmem:[%s11465_s8 + $0x1c] sm:$0xf] }
  0xea   : > { %v3110_v7 = vrot.slane %v3108_v17, 4  ;;  %v3118_v50 = vor.u32 %v3117_v28, %v3114_v38  ;;  %v2901_v23 = vrot.slane %v12352_v29, 5  ;;  %v2892_v1 = vrot.slane %v2890_v8, 4  ;;  %v11127_v8 = vld [vmem:[%s11465_s8 + $0x50] sm:$0x3] }
  0xeb   : > { %v3105_v37 = vrot.slane %v3104_v60, 4  ;;  %v1466_v58 = vsel %vm11537_vm8, %v1464_v21, %v1465_v41  ;;  %v2905_v63 = vrot.slane %v12356_v48, 4  ;;  %v2909_v49 = vshll.u32 %v8980_v36, 16  ;;  %v10951_v41 = vld [vmem:[%s15310_s1 + $0x308] sm:$0xff]   ;;  %v9004_v36 = vld [vmem:[%s11465_s8 + $0x18] sm:$0xe] }
  0xec   : > { %v3119_v26 = vsel %vm11505_vm7, %v3110_v7, %v3118_v50  ;;  %v8897_v31 = vcombine.low %v1463_v42, %v1466_v58  ;;  %v2895_v10 = vrot.slane %v2893_v43, 5  ;;  %v10952_v60 = vld [vmem:[%s15310_s1 + $0x2c8] sm:$0xff]   ;;  %v12402_v50 = vshll.u32 %v8982_v46, 16  ;;  %v9005_v43 = vld [vmem:[%s11465_s8 + $0x20] sm:$0x3] }
  0xed   : > { %v3109_v52 = vsel %vm11505_vm7, %v3105_v37, %v3108_v17  ;;  %v2906_v30 = vor.u32 %v2905_v63, %v2901_v23  ;;  %v2911_v11 = vrot.slane %v2909_v49, 5  ;;  %v8826_v17 = vrot.slane %v8818_v53, 10  ;;  %v11126_v42 = vld [vmem:[%s11465_s8 + $0x4c] sm:$0xf]  ;;  %v10953_v53 = vld [vmem:[%s15310_s1 + $0x310] sm:$0xff]  }
  0xee   : > { %v9116_v38 = vcombine.low %v3109_v52, %v3119_v26  ;;  %v2896_v7 = vor.u32 %v2895_v10, %v2892_v1  ;;  %v1469_v21 = vrot.slane %v11126_v42, 6  ;;  %v1472_v37 = vrot.slane %v11127_v8, 6  ;;  %v8819_v1 = vld [vmem:[%s11465_s8 + $0x54] sm:$0xc]  ;;  %v8981_v8 = vld [vmem:[%s11465_s8 + $0x18] sm:$0xf] }
  0xef   : > { %10683 = vmatmul.mubr.bf16.vlgmr.msra.gmra.mrb[64].mxu0 %v8897_v31  ;;  %v2907_v58 = vrot.slane %v2906_v30, 4  ;;  %v12408_v63 = vshrl.u32 %v8982_v46, 16  ;;  %v3121_v49 = vshrl.u32 %v9004_v36, 16  ;;  %v3124_v52 = vshll.u32 %v9004_v36, 16 }
  0xf0   : > { %5321 = vmatprep.mubr.bf16.mxu1 %v9116_v38  ;;  %10178 = vmatpush3.bf16.msra.mxu0 %v10950_v14  ;;  %v2897_v26 = vrot.slane %v2896_v7, 4  ;;  %v1470_v31 = vsel %vm11537_vm8, %v8826_v17, %v1469_v21  ;;  %v1471_v10 = vrot.slane %v1469_v21, 4  ;;  %v3130_v42 = vrot.slane %v12402_v50, 6  ;;  %v10965_v38 = vld [vmem:[%s15310_s1 + $0x340] sm:$0xff]   ;;  %v10969_v17 = vld [vmem:[%s15310_s1 + $0x388] sm:$0xff]  }
  0xf1   : > { %10179 = vmatprep.subr.bf16.mxu0 %v10951_v41  ;;  %v2912_v14 = vsel %vm12396_vm11, %v2907_v58, %v2911_v11  ;;  %v3123_v46 = vrot.slane %v3121_v49, 5  ;;  %v3126_v30 = vrot.slane %v3124_v52, 6  ;;  %v3129_v36 = vrot.slane %v12408_v63, 5  ;;  %v10954_v41 = vld [vmem:[%s15310_s1 + $0x2d0] sm:$0xff]   ;;  %v10955_v49 = vld [vmem:[%s15310_s1 + $0x318] sm:$0xff]  }
  0xf2   : > { %v2902_v7 = vsel %vm12396_vm11, %v2897_v26, %v2901_v23  ;;  %v1473_v21 = vsel %vm11537_vm8, %v1471_v10, %v1472_v37  ;;  %v3135_v11 = vshrl.u32 %v9005_v43, 16  ;;  %v3138_v58 = vshll.u32 %v9005_v43, 16  ;;  %v11128_v23 = vld [vmem:[%s11465_s8 + $0x58] sm:$0xf]  ;;  %v11129_v10 = vld [vmem:[%s11465_s8 + $0x5c] sm:$0x3] }
  0xf3   : > { %v9108_v52 = vcombine.low %v2902_v7, %v2912_v14  ;;  %v8898_v47 = vcombine.low %v1470_v31, %v1473_v21  ;;  %v3127_v39 = vor.u32 %v3126_v30, %v3123_v46  ;;  %v3131_v27 = vor.u32 %v3130_v42, %v3129_v36  ;;  %v8820_v30 = vld [vmem:[%s11465_s8 + $0x60] sm:$0xc]  ;;  %v8985_v7 = vld [vmem:[%s11465_s8 + $0x28] sm:$0xf] }
  0xf4   : > { %10180 = vmatpush3.bf16.msra.mxu0 %v10952_v60  ;;  %v3137_v59 = vrot.slane %v3135_v11, 5  ;;  %v3140_v33 = vrot.slane %v3138_v58, 6  ;;  %v8827_v61 = vrot.slane %v8819_v1, 10  ;;  %v1476_v26 = vrot.slane %v11128_v23, 6  ;;  %v10957_v23 = vld [vmem:[%s15310_s1 + $0x320] sm:$0xff]  }
  0xf5   : > { %10181 = vmatprep.subr.bf16.mxu0 %v10953_v53  ;;  %5322 = vmatmul.mubr.bf16.vlgmr.msra.gmra.mrb[64].mxu1 %v9108_v52  ;;  %v3128_v37 = vrot.slane %v3127_v39, 4  ;;  %v3133_v43 = vrot.slane %v3131_v27, 4  ;;  %v1479_v3 = vrot.slane %v11129_v10, 6  ;;  %v2914_v14 = vshrl.u32 %v8981_v8, 16  ;;  %v10975_v10 = vld [vmem:[%s15310_s1 + $0x398] sm:$0xff]  }
  0xf6   : > { %10686 = vmatprep.mubr.bf16.mxu0 %v8898_v47  ;;  %v3141_v60 = vor.u32 %v3140_v33, %v3137_v59  ;;  %v1477_v31 = vsel %vm11537_vm8, %v8827_v61, %v1476_v26  ;;  %v1478_v42 = vrot.slane %v1476_v26, 4  ;;  %v2917_v46 = vshll.u32 %v8981_v8, 16  ;;  %10242 = vmatpush3.bf16.msra.mxu1 %v10965_v38  ;;  %v10970_v47 = vld [vmem:[%s15310_s1 + $0x348] sm:$0xff]   ;;  %v10956_v61 = vld [vmem:[%s15310_s1 + $0x2d8] sm:$0xff]   ;;  %v10971_v59 = vld [vmem:[%s15310_s1 + $0x390] sm:$0xff]  }
  0xf7   : > { %v3132_v39 = vsel %vm11505_vm7, %v3128_v37, %v3131_v27  ;;  %v2916_v53 = vrot.slane %v2914_v14, 4  ;;  %v2925_v1 = vrot.slane %v12402_v50, 5  ;;  %v2929_v33 = vrot.slane %v12408_v63, 4  ;;  %10243 = vmatprep.subr.bf16.mxu1 %v10969_v17  ;;  %v9007_v17 = vld [vmem:[%s11465_s8 + $0x2c] sm:$0x3]  ;;  %v10973_v26 = vld [vmem:[%s15310_s1 + $0x350] sm:$0xff]  }
  0xf8   : > { %10182 = vmatpush3.bf16.msra.mxu0 %v10954_v41  ;;  %v3142_v8 = vsel %vm11505_vm7, %v3133_v43, %v3141_v60  ;;  %v1480_v27 = vsel %vm11537_vm8, %v1478_v42, %v1479_v3  ;;  %v2919_v38 = vrot.slane %v2917_v46, 5  ;;  %v2933_v36 = vshll.u32 %v8983_v16, 16  ;;  %v9006_v41 = vld [vmem:[%s11465_s8 + $0x24] sm:$0xe]  ;;  %v8821_v42 = vld [vmem:[%s11465_s8 + $0x6c] sm:$0xc] }
  0xf9   : > { %10183 = vmatprep.subr.bf16.mxu0 %v10955_v49  ;;  %v9117_v21 = vcombine.low %v3132_v39, %v3142_v8  ;;  %v8899_v11 = vcombine.low %v1477_v31, %v1480_v27  ;;  %v2930_v58 = vor.u32 %v2929_v33, %v2925_v1  ;;  %v8828_v52 = vrot.slane %v8820_v30, 10  ;;  %v10958_v43 = vld [vmem:[%s15310_s1 + $0x2e0] sm:$0xff]  }
  0xfa   : > { %v2920_v3 = vor.u32 %v2919_v38, %v2916_v53  ;;  %v2935_v37 = vrot.slane %v2933_v36, 5  ;;  %v1483_v16 = vrot.slane %v12150_v5, 6  ;;  %v1486_v49 = vrot.slane %v12157_v24, 6  ;;  %10244 = vmatpush3.bf16.msra.mxu1 %v10970_v47  ;;  %v8984_v39 = vld [vmem:[%s11465_s8 + $0x24] sm:$0xf]  ;;  %v10959_v53 = vld [vmem:[%s15310_s1 + $0x328] sm:$0xff]  }
  0xfb   : > { %5329 = vmatprep.mubr.bf16.mxu1 %v9117_v21  ;;  %10687 = vmatmul.mubr.bf16.gmra.mrb[68].mxu0 %v8899_v11  ;;  %v2931_v14 = vrot.slane %v2930_v58, 4  ;;  %v12474_v60 = vshll.u32 %v8985_v7, 16  ;;  %v12476_v31 = vshrl.u32 %v8985_v7, 16  ;;  %v3144_v5 = vshrl.u32 %v9006_v41, 16  ;;  %v10976_v38 = vld [vmem:[%s15310_s1 + $0x358] sm:$0xff]   ;;  %v10960_v21 = vld [vmem:[%s15310_s1 + $0x2e8] sm:$0xff]  }
  0xfc   : > { %v2921_v24 = vrot.slane %v2920_v3, 4  ;;  %10184 = vmatpush3.bf16.msra.mxu0 %v10956_v61  ;;  %v1484_v46 = vsel %vm11537_vm8, %v8828_v52, %v1483_v16  ;;  %v1485_v30 = vrot.slane %v1483_v16, 4  ;;  %v3147_v47 = vshll.u32 %v9006_v41, 16  ;;  %10245 = vmatprep.subr.bf16.mxu1 %v10971_v59  ;;  %v8986_v3 = vld [vmem:[%s11465_s8 + $0x2c] sm:$0x1] }
  0xfd   : > { %v2936_v33 = vsel %vm12396_vm11, %v2931_v14, %v2935_v37  ;;  %v3146_v8 = vrot.slane %v3144_v5, 5  ;;  %v3152_v27 = vrot.slane %v12476_v31, 5  ;;  %v3153_v61 = vrot.slane %v12474_v60, 6  ;;  %10185 = vmatprep.subr.bf16.mxu0 %v10957_v23  ;;  %v8822_v5 = vld [vmem:[%s11465_s8 + $0x78] sm:$0xc] }
  0xfe   : > { %v2926_v36 = vsel %vm12396_vm11, %v2921_v24, %v2925_v1  ;;  %v1487_v59 = vsel %vm11537_vm8, %v1485_v30, %v1486_v49  ;;  %v3149_v7 = vrot.slane %v3147_v47, 6  ;;  %v3158_v41 = vshrl.u32 %v9007_v17, 16  ;;  %10246 = vmatpush3.bf16.msra.mxu1 %v10973_v26  ;;  %v10977_v1 = vld [vmem:[%s15310_s1 + $0x3a0] sm:$0xff]   ;;  %v10961_v26 = vld [vmem:[%s15310_s1 + $0x330] sm:$0xff]  }
  0xff   : > { %v9109_v11 = vcombine.low %v2926_v36, %v2936_v33  ;;  %v8900_v58 = vcombine.low %v1484_v46, %v1487_v59  ;;  %v3154_v52 = vor.u32 %v3153_v61, %v3152_v27  ;;  %v3161_v23 = vshll.u32 %v9007_v17, 16  ;;  %10247 = vmatprep.subr.bf16.mxu1 %v10975_v10  ;;  %v10981_v61 = vld [vmem:[%s15310_s1 + $0x3a8] sm:$0xff]   ;;  %v8988_v59 = vld [vmem:[%s11465_s8 + $0x34] sm:$0xf] }
 0x100   : > { %v3150_v37 = vor.u32 %v3149_v7, %v3146_v8  ;;  %v3160_v16 = vrot.slane %v3158_v41, 5  ;;  %v8829_v49 = vrot.slane %v8821_v42, 10  ;;  %v1490_v14 = vrot.slane %v12194_v62, 6  ;;  %10186 = vmatpush3.bf16.msra.mxu0 %v10958_v43  ;;  %v10979_v43 = vld [vmem:[%s15310_s1 + $0x360] sm:$0xff]   ;;  %v10962_v7 = vld [vmem:[%s15310_s1 + $0x2f0] sm:$0xff]  }
 0x101   : > { %5330 = vmatmul.mubr.bf16.gmra.mrb[68].mxu1 %v9109_v11  ;;  %10690 = vmatprep.mubr.bf16.mxu0 %v8900_v58  ;;  %v3156_v17 = vrot.slane %v3154_v52, 4  ;;  %v3163_v24 = vrot.slane %v3161_v23, 6  ;;  %v1493_v10 = vrot.slane %v12206_v22, 6  ;;  %v2938_v46 = vshrl.u32 %v8984_v39, 16 }
 0x102   : > { %v3151_v30 = vrot.slane %v3150_v37, 4  ;;  %v1491_v47 = vsel %vm11537_vm8, %v8829_v49, %v1490_v14  ;;  %v1492_v42 = vrot.slane %v1490_v14, 4  ;;  %v2941_v62 = vshll.u32 %v8984_v39, 16  ;;  %10187 = vmatprep.subr.bf16.mxu0 %v10959_v53  ;;  %10248 = vmatpush3.bf16.msra.mxu1 %v10976_v38  ;;  %v9009_v49 = vld [vmem:[%s11465_s8 + $0x38] sm:$0x3] }
 0x103   : > { %v3164_v33 = vor.u32 %v3163_v24, %v3160_v16  ;;  %v2940_v8 = vrot.slane %v2938_v46, 4  ;;  %v2949_v27 = vrot.slane %v12474_v60, 5  ;;  %v2953_v22 = vrot.slane %v12476_v31, 4  ;;  %10249 = vmatprep.subr.bf16.mxu1 %v10977_v1  ;;  %v9008_v1 = vld [vmem:[%s11465_s8 + $0x30] sm:$0xe]  ;;  %v10966_v14 = vld [vmem:[%s15310_s1 + $0x2f8] sm:$0xff]  }
 0x104   : > { %v3155_v39 = vsel %vm11505_vm7, %v3151_v30, %v3154_v52  ;;  %v1494_v53 = vsel %vm11537_vm8, %v1492_v42, %v1493_v10  ;;  %v2943_v38 = vrot.slane %v2941_v62, 5  ;;  %v2957_v36 = vshll.u32 %v8986_v3, 16  ;;  %10188 = vmatpush3.bf16.msra.mxu0 %v10960_v21  ;;  %v10964_v52 = vld [vmem:[%s15310_s1 + $0x338] sm:$0xff]   ;;  %v8823_v46 = vld [vmem:[%s11465_s8 + $0x84] sm:$0xc] }
 0x105   : > { %v3165_v41 = vsel %vm11505_vm7, %v3156_v17, %v3164_v33  ;;  %v8901_v11 = vcombine.low %v1491_v47, %v1494_v53  ;;  %v2954_v58 = vor.u32 %v2953_v22, %v2949_v27  ;;  %v8830_v23 = vrot.slane %v8822_v5, 10  ;;  %10189 = vmatprep.subr.bf16.mxu0 %v10961_v26  ;;  %v10982_v5 = vld [vmem:[%s15310_s1 + $0x368] sm:$0xff]   ;;  %v10983_v26 = vld [vmem:[%s15310_s1 + $0x3b0] sm:$0xff]   ;;  %v10967_v33 = vld [vmem:[%s15310_s1 + $0x400] sm:$0xff]  }
 0x106   : > { %v9118_v3 = vcombine.low %v3155_v39, %v3165_v41  ;;  %v2944_v21 = vor.u32 %v2943_v38, %v2940_v8  ;;  %v2959_v37 = vrot.slane %v2957_v36, 5  ;;  %v1497_v16 = vrot.slane %v12248_v57, 6  ;;  %10250 = vmatpush3.bf16.msra.mxu1 %v10979_v43  ;;  %v8987_v43 = vld [vmem:[%s11465_s8 + $0x30] sm:$0xf]  ;;  %v10987_v38 = vld [vmem:[%s15310_s1 + $0x3b8] sm:$0xff]  }
 0x107   : > { %10691 = vmatmul.mubr.bf16.gmra.mrb[72].mxu0 %v8901_v11  ;;  %v2955_v17 = vrot.slane %v2954_v58, 4  ;;  %v1500_v24 = vrot.slane %v12261_v35, 6  ;;  %v12545_v57 = vshll.u32 %v8988_v59, 16  ;;  %v12547_v10 = vshrl.u32 %v8988_v59, 16  ;;  %10251 = vmatprep.subr.bf16.mxu1 %v10981_v61  ;;  %v10985_v35 = vld [vmem:[%s15310_s1 + $0x370] sm:$0xff]  }
 0x108   : > { %5337 = vmatprep.mubr.bf16.mxu1 %v9118_v3  ;;  %v2945_v30 = vrot.slane %v2944_v21, 4  ;;  %v1498_v47 = vsel %vm11537_vm8, %v8830_v23, %v1497_v16  ;;  %v1499_v42 = vrot.slane %v1497_v16, 4  ;;  %v3167_v62 = vshrl.u32 %v9008_v1, 16  ;;  %10190 = vmatpush3.bf16.msra.mxu0 %v10962_v7  ;;  %v8989_v3 = vld [vmem:[%s11465_s8 + $0x38] sm:$0x1] }
 0x109   : > { %v2960_v22 = vsel %vm12396_vm11, %v2955_v17, %v2959_v37  ;;  %v3170_v61 = vshll.u32 %v9008_v1, 16  ;;  %v3175_v39 = vrot.slane %v12547_v10, 5  ;;  %v3176_v53 = vrot.slane %v12545_v57, 6  ;;  %10191 = vmatprep.subr.bf16.mxu0 %v10964_v52 }
 0x10a   : > { %v2950_v59 = vsel %vm12396_vm11, %v2945_v30, %v2949_v27  ;;  %v1501_v7 = vsel %vm11537_vm8, %v1499_v42, %v1500_v24  ;;  %v3169_v41 = vrot.slane %v3167_v62, 5  ;;  %v3181_v11 = vshrl.u32 %v9009_v49, 16  ;;  %10252 = vmatpush3.bf16.msra.mxu1 %v10982_v5  ;;  %v8991_v24 = vld [vmem:[%s11465_s8 + $0x40] sm:$0xf]  ;;  %v10988_v5 = vld [vmem:[%s15310_s1 + $0x378] sm:$0xff]  }
 0x10b   : > { %v9110_v58 = vcombine.low %v2950_v59, %v2960_v22  ;;  %v8902_v23 = vcombine.low %v1498_v47, %v1501_v7  ;;  %v3172_v1 = vrot.slane %v3170_v61, 6  ;;  %v3177_v52 = vor.u32 %v3176_v53, %v3175_v39  ;;  %10253 = vmatprep.subr.bf16.mxu1 %v10983_v26  ;;  %v9010_v22 = vld [vmem:[%s11465_s8 + $0x3c] sm:$0xe] }
 0x10c   : > { %v3183_v37 = vrot.slane %v3181_v11, 5  ;;  %v3184_v16 = vshll.u32 %v9009_v49, 16  ;;  %v8831_v17 = vrot.slane %v8823_v46, 10  ;;  %v1504_v27 = vrot.slane %v12297_v54, 6  ;;  %10192 = vmatpush3.bf16.msra.mxu0 %v10966_v14 }
 0x10d   : > { %v12559_v8 = vpop.f32.mrb[0].mxu0  ;;  %5338 = vmatmul.mubr.bf16.gmra.mrb[72].mxu1 %v9110_v58  ;;  %10694 = vmatprep.mubr.bf16.mxu0 %v8902_v23  ;;  %v3173_v30 = vor.u32 %v3172_v1, %v3169_v41  ;;  %v3179_v47 = vrot.slane %v3177_v52, 4  ;;  %v1507_v26 = vrot.slane %v12308_v25, 6  ;;  %v2962_v42 = vshrl.u32 %v8987_v43, 16  ;;  %v9011_v1 = vld [vmem:[%s11465_s8 + $0x44] sm:$0x3] }
 0x10e   : > { %v12568_v36 = vpop.f32.mrb[0].mxu1  ;;  %v12575_v21 = vpop.f32.mrb[1].mxu0  ;;  %v3186_v49 = vrot.slane %v3184_v16, 6  ;;  %v1505_v46 = vsel %vm11537_vm8, %v8831_v17, %v1504_v27  ;;  %v1506_v54 = vrot.slane %v1504_v27, 4  ;;  %v2965_v14 = vshll.u32 %v8987_v43, 16  ;;  %10305 = vmatprep.subr.bf16.mxu0 %v10967_v33  ;;  %10254 = vmatpush3.bf16.msra.mxu1 %v10985_v35 }
 0x10f   : > { %v12583_v62 = vpop.f32.mrb[1].mxu1  ;;  %v12588_v61 = vpop.f32.mrb[2].mxu0  ;;  %v3174_v39 = vrot.slane %v3173_v30, 4  ;;  %v2964_v53 = vrot.slane %v2962_v42, 4  ;;  %v2973_v59 = vrot.slane %v12545_v57, 5  ;;  %v2977_v25 = vrot.slane %v12547_v10, 4  ;;  %10255 = vmatprep.subr.bf16.mxu1 %v10987_v38 }
 0x110   : > { %v3187_v7 = vor.u32 %v3186_v49, %v3183_v37  ;;  %v1508_v41 = vsel %vm11537_vm8, %v1506_v54, %v1507_v26  ;;  %v2967_v11 = vrot.slane %v2965_v14, 5  ;;  %v2981_v58 = vshll.u32 %v8989_v3, 16  ;;  %v12599_v16 = vpop.f32.mrb[2].mxu1  ;;  %v9034_v26 = vld [vmem:[%s11465_s8 + $0x24] sm:$0xf]  ;;  %v12606_v42 = vpop.f32.mrb[3].mxu0 }
 0x111   : > { %v3178_v43 = vsel %vm11505_vm7, %v3174_v39, %v3177_v52  ;;  %v8903_v33 = vcombine.low %v1505_v46, %v1508_v41  ;;  %v2978_v35 = vor.u32 %v2977_v25, %v2973_v59  ;;  %v12596_v23 = vshll.u32 %v8991_v24, 16  ;;  %15358 = vst [vmem:[#allocation15_spill] sm:$0xff] %v12599_v16  ;;  %15359 = vst [vmem:[#allocation16_spill] sm:$0xff] %v12606_v42 }
 0x112   : > { %v3188_v38 = vsel %vm11505_vm7, %v3179_v47, %v3187_v7  ;;  %v2968_v37 = vor.u32 %v2967_v11, %v2964_v53  ;;  %v2983_v17 = vrot.slane %v2981_v58, 5  ;;  %v12603_v20 = vshrl.u32 %v8991_v24, 16  ;;  %10256 = vmatpush3.bf16.msra.mxu1 %v10988_v5  ;;  %v12612_v53 = vpop.f32.mrb[3].mxu1  ;;  %v8990_v11 = vld [vmem:[%s11465_s8 + $0x3c] sm:$0xf] }
 0x113   : > { %v9119_v3 = vcombine.low %v3178_v43, %v3188_v38  ;;  %10695 = vmatmul.mubr.bf16.gmra.mrb[76].mxu0 %v8903_v33  ;;  %v2979_v27 = vrot.slane %v2978_v35, 4  ;;  %v3190_v52 = vshrl.u32 %v9010_v22, 16  ;;  %v3193_v30 = vshll.u32 %v9010_v22, 16  ;;  %15360 = vst [vmem:[#allocation17_spill] sm:$0xff] %v12612_v53 }
 0x114   : > { %v2969_v49 = vrot.slane %v2968_v37, 4  ;;  %v3198_v46 = vrot.slane %v12603_v20, 5  ;;  %v3199_v54 = vrot.slane %v12596_v23, 6  ;;  %v3204_v47 = vshrl.u32 %v9011_v1, 16 }
 0x115   : > { %5345 = vmatprep.mubr.bf16.mxu1 %v9119_v3  ;;  %v2984_v24 = vsel %vm12396_vm11, %v2979_v27, %v2983_v17  ;;  %v3192_v5 = vrot.slane %v3190_v52, 5  ;;  %v3195_v14 = vrot.slane %v3193_v30, 6  ;;  %v3207_v39 = vshll.u32 %v9011_v1, 16  ;;  %v8992_v3 = vld [vmem:[%s11465_s8 + $0x44] sm:$0x1] }
 0x116   : > { %v2974_v22 = vsel %vm12396_vm11, %v2969_v49, %v2973_v59  ;;  %v3200_v25 = vor.u32 %v3199_v54, %v3198_v46  ;;  %v3206_v7 = vrot.slane %v3204_v47, 5  ;;  %v3493_v41 = vshrl.u32 %v9034_v26, 16  ;;  %v9018_v49 = vld [vmem:[%s11465_s8 + $0xc] sm:$0xc] }
 0x117   : > { %v9111_v58 = vcombine.low %v2974_v22, %v2984_v24  ;;  %v3196_v43 = vor.u32 %v3195_v14, %v3192_v5  ;;  %v3209_v33 = vrot.slane %v3207_v39, 6  ;;  %v3496_v35 = vshll.u32 %v9034_v26, 16  ;;  %v12627_v22 = vpop.f32.mrb[4].mxu0 }
 0x118   : > { %v3202_v38 = vrot.slane %v3200_v25, 4  ;;  %v3495_v37 = vrot.slane %v3493_v41, 4  ;;  %v3501_v17 = vrot.slane %v11517_v6, 5  ;;  %v3503_v1 = vrot.slane %v11514_v2, 4  ;;  %15361 = vst [vmem:[#allocation18_spill] sm:$0xff] %v12627_v22 }
 0x119   : > { %5346 = vmatmul.mubr.bf16.gmra.mrb[76].mxu1 %v9111_v58  ;;  %v3197_v27 = vrot.slane %v3196_v43, 4  ;;  %v3210_v52 = vor.u32 %v3209_v33, %v3206_v7  ;;  %v3498_v59 = vrot.slane %v3496_v35, 5  ;;  %v2986_v30 = vshrl.u32 %v8990_v11, 16 }
 0x11a   : > { %v3504_v46 = vor.u32 %v3503_v1, %v3501_v17  ;;  %v2989_v54 = vshll.u32 %v8990_v11, 16  ;;  %v2997_v47 = vrot.slane %v12596_v23, 5  ;;  %v3001_v26 = vrot.slane %v12603_v20, 4  ;;  %v9019_v11 = vld [vmem:[%s11465_s8 + $0x14] sm:$0x7] }
 0x11b   : > { %v3201_v24 = vsel %vm11505_vm7, %v3197_v27, %v3200_v25  ;;  %v3211_v5 = vsel %vm11505_vm7, %v3202_v38, %v3210_v52  ;;  %v3499_v14 = vor.u32 %v3498_v59, %v3495_v37  ;;  %v2988_v39 = vrot.slane %v2986_v30, 4  ;;  %v8994_v1 = vld [vmem:[%s11465_s8 + $0x4c] sm:$0xf] }
 0x11c   : > { %v9120_v7 = vcombine.low %v3201_v24, %v3211_v5  ;;  %v3505_v41 = vrot.slane %v3504_v46, 4  ;;  %v2991_v58 = vrot.slane %v2989_v54, 5  ;;  %v3002_v43 = vor.u32 %v3001_v26, %v2997_v47  ;;  %v12643_v5 = vld [vmem:[%s15310_s1 + $0x440] sm:$0xff]  }
 0x11d   : > { %v3500_v33 = vrot.slane %v3499_v14, 4  ;;  %v3005_v35 = vshll.u32 %v8992_v3, 16  ;;  %v3301_v27 = vshrl.u32 %v9018_v49, 16  ;;  %v3304_v30 = vshll.u32 %v9018_v49, 16  ;;  %v12637_v3 = vpop.f32.mrb[4].mxu1  ;;  %10698 = vmatprep.subr.bf16.mxu1 %v12643_v5 }
 0x11e   : > { %5353 = vmatprep.mubr.bf16.mxu1 %v9120_v7  ;;  %v3510_v25 = vsel %vm12396_vm11, %v3505_v41, %v11533_v18  ;;  %v2992_v38 = vor.u32 %v2991_v58, %v2988_v39  ;;  %v3003_v37 = vrot.slane %v3002_v43, 4  ;;  %v3309_v46 = vrot.slane %v12356_v48, 6  ;;  %15362 = vst [vmem:[#allocation19_spill] sm:$0xff] %v12637_v3  ;;  %v9012_v39 = vld [vmem:[%s11465_s8 + $0x48] sm:$0xe]  ;;  %v12648_v7 = vpop.f32.mrb[5].mxu0 }
 0x11f   : > { %v3502_v52 = vsel %vm12396_vm11, %v3500_v33, %v3501_v17  ;;  %v3007_v59 = vrot.slane %v3005_v35, 5  ;;  %v3303_v24 = vrot.slane %v3301_v27, 6  ;;  %v3310_v18 = vrot.slane %v12352_v29, 7  ;;  %15363 = vst [vmem:[#allocation20_spill] sm:$0xff] %v12648_v7  ;;  %v9013_v33 = vld [vmem:[%s11465_s8 + $0x50] sm:$0x3] }
 0x120   : > { %v9132_v54 = vcombine.low %v3502_v52, %v3510_v25  ;;  %v2993_v26 = vrot.slane %v2992_v38, 4  ;;  %v3306_v49 = vrot.slane %v3304_v30, 7  ;;  %v3315_v14 = vshrl.u32 %v9019_v11, 16  ;;  %v9035_v35 = vld [vmem:[%s11465_s8 + $0x30] sm:$0xf] }
 0x121   : > { %v3008_v17 = vsel %vm12396_vm11, %v3003_v37, %v3007_v59  ;;  %v3318_v48 = vshll.u32 %v9019_v11, 16  ;;  %v3311_v58 = vor.u32 %v3310_v18, %v3309_v46  ;;  %v12652_v29 = vshll.u32 %v8994_v1, 16 }
 0x122   : > { %5418 = vmatprep.mubr.bf16.mxu0 %v9132_v54  ;;  %v2998_v41 = vsel %vm12396_vm11, %v2993_v26, %v2997_v47  ;;  %v12654_v43 = vshrl.u32 %v8994_v1, 16  ;;  %v3307_v38 = vor.u32 %v3306_v49, %v3303_v24  ;;  %v3317_v37 = vrot.slane %v3315_v14, 6  ;;  %v12667_v24 = vpop.f32.mrb[5].mxu1 }
 0x123   : > { %v9112_v25 = vcombine.low %v2998_v41, %v3008_v17  ;;  %v3320_v11 = vrot.slane %v3318_v48, 7  ;;  %v3313_v47 = vrot.slane %v3311_v58, 4  ;;  %v3213_v52 = vshrl.u32 %v9012_v39, 16  ;;  %15366 = vst [vmem:[#allocation21_spill] sm:$0xff] %v12667_v24  ;;  %v10968_v41 = vld [vmem:[%s15310_s1 + $0x3c0] sm:$0xff]  }
 0x124   : > { %v3216_v59 = vshll.u32 %v9012_v39, 16  ;;  %v3221_v1 = vrot.slane %v12654_v43, 5  ;;  %v3308_v30 = vrot.slane %v3307_v38, 4  ;;  %v3222_v54 = vrot.slane %v12652_v29, 6 }
 0x125   : > { %5354 = vmatmul.mubr.bf16.gmra.mrb[80].mxu1 %v9112_v25  ;;  %v3321_v46 = vor.u32 %v3320_v11, %v3317_v37  ;;  %v3227_v26 = vshrl.u32 %v9013_v33, 16  ;;  %v3215_v18 = vrot.slane %v3213_v52, 5  ;;  %v3230_v49 = vshll.u32 %v9013_v33, 16  ;;  %v8993_v37 = vld [vmem:[%s11465_s8 + $0x48] sm:$0xf]  ;;  %v12677_v11 = vpop.f32.mrb[6].mxu0 }
 0x126   : > { %v3218_v17 = vrot.slane %v3216_v59, 6  ;;  %v3512_v14 = vshrl.u32 %v9035_v35, 16  ;;  %v3312_v48 = vsel %vm12661_vm14, %v3308_v30, %v3311_v58  ;;  %v3223_v25 = vor.u32 %v3222_v54, %v3221_v1  ;;  %15367 = vst [vmem:[#allocation22_spill] sm:$0xff] %v12677_v11  ;;  %v10972_v58 = vld [vmem:[%s15310_s1 + $0x408] sm:$0xff]   ;;  %v8995_v1 = vld [vmem:[%s11465_s8 + $0x50] sm:$0x1] }
 0x127   : > { %v3322_v39 = vsel %vm12661_vm14, %v3313_v47, %v3321_v46  ;;  %v3229_v38 = vrot.slane %v3227_v26, 5  ;;  %v3232_v59 = vrot.slane %v3230_v49, 6  ;;  %v3515_v30 = vshll.u32 %v9035_v35, 16  ;;  %v9020_v54 = vld [vmem:[%s11465_s8 + $0x18] sm:$0xc]  ;;  %v10974_v26 = vld [vmem:[%s15310_s1 + $0x3c8] sm:$0xff]  }
 0x128   : > { %v9124_v33 = vcombine.low %v3312_v48, %v3322_v39  ;;  %v3219_v52 = vor.u32 %v3218_v17, %v3215_v18  ;;  %v3514_v24 = vrot.slane %v3512_v14, 4  ;;  %v3225_v47 = vrot.slane %v3223_v25, 4  ;;  %v11130_v49 = vld [vmem:[%s11465_s8 + $0x38] sm:$0x1]  ;;  %v12690_v39 = vpop.f32.mrb[6].mxu1  ;;  %v12693_v53 = vpop.f32.mrb[7].mxu0 }
 0x129   : > { %v3520_v46 = vrot.slane %v11977_v51, 5  ;;  %v3522_v3 = vrot.slane %v11972_v44, 4  ;;  %v3233_v17 = vor.u32 %v3232_v59, %v3229_v38  ;;  %v3526_v14 = vshll.u32 %v11130_v49, 16  ;;  %15368 = vst [vmem:[#allocation23_spill] sm:$0xff] %v12690_v39  ;;  %15369 = vst [vmem:[#allocation24_spill] sm:$0xff] %v12693_v53  ;;  %v10994_v53 = vld [vmem:[%s15310_s1 + $0x3f0] sm:$0xff]  }
 0x12a   : > { %5419 = vmatmul.mubr.bf16.vlgmr.msra.gmra.mrb[80].mxu0 %v9124_v33  ;;  %v3220_v18 = vrot.slane %v3219_v52, 4  ;;  %v3010_v48 = vshrl.u32 %v8993_v37, 16  ;;  %v3517_v35 = vrot.slane %v3515_v30, 5  ;;  %v3013_v7 = vshll.u32 %v8993_v37, 16  ;;  %v9021_v49 = vld [vmem:[%s11465_s8 + $0x20] sm:$0x7] }
 0x12b   : > { %10306 = vmatpush3.bf16.msra.mxu0 %v10968_v41  ;;  %v3523_v11 = vor.u32 %v3522_v3, %v3520_v46  ;;  %v3021_v22 = vrot.slane %v12652_v29, 5  ;;  %v3234_v38 = vsel %vm11505_vm7, %v3225_v47, %v3233_v17  ;;  %v3528_v33 = vrot.slane %v3526_v14, 5  ;;  %v10978_v41 = vld [vmem:[%s15310_s1 + $0x410] sm:$0xff]   ;;  %v8997_v14 = vld [vmem:[%s11465_s8 + $0x58] sm:$0xf] }
 0x12c   : > { %v3224_v16 = vsel %vm11505_vm7, %v3220_v18, %v3223_v25  ;;  %v3012_v52 = vrot.slane %v3010_v48, 4  ;;  %10307 = vmatprep.subr.bf16.mxu0 %v10972_v58  ;;  %v3518_v37 = vor.u32 %v3517_v35, %v3514_v24  ;;  %v3015_v30 = vrot.slane %v3013_v7, 5  ;;  %v10980_v25 = vld [vmem:[%s15310_s1 + $0x3d0] sm:$0xff]   ;;  %v10984_v58 = vld [vmem:[%s15310_s1 + $0x418] sm:$0xff]  }
 0x12d   : > { %v9121_v3 = vcombine.low %v3224_v16, %v3234_v38  ;;  %v3524_v59 = vrot.slane %v3523_v11, 4  ;;  %v3025_v18 = vrot.slane %v12654_v43, 4  ;;  %v3029_v39 = vshll.u32 %v8995_v1, 16  ;;  %v12714_v38 = vpop.f32.mrb[7].mxu1 }
 0x12e   : > { %v3324_v47 = vshrl.u32 %v9020_v54, 16  ;;  %v3327_v17 = vshll.u32 %v9020_v54, 16  ;;  %v3519_v16 = vrot.slane %v3518_v37, 4  ;;  %v3016_v24 = vor.u32 %v3015_v30, %v3012_v52  ;;  %15370 = vst [vmem:[#allocation25_spill] sm:$0xff] %v12714_v38 }
 0x12f   : > { %5361 = vmatprep.mubr.bf16.mxu1 %v9121_v3  ;;  %v3529_v7 = vsel %vm12396_vm11, %v3524_v59, %v3528_v33  ;;  %v3332_v11 = vrot.slane %v12408_v63, 6  ;;  %10308 = vmatpush3.bf16.msra.mxu0 %v10974_v26  ;;  %v3026_v48 = vor.u32 %v3025_v18, %v3021_v22  ;;  %v3031_v1 = vrot.slane %v3029_v39, 5  ;;  %v10986_v63 = vld [vmem:[%s15310_s1 + $0x3d8] sm:$0xff]   ;;  %v9014_v18 = vld [vmem:[%s11465_s8 + $0x54] sm:$0xe] }
 0x130   : > { %v3326_v35 = vrot.slane %v3324_v47, 6  ;;  %v3329_v54 = vrot.slane %v3327_v17, 7  ;;  %10309 = vmatprep.subr.bf16.mxu0 %v10978_v41  ;;  %v3521_v3 = vsel %vm12396_vm11, %v3519_v16, %v3520_v46  ;;  %v3017_v37 = vrot.slane %v3016_v24, 4  ;;  %v9015_v41 = vld [vmem:[%s11465_s8 + $0x5c] sm:$0x3] }
 0x131   : > { %v3333_v33 = vrot.slane %v12402_v50, 7  ;;  %v3338_v52 = vshrl.u32 %v9021_v49, 16  ;;  %v9133_v26 = vcombine.low %v3521_v3, %v3529_v7  ;;  %v3027_v59 = vrot.slane %v3026_v48, 4  ;;  %v9036_v16 = vld [vmem:[%s11465_s8 + $0x3c] sm:$0xf]  ;;  %v12736_v3 = vpop.f32.mrb[8].mxu0 }
 0x132   : > { %v3330_v39 = vor.u32 %v3329_v54, %v3326_v35  ;;  %v3341_v30 = vshll.u32 %v9021_v49, 16  ;;  %v3022_v47 = vsel %vm12396_vm11, %v3017_v37, %v3021_v22  ;;  %v12726_v46 = vshll.u32 %v8997_v14, 16  ;;  %v10989_v49 = vld [vmem:[%s15310_s1 + $0x420] sm:$0xff]   ;;  %15371 = vst [vmem:[#allocation26_spill] sm:$0xff] %v12736_v3 }
 0x133   : > { %v3334_v17 = vor.u32 %v3333_v33, %v3332_v11  ;;  %v3340_v38 = vrot.slane %v3338_v52, 6  ;;  %10310 = vmatpush3.bf16.msra.mxu0 %v10980_v25  ;;  %5426 = vmatprep.mubr.bf16.mxu0 %v9133_v26  ;;  %v3032_v50 = vsel %vm12396_vm11, %v3027_v59, %v3031_v1  ;;  %v12731_v48 = vshrl.u32 %v8997_v14, 16  ;;  %v9000_v3 = vld [vmem:[%s11465_s8 + $0x64] sm:$0xf] }
 0x134   : > { %v3331_v24 = vrot.slane %v3330_v39, 4  ;;  %v3343_v7 = vrot.slane %v3341_v30, 7  ;;  %10311 = vmatprep.subr.bf16.mxu0 %v10984_v58  ;;  %v9113_v22 = vcombine.low %v3022_v47, %v3032_v50  ;;  %v3236_v35 = vshrl.u32 %v9014_v18, 16 }
 0x135   : > { %v3336_v11 = vrot.slane %v3334_v17, 4  ;;  %v3239_v54 = vshll.u32 %v9014_v18, 16  ;;  %v3244_v1 = vrot.slane %v12731_v48, 5  ;;  %v3245_v14 = vrot.slane %v12726_v46, 6 }
 0x136   : > { %v3335_v25 = vsel %vm12661_vm14, %v3331_v24, %v3334_v17  ;;  %v3344_v37 = vor.u32 %v3343_v7, %v3340_v38  ;;  %5362 = vmatmul.mubr.bf16.gmra.mrb[84].mxu1 %v9113_v22  ;;  %v3238_v58 = vrot.slane %v3236_v35, 5  ;;  %v3250_v52 = vshrl.u32 %v9015_v41, 16  ;;  %v10990_v38 = vld [vmem:[%s15310_s1 + $0x3e0] sm:$0xff]   ;;  %v10992_v35 = vld [vmem:[%s15310_s1 + $0x3e8] sm:$0xff]  }
 0x137   : > { %v3241_v33 = vrot.slane %v3239_v54, 6  ;;  %v3253_v26 = vshll.u32 %v9015_v41, 16  ;;  %10312 = vmatpush3.bf16.msra.mxu0 %v10986_v63  ;;  %v3246_v39 = vor.u32 %v3245_v14, %v3244_v1  ;;  %v3531_v30 = vshrl.u32 %v9036_v16, 16  ;;  %v8996_v41 = vld [vmem:[%s11465_s8 + $0x54] sm:$0xf]  ;;  %v10991_v63 = vld [vmem:[%s15310_s1 + $0x428] sm:$0xff]  }
 0x138   : > { %v3345_v59 = vsel %vm12661_vm14, %v3336_v11, %v3344_v37  ;;  %v3534_v18 = vshll.u32 %v9036_v16, 16  ;;  %10313 = vmatprep.subr.bf16.mxu0 %v10989_v49  ;;  %v3252_v50 = vrot.slane %v3250_v52, 5  ;;  %v3539_v16 = vrot.slane %v12055_v4, 5  ;;  %v8998_v49 = vld [vmem:[%s11465_s8 + $0x5c] sm:$0x1] }
 0x139   : > { %v9125_v47 = vcombine.low %v3335_v25, %v3345_v59  ;;  %v3242_v17 = vor.u32 %v3241_v33, %v3238_v58  ;;  %v3255_v24 = vrot.slane %v3253_v26, 6  ;;  %v3248_v7 = vrot.slane %v3246_v39, 4  ;;  %v11131_v1 = vld [vmem:[%s11465_s8 + $0x44] sm:$0x1]  ;;  %v9022_v58 = vld [vmem:[%s11465_s8 + $0x24] sm:$0xc] }
 0x13a   : > { %v3533_v22 = vrot.slane %v3531_v30, 4  ;;  %v3536_v11 = vrot.slane %v3534_v18, 5  ;;  %v3541_v37 = vrot.slane %v12053_v12, 4  ;;  %v3545_v14 = vshll.u32 %v11131_v1, 16  ;;  %v12759_v33 = vpop.f32.mrb[8].mxu1  ;;  %v10993_v18 = vld [vmem:[%s15310_s1 + $0x430] sm:$0xff]  }
 0x13b   : > { %5427 = vmatmul.mubr.bf16.gmra.mrb[84].mxu0 %v9125_v47  ;;  %v3243_v54 = vrot.slane %v3242_v17, 4  ;;  %v3256_v25 = vor.u32 %v3255_v24, %v3252_v50  ;;  %15372 = vst [vmem:[#allocation27_spill] sm:$0xff] %v12759_v33  ;;  %v3034_v26 = vshrl.u32 %v8996_v41, 16  ;;  %v3037_v59 = vshll.u32 %v8996_v41, 16  ;;  %v12776_v42 = vpop.f32.mrb[9].mxu1 }
 0x13c   : > { %v3537_v52 = vor.u32 %v3536_v11, %v3533_v22  ;;  %v3045_v30 = vrot.slane %v12726_v46, 5  ;;  %10314 = vmatpush3.bf16.msra.mxu0 %v10990_v38  ;;  %v3542_v50 = vor.u32 %v3541_v37, %v3539_v16  ;;  %v3547_v24 = vrot.slane %v3545_v14, 5  ;;  %v12769_v22 = vpop.f32.mrb[9].mxu0  ;;  %v9023_v38 = vld [vmem:[%s11465_s8 + $0x2c] sm:$0x7] }
 0x13d   : > { %v3247_v47 = vsel %vm11505_vm7, %v3243_v54, %v3246_v39  ;;  %v3257_v17 = vsel %vm11505_vm7, %v3248_v7, %v3256_v25  ;;  %10315 = vmatprep.subr.bf16.mxu0 %v10991_v63  ;;  %v3036_v1 = vrot.slane %v3034_v26, 4  ;;  %v3039_v33 = vrot.slane %v3037_v59, 5  ;;  %v12782_v26 = vpop.f32.mrb[10].mxu0  ;;  %v12784_v59 = vpop.f32.mrb[10].mxu1 }
 0x13e   : > { %v9122_v11 = vcombine.low %v3247_v47, %v3257_v17  ;;  %v3538_v41 = vrot.slane %v3537_v52, 4  ;;  %v3543_v39 = vrot.slane %v3542_v50, 4  ;;  %v3049_v7 = vrot.slane %v12731_v48, 4  ;;  %15373 = vst [vmem:[#allocation28_spill] sm:$0xff] %v12782_v26  ;;  %15374 = vst [vmem:[#allocation29_spill] sm:$0xff] %v12784_v59 }
 0x13f   : > { %v3053_v54 = vshll.u32 %v8998_v49, 16  ;;  %v3347_v25 = vshrl.u32 %v9022_v58, 16  ;;  %v3040_v37 = vor.u32 %v3039_v33, %v3036_v1  ;;  %v3350_v14 = vshll.u32 %v9022_v58, 16  ;;  %v12791_v58 = vpop.f32.mrb[11].mxu0  ;;  %v9016_v1 = vld [vmem:[%s11465_s8 + $0x60] sm:$0xe] }
 0x140   : > { %5369 = vmatprep.mubr.bf16.mxu1 %v9122_v11  ;;  %v3540_v63 = vsel %vm12396_vm11, %v3538_v41, %v3539_v16  ;;  %v3355_v52 = vrot.slane %v12476_v31, 6  ;;  %10316 = vmatpush3.bf16.msra.mxu0 %v10992_v35  ;;  %v3548_v47 = vsel %vm12396_vm11, %v3543_v39, %v3547_v24  ;;  %v3050_v17 = vor.u32 %v3049_v7, %v3045_v30  ;;  %v10995_v16 = vld [vmem:[%s15310_s1 + $0x438] sm:$0xff]   ;;  %v12793_v31 = vpop.f32.mrb[11].mxu1  ;;  %v9024_v26 = vld [vmem:[%s11465_s8 + $0x30] sm:$0xc] }
 0x141   : > { %v3055_v49 = vrot.slane %v3053_v54, 5  ;;  %v3349_v50 = vrot.slane %v3347_v25, 6  ;;  %10317 = vmatprep.subr.bf16.mxu0 %v10993_v18  ;;  %15375 = vst [vmem:[#allocation30_spill] sm:$0xff] %v12791_v58  ;;  %15376 = vst [vmem:[#allocation31_spill] sm:$0xff] %v12793_v31  ;;  %v9134_v35 = vcombine.low %v3540_v63, %v3548_v47  ;;  %v3041_v33 = vrot.slane %v3040_v37, 4 }
 0x142   : > { %v3352_v11 = vrot.slane %v3350_v14, 7  ;;  %v3356_v41 = vrot.slane %v12474_v60, 7  ;;  %v3051_v24 = vrot.slane %v3050_v17, 4  ;;  %v3361_v39 = vshrl.u32 %v9023_v38, 16  ;;  %v9017_v63 = vld [vmem:[%s11465_s8 + $0x68] sm:$0x3] }
 0x143   : > { %v3364_v7 = vshll.u32 %v9023_v38, 16  ;;  %v12797_v18 = vshll.u32 %v9000_v3, 16  ;;  %5434 = vmatprep.mubr.bf16.mxu0 %v9134_v35  ;;  %v3046_v54 = vsel %vm12396_vm11, %v3041_v33, %v3045_v30  ;;  %v12801_v58 = vshrl.u32 %v9000_v3, 16  ;;  %v10996_v60 = vld [vmem:[%s15310_s1 + $0x3f8] sm:$0xff]   ;;  %v9037_v17 = vld [vmem:[%s11465_s8 + $0x48] sm:$0xf] }
 0x144   : > { %v3353_v25 = vor.u32 %v3352_v11, %v3349_v50  ;;  %v3357_v59 = vor.u32 %v3356_v41, %v3355_v52  ;;  %10318 = vmatpush3.bf16.msra.mxu0 %v10994_v53  ;;  %v3056_v37 = vsel %vm12396_vm11, %v3051_v24, %v3055_v49  ;;  %v3363_v38 = vrot.slane %v3361_v39, 6  ;;  %v10998_v30 = vld [vmem:[%s15310_s1 + $0x4c0] sm:$0xff]   ;;  %v12813_v35 = vpop.f32.mrb[12].mxu0  ;;  %v12817_v24 = vpop.f32.mrb[12].mxu1  ;;  %v9001_v31 = vld [vmem:[%s11465_s8 + $0x68] sm:$0x1] }
 0x145   : > { %v3366_v14 = vrot.slane %v3364_v7, 7  ;;  %v3259_v47 = vshrl.u32 %v9016_v1, 16  ;;  %10319 = vmatprep.subr.bf16.mxu0 %v10995_v16  ;;  %v9114_v3 = vcombine.low %v3046_v54, %v3056_v37  ;;  %v3262_v50 = vshll.u32 %v9016_v1, 16  ;;  %15377 = vst [vmem:[#allocation32_spill] sm:$0xff] %v12813_v35  ;;  %15378 = vst [vmem:[#allocation33_spill] sm:$0xff] %v12817_v24  ;;  %v12822_v1 = vpop.f32.mrb[13].mxu0 }
 0x146   : > { %v3354_v52 = vrot.slane %v3353_v25, 4  ;;  %v3359_v53 = vrot.slane %v3357_v59, 4  ;;  %v3267_v49 = vrot.slane %v12801_v58, 5  ;;  %v3268_v41 = vrot.slane %v12797_v18, 6  ;;  %v8999_v25 = vld [vmem:[%s11465_s8 + $0x60] sm:$0xf] }
 0x147   : > { %v3367_v33 = vor.u32 %v3366_v14, %v3363_v38  ;;  %v3261_v11 = vrot.slane %v3259_v47, 5  ;;  %5370 = vmatmul.mubr.bf16.gmra.mrb[88].mxu1 %v9114_v3  ;;  %v3264_v39 = vrot.slane %v3262_v50, 6  ;;  %v3273_v7 = vshrl.u32 %v9017_v63, 16  ;;  %15379 = vst [vmem:[#allocation34_spill] sm:$0xff] %v12822_v1  ;;  %v12826_v50 = vpop.f32.mrb[13].mxu1 }
 0x148   : > { %v3358_v16 = vsel %vm12661_vm14, %v3354_v52, %v3357_v59  ;;  %v3276_v54 = vshll.u32 %v9017_v63, 16  ;;  %10320 = vmatpush3.bf16.msra.mxu0 %v10996_v60  ;;  %v3269_v38 = vor.u32 %v3268_v41, %v3267_v49  ;;  %v3550_v14 = vshrl.u32 %v9037_v17, 16  ;;  %15380 = vst [vmem:[#allocation35_spill] sm:$0xff] %v12826_v50  ;;  %v12833_v41 = vpop.f32.mrb[14].mxu0 }
 0x149   : > { %v3368_v37 = vsel %vm12661_vm14, %v3359_v53, %v3367_v33  ;;  %v3553_v47 = vshll.u32 %v9037_v17, 16  ;;  %10385 = vmatprep.subr.bf16.mxu0 %v10998_v30  ;;  %v3265_v24 = vor.u32 %v3264_v39, %v3261_v11  ;;  %v3275_v59 = vrot.slane %v3273_v7, 5  ;;  %v11132_v30 = vld [vmem:[%s11465_s8 + $0x50] sm:$0x1]  ;;  %15381 = vst [vmem:[#allocation36_spill] sm:$0xff] %v12833_v41 }
 0x14a   : > { %v9126_v3 = vcombine.low %v3358_v16, %v3368_v37  ;;  %v3278_v52 = vrot.slane %v3276_v54, 6  ;;  %v3271_v63 = vrot.slane %v3269_v38, 4  ;;  %v3552_v60 = vrot.slane %v3550_v14, 4  ;;  %v12836_v54 = vpop.f32.mrb[14].mxu1  ;;  %v12838_v37 = vpop.f32.mrb[15].mxu0 }
 0x14b   : > { %v3555_v35 = vrot.slane %v3553_v47, 5  ;;  %v3558_v1 = vrot.slane %v12133_v34, 5  ;;  %v3266_v53 = vrot.slane %v3265_v24, 4  ;;  %v3560_v17 = vrot.slane %v12131_v19, 4  ;;  %15382 = vst [vmem:[#allocation37_spill] sm:$0xff] %v12836_v54  ;;  %15383 = vst [vmem:[#allocation38_spill] sm:$0xff] %v12838_v37 }
 0x14c   : > { %5435 = vmatmul.mubr.bf16.gmra.mrb[88].mxu0 %v9126_v3  ;;  %v3279_v33 = vor.u32 %v3278_v52, %v3275_v59  ;;  %v3564_v49 = vshll.u32 %v11132_v30, 16  ;;  %v3058_v16 = vshrl.u32 %v8999_v25, 16  ;;  %v3061_v39 = vshll.u32 %v8999_v25, 16  ;;  %v12844_v59 = vpop.f32.mrb[15].mxu1 }
 0x14d   : > { %v3556_v11 = vor.u32 %v3555_v35, %v3552_v60  ;;  %v3069_v7 = vrot.slane %v12797_v18, 5  ;;  %v3270_v14 = vsel %vm11505_vm7, %v3266_v53, %v3269_v38  ;;  %v3561_v47 = vor.u32 %v3560_v17, %v3558_v1  ;;  %15384 = vst [vmem:[#allocation39_spill] sm:$0xff] %v12844_v59 }
 0x14e   : > { %v3280_v24 = vsel %vm11505_vm7, %v3271_v63, %v3279_v33  ;;  %v3566_v3 = vrot.slane %v3564_v49, 5  ;;  %v3060_v52 = vrot.slane %v3058_v16, 4  ;;  %v3063_v60 = vrot.slane %v3061_v39, 5  ;;  %v9025_v63 = vld [vmem:[%s11465_s8 + $0x38] sm:$0x7] }
 0x14f   : > { %v9123_v35 = vcombine.low %v3270_v14, %v3280_v24  ;;  %v3557_v25 = vrot.slane %v3556_v11, 4  ;;  %v3562_v30 = vrot.slane %v3561_v47, 4  ;;  %v3073_v54 = vrot.slane %v12801_v58, 4  ;;  %v9038_v49 = vld [vmem:[%s11465_s8 + $0x54] sm:$0xf] }
 0x150   : > { %v3077_v37 = vshll.u32 %v9001_v31, 16  ;;  %v3370_v41 = vshrl.u32 %v9024_v26, 16  ;;  %v3064_v53 = vor.u32 %v3063_v60, %v3060_v52  ;;  %v3373_v33 = vshll.u32 %v9024_v26, 16 }
 0x151   : > { %5377 = vmatprep.mubr.bf16.mxu1 %v9123_v35  ;;  %v3559_v38 = vsel %vm12396_vm11, %v3557_v25, %v3558_v1  ;;  %v3378_v17 = vrot.slane %v12547_v10, 6  ;;  %v3567_v11 = vsel %vm12396_vm11, %v3562_v30, %v3566_v3  ;;  %v3074_v16 = vor.u32 %v3073_v54, %v3069_v7  ;;  %v12857_v54 = vpop.f32.mrb[16].mxu0  ;;  %v12861_v30 = vpop.f32.mrb[16].mxu1 }
 0x152   : > { %v3079_v39 = vrot.slane %v3077_v37, 5  ;;  %v3372_v14 = vrot.slane %v3370_v41, 6  ;;  %v9135_v24 = vcombine.low %v3559_v38, %v3567_v11  ;;  %v3065_v47 = vrot.slane %v3064_v53, 4  ;;  %v12863_v38 = vpop.f32.mrb[17].mxu0 }
 0x153   : > { %v3375_v31 = vrot.slane %v3373_v33, 7  ;;  %v3379_v35 = vrot.slane %v12545_v57, 7  ;;  %v3075_v59 = vrot.slane %v3074_v16, 4  ;;  %v3384_v50 = vshrl.u32 %v9025_v63, 16 }
 0x154   : > { %v3387_v1 = vshll.u32 %v9025_v63, 16  ;;  %v3569_v25 = vshrl.u32 %v9038_v49, 16  ;;  %5442 = vmatprep.mubr.bf16.mxu0 %v9135_v24  ;;  %v3070_v10 = vsel %vm12396_vm11, %v3065_v47, %v3069_v7  ;;  %v3572_v60 = vshll.u32 %v9038_v49, 16  ;;  %v9042_v47 = vld [vmem:[%s11465_s8 + $0x2c] sm:$0x7] }
 0x155   : > { %v3376_v26 = vor.u32 %v3375_v31, %v3372_v14  ;;  %v3380_v52 = vor.u32 %v3379_v35, %v3378_v17  ;;  %v3080_v41 = vsel %vm12396_vm11, %v3075_v59, %v3079_v39  ;;  %v3386_v37 = vrot.slane %v3384_v50, 6  ;;  %v12865_v17 = vpop.f32.mrb[17].mxu1  ;;  %v11133_v50 = vld [vmem:[%s11465_s8 + $0x5c] sm:$0x1]  ;;  %v12870_v39 = vpop.f32.mrb[18].mxu0 }
 0x156   : > { %v3389_v3 = vrot.slane %v3387_v1, 7  ;;  %v3571_v57 = vrot.slane %v3569_v25, 4  ;;  %v9115_v53 = vcombine.low %v3070_v10, %v3080_v41  ;;  %v3574_v33 = vrot.slane %v3572_v60, 5  ;;  %15385 = vst [vmem:[#allocation40_spill] sm:$0xff] %v12865_v17  ;;  %15386 = vst [vmem:[#allocation41_spill] sm:$0xff] %v12870_v39  ;;  %v12876_v25 = vpop.f32.mrb[18].mxu1 }
 0x157   : > { %v3377_v7 = vrot.slane %v3376_v26, 4  ;;  %v3382_v63 = vrot.slane %v3380_v52, 4  ;;  %v3577_v11 = vrot.slane %v12182_v0, 5  ;;  %v3579_v59 = vrot.slane %v12180_v55, 4  ;;  %v11134_v31 = vld [vmem:[%s11465_s8 + $0x24] sm:$0xc] }
 0x158   : > { %v3390_v49 = vor.u32 %v3389_v3, %v3386_v37  ;;  %v3583_v16 = vshll.u32 %v11133_v50, 16  ;;  %5378 = vmatmul.mubr.bf16.gmra.mrb[92].mxu1 %v9115_v53  ;;  %v3575_v24 = vor.u32 %v3574_v33, %v3571_v57  ;;  %v3653_v35 = vshrl.u32 %v11134_v31, 16  ;;  %15387 = vst [vmem:[#allocation42_spill] sm:$0xff] %v12876_v25  ;;  %v12878_v10 = vpop.f32.mrb[19].mxu0  ;;  %v9026_v3 = vld [vmem:[%s11465_s8 + $0x3c] sm:$0xc] }
 0x159   : > { %v3381_v14 = vsel %vm12661_vm14, %v3377_v7, %v3380_v52  ;;  %v3656_v1 = vshll.u32 %v11134_v31, 16  ;;  %15388 = vst [vmem:[#allocation43_spill] sm:$0xff] %v12878_v10  ;;  %v3580_v60 = vor.u32 %v3579_v59, %v3577_v11  ;;  %v3661_v37 = vrot.slane %v11514_v2, 6  ;;  %v12884_v52 = vpop.f32.mrb[19].mxu1  ;;  %v9027_v59 = vld [vmem:[%s11465_s8 + $0x44] sm:$0x7] }
 0x15a   : > { %v3391_v26 = vsel %vm12661_vm14, %v3382_v63, %v3390_v49  ;;  %v3585_v41 = vrot.slane %v3583_v16, 5  ;;  %15389 = vst [vmem:[#allocation44_spill] sm:$0xff] %v12884_v52  ;;  %v3576_v53 = vrot.slane %v3575_v24, 4  ;;  %v3655_v7 = vrot.slane %v3653_v35, 6  ;;  %v9039_v39 = vld [vmem:[%s11465_s8 + $0x60] sm:$0xf] }
 0x15b   : > { %v9127_v57 = vcombine.low %v3381_v14, %v3391_v26  ;;  %v3658_v33 = vrot.slane %v3656_v1, 7  ;;  %v3581_v50 = vrot.slane %v3580_v60, 4  ;;  %v3662_v31 = vrot.slane %v11517_v6, 7 }
 0x15c   : > { %v3667_v25 = vshrl.u32 %v9042_v47, 16  ;;  %v3670_v10 = vshll.u32 %v9042_v47, 16  ;;  %v3578_v63 = vsel %vm12396_vm11, %v3576_v53, %v3577_v11  ;;  %v3393_v2 = vshrl.u32 %v9026_v3, 16  ;;  %v12895_v53 = vpop.f32.mrb[20].mxu0 }
 0x15d   : > { %5443 = vmatmul.mubr.bf16.gmra.mrb[92].mxu0 %v9127_v57  ;;  %v3659_v49 = vor.u32 %v3658_v33, %v3655_v7  ;;  %v3396_v16 = vshll.u32 %v9026_v3, 16  ;;  %v3586_v14 = vsel %vm12396_vm11, %v3581_v50, %v3585_v41  ;;  %v3663_v24 = vor.u32 %v3662_v31, %v3661_v37  ;;  %v12901_v31 = vpop.f32.mrb[20].mxu1 }
 0x15e   : > { %v3669_v35 = vrot.slane %v3667_v25, 6  ;;  %v3672_v1 = vrot.slane %v3670_v10, 7  ;;  %v9136_v26 = vcombine.low %v3578_v63, %v3586_v14  ;;  %v3395_v6 = vrot.slane %v3393_v2, 6 }
 0x15f   : > { %v3660_v60 = vrot.slane %v3659_v49, 4  ;;  %v3398_v52 = vrot.slane %v3396_v16, 7  ;;  %v3665_v47 = vrot.slane %v3663_v24, 4  ;;  %v3401_v17 = vrot.slane %v12603_v20, 6  ;;  %v12903_v20 = vpop.f32.mrb[21].mxu0  ;;  %v12905_v16 = vpop.f32.mrb[21].mxu1 }
 0x160   : > { %v3673_v57 = vor.u32 %v3672_v1, %v3669_v35  ;;  %v3402_v11 = vrot.slane %v12596_v23, 7  ;;  %5450 = vmatprep.mubr.bf16.mxu0 %v9136_v26  ;;  %v3407_v37 = vshrl.u32 %v9027_v59, 16  ;;  %v3410_v25 = vshll.u32 %v9027_v59, 16 }
 0x161   : > { %v3664_v3 = vsel %vm12661_vm14, %v3660_v60, %v3663_v24  ;;  %v3399_v41 = vor.u32 %v3398_v52, %v3395_v6  ;;  %v3588_v33 = vshrl.u32 %v9039_v39, 16  ;;  %v3591_v50 = vshll.u32 %v9039_v39, 16  ;;  %v11000_v39 = vld [vmem:[%s15310_s1 + $0x448] sm:$0xff]   ;;  %v12911_v24 = vpop.f32.mrb[22].mxu0 }
 0x162   : > { %v3674_v10 = vsel %vm12661_vm14, %v3665_v47, %v3673_v57  ;;  %v3403_v7 = vor.u32 %v3402_v11, %v3401_v17  ;;  %v3409_v49 = vrot.slane %v3407_v37, 6  ;;  %v3412_v2 = vrot.slane %v3410_v25, 7  ;;  %v11135_v60 = vld [vmem:[%s11465_s8 + $0x68] sm:$0x1]  ;;  %v12917_v47 = vpop.f32.mrb[22].mxu1  ;;  %v12919_v57 = vpop.f32.mrb[23].mxu0 }
 0x163   : > { %v9140_v23 = vcombine.low %v3664_v3, %v3674_v10  ;;  %v3400_v63 = vrot.slane %v3399_v41, 4  ;;  %v3590_v59 = vrot.slane %v3588_v33, 4  ;;  %v3593_v14 = vrot.slane %v3591_v50, 5  ;;  %v9043_v3 = vld [vmem:[%s11465_s8 + $0x38] sm:$0x7] }
 0x164   : > { %v3405_v52 = vrot.slane %v3403_v7, 4  ;;  %v3596_v17 = vrot.slane %v12233_v15, 5  ;;  %v3413_v1 = vor.u32 %v3412_v2, %v3409_v49  ;;  %v3598_v26 = vrot.slane %v12230_v40, 4  ;;  %v11136_v41 = vld [vmem:[%s11465_s8 + $0x30] sm:$0xc] }
 0x165   : > { %5515 = vmatprep.mubr.bf16.mxu1 %v9140_v23  ;;  %v3404_v35 = vsel %vm12661_vm14, %v3400_v63, %v3403_v7  ;;  %v3602_v6 = vshll.u32 %v11135_v60, 16  ;;  %v3594_v11 = vor.u32 %v3593_v14, %v3590_v59  ;;  %v3676_v37 = vshrl.u32 %v11136_v41, 16  ;;  %v12925_v7 = vpop.f32.mrb[23].mxu1  ;;  %v9028_v49 = vld [vmem:[%s11465_s8 + $0x48] sm:$0xc] }
 0x166   : > { %5516 = vmatmul.mubr.bf16.vlgmr.msra.gmra.mrb[96].mxu1 %v11950_v32  ;;  %v3679_v25 = vshll.u32 %v11136_v41, 16  ;;  %v3684_v10 = vrot.slane %v11972_v44, 6  ;;  %15390 = vst [vmem:[#allocation45_spill] sm:$0xff] %v12925_v7  ;;  %v3414_v33 = vsel %vm12661_vm14, %v3405_v52, %v3413_v1  ;;  %v3599_v50 = vor.u32 %v3598_v26, %v3596_v17  ;;  %v11001_v44 = vld [vmem:[%s15310_s1 + $0x450] sm:$0xff]   ;;  %v9040_v7 = vld [vmem:[%s11465_s8 + $0x6c] sm:$0xf] }
 0x167   : > { %v3604_v23 = vrot.slane %v3602_v6, 5  ;;  %v3685_v63 = vrot.slane %v11977_v51, 7  ;;  %10699 = vmatpush3.bf16.msra.mxu1 %v12643_v5  ;;  %v9128_v2 = vcombine.low %v3404_v35, %v3414_v33  ;;  %v3595_v59 = vrot.slane %v3594_v11, 4  ;;  %v9029_v5 = vld [vmem:[%s11465_s8 + $0x50] sm:$0x7] }
 0x168   : > { %v3678_v14 = vrot.slane %v3676_v37, 6  ;;  %v3681_v60 = vrot.slane %v3679_v25, 7  ;;  %10700 = vmatprep.subr.bf16.mxu1 %v11000_v39  ;;  %v3600_v41 = vrot.slane %v3599_v50, 4  ;;  %v3690_v1 = vshrl.u32 %v9043_v3, 16 }
 0x169   : > { %v3686_v52 = vor.u32 %v3685_v63, %v3684_v10  ;;  %v3693_v26 = vshll.u32 %v9043_v3, 16  ;;  %5451 = vmatmul.mubr.bf16.gmra.mrb[96].mxu0 %v9128_v2  ;;  %v3597_v51 = vsel %vm12396_vm11, %v3595_v59, %v3596_v17  ;;  %v3416_v35 = vshrl.u32 %v9028_v49, 16  ;;  %v11004_v17 = vld [vmem:[%s15310_s1 + $0x458] sm:$0xff]  }
 0x16a   : > { %v3682_v6 = vor.u32 %v3681_v60, %v3678_v14  ;;  %v3419_v11 = vshll.u32 %v9028_v49, 16  ;;  %v3605_v37 = vsel %vm12396_vm11, %v3600_v41, %v3604_v23  ;;  %v3692_v33 = vrot.slane %v3690_v1, 6  ;;  %v12946_v14 = vpop.f32.mrb[24].mxu0 }
 0x16b   : > { %v3688_v25 = vrot.slane %v3686_v52, 4  ;;  %v3695_v32 = vrot.slane %v3693_v26, 7  ;;  %10701 = vmatpush3.bf16.msra.mxu1 %v11000_v39  ;;  %v9137_v50 = vcombine.low %v3597_v51, %v3605_v37  ;;  %v3418_v63 = vrot.slane %v3416_v35, 6 }
 0x16c   : > { %v3683_v10 = vrot.slane %v3682_v6, 4  ;;  %v3421_v3 = vrot.slane %v3419_v11, 7  ;;  %10702 = vmatprep.subr.bf16.mxu1 %v11001_v44  ;;  %v3424_v49 = vrot.slane %v12654_v43, 6  ;;  %v3425_v59 = vrot.slane %v12652_v29, 7  ;;  %v11005_v29 = vld [vmem:[%s15310_s1 + $0x460] sm:$0xff]   ;;  %v12955_v11 = vpop.f32.mrb[24].mxu1 }
 0x16d   : > { %v3696_v2 = vor.u32 %v3695_v32, %v3692_v33  ;;  %v3430_v23 = vshrl.u32 %v9029_v5, 16  ;;  %5458 = vmatprep.mubr.bf16.mxu0 %v9137_v50  ;;  %v3433_v41 = vshll.u32 %v9029_v5, 16  ;;  %v3607_v1 = vshrl.u32 %v9040_v7, 16  ;;  %v9030_v50 = vld [vmem:[%s11465_s8 + $0x54] sm:$0xc] }
 0x16e   : > { %v3687_v39 = vsel %vm12661_vm14, %v3683_v10, %v3686_v52  ;;  %v3422_v60 = vor.u32 %v3421_v3, %v3418_v63  ;;  %v3426_v51 = vor.u32 %v3425_v59, %v3424_v49  ;;  %v3610_v43 = vshll.u32 %v9040_v7, 16  ;;  %v11137_v3 = vld [vmem:[%s11465_s8 + $0x74] sm:$0x1]  ;;  %v11138_v49 = vld [vmem:[%s11465_s8 + $0x3c] sm:$0xc] }
 0x16f   : > { %v3697_v26 = vsel %vm12661_vm14, %v3688_v25, %v3696_v2  ;;  %v3432_v32 = vrot.slane %v3430_v23, 6  ;;  %10703 = vmatpush3.bf16.msra.mxu1 %v11001_v44  ;;  %v3435_v52 = vrot.slane %v3433_v41, 7  ;;  %v3609_v5 = vrot.slane %v3607_v1, 4  ;;  %v9044_v44 = vld [vmem:[%s11465_s8 + $0x44] sm:$0x7]  ;;  %v12965_v23 = vpop.f32.mrb[25].mxu0 }
 0x170   : > { %v9141_v6 = vcombine.low %v3687_v39, %v3697_v26  ;;  %v3423_v35 = vrot.slane %v3422_v60, 4  ;;  %10704 = vmatprep.subr.bf16.mxu1 %v11004_v17  ;;  %v3428_v37 = vrot.slane %v3426_v51, 4  ;;  %v3612_v25 = vrot.slane %v3610_v43, 5  ;;  %v12967_v39 = vpop.f32.mrb[25].mxu1  ;;  %v12971_v43 = vpop.f32.mrb[26].mxu0 }
 0x171   : > { %v3615_v33 = vrot.slane %v12283_v13, 5  ;;  %v3617_v7 = vrot.slane %v12279_v9, 4  ;;  %v3436_v63 = vor.u32 %v3435_v52, %v3432_v32  ;;  %v3621_v2 = vshll.u32 %v11137_v3, 16  ;;  %v12976_v52 = vpop.f32.mrb[26].mxu1 }
 0x172   : > { %5523 = vmatprep.mubr.bf16.mxu1 %v9141_v6  ;;  %v3427_v10 = vsel %vm12661_vm14, %v3423_v35, %v3426_v51  ;;  %v3699_v59 = vshrl.u32 %v11138_v49, 16  ;;  %v3613_v60 = vor.u32 %v3612_v25, %v3609_v5  ;;  %v3702_v1 = vshll.u32 %v11138_v49, 16  ;;  %15391 = vst [vmem:[#allocation46_spill] sm:$0xff] %v12976_v52 }
 0x173   : > { %5524 = vmatmul.mubr.bf16.gmra.mrb[100].mxu1 %v12035_v45  ;;  %v3618_v41 = vor.u32 %v3617_v7, %v3615_v33  ;;  %v3707_v26 = vrot.slane %v12053_v12, 6  ;;  %v3437_v51 = vsel %vm12661_vm14, %v3428_v37, %v3436_v63  ;;  %v3623_v32 = vrot.slane %v3621_v2, 5  ;;  %v11008_v12 = vld [vmem:[%s15310_s1 + $0x468] sm:$0xff]   ;;  %v12981_v2 = vpop.f32.mrb[27].mxu0 }
 0x174   : > { %v3701_v6 = vrot.slane %v3699_v59, 6  ;;  %v3708_v35 = vrot.slane %v12055_v4, 7  ;;  %10705 = vmatpush3.bf16.msra.mxu1 %v11004_v17  ;;  %v9129_v3 = vcombine.low %v3427_v10, %v3437_v51  ;;  %v3614_v45 = vrot.slane %v3613_v60, 4  ;;  %15392 = vst [vmem:[#allocation47_spill] sm:$0xff] %v12981_v2  ;;  %v12983_v4 = vpop.f32.mrb[27].mxu1 }
 0x175   : > { %v3619_v5 = vrot.slane %v3618_v41, 4  ;;  %v3704_v25 = vrot.slane %v3702_v1, 7  ;;  %10706 = vmatprep.subr.bf16.mxu1 %v11005_v29  ;;  %v3713_v49 = vshrl.u32 %v9044_v44, 16  ;;  %v3716_v37 = vshll.u32 %v9044_v44, 16  ;;  %v9031_v60 = vld [vmem:[%s11465_s8 + $0x5c] sm:$0x7] }
 0x176   : > { %v3709_v7 = vor.u32 %v3708_v35, %v3707_v26  ;;  %v3439_v63 = vshrl.u32 %v9030_v50, 16  ;;  %5459 = vmatmul.mubr.bf16.gmra.mrb[100].mxu0 %v9129_v3  ;;  %v3616_v17 = vsel %vm12396_vm11, %v3614_v45, %v3615_v33  ;;  %v3442_v41 = vshll.u32 %v9030_v50, 16  ;;  %v11009_v45 = vld [vmem:[%s15310_s1 + $0x470] sm:$0xff]  }
 0x177   : > { %v3624_v10 = vsel %vm12396_vm11, %v3619_v5, %v3623_v32  ;;  %v3705_v59 = vor.u32 %v3704_v25, %v3701_v6  ;;  %v3715_v26 = vrot.slane %v3713_v49, 6  ;;  %v3718_v35 = vrot.slane %v3716_v37, 7  ;;  %v9041_v49 = vld [vmem:[%s11465_s8 + $0x78] sm:$0xf] }
 0x178   : > { %v9138_v1 = vcombine.low %v3616_v17, %v3624_v10  ;;  %v3711_v51 = vrot.slane %v3709_v7, 4  ;;  %10707 = vmatpush3.bf16.msra.mxu1 %v11005_v29  ;;  %v3441_v52 = vrot.slane %v3439_v63, 6  ;;  %v3444_v2 = vrot.slane %v3442_v41, 7 }
 0x179   : > { %v3706_v44 = vrot.slane %v3705_v59, 4  ;;  %v3447_v3 = vrot.slane %v12731_v48, 6  ;;  %10708 = vmatprep.subr.bf16.mxu1 %v11008_v12  ;;  %v3719_v33 = vor.u32 %v3718_v35, %v3715_v26  ;;  %v3448_v50 = vrot.slane %v12726_v46, 7 }
 0x17a   : > { %5466 = vmatprep.mubr.bf16.mxu0 %v9138_v1  ;;  %v3453_v32 = vshrl.u32 %v9031_v60, 16  ;;  %v3456_v6 = vshll.u32 %v9031_v60, 16  ;;  %v3445_v5 = vor.u32 %v3444_v2, %v3441_v52  ;;  %v9859_v25 = vadd.f32 %v12575_v21, %v12559_v8  ;;  %v15395_v60 = vld [vmem:[#allocation15_spill] sm:$0xff] }
 0x17b   : > { %v3710_v29 = vsel %vm12661_vm14, %v3706_v44, %v3709_v7  ;;  %v9923_v48 = vadd.f32 %v12583_v62, %v12568_v36  ;;  %v3720_v37 = vsel %vm12661_vm14, %v3711_v51, %v3719_v33  ;;  %v3449_v63 = vor.u32 %v3448_v50, %v3447_v3  ;;  %v11012_v7 = vld [vmem:[%s15310_s1 + $0x478] sm:$0xff]   ;;  %v13011_v62 = vpop.f32.mrb[28].mxu0  ;;  %v9045_v51 = vld [vmem:[%s11465_s8 + $0x50] sm:$0x7]  ;;  %v15397_v44 = vld [vmem:[#allocation13_spill] sm:$0xff] }
 0x17c   : > { %v3455_v17 = vrot.slane %v3453_v32, 6  ;;  %v3458_v46 = vrot.slane %v3456_v6, 7  ;;  %10709 = vmatpush3.bf16.msra.mxu1 %v11008_v12  ;;  %v9142_v52 = vcombine.low %v3710_v29, %v3720_v37  ;;  %v3446_v2 = vrot.slane %v3445_v5, 4  ;;  %v15394_v36 = vld [vmem:[#allocation16_spill] sm:$0xff]  ;;  %v15396_v12 = vld [vmem:[#allocation17_spill] sm:$0xff]  ;;  %v13021_v32 = vpop.f32.mrb[28].mxu1 }
 0x17d   : > { %v13007_v8 = vadd.f32 %v9923_v48, %v9859_v25  ;;  %v9862_v21 = vadd.f32 %v15394_v36, %v12588_v61  ;;  %10710 = vmatprep.subr.bf16.mxu1 %v11009_v45  ;;  %v3451_v10 = vrot.slane %v3449_v63, 4  ;;  %v9926_v41 = vadd.f32 %v15396_v12, %v15395_v60  ;;  %v15398_v61 = vld [vmem:[#allocation12_spill] sm:$0xff]  ;;  %v9032_v50 = vld [vmem:[%s11465_s8 + $0x60] sm:$0xc]  ;;  %v15399_v29 = vld [vmem:[#allocation7_spill] sm:$0xff]  ;;  %v13033_v36 = vpop.f32.mrb[29].mxu0 }
 0x17e   : > { %v3459_v59 = vor.u32 %v3458_v46, %v3455_v17  ;;  %v3626_v1 = vshrl.u32 %v9041_v49, 16  ;;  %5531 = vmatprep.mubr.bf16.mxu1 %v9142_v52  ;;  %v3450_v26 = vsel %vm12661_vm14, %v3446_v2, %v3449_v63  ;;  %v3629_v35 = vshll.u32 %v9041_v49, 16  ;;  %v11139_v48 = vld [vmem:[%s11465_s8 + $0x80] sm:$0x1]  ;;  %v11140_v52 = vld [vmem:[%s11465_s8 + $0x48] sm:$0xc] }
 0x17f   : > { %15393 = vst [vmem:[#allocation48_spill] sm:$0xff] %v13007_v8  ;;  %v3634_v3 = vrot.slane %v15397_v44, 5  ;;  %v3636_v33 = vrot.slane %v15398_v61, 4  ;;  %5532 = vmatmul.mubr.bf16.gmra.mrb[104].mxu1 %v15399_v29  ;;  %v13026_v5 = vadd.f32 %v9926_v41, %v9862_v21  ;;  %v3640_v37 = vshll.u32 %v11139_v48, 16  ;;  %v11014_v49 = vld [vmem:[%s15310_s1 + $0x540] sm:$0xff]  }
 0x180   : > { %v3460_v6 = vsel %vm12661_vm14, %v3451_v10, %v3459_v59  ;;  %v3628_v25 = vrot.slane %v3626_v1, 4  ;;  %v3631_v17 = vrot.slane %v3629_v35, 5  ;;  %v3722_v2 = vshrl.u32 %v11140_v52, 16  ;;  %10711 = vmatpush3.bf16.msra.mxu1 %v11009_v45  ;;  %v13035_v10 = vpop.f32.mrb[29].mxu1 }
 0x181   : > { %15400 = vst [vmem:[#allocation16_spill] sm:$0xff] %v13026_v5  ;;  %v9130_v63 = vcombine.low %v3450_v26, %v3460_v6  ;;  %v3637_v46 = vor.u32 %v3636_v33, %v3634_v3  ;;  %v3642_v21 = vrot.slane %v3640_v37, 5  ;;  %v3725_v59 = vshll.u32 %v11140_v52, 16  ;;  %10712 = vmatprep.subr.bf16.mxu1 %v11012_v7  ;;  %v9033_v33 = vld [vmem:[%s11465_s8 + $0x68] sm:$0x7]  ;;  %v13040_v6 = vpop.f32.mrb[30].mxu0 }
 0x182   : > { %v3730_v60 = vrot.slane %v12131_v19, 6  ;;  %v3731_v12 = vrot.slane %v12133_v34, 7  ;;  %v3632_v41 = vor.u32 %v3631_v17, %v3628_v25  ;;  %v3724_v26 = vrot.slane %v3722_v2, 6  ;;  %15401 = vst [vmem:[#allocation15_spill] sm:$0xff] %v13040_v6  ;;  %v13042_v45 = vpop.f32.mrb[30].mxu1  ;;  %v13046_v25 = vpop.f32.mrb[31].mxu0 }
 0x183   : > { %5467 = vmatmul.mubr.bf16.gmra.mrb[104].mxu0 %v9130_v63  ;;  %v3638_v1 = vrot.slane %v3637_v46, 4  ;;  %v3736_v35 = vshrl.u32 %v9045_v51, 16  ;;  %v3727_v48 = vrot.slane %v3725_v59, 7  ;;  %v3739_v5 = vshll.u32 %v9045_v51, 16  ;;  %v13048_v6 = vpop.f32.mrb[31].mxu1 }
 0x184   : > { %v3732_v29 = vor.u32 %v3731_v12, %v3730_v60  ;;  %v3462_v37 = vshrl.u32 %v9032_v50, 16  ;;  %v3633_v52 = vrot.slane %v3632_v41, 4  ;;  %v3465_v8 = vshll.u32 %v9032_v50, 16  ;;  %10713 = vmatpush3.bf16.msra.mxu1 %v11012_v7 }
 0x185   : > { %v3643_v19 = vsel %vm12396_vm11, %v3638_v1, %v3642_v21  ;;  %v3738_v34 = vrot.slane %v3736_v35, 6  ;;  %v3728_v63 = vor.u32 %v3727_v48, %v3724_v26  ;;  %v3741_v46 = vrot.slane %v3739_v5, 7  ;;  %10449 = vmatprep.subr.bf16.mxu1 %v11014_v49  ;;  %v15402_v49 = vld [vmem:[#allocation18_spill] sm:$0xff]  ;;  %v15403_v35 = vld [vmem:[#allocation20_spill] sm:$0xff] }
 0x186   : > { %v3734_v17 = vrot.slane %v3732_v29, 4  ;;  %v3464_v2 = vrot.slane %v3462_v37, 6  ;;  %v3635_v51 = vsel %vm12396_vm11, %v3633_v52, %v3634_v3  ;;  %v3467_v59 = vrot.slane %v3465_v8, 7  ;;  %v15404_v3 = vld [vmem:[#allocation19_spill] sm:$0xff]  ;;  %v15405_v37 = vld [vmem:[#allocation21_spill] sm:$0xff] }
 0x187   : > { %v3470_v60 = vrot.slane %v12801_v58, 6  ;;  %v3471_v21 = vrot.slane %v12797_v18, 7  ;;  %v9139_v50 = vcombine.low %v3635_v51, %v3643_v19  ;;  %v3729_v7 = vrot.slane %v3728_v63, 4  ;;  %v9046_v19 = vld [vmem:[%s11465_s8 + $0x5c] sm:$0x7] }
 0x188   : > { %v3742_v12 = vor.u32 %v3741_v46, %v3738_v34  ;;  %v3476_v41 = vshrl.u32 %v9033_v33, 16  ;;  %v3468_v1 = vor.u32 %v3467_v59, %v3464_v2  ;;  %v3479_v26 = vshll.u32 %v9033_v33, 16  ;;  %v9053_v2 = vld [vmem:[%s11465_s8 + $0x40] sm:$0xf]  ;;  %v15407_v59 = vld [vmem:[#allocation22_spill] sm:$0xff] }
 0x189   : > { %v3472_v5 = vor.u32 %v3471_v21, %v3470_v60  ;;  %v9865_v48 = vadd.f32 %v15403_v35, %v15402_v49  ;;  %5474 = vmatprep.mubr.bf16.mxu0 %v9139_v50  ;;  %v3733_v8 = vsel %vm12661_vm14, %v3729_v7, %v3732_v29  ;;  %v9929_v52 = vadd.f32 %v15405_v37, %v15404_v3  ;;  %v15408_v60 = vld [vmem:[#allocation24_spill] sm:$0xff]  ;;  %v15409_v29 = vld [vmem:[#allocation23_spill] sm:$0xff]  ;;  %v15410_v50 = vld [vmem:[#allocation25_spill] sm:$0xff]  ;;  %v13072_v49 = vpop.f32.mrb[32].mxu0 }
 0x18a   : > { %v3743_v58 = vsel %vm12661_vm14, %v3734_v17, %v3742_v12  ;;  %v3478_v18 = vrot.slane %v3476_v41, 6  ;;  %v3469_v63 = vrot.slane %v3468_v1, 4  ;;  %v3481_v46 = vrot.slane %v3479_v26, 7  ;;  %v11141_v17 = vld [vmem:[%s11465_s8 + $0x54] sm:$0xc] }
 0x18b   : > { %v9143_v34 = vcombine.low %v3733_v8, %v3743_v58  ;;  %v3474_v33 = vrot.slane %v3472_v5, 4  ;;  %v13064_v51 = vadd.f32 %v9929_v52, %v9865_v48  ;;  %v9868_v21 = vadd.f32 %v15408_v60, %v15407_v59  ;;  %v9076_v41 = vld [vmem:[%s11465_s8 + $0x3c] sm:$0xe]  ;;  %v9077_v8 = vld [vmem:[%s11465_s8 + $0x44] sm:$0x3]  ;;  %v13082_v60 = vpop.f32.mrb[33].mxu0 }
 0x18c   : > { %v9932_v7 = vadd.f32 %v15410_v50, %v15409_v29  ;;  %v3745_v12 = vshrl.u32 %v11141_v17, 16  ;;  %v3473_v1 = vsel %vm12661_vm14, %v3469_v63, %v3472_v5  ;;  %v3482_v26 = vor.u32 %v3481_v46, %v3478_v18  ;;  %v15411_v58 = vld [vmem:[#allocation8_spill] sm:$0xff]  ;;  %15413 = vst [vmem:[#allocation12_spill] sm:$0xff] %v13082_v60 }
 0x18d   : > { %15406 = vst [vmem:[#allocation17_spill] sm:$0xff] %v13064_v51  ;;  %5539 = vmatprep.mubr.bf16.mxu1 %v9143_v34  ;;  %v3748_v35 = vshll.u32 %v11141_v17, 16  ;;  %v3753_v48 = vrot.slane %v12180_v55, 6  ;;  %v3754_v52 = vrot.slane %v12182_v0, 7  ;;  %v3759_v59 = vshrl.u32 %v9046_v19, 16 }
 0x18e   : > { %5540 = vmatmul.mubr.bf16.gmra.mrb[108].mxu1 %v15411_v58  ;;  %v13079_v3 = vadd.f32 %v9932_v7, %v9868_v21  ;;  %v3747_v37 = vrot.slane %v3745_v12, 6  ;;  %v3483_v34 = vsel %vm12661_vm14, %v3474_v33, %v3482_v26  ;;  %v3762_v5 = vshll.u32 %v9046_v19, 16  ;;  %v9052_v63 = vld [vmem:[%s11465_s8 + $0x3c] sm:$0xf]  ;;  %v13091_v58 = vpop.f32.mrb[34].mxu0 }
 0x18f   : > { %v3750_v29 = vrot.slane %v3748_v35, 7  ;;  %v13086_v18 = vshll.u32 %v9053_v2, 16  ;;  %v9131_v55 = vcombine.low %v3473_v1, %v3483_v34  ;;  %v3755_v46 = vor.u32 %v3754_v52, %v3753_v48  ;;  %15414 = vst [vmem:[#allocation18_spill] sm:$0xff] %v13091_v58  ;;  %v9054_v51 = vld [vmem:[%s11465_s8 + $0x44] sm:$0x1]  ;;  %v13102_v60 = vpop.f32.mrb[35].mxu0 }
 0x190   : > { %15412 = vst [vmem:[#allocation13_spill] sm:$0xff] %v13079_v3  ;;  %v3761_v50 = vrot.slane %v3759_v59, 6  ;;  %v13089_v17 = vshrl.u32 %v9053_v2, 16  ;;  %v3764_v7 = vrot.slane %v3762_v5, 7  ;;  %v4073_v12 = vshrl.u32 %v9076_v41, 16  ;;  %v13095_v2 = vpop.f32.mrb[32].mxu1 }
 0x191   : > { %v3751_v21 = vor.u32 %v3750_v29, %v3747_v37  ;;  %v4076_v0 = vshll.u32 %v9076_v41, 16  ;;  %5475 = vmatmul.mubr.bf16.gmra.mrb[108].mxu0 %v9131_v55  ;;  %v3757_v3 = vrot.slane %v3755_v46, 4  ;;  %v4082_v19 = vrot.slane %v13086_v18, 6  ;;  %15415 = vst [vmem:[#allocation20_spill] sm:$0xff] %v13095_v2  ;;  %15416 = vst [vmem:[#allocation19_spill] sm:$0xff] %v13102_v60 }
 0x192   : > { %v4081_v33 = vrot.slane %v13089_v17, 5  ;;  %v4087_v26 = vshrl.u32 %v9077_v8, 16  ;;  %v3765_v1 = vor.u32 %v3764_v7, %v3761_v50  ;;  %v4075_v48 = vrot.slane %v4073_v12, 5  ;;  %v13104_v50 = vpop.f32.mrb[33].mxu1 }
 0x193   : > { %v3752_v35 = vrot.slane %v3751_v21, 4  ;;  %v4078_v52 = vrot.slane %v4076_v0, 6  ;;  %v4090_v34 = vshll.u32 %v9077_v8, 16  ;;  %v3865_v41 = vshrl.u32 %v9052_v63, 16  ;;  %15417 = vst [vmem:[#allocation21_spill] sm:$0xff] %v13104_v50 }
 0x194   : > { %v4083_v37 = vor.u32 %v4082_v19, %v4081_v33  ;;  %v4089_v59 = vrot.slane %v4087_v26, 5  ;;  %v3766_v5 = vsel %vm12661_vm14, %v3757_v3, %v3765_v1  ;;  %v3868_v58 = vshll.u32 %v9052_v63, 16  ;;  %v13106_v33 = vpop.f32.mrb[34].mxu1 }
 0x195   : > { %v3756_v29 = vsel %vm12661_vm14, %v3752_v35, %v3755_v46  ;;  %v4079_v55 = vor.u32 %v4078_v52, %v4075_v48  ;;  %v4092_v12 = vrot.slane %v4090_v34, 6  ;;  %v3867_v0 = vrot.slane %v3865_v41, 4  ;;  %15418 = vst [vmem:[#allocation22_spill] sm:$0xff] %v13106_v33  ;;  %v15419_v35 = vld [vmem:[#allocation26_spill] sm:$0xff]  ;;  %v15420_v48 = vld [vmem:[#allocation27_spill] sm:$0xff]  ;;  %v13114_v34 = vpop.f32.mrb[35].mxu1 }
 0x196   : > { %v9144_v21 = vcombine.low %v3756_v29, %v3766_v5  ;;  %v4085_v7 = vrot.slane %v4083_v37, 4  ;;  %v3870_v19 = vrot.slane %v3868_v58, 5  ;;  %v3876_v46 = vrot.slane %v13086_v18, 5  ;;  %15421 = vst [vmem:[#allocation24_spill] sm:$0xff] %v13114_v34  ;;  %v15422_v41 = vld [vmem:[#allocation9_spill] sm:$0xff] }
 0x197   : > { %v4080_v8 = vrot.slane %v4079_v55, 4  ;;  %v3880_v3 = vrot.slane %v13089_v17, 4  ;;  %v4093_v63 = vor.u32 %v4092_v12, %v4089_v59  ;;  %v3884_v26 = vshll.u32 %v9054_v51, 16  ;;  %v15423_v55 = vld [vmem:[#allocation28_spill] sm:$0xff]  ;;  %v15424_v59 = vld [vmem:[#allocation30_spill] sm:$0xff] }
 0x198   : > { %5547 = vmatprep.mubr.bf16.mxu1 %v9144_v21  ;;  %v9871_v1 = vadd.f32 %v12769_v22, %v15419_v35  ;;  %v9935_v52 = vadd.f32 %v12776_v42, %v15420_v48  ;;  %v3871_v29 = vor.u32 %v3870_v19, %v3867_v0  ;;  %v9874_v21 = vadd.f32 %v15424_v59, %v15423_v55  ;;  %v9047_v51 = vld [vmem:[%s11465_s8 + $0x68] sm:$0x7]  ;;  %v15426_v35 = vld [vmem:[#allocation29_spill] sm:$0xff]  ;;  %v15427_v48 = vld [vmem:[#allocation31_spill] sm:$0xff] }
 0x199   : > { %v4084_v58 = vsel %vm11505_vm7, %v4080_v8, %v4083_v37  ;;  %5548 = vmatmul.mubr.bf16.gmra.mrb[112].mxu1 %v15422_v41  ;;  %v3881_v5 = vor.u32 %v3880_v3, %v3876_v46  ;;  %v4094_v22 = vsel %vm11505_vm7, %v4085_v7, %v4093_v63  ;;  %v3886_v12 = vrot.slane %v3884_v26, 5  ;;  %v9056_v37 = vld [vmem:[%s11465_s8 + $0x4c] sm:$0xf]  ;;  %v9078_v8 = vld [vmem:[%s11465_s8 + $0x48] sm:$0xe]  ;;  %v10999_v19 = vld [vmem:[%s15310_s1 + $0x480] sm:$0xff]  }
 0x19a   : > { %v13124_v42 = vadd.f32 %v9935_v52, %v9871_v1  ;;  %v9938_v34 = vadd.f32 %v15427_v48, %v15426_v35  ;;  %v9156_v33 = vcombine.low %v4084_v58, %v4094_v22  ;;  %v3872_v41 = vrot.slane %v3871_v29, 4  ;;  %v11142_v3 = vld [vmem:[%s11465_s8 + $0x60] sm:$0xc]  ;;  %v9079_v52 = vld [vmem:[%s11465_s8 + $0x50] sm:$0x3]  ;;  %v11002_v58 = vld [vmem:[%s15310_s1 + $0x4c8] sm:$0xff]  }
 0x19b   : > { %v3882_v0 = vrot.slane %v3881_v5, 4  ;;  %v3768_v55 = vshrl.u32 %v11142_v3, 16  ;;  %v3771_v63 = vshll.u32 %v11142_v3, 16  ;;  %v3776_v26 = vrot.slane %v12230_v40, 6  ;;  %v9055_v48 = vld [vmem:[%s11465_s8 + $0x48] sm:$0xf] }
 0x19c   : > { %15425 = vst [vmem:[#allocation23_spill] sm:$0xff] %v13124_v42  ;;  %v13134_v7 = vadd.f32 %v9938_v34, %v9874_v21  ;;  %v3777_v1 = vrot.slane %v12233_v15, 7  ;;  %5612 = vmatprep.mubr.bf16.mxu0 %v9156_v33  ;;  %v3877_v29 = vsel %vm12396_vm11, %v3872_v41, %v3876_v46  ;;  %v3782_v34 = vshrl.u32 %v9047_v51, 16 }
 0x19d   : > { %v3887_v5 = vsel %vm12396_vm11, %v3882_v0, %v3886_v12  ;;  %v3770_v59 = vrot.slane %v3768_v55, 6  ;;  %v3773_v22 = vrot.slane %v3771_v63, 7  ;;  %v3785_v40 = vshll.u32 %v9047_v51, 16  ;;  %v11003_v12 = vld [vmem:[%s15310_s1 + $0x488] sm:$0xff]   ;;  %v11006_v51 = vld [vmem:[%s15310_s1 + $0x4d0] sm:$0xff]   ;;  %v13157_v0 = vpop.f32.mrb[36].mxu0 }
 0x19e   : > { %15428 = vst [vmem:[#allocation25_spill] sm:$0xff] %v13134_v7  ;;  %v9148_v21 = vcombine.low %v3877_v29, %v3887_v5  ;;  %v3778_v35 = vor.u32 %v3777_v1, %v3776_v26  ;;  %v3784_v15 = vrot.slane %v3782_v34, 6  ;;  %v13147_v3 = vshll.u32 %v9056_v37, 16  ;;  %15429 = vst [vmem:[#allocation26_spill] sm:$0xff] %v13157_v0  ;;  %v13161_v1 = vpop.f32.mrb[37].mxu0 }
 0x19f   : > { %v13149_v7 = vshrl.u32 %v9056_v37, 16  ;;  %v4096_v42 = vshrl.u32 %v9078_v8, 16  ;;  %v3774_v33 = vor.u32 %v3773_v22, %v3770_v59  ;;  %v3787_v46 = vrot.slane %v3785_v40, 7  ;;  %15430 = vst [vmem:[#allocation27_spill] sm:$0xff] %v13161_v1  ;;  %v13166_v22 = vpop.f32.mrb[38].mxu0 }
 0x1a0   : > { %5613 = vmatmul.mubr.bf16.vlgmr.msra.gmra.mrb[112].mxu0 %v9148_v21  ;;  %v3780_v50 = vrot.slane %v3778_v35, 4  ;;  %v4099_v41 = vshll.u32 %v9078_v8, 16  ;;  %v4105_v63 = vrot.slane %v13147_v3, 6  ;;  %v4110_v26 = vshrl.u32 %v9079_v52, 16  ;;  %v13163_v8 = vpop.f32.mrb[36].mxu1 }
 0x1a1   : > { %10386 = vmatpush3.bf16.msra.mxu0 %v10999_v19  ;;  %v4098_v37 = vrot.slane %v4096_v42, 5  ;;  %v4104_v55 = vrot.slane %v13149_v7, 5  ;;  %15431 = vst [vmem:[#allocation28_spill] sm:$0xff] %v13163_v8  ;;  %v3775_v29 = vrot.slane %v3774_v33, 4  ;;  %v3788_v5 = vor.u32 %v3787_v46, %v3784_v15  ;;  %v9057_v21 = vld [vmem:[%s11465_s8 + $0x50] sm:$0x1] }
 0x1a2   : > { %v4101_v59 = vrot.slane %v4099_v41, 6  ;;  %v4113_v34 = vshll.u32 %v9079_v52, 16  ;;  %10387 = vmatprep.subr.bf16.mxu0 %v11002_v58  ;;  %v4112_v19 = vrot.slane %v4110_v26, 5  ;;  %v3889_v42 = vshrl.u32 %v9055_v48, 16  ;;  %v13172_v33 = vpop.f32.mrb[39].mxu0  ;;  %v11007_v41 = vld [vmem:[%s15310_s1 + $0x490] sm:$0xff]  }
 0x1a3   : > { %v4106_v40 = vor.u32 %v4105_v63, %v4104_v55  ;;  %v3892_v0 = vshll.u32 %v9055_v48, 16  ;;  %v3779_v2 = vsel %vm12661_vm14, %v3775_v29, %v3778_v35  ;;  %v3789_v1 = vsel %vm12661_vm14, %v3780_v50, %v3788_v5  ;;  %15432 = vst [vmem:[#allocation30_spill] sm:$0xff] %v13172_v33  ;;  %v13177_v48 = vpop.f32.mrb[37].mxu1  ;;  %v15435_v26 = vld [vmem:[#allocation32_spill] sm:$0xff]  ;;  %v15438_v29 = vld [vmem:[#allocation35_spill] sm:$0xff] }
 0x1a4   : > { %v4102_v60 = vor.u32 %v4101_v59, %v4098_v37  ;;  %v4115_v8 = vrot.slane %v4113_v34, 6  ;;  %v9145_v15 = vcombine.low %v3779_v2, %v3789_v1  ;;  %v3891_v46 = vrot.slane %v3889_v42, 4  ;;  %15433 = vst [vmem:[#allocation29_spill] sm:$0xff] %v13177_v48  ;;  %v11010_v2 = vld [vmem:[%s15310_s1 + $0x4d8] sm:$0xff]   ;;  %v15439_v34 = vld [vmem:[#allocation10_spill] sm:$0xff] }
 0x1a5   : > { %v4108_v52 = vrot.slane %v4106_v40, 4  ;;  %v3894_v58 = vrot.slane %v3892_v0, 5  ;;  %10388 = vmatpush3.bf16.msra.mxu0 %v11003_v12  ;;  %v3900_v50 = vrot.slane %v13147_v3, 5  ;;  %v3904_v37 = vrot.slane %v13149_v7, 4  ;;  %v13184_v0 = vpop.f32.mrb[38].mxu1  ;;  %v15440_v42 = vld [vmem:[#allocation36_spill] sm:$0xff] }
 0x1a6   : > { %v4103_v55 = vrot.slane %v4102_v60, 4  ;;  %v4116_v35 = vor.u32 %v4115_v8, %v4112_v19  ;;  %10389 = vmatprep.subr.bf16.mxu0 %v11006_v51  ;;  %15434 = vst [vmem:[#allocation31_spill] sm:$0xff] %v13184_v0  ;;  %5555 = vmatprep.mubr.bf16.mxu1 %v9145_v15  ;;  %v3908_v63 = vshll.u32 %v9057_v21, 16  ;;  %v15436_v60 = vld [vmem:[#allocation34_spill] sm:$0xff]  ;;  %v15437_v8 = vld [vmem:[#allocation33_spill] sm:$0xff]  ;;  %vm8419_vm5 = vcmask 523264  }
 0x1a7   : > { %v3895_v12 = vor.u32 %v3894_v58, %v3891_v46  ;;  %v9877_v1 = vadd.f32 %v15436_v60, %v15435_v26  ;;  %v9941_v5 = vadd.f32 %v15438_v29, %v15437_v8  ;;  %5556 = vmatmul.mubr.bf16.gmra.mrb[116].mxu1 %v15439_v34  ;;  %v3905_v19 = vor.u32 %v3904_v37, %v3900_v50  ;;  %v15441_v15 = vld [vmem:[#allocation38_spill] sm:$0xff]  ;;  %v9048_v21 = vld [vmem:[%s11465_s8 + $0x74] sm:$0x7]  ;;  %v13198_v58 = vpop.f32.mrb[39].mxu1  ;;  %v15444_v37 = vld [vmem:[#allocation37_spill] sm:$0xff] }
 0x1a8   : > { %v4107_v51 = vsel %vm11505_vm7, %v4103_v55, %v4106_v40  ;;  %v4117_v59 = vsel %vm11505_vm7, %v4108_v52, %v4116_v35  ;;  %v9880_v46 = vadd.f32 %v15441_v15, %v15440_v42  ;;  %15442 = vst [vmem:[#allocation32_spill] sm:$0xff] %v13198_v58  ;;  %v3910_v8 = vrot.slane %v3908_v63, 5  ;;  %v9059_v40 = vld [vmem:[%s11465_s8 + $0x58] sm:$0xf]  ;;  %v9080_v55 = vld [vmem:[%s11465_s8 + $0x54] sm:$0xe] }
 0x1a9   : > { %v9157_v26 = vcombine.low %v4107_v51, %v4117_v59  ;;  %v3896_v60 = vrot.slane %v3895_v12, 4  ;;  %v13200_v29 = vadd.f32 %v9941_v5, %v9877_v1  ;;  %10390 = vmatpush3.bf16.msra.mxu0 %v11007_v41  ;;  %v11011_v52 = vld [vmem:[%s15310_s1 + $0x498] sm:$0xff]   ;;  %v3906_v35 = vrot.slane %v3905_v19, 4  ;;  %v15445_v34 = vld [vmem:[#allocation39_spill] sm:$0xff]  ;;  %v11143_v15 = vld [vmem:[%s11465_s8 + $0x6c] sm:$0xc] }
 0x1aa   : > { %v9944_v42 = vadd.f32 %v15445_v34, %v15444_v37  ;;  %v3791_v0 = vshrl.u32 %v11143_v15, 16  ;;  %v3794_v48 = vshll.u32 %v11143_v15, 16  ;;  %v9081_v58 = vld [vmem:[%s11465_s8 + $0x5c] sm:$0x3]  ;;  %10391 = vmatprep.subr.bf16.mxu0 %v11010_v2  ;;  %v11013_v12 = vld [vmem:[%s15310_s1 + $0x4e0] sm:$0xff]   ;;  %v3799_v63 = vrot.slane %v12279_v9, 6 }
 0x1ab   : > { %15443 = vst [vmem:[#allocation34_spill] sm:$0xff] %v13200_v29  ;;  %5620 = vmatprep.mubr.bf16.mxu0 %v9157_v26  ;;  %v3901_v41 = vsel %vm12396_vm11, %v3896_v60, %v3900_v50  ;;  %v3800_v1 = vrot.slane %v12283_v13, 7  ;;  %v3805_v5 = vshrl.u32 %v9048_v21, 16  ;;  %v13218_v51 = vpop.f32.mrb[40].mxu0  ;;  %v3911_v59 = vsel %vm12396_vm11, %v3906_v35, %v3910_v8  ;;  %v9058_v33 = vld [vmem:[%s11465_s8 + $0x54] sm:$0xf] }
 0x1ac   : > { %v13222_v2 = vadd.f32 %v9944_v42, %v9880_v46  ;;  %v3793_v34 = vrot.slane %v3791_v0, 6  ;;  %v3796_v19 = vrot.slane %v3794_v48, 7  ;;  %v9149_v37 = vcombine.low %v3901_v41, %v3911_v59  ;;  %v11015_v9 = vld [vmem:[%s15310_s1 + $0x4a0] sm:$0xff]   ;;  %v13228_v13 = vpop.f32.mrb[41].mxu0  ;;  %v13230_v50 = vpop.f32.mrb[40].mxu1  ;;  %v11019_v0 = vld [vmem:[%s15310_s1 + $0x4e8] sm:$0xff]  }
 0x1ad   : > { %v3801_v15 = vor.u32 %v3800_v1, %v3799_v63  ;;  %v3807_v26 = vrot.slane %v3805_v5, 6  ;;  %v3808_v29 = vshll.u32 %v9048_v21, 16  ;;  %10392 = vmatpush3.bf16.msra.mxu0 %v11011_v52  ;;  %15447 = vst [vmem:[#allocation35_spill] sm:$0xff] %v13230_v50  ;;  %v13232_v8 = vshll.u32 %v9059_v40, 16  ;;  %v13239_v21 = vpop.f32.mrb[42].mxu0  ;;  %v13241_v52 = vpop.f32.mrb[41].mxu1 }
 0x1ae   : > { %15446 = vst [vmem:[#allocation33_spill] sm:$0xff] %v13222_v2  ;;  %v3797_v60 = vor.u32 %v3796_v19, %v3793_v34  ;;  %v13234_v46 = vshrl.u32 %v9059_v40, 16  ;;  %v4119_v48 = vshrl.u32 %v9080_v55, 16  ;;  %10393 = vmatprep.subr.bf16.mxu0 %v11013_v12  ;;  %15448 = vst [vmem:[#allocation36_spill] sm:$0xff] %v13239_v21  ;;  %5621 = vmatmul.mubr.bf16.gmra.mrb[116].mxu0 %v9149_v37  ;;  %v4122_v41 = vshll.u32 %v9080_v55, 16  ;;  %v13243_v1 = vpop.f32.mrb[43].mxu0 }
 0x1af   : > { %15449 = vst [vmem:[#allocation38_spill] sm:$0xff] %v13241_v52  ;;  %v3803_v35 = vrot.slane %v3801_v15, 4  ;;  %v3810_v42 = vrot.slane %v3808_v29, 7  ;;  %v4133_v63 = vshrl.u32 %v9081_v58, 16  ;;  %15450 = vst [vmem:[#allocation37_spill] sm:$0xff] %v13243_v1  ;;  %v13245_v40 = vpop.f32.mrb[42].mxu1 }
 0x1b0   : > { %15451 = vst [vmem:[#allocation39_spill] sm:$0xff] %v13245_v40  ;;  %v3798_v5 = vrot.slane %v3797_v60, 4  ;;  %v4121_v59 = vrot.slane %v4119_v48, 5  ;;  %v4127_v12 = vrot.slane %v13234_v46, 5  ;;  %v4128_v34 = vrot.slane %v13232_v8, 6  ;;  %v11021_v29 = vld [vmem:[%s15310_s1 + $0x4a8] sm:$0xff]  }
 0x1b1   : > { %v9060_v19 = vld [vmem:[%s11465_s8 + $0x5c] sm:$0x1]  ;;  %v3811_v2 = vor.u32 %v3810_v42, %v3807_v26  ;;  %v4124_v50 = vrot.slane %v4122_v41, 6  ;;  %v4135_v21 = vrot.slane %v4133_v63, 5  ;;  %v4136_v52 = vshll.u32 %v9081_v58, 16  ;;  %10394 = vmatpush3.bf16.msra.mxu0 %v11015_v9  ;;  %v13253_v55 = vpop.f32.mrb[43].mxu1 }
 0x1b2   : > { %15452 = vst [vmem:[#allocation49_spill] sm:$0xff] %v13253_v55  ;;  %v3802_v37 = vsel %vm12661_vm14, %v3798_v5, %v3801_v15  ;;  %v4129_v60 = vor.u32 %v4128_v34, %v4127_v12  ;;  %v3913_v48 = vshrl.u32 %v9058_v33, 16  ;;  %v3916_v40 = vshll.u32 %v9058_v33, 16  ;;  %10395 = vmatprep.subr.bf16.mxu0 %v11019_v0  ;;  %v11025_v41 = vld [vmem:[%s15310_s1 + $0x4f0] sm:$0xff]   ;;  %v15453_v12 = vld [vmem:[#allocation40_spill] sm:$0xff]  ;;  %v15518_v28 = vld [vmem:[#allocation29_spill] sm:$0xff] }
 0x1b3   : > { %v3812_v26 = vsel %vm12661_vm14, %v3803_v35, %v3811_v2  ;;  %v4125_v42 = vor.u32 %v4124_v50, %v4121_v59  ;;  %v4138_v58 = vrot.slane %v4136_v52, 6  ;;  %v3924_v9 = vrot.slane %v13232_v8, 5  ;;  %v11027_v33 = vld [vmem:[%s15310_s1 + $0x4b0] sm:$0xff]   ;;  %v9049_v52 = vld [vmem:[%s11465_s8 + $0x80] sm:$0x7]  ;;  %v11031_v35 = vld [vmem:[%s15310_s1 + $0x4f8] sm:$0xff]  }
 0x1b4   : > { %v9146_v63 = vcombine.low %v3802_v37, %v3812_v26  ;;  %v4131_v55 = vrot.slane %v4129_v60, 4  ;;  %v3915_v1 = vrot.slane %v3913_v48, 4  ;;  %v3918_v15 = vrot.slane %v3916_v40, 5  ;;  %v15455_v37 = vld [vmem:[#allocation43_spill] sm:$0xff] }
 0x1b5   : > { %v4126_v0 = vrot.slane %v4125_v42, 4  ;;  %v4139_v5 = vor.u32 %v4138_v58, %v4135_v21  ;;  %v3928_v2 = vrot.slane %v13234_v46, 4  ;;  %v3932_v50 = vshll.u32 %v9060_v19, 16  ;;  %10396 = vmatpush3.bf16.msra.mxu0 %v11021_v29  ;;  %v15454_v21 = vld [vmem:[#allocation41_spill] sm:$0xff]  ;;  %v15456_v26 = vld [vmem:[#allocation11_spill] sm:$0xff] }
 0x1b6   : > { %5563 = vmatprep.mubr.bf16.mxu1 %v9146_v63  ;;  %v3919_v59 = vor.u32 %v3918_v15, %v3915_v1  ;;  %v9883_v40 = vadd.f32 %v12863_v38, %v12857_v54  ;;  %v9947_v34 = vadd.f32 %v15453_v12, %v12861_v30  ;;  %v9886_v48 = vadd.f32 %v15455_v37, %v15454_v21  ;;  %v9062_v58 = vld [vmem:[%s11465_s8 + $0x64] sm:$0xf]  ;;  %v13283_v54 = vpop.f32.mrb[44].mxu0  ;;  %v13285_v30 = vpop.f32.mrb[44].mxu1  ;;  %v11144_v21 = vld [vmem:[%s11465_s8 + $0x78] sm:$0xc] }
 0x1b7   : > { %v4130_v19 = vsel %vm11505_vm7, %v4126_v0, %v4129_v60  ;;  %v4140_v29 = vsel %vm11505_vm7, %v4131_v55, %v4139_v5  ;;  %5564 = vmatmul.mubr.bf16.gmra.mrb[120].mxu1 %v15456_v26  ;;  %v3929_v1 = vor.u32 %v3928_v2, %v3924_v9  ;;  %v3934_v42 = vrot.slane %v3932_v50, 5  ;;  %10397 = vmatprep.subr.bf16.mxu0 %v11025_v41  ;;  %v15459_v60 = vld [vmem:[#allocation42_spill] sm:$0xff]  ;;  %v15460_v0 = vld [vmem:[#allocation44_spill] sm:$0xff]  ;;  %v9082_v55 = vld [vmem:[%s11465_s8 + $0x60] sm:$0xe]  ;;  %v13295_v2 = vpop.f32.mrb[45].mxu0 }
 0x1b8   : > { %15457 = vst [vmem:[#allocation40_spill] sm:$0xff] %v13285_v30  ;;  %v9158_v38 = vcombine.low %v4130_v19, %v4140_v29  ;;  %v3920_v63 = vrot.slane %v3919_v59, 4  ;;  %v13287_v15 = vadd.f32 %v9947_v34, %v9883_v40  ;;  %v9950_v12 = vadd.f32 %v15460_v0, %v15459_v60  ;;  %v11033_v5 = vld [vmem:[%s15310_s1 + $0x4b8] sm:$0xff]   ;;  %v13297_v41 = vpop.f32.mrb[45].mxu1  ;;  %v9083_v40 = vld [vmem:[%s11465_s8 + $0x68] sm:$0x3] }
 0x1b9   : > { %15461 = vst [vmem:[#allocation43_spill] sm:$0xff] %v13297_v41  ;;  %v3930_v50 = vrot.slane %v3929_v1, 4  ;;  %v3814_v37 = vshrl.u32 %v11144_v21, 16  ;;  %v3817_v26 = vshll.u32 %v11144_v21, 16  ;;  %v3822_v59 = vrot.slane %v15398_v61, 6  ;;  %10398 = vmatpush3.bf16.msra.mxu0 %v11027_v33  ;;  %v13302_v34 = vpop.f32.mrb[46].mxu0 }
 0x1ba   : > { %15458 = vst [vmem:[#allocation41_spill] sm:$0xff] %v13287_v15  ;;  %v13304_v19 = vpop.f32.mrb[46].mxu1  ;;  %5628 = vmatprep.mubr.bf16.mxu0 %v9158_v38  ;;  %v3925_v29 = vsel %vm12396_vm11, %v3920_v63, %v3924_v9  ;;  %v13308_v60 = vadd.f32 %v9950_v12, %v9886_v48  ;;  %v3823_v0 = vrot.slane %v15397_v44, 7  ;;  %v3828_v1 = vshrl.u32 %v9049_v52, 16  ;;  %10399 = vmatprep.subr.bf16.mxu0 %v11031_v35  ;;  %v11039_v61 = vld [vmem:[%s15310_s1 + $0x5c0] sm:$0xff]   ;;  %v13314_v33 = vpop.f32.mrb[47].mxu0 }
 0x1bb   : > { %15462 = vst [vmem:[#allocation42_spill] sm:$0xff] %v13304_v19  ;;  %15464 = vst [vmem:[#allocation50_spill] sm:$0xff] %v13314_v33  ;;  %v13316_v21 = vpop.f32.mrb[47].mxu1  ;;  %v3935_v38 = vsel %vm12396_vm11, %v3930_v50, %v3934_v42  ;;  %v3816_v15 = vrot.slane %v3814_v37, 6  ;;  %v3819_v9 = vrot.slane %v3817_v26, 7  ;;  %v3831_v48 = vshll.u32 %v9049_v52, 16 }
 0x1bc   : > { %15463 = vst [vmem:[#allocation44_spill] sm:$0xff] %v13308_v60  ;;  %15465 = vst [vmem:[#allocation51_spill] sm:$0xff] %v13316_v21  ;;  %v9150_v63 = vcombine.low %v3925_v29, %v3935_v38  ;;  %v3824_v12 = vor.u32 %v3823_v0, %v3822_v59  ;;  %v3830_v44 = vrot.slane %v3828_v1, 6  ;;  %v13320_v60 = vshll.u32 %v9062_v58, 16  ;;  %v9061_v33 = vld [vmem:[%s11465_s8 + $0x60] sm:$0xf] }
 0x1bd   : > { %v3820_v35 = vor.u32 %v3819_v9, %v3816_v15  ;;  %v3833_v19 = vrot.slane %v3831_v48, 7  ;;  %v13322_v41 = vshrl.u32 %v9062_v58, 16  ;;  %v4142_v30 = vshrl.u32 %v9082_v55, 16  ;;  %10400 = vmatpush3.bf16.msra.mxu0 %v11033_v5  ;;  %v13325_v21 = vpop.f32.mrb[48].mxu0  ;;  %v9063_v0 = vld [vmem:[%s11465_s8 + $0x68] sm:$0x1] }
 0x1be   : > { %15466 = vst [vmem:[#allocation52_spill] sm:$0xff] %v13325_v21  ;;  %5629 = vmatmul.mubr.bf16.gmra.mrb[120].mxu0 %v9150_v63  ;;  %v3826_v42 = vrot.slane %v3824_v12, 4  ;;  %v4145_v50 = vshll.u32 %v9082_v55, 16  ;;  %v4151_v52 = vrot.slane %v13320_v60, 6  ;;  %v4156_v26 = vshrl.u32 %v9083_v40, 16  ;;  %10513 = vmatprep.subr.bf16.mxu0 %v11039_v61  ;;  %v13330_v58 = vpop.f32.mrb[49].mxu0 }
 0x1bf   : > { %v3821_v37 = vrot.slane %v3820_v35, 4  ;;  %v3834_v59 = vor.u32 %v3833_v19, %v3830_v44  ;;  %v4144_v29 = vrot.slane %v4142_v30, 5  ;;  %v4150_v15 = vrot.slane %v13322_v41, 5  ;;  %15467 = vst [vmem:[#allocation53_spill] sm:$0xff] %v13330_v58  ;;  %v13336_v35 = vpop.f32.mrb[50].mxu0  ;;  %v13338_v58 = vpop.f32.mrb[48].mxu1 }
 0x1c0   : > { %v4147_v1 = vrot.slane %v4145_v50, 6  ;;  %v4158_v38 = vrot.slane %v4156_v26, 5  ;;  %v4159_v5 = vshll.u32 %v9083_v40, 16  ;;  %v3937_v9 = vshrl.u32 %v9061_v33, 16  ;;  %v13340_v50 = vpop.f32.mrb[51].mxu0 }
 0x1c1   : > { %v3825_v48 = vsel %vm12661_vm14, %v3821_v37, %v3824_v12  ;;  %v3835_v55 = vsel %vm12661_vm14, %v3826_v42, %v3834_v59  ;;  %v4152_v63 = vor.u32 %v4151_v52, %v4150_v15  ;;  %v3940_v61 = vshll.u32 %v9061_v33, 16  ;;  %v13344_v52 = vpop.f32.mrb[49].mxu1  ;;  %v9065_v15 = vld [vmem:[%s11465_s8 + $0x70] sm:$0xf] }
 0x1c2   : > { %v9147_v30 = vcombine.low %v3825_v48, %v3835_v55  ;;  %v4148_v19 = vor.u32 %v4147_v1, %v4144_v29  ;;  %v4161_v44 = vrot.slane %v4159_v5, 6  ;;  %v3939_v21 = vrot.slane %v3937_v9, 4  ;;  %v13349_v1 = vpop.f32.mrb[50].mxu1  ;;  %v15468_v5 = vld [vmem:[#allocation14_spill] sm:$0xff] }
 0x1c3   : > { %v4154_v40 = vrot.slane %v4152_v63, 4  ;;  %v3942_v26 = vrot.slane %v3940_v61, 5  ;;  %v3948_v12 = vrot.slane %v13320_v60, 5  ;;  %v3952_v42 = vrot.slane %v13322_v41, 4 }
 0x1c4   : > { %5571 = vmatprep.mubr.bf16.mxu1 %v9147_v30  ;;  %v4149_v33 = vrot.slane %v4148_v19, 4  ;;  %v4162_v37 = vor.u32 %v4161_v44, %v4158_v38  ;;  %v3956_v59 = vshll.u32 %v9063_v0, 16  ;;  %v9889_v29 = vadd.f32 %v12903_v20, %v12895_v53  ;;  %v9084_v30 = vld [vmem:[%s11465_s8 + $0x6c] sm:$0xe]  ;;  %v15469_v38 = vld [vmem:[#allocation45_spill] sm:$0xff]  ;;  %v13364_v44 = vpop.f32.mrb[51].mxu1 }
 0x1c5   : > { %5572 = vmatmul.mubr.bf16.gmra.mrb[124].mxu1 %v15468_v5  ;;  %v3943_v9 = vor.u32 %v3942_v26, %v3939_v21  ;;  %v3953_v48 = vor.u32 %v3952_v42, %v3948_v12  ;;  %v9953_v55 = vadd.f32 %v12905_v16, %v12901_v31  ;;  %v9892_v61 = vadd.f32 %v12919_v57, %v12911_v24  ;;  %v9085_v21 = vld [vmem:[%s11465_s8 + $0x74] sm:$0x3]  ;;  %v9092_v24 = vld [vmem:[%s11465_s8 + $0x3c] sm:$0xc] }
 0x1c6   : > { %v4153_v0 = vsel %vm11505_vm7, %v4149_v33, %v4152_v63  ;;  %v4163_v53 = vsel %vm11505_vm7, %v4154_v40, %v4162_v37  ;;  %v3958_v20 = vrot.slane %v3956_v59, 5  ;;  %v9956_v19 = vadd.f32 %v15469_v38, %v12917_v47  ;;  %15470 = vst [vmem:[#allocation45_spill] sm:$0xff] %v13364_v44  ;;  %v9093_v33 = vld [vmem:[%s11465_s8 + $0x44] sm:$0x7]  ;;  %v9094_v44 = vld [vmem:[%s11465_s8 + $0x48] sm:$0xc] }
 0x1c7   : > { %v9159_v26 = vcombine.low %v4153_v0, %v4163_v53  ;;  %v3944_v31 = vrot.slane %v3943_v9, 4  ;;  %v3954_v16 = vrot.slane %v3953_v48, 4  ;;  %v13366_v42 = vadd.f32 %v9953_v55, %v9889_v29 }
 0x1c8   : > { %v13369_v57 = vadd.f32 %v9956_v19, %v9892_v61  ;;  %v13371_v5 = vshll.u32 %v9065_v15, 16  ;;  %v13373_v63 = vshrl.u32 %v9065_v15, 16  ;;  %v4165_v40 = vshrl.u32 %v9084_v30, 16  ;;  %v13382_v15 = vpop.f32.mrb[52].mxu0 }
 0x1c9   : > { %15471 = vst [vmem:[#allocation54_spill] sm:$0xff] %v13366_v42  ;;  %5636 = vmatprep.mubr.bf16.mxu0 %v9159_v26  ;;  %v3949_v47 = vsel %vm12396_vm11, %v3944_v31, %v3948_v12  ;;  %v3959_v37 = vsel %vm12396_vm11, %v3954_v16, %v3958_v20  ;;  %v4168_v59 = vshll.u32 %v9084_v30, 16  ;;  %v4179_v29 = vshrl.u32 %v9085_v21, 16  ;;  %15473 = vst [vmem:[#allocation56_spill] sm:$0xff] %v13382_v15  ;;  %v9064_v31 = vld [vmem:[%s11465_s8 + $0x6c] sm:$0xf] }
 0x1ca   : > { %15472 = vst [vmem:[#allocation55_spill] sm:$0xff] %v13369_v57  ;;  %v9151_v9 = vcombine.low %v3949_v47, %v3959_v37  ;;  %v4167_v48 = vrot.slane %v4165_v40, 5  ;;  %v4173_v55 = vrot.slane %v13373_v63, 5  ;;  %v4174_v61 = vrot.slane %v13371_v5, 6  ;;  %v13387_v16 = vpop.f32.mrb[53].mxu0 }
 0x1cb   : > { %v4170_v0 = vrot.slane %v4168_v59, 6  ;;  %v4181_v53 = vrot.slane %v4179_v29, 5  ;;  %v4182_v38 = vshll.u32 %v9085_v21, 16  ;;  %v4273_v19 = vshrl.u32 %v9092_v24, 16  ;;  %15474 = vst [vmem:[#allocation57_spill] sm:$0xff] %v13387_v16  ;;  %v13389_v42 = vpop.f32.mrb[54].mxu0 }
 0x1cc   : > { %5637 = vmatmul.mubr.bf16.gmra.mrb[124].mxu0 %v9151_v9  ;;  %v4175_v12 = vor.u32 %v4174_v61, %v4173_v55  ;;  %v4276_v26 = vshll.u32 %v9092_v24, 16  ;;  %v4281_v30 = vrot.slane %v13089_v17, 6  ;;  %v4282_v20 = vrot.slane %v13086_v18, 7  ;;  %15475 = vst [vmem:[#allocation58_spill] sm:$0xff] %v13389_v42  ;;  %v9066_v55 = vld [vmem:[%s11465_s8 + $0x74] sm:$0x1] }
 0x1cd   : > { %v4171_v40 = vor.u32 %v4170_v0, %v4167_v48  ;;  %v4184_v47 = vrot.slane %v4182_v38, 6  ;;  %v4275_v37 = vrot.slane %v4273_v19, 6  ;;  %v4287_v57 = vshrl.u32 %v9093_v33, 16  ;;  %v13392_v24 = vpop.f32.mrb[52].mxu1  ;;  %v13394_v16 = vpop.f32.mrb[55].mxu0 }
 0x1ce   : > { %v4177_v59 = vrot.slane %v4175_v12, 4  ;;  %v4278_v21 = vrot.slane %v4276_v26, 7  ;;  %v4283_v29 = vor.u32 %v4282_v20, %v4281_v30  ;;  %v4290_v9 = vshll.u32 %v9093_v33, 16  ;;  %15476 = vst [vmem:[#allocation59_spill] sm:$0xff] %v13392_v24  ;;  %v13396_v48 = vpop.f32.mrb[53].mxu1 }
 0x1cf   : > { %v4172_v17 = vrot.slane %v4171_v40, 4  ;;  %v4185_v18 = vor.u32 %v4184_v47, %v4181_v53  ;;  %v4289_v61 = vrot.slane %v4287_v57, 6  ;;  %v3961_v15 = vshrl.u32 %v9064_v31, 16  ;;  %15477 = vst [vmem:[#allocation60_spill] sm:$0xff] %v13396_v48  ;;  %v13399_v26 = vpop.f32.mrb[54].mxu1 }
 0x1d0   : > { %v4279_v0 = vor.u32 %v4278_v21, %v4275_v37  ;;  %v4285_v38 = vrot.slane %v4283_v29, 4  ;;  %v4292_v19 = vrot.slane %v4290_v9, 7  ;;  %v3964_v42 = vshll.u32 %v9064_v31, 16  ;;  %15478 = vst [vmem:[#allocation61_spill] sm:$0xff] %v13399_v26  ;;  %v9095_v20 = vld [vmem:[%s11465_s8 + $0x50] sm:$0x7] }
 0x1d1   : > { %v4176_v33 = vsel %vm11505_vm7, %v4172_v17, %v4175_v12  ;;  %v4186_v30 = vsel %vm11505_vm7, %v4177_v59, %v4185_v18  ;;  %v3963_v53 = vrot.slane %v3961_v15, 4  ;;  %v3972_v57 = vrot.slane %v13371_v5, 5  ;;  %v13408_v24 = vpop.f32.mrb[55].mxu1 }
 0x1d2   : > { %v9160_v40 = vcombine.low %v4176_v33, %v4186_v30  ;;  %v4280_v47 = vrot.slane %v4279_v0, 4  ;;  %v4293_v48 = vor.u32 %v4292_v19, %v4289_v61  ;;  %v3966_v37 = vrot.slane %v3964_v42, 5  ;;  %v9068_v30 = vld [vmem:[%s11465_s8 + $0x7c] sm:$0xf] }
 0x1d3   : > { %v3976_v21 = vrot.slane %v13373_v63, 4  ;;  %v3980_v31 = vshll.u32 %v9066_v55, 16  ;;  %v4296_v9 = vshrl.u32 %v9094_v44, 16  ;;  %v4299_v26 = vshll.u32 %v9094_v44, 16 }
 0x1d4   : > { %5644 = vmatprep.mubr.bf16.mxu0 %v9160_v40  ;;  %v4284_v15 = vsel %vm12661_vm14, %v4280_v47, %v4283_v29  ;;  %v4294_v12 = vsel %vm12661_vm14, %v4285_v38, %v4293_v48  ;;  %v3967_v59 = vor.u32 %v3966_v37, %v3963_v53  ;;  %v4304_v17 = vrot.slane %v13149_v7, 6  ;;  %v9086_v40 = vld [vmem:[%s11465_s8 + $0x78] sm:$0xe] }
 0x1d5   : > { %v9164_v42 = vcombine.low %v4284_v15, %v4294_v12  ;;  %v3977_v18 = vor.u32 %v3976_v21, %v3972_v57  ;;  %v3982_v61 = vrot.slane %v3980_v31, 5  ;;  %v4298_v55 = vrot.slane %v4296_v9, 6  ;;  %v15481_v12 = vld [vmem:[#allocation46_spill] sm:$0xff] }
 0x1d6   : > { %v3968_v0 = vrot.slane %v3967_v59, 4  ;;  %v4301_v19 = vrot.slane %v4299_v26, 7  ;;  %v4305_v44 = vrot.slane %v13147_v3, 7  ;;  %v4310_v33 = vshrl.u32 %v9095_v20, 16  ;;  %v13424_v3 = vpop.f32.mrb[56].mxu0 }
 0x1d7   : > { %10714 = vmatprep.mubr.bf16.mxu1 %v9164_v42  ;;  %v3978_v29 = vrot.slane %v3977_v18, 4  ;;  %v4313_v47 = vshll.u32 %v9095_v20, 16  ;;  %v9895_v48 = vadd.f32 %v12965_v23, %v12946_v14  ;;  %v9959_v7 = vadd.f32 %v12967_v39, %v12955_v11  ;;  %v15480_v20 = vld [vmem:[#allocation47_spill] sm:$0xff]  ;;  %v9087_v23 = vld [vmem:[%s11465_s8 + $0x80] sm:$0x3]  ;;  %v13433_v15 = vpop.f32.mrb[57].mxu0 }
 0x1d8   : > { %v3973_v38 = vsel %vm12396_vm11, %v3968_v0, %v3972_v57  ;;  %v4302_v53 = vor.u32 %v4301_v19, %v4298_v55  ;;  %v4306_v26 = vor.u32 %v4305_v44, %v4304_v17  ;;  %v4312_v37 = vrot.slane %v4310_v33, 6  ;;  %v13437_v17 = vpop.f32.mrb[58].mxu0  ;;  %v13439_v42 = vpop.f32.mrb[56].mxu1 }
 0x1d9   : > { %v3983_v21 = vsel %vm12396_vm11, %v3978_v29, %v3982_v61  ;;  %v4315_v31 = vrot.slane %v4313_v47, 7  ;;  %v13428_v9 = vadd.f32 %v9959_v7, %v9895_v48  ;;  %v9898_v14 = vadd.f32 %v15480_v20, %v12971_v43  ;;  %v13445_v0 = vpop.f32.mrb[59].mxu0  ;;  %v13447_v19 = vpop.f32.mrb[57].mxu1  ;;  %v9096_v47 = vld [vmem:[%s11465_s8 + $0x54] sm:$0xc] }
 0x1da   : > { %v9152_v11 = vcombine.low %v3973_v38, %v3983_v21  ;;  %v4303_v39 = vrot.slane %v4302_v53, 4  ;;  %v4308_v57 = vrot.slane %v4306_v26, 4  ;;  %v9962_v59 = vadd.f32 %v12983_v4, %v15481_v12  ;;  %v11016_v4 = vld [vmem:[%s15310_s1 + $0x500] sm:$0xff]   ;;  %v13457_v48 = vpop.f32.mrb[58].mxu1 }
 0x1db   : > { %15479 = vst [vmem:[#allocation62_spill] sm:$0xff] %v13428_v9  ;;  %v4316_v18 = vor.u32 %v4315_v31, %v4312_v37  ;;  %v13441_v61 = vshll.u32 %v9068_v30, 16  ;;  %v13443_v55 = vshrl.u32 %v9068_v30, 16  ;;  %v4188_v43 = vshrl.u32 %v9086_v40, 16  ;;  %15483 = vst [vmem:[#allocation46_spill] sm:$0xff] %v13457_v48  ;;  %v13464_v21 = vpop.f32.mrb[59].mxu1 }
 0x1dc   : > { %5645 = vmatmul.mubr.bf16.gmra.mrb[128].mxu0 %v9152_v11  ;;  %v4307_v44 = vsel %vm12661_vm14, %v4303_v39, %v4306_v26  ;;  %v13454_v33 = vadd.f32 %v9962_v59, %v9898_v14  ;;  %v4191_v29 = vshll.u32 %v9086_v40, 16  ;;  %v4202_v30 = vshrl.u32 %v9087_v23, 16  ;;  %v9097_v37 = vld [vmem:[%s11465_s8 + $0x5c] sm:$0x7]  ;;  %15484 = vst [vmem:[#allocation63_spill] sm:$0xff] %v13464_v21  ;;  %v11017_v40 = vld [vmem:[%s15310_s1 + $0x548] sm:$0xff]  }
 0x1dd   : > { %v4317_v7 = vsel %vm12661_vm14, %v4308_v57, %v4316_v18  ;;  %v4190_v38 = vrot.slane %v4188_v43, 5  ;;  %v4196_v53 = vrot.slane %v13443_v55, 5  ;;  %v4197_v26 = vrot.slane %v13441_v61, 6  ;;  %v9067_v39 = vld [vmem:[%s11465_s8 + $0x78] sm:$0xf] }
 0x1de   : > { %15482 = vst [vmem:[#allocation47_spill] sm:$0xff] %v13454_v33  ;;  %v9165_v31 = vcombine.low %v4307_v44, %v4317_v7  ;;  %v4193_v20 = vrot.slane %v4191_v29, 6  ;;  %v4204_v14 = vrot.slane %v4202_v30, 5  ;;  %v4205_v11 = vshll.u32 %v9087_v23, 16  ;;  %v13472_v7 = vpop.f32.mrb[60].mxu0  ;;  %v11018_v23 = vld [vmem:[%s15310_s1 + $0x508] sm:$0xff]  }
 0x1df   : > { %v4198_v12 = vor.u32 %v4197_v26, %v4196_v53  ;;  %v4319_v59 = vshrl.u32 %v9096_v47, 16  ;;  %v4322_v57 = vshll.u32 %v9096_v47, 16  ;;  %v4327_v18 = vrot.slane %v13234_v46, 6  ;;  %15485 = vst [vmem:[#allocation64_spill] sm:$0xff] %v13472_v7  ;;  %v11020_v46 = vld [vmem:[%s15310_s1 + $0x550] sm:$0xff]  }
 0x1e0   : > { %10715 = vmatmul.mubr.bf16.vlgmr.msra.gmra.mrb[128].mxu1 %v9165_v31  ;;  %v4194_v43 = vor.u32 %v4193_v20, %v4190_v38  ;;  %v4207_v48 = vrot.slane %v4205_v11, 6  ;;  %v4328_v21 = vrot.slane %v13232_v8, 7  ;;  %v4333_v44 = vshrl.u32 %v9097_v37, 16  ;;  %v9069_v20 = vld [vmem:[%s11465_s8 + $0x80] sm:$0x1] }
 0x1e1   : > { %10450 = vmatpush3.bf16.msra.mxu1 %v11016_v4  ;;  %v4200_v29 = vrot.slane %v4198_v12, 4  ;;  %v4321_v30 = vrot.slane %v4319_v59, 6  ;;  %v4324_v47 = vrot.slane %v4322_v57, 7  ;;  %v4336_v53 = vshll.u32 %v9097_v37, 16  ;;  %v9098_v4 = vld [vmem:[%s11465_s8 + $0x60] sm:$0xc] }
 0x1e2   : > { %10451 = vmatprep.subr.bf16.mxu1 %v11017_v40  ;;  %v4195_v8 = vrot.slane %v4194_v43, 4  ;;  %v4208_v38 = vor.u32 %v4207_v48, %v4204_v14  ;;  %v4329_v26 = vor.u32 %v4328_v21, %v4327_v18  ;;  %v4335_v31 = vrot.slane %v4333_v44, 6  ;;  %v11022_v37 = vld [vmem:[%s15310_s1 + $0x510] sm:$0xff]   ;;  %v9099_v21 = vld [vmem:[%s11465_s8 + $0x68] sm:$0x7]  ;;  %v11023_v14 = vld [vmem:[%s15310_s1 + $0x558] sm:$0xff]  }
 0x1e3   : > { %v4325_v11 = vor.u32 %v4324_v47, %v4321_v30  ;;  %v4338_v7 = vrot.slane %v4336_v53, 7  ;;  %v3985_v33 = vshrl.u32 %v9067_v39, 16  ;;  %v3988_v9 = vshll.u32 %v9067_v39, 16 }
 0x1e4   : > { %v4199_v59 = vsel %vm11505_vm7, %v4195_v8, %v4198_v12  ;;  %v4209_v40 = vsel %vm11505_vm7, %v4200_v29, %v4208_v38  ;;  %v4331_v57 = vrot.slane %v4329_v26, 4  ;;  %v3996_v48 = vrot.slane %v13441_v61, 5 }
 0x1e5   : > { %10452 = vmatpush3.bf16.msra.mxu1 %v11018_v23  ;;  %v9161_v39 = vcombine.low %v4199_v59, %v4209_v40  ;;  %v4326_v18 = vrot.slane %v4325_v11, 4  ;;  %v4339_v43 = vor.u32 %v4338_v7, %v4335_v31  ;;  %v3987_v44 = vrot.slane %v3985_v33, 4  ;;  %v11024_v33 = vld [vmem:[%s15310_s1 + $0x518] sm:$0xff]   ;;  %v13506_v11 = vpop.f32.mrb[61].mxu0 }
 0x1e6   : > { %v3990_v30 = vrot.slane %v3988_v9, 5  ;;  %v4000_v47 = vrot.slane %v13443_v55, 4  ;;  %v4004_v12 = vshll.u32 %v9069_v20, 16  ;;  %v4342_v53 = vshrl.u32 %v9098_v4, 16  ;;  %10453 = vmatprep.subr.bf16.mxu1 %v11020_v46  ;;  %v11026_v46 = vld [vmem:[%s15310_s1 + $0x560] sm:$0xff]  }
 0x1e7   : > { %5652 = vmatprep.mubr.bf16.mxu0 %v9161_v39  ;;  %v4330_v29 = vsel %vm12661_vm14, %v4326_v18, %v4329_v26  ;;  %v4340_v8 = vsel %vm12661_vm14, %v4331_v57, %v4339_v43  ;;  %v4345_v38 = vshll.u32 %v9098_v4, 16  ;;  %v4350_v23 = vrot.slane %v13322_v41, 6  ;;  %v13508_v26 = vpop.f32.mrb[60].mxu1  ;;  %v13511_v57 = vpop.f32.mrb[62].mxu0 }
 0x1e8   : > { %v9166_v9 = vcombine.low %v4330_v29, %v4340_v8  ;;  %v3991_v7 = vor.u32 %v3990_v30, %v3987_v44  ;;  %v4001_v31 = vor.u32 %v4000_v47, %v3996_v48  ;;  %v4006_v20 = vrot.slane %v4004_v12, 5  ;;  %v13513_v39 = vpop.f32.mrb[61].mxu1  ;;  %v13517_v47 = vpop.f32.mrb[63].mxu0  ;;  %v9071_v29 = vld [vmem:[%s11465_s8 + $0x88] sm:$0xf] }
 0x1e9   : > { %v4344_v59 = vrot.slane %v4342_v53, 6  ;;  %v4347_v4 = vrot.slane %v4345_v38, 7  ;;  %v4351_v41 = vrot.slane %v13320_v60, 7  ;;  %v4356_v40 = vshrl.u32 %v9099_v21, 16  ;;  %10454 = vmatpush3.bf16.msra.mxu1 %v11022_v37  ;;  %v9088_v8 = vld [vmem:[%s11465_s8 + $0x84] sm:$0xe] }
 0x1ea   : > { %10718 = vmatprep.mubr.bf16.mxu1 %v9166_v9  ;;  %v3992_v18 = vrot.slane %v3991_v7, 4  ;;  %v4002_v43 = vrot.slane %v4001_v31, 4  ;;  %v4359_v44 = vshll.u32 %v9099_v21, 16  ;;  %v9901_v30 = vadd.f32 %v13033_v36, %v13011_v62  ;;  %10455 = vmatprep.subr.bf16.mxu1 %v11023_v14  ;;  %v13523_v38 = vpop.f32.mrb[62].mxu1  ;;  %v15487_v36 = vld [vmem:[#allocation15_spill] sm:$0xff] }
 0x1eb   : > { %v4348_v60 = vor.u32 %v4347_v4, %v4344_v59  ;;  %v4352_v12 = vor.u32 %v4351_v41, %v4350_v23  ;;  %v4358_v53 = vrot.slane %v4356_v40, 6  ;;  %v9965_v37 = vadd.f32 %v13035_v10, %v13021_v32  ;;  %15486 = vst [vmem:[#allocation65_spill] sm:$0xff] %v13523_v38  ;;  %v9089_v7 = vld [vmem:[%s11465_s8 + $0x8c] sm:$0x3]  ;;  %v11028_v23 = vld [vmem:[%s15310_s1 + $0x520] sm:$0xff]   ;;  %v13546_v40 = vpop.f32.mrb[63].mxu1 }
 0x1ec   : > { %v3997_v9 = vsel %vm12396_vm11, %v3992_v18, %v3996_v48  ;;  %v4007_v21 = vsel %vm12396_vm11, %v4002_v43, %v4006_v20  ;;  %v4361_v62 = vrot.slane %v4359_v44, 7  ;;  %v9904_v14 = vadd.f32 %v13046_v25, %v15487_v36  ;;  %v11029_v41 = vld [vmem:[%s15310_s1 + $0x568] sm:$0xff]   ;;  %15488 = vst [vmem:[#allocation15_spill] sm:$0xff] %v13546_v40 }
 0x1ed   : > { %v9153_v32 = vcombine.low %v3997_v9, %v4007_v21  ;;  %v4349_v10 = vrot.slane %v4348_v60, 4  ;;  %v4354_v31 = vrot.slane %v4352_v12, 4  ;;  %v13535_v59 = vadd.f32 %v9965_v37, %v9901_v30  ;;  %10456 = vmatpush3.bf16.msra.mxu1 %v11024_v33 }
 0x1ee   : > { %v4362_v48 = vor.u32 %v4361_v62, %v4358_v53  ;;  %v9968_v20 = vadd.f32 %v13048_v6, %v13042_v45  ;;  %v13539_v4 = vshll.u32 %v9071_v29, 16  ;;  %v13541_v25 = vshrl.u32 %v9071_v29, 16  ;;  %10457 = vmatprep.subr.bf16.mxu1 %v11026_v46  ;;  %v9100_v45 = vld [vmem:[%s11465_s8 + $0x6c] sm:$0xc]  ;;  %v9101_v53 = vld [vmem:[%s11465_s8 + $0x74] sm:$0x7] }
 0x1ef   : > { %5653 = vmatmul.mubr.bf16.gmra.mrb[132].mxu0 %v9153_v32  ;;  %v4353_v33 = vsel %vm12661_vm14, %v4349_v10, %v4352_v12  ;;  %v4211_v18 = vshrl.u32 %v9088_v8, 16  ;;  %v4214_v43 = vshll.u32 %v9088_v8, 16  ;;  %v4225_v6 = vshrl.u32 %v9089_v7, 16  ;;  %v9070_v62 = vld [vmem:[%s11465_s8 + $0x84] sm:$0xf]  ;;  %v11030_v12 = vld [vmem:[%s15310_s1 + $0x528] sm:$0xff]  }
 0x1f0   : > { %v4363_v44 = vsel %vm12661_vm14, %v4354_v31, %v4362_v48  ;;  %v13553_v30 = vadd.f32 %v9968_v20, %v9904_v14  ;;  %v4219_v46 = vrot.slane %v13541_v25, 5  ;;  %v4220_v60 = vrot.slane %v13539_v4, 6  ;;  %v11032_v10 = vld [vmem:[%s15310_s1 + $0x570] sm:$0xff]  }
 0x1f1   : > { %v9167_v37 = vcombine.low %v4353_v33, %v4363_v44  ;;  %v4213_v29 = vrot.slane %v4211_v18, 5  ;;  %v4216_v9 = vrot.slane %v4214_v43, 6  ;;  %v4227_v21 = vrot.slane %v4225_v6, 5  ;;  %10458 = vmatpush3.bf16.msra.mxu1 %v11028_v23  ;;  %v13570_v33 = vpop.f32.mrb[64].mxu0 }
 0x1f2   : > { %v4221_v8 = vor.u32 %v4220_v60, %v4219_v46  ;;  %v4228_v36 = vshll.u32 %v9089_v7, 16  ;;  %v4365_v14 = vshrl.u32 %v9100_v45, 16  ;;  %v4368_v32 = vshll.u32 %v9100_v45, 16  ;;  %10459 = vmatprep.subr.bf16.mxu1 %v11029_v41  ;;  %v11034_v7 = vld [vmem:[%s15310_s1 + $0x530] sm:$0xff]   ;;  %v9072_v45 = vld [vmem:[%s11465_s8 + $0x8c] sm:$0x1] }
 0x1f3   : > { %10719 = vmatmul.mubr.bf16.gmra.mrb[132].mxu1 %v9167_v37  ;;  %v4217_v31 = vor.u32 %v4216_v9, %v4213_v29  ;;  %v4373_v48 = vrot.slane %v13373_v63, 6  ;;  %v4374_v23 = vrot.slane %v13371_v5, 7  ;;  %v4379_v20 = vshrl.u32 %v9101_v53, 16  ;;  %v9102_v29 = vld [vmem:[%s11465_s8 + $0x78] sm:$0xc] }
 0x1f4   : > { %v4223_v18 = vrot.slane %v4221_v8, 4  ;;  %v4230_v41 = vrot.slane %v4228_v36, 6  ;;  %v4367_v43 = vrot.slane %v4365_v14, 6  ;;  %v4370_v6 = vrot.slane %v4368_v32, 7  ;;  %v11035_v5 = vld [vmem:[%s15310_s1 + $0x578] sm:$0xff]  }
 0x1f5   : > { %v4218_v44 = vrot.slane %v4217_v31, 4  ;;  %v4375_v46 = vor.u32 %v4374_v23, %v4373_v48  ;;  %v4381_v60 = vrot.slane %v4379_v20, 6  ;;  %v4382_v37 = vshll.u32 %v9101_v53, 16  ;;  %10460 = vmatpush3.bf16.msra.mxu1 %v11030_v12  ;;  %v13580_v53 = vpop.f32.mrb[65].mxu0 }
 0x1f6   : > { %v4231_v63 = vor.u32 %v4230_v41, %v4227_v21  ;;  %v4371_v9 = vor.u32 %v4370_v6, %v4367_v43  ;;  %v4009_v40 = vshrl.u32 %v9070_v62, 16  ;;  %v4012_v38 = vshll.u32 %v9070_v62, 16  ;;  %10461 = vmatprep.subr.bf16.mxu1 %v11032_v10  ;;  %v13584_v20 = vpop.f32.mrb[66].mxu0  ;;  %v11036_v43 = vld [vmem:[%s15310_s1 + $0x538] sm:$0xff]  }
 0x1f7   : > { %v4222_v36 = vsel %vm11505_vm7, %v4218_v44, %v4221_v8  ;;  %v4377_v14 = vrot.slane %v4375_v46, 4  ;;  %v4384_v32 = vrot.slane %v4382_v37, 7  ;;  %v4020_v31 = vrot.slane %v13539_v4, 5  ;;  %v13590_v6 = vpop.f32.mrb[67].mxu0 }
 0x1f8   : > { %v4232_v12 = vsel %vm11505_vm7, %v4223_v18, %v4231_v63  ;;  %v4372_v48 = vrot.slane %v4371_v9, 4  ;;  %v4011_v23 = vrot.slane %v4009_v40, 4  ;;  %v4014_v21 = vrot.slane %v4012_v38, 5  ;;  %15489 = vst [vmem:[#allocation66_spill] sm:$0xff] %v13590_v6  ;;  %v9103_v40 = vld [vmem:[%s11465_s8 + $0x80] sm:$0x7] }
 0x1f9   : > { %v9162_v62 = vcombine.low %v4222_v36, %v4232_v12  ;;  %v4385_v10 = vor.u32 %v4384_v32, %v4381_v60  ;;  %v4024_v41 = vrot.slane %v13541_v25, 4  ;;  %v4028_v8 = vshll.u32 %v9072_v45, 16  ;;  %10462 = vmatpush3.bf16.msra.mxu1 %v11034_v7  ;;  %v11053_v9 = vld [vmem:[%s15310_s1 + $0x640] sm:$0xff]  }
 0x1fa   : > { %v4376_v18 = vsel %vm12661_vm14, %v4372_v48, %v4375_v46  ;;  %v4015_v44 = vor.u32 %v4014_v21, %v4011_v23  ;;  %v4388_v38 = vshrl.u32 %v9102_v29, 16  ;;  %v4391_v37 = vshll.u32 %v9102_v29, 16  ;;  %10463 = vmatprep.subr.bf16.mxu1 %v11035_v5  ;;  %v15490_v21 = vld [vmem:[#allocation12_spill] sm:$0xff] }
 0x1fb   : > { %5660 = vmatprep.mubr.bf16.mxu0 %v9162_v62  ;;  %v4386_v60 = vsel %vm12661_vm14, %v4377_v14, %v4385_v10  ;;  %v4025_v45 = vor.u32 %v4024_v41, %v4020_v31  ;;  %v4030_v7 = vrot.slane %v4028_v8, 5  ;;  %v4396_v63 = vrot.slane %v13443_v55, 6  ;;  %v15491_v10 = vld [vmem:[#allocation18_spill] sm:$0xff]  ;;  %v15492_v41 = vld [vmem:[#allocation19_spill] sm:$0xff] }
 0x1fc   : > { %v9168_v36 = vcombine.low %v4376_v18, %v4386_v60  ;;  %v4016_v46 = vrot.slane %v4015_v44, 4  ;;  %v4390_v32 = vrot.slane %v4388_v38, 6  ;;  %v4393_v12 = vrot.slane %v4391_v37, 7  ;;  %v9074_v18 = vld [vmem:[%s11465_s8 + $0x94] sm:$0xf]  ;;  %v13609_v44 = vpop.f32.mrb[68].mxu0 }
 0x1fd   : > { %v4026_v48 = vrot.slane %v4025_v45, 4  ;;  %v4397_v29 = vrot.slane %v13441_v61, 7  ;;  %v4402_v5 = vshrl.u32 %v9103_v40, 16  ;;  %v4405_v14 = vshll.u32 %v9103_v40, 16  ;;  %10464 = vmatpush3.bf16.msra.mxu1 %v11036_v43  ;;  %15493 = vst [vmem:[#allocation12_spill] sm:$0xff] %v13609_v44  ;;  %v13640_v44 = vpop.f32.mrb[69].mxu0 }
 0x1fe   : > { %10722 = vmatprep.mubr.bf16.mxu1 %v9168_v36  ;;  %v4021_v55 = vsel %vm12396_vm11, %v4016_v46, %v4020_v31  ;;  %v4394_v23 = vor.u32 %v4393_v12, %v4390_v32  ;;  %v9987_v62 = vadd.f32 %v15490_v21, %v13072_v49  ;;  %v9990_v8 = vadd.f32 %v15492_v41, %v15491_v10  ;;  %v9090_v37 = vld [vmem:[%s11465_s8 + $0x90] sm:$0xe]  ;;  %v9091_v60 = vld [vmem:[%s11465_s8 + $0x98] sm:$0x3]  ;;  %v9104_v12 = vld [vmem:[%s11465_s8 + $0x84] sm:$0xc] }
 0x1ff   : > { %v4031_v61 = vsel %vm12396_vm11, %v4026_v48, %v4030_v7  ;;  %v4398_v40 = vor.u32 %v4397_v29, %v4396_v63  ;;  %v4404_v43 = vrot.slane %v4402_v5, 6  ;;  %v4407_v38 = vrot.slane %v4405_v14, 7  ;;  %10577 = vmatprep.subr.bf16.mxu1 %v11053_v9  ;;  %v15494_v36 = vld [vmem:[#allocation48_spill] sm:$0xff]  ;;  %v15498_v7 = vld [vmem:[#allocation21_spill] sm:$0xff]  ;;  %15499 = vst [vmem:[#allocation19_spill] sm:$0xff] %v13640_v44  ;;  %v11041_v44 = vld [vmem:[%s11465_s8 + $0x30] sm:$0xff]  }
 0x200   : > { %v9154_v31 = vcombine.low %v4021_v55, %v4031_v61  ;;  %v4395_v45 = vrot.slane %v4394_v23, 4  ;;  %v13616_v49 = vadd.f32 %v9987_v62, %v15494_v36  ;;  %v15495_v46 = vld [vmem:[#allocation16_spill] sm:$0xff]  ;;  %v13626_v48 = vshll.u32 %v9074_v18, 16  ;;  %v9105_v55 = vld [vmem:[%s11465_s8 + $0x8c] sm:$0x7] }
 0x201   : > { %v13619_v32 = vadd.f32 %v9990_v8, %v15495_v46  ;;  %v4400_v21 = vrot.slane %v4398_v40, 4  ;;  %v4408_v10 = vor.u32 %v4407_v38, %v4404_v43  ;;  %v15497_v41 = vld [vmem:[#allocation20_spill] sm:$0xff]  ;;  %v13630_v29 = vshrl.u32 %v9074_v18, 16  ;;  %v9073_v46 = vld [vmem:[%s11465_s8 + $0x90] sm:$0xf] }
 0x202   : > { %v13624_v63 = vadd.f32 %v15498_v7, %v15497_v41  ;;  %5661 = vmatmul.mubr.bf16.gmra.mrb[136].mxu0 %v9154_v31  ;;  %v4399_v9 = vsel %vm12661_vm14, %v4395_v45, %v4398_v40  ;;  %v4234_v5 = vshrl.u32 %v9090_v37, 16  ;;  %v4237_v14 = vshll.u32 %v9090_v37, 16 }
 0x203   : > { %15496 = vst [vmem:[#allocation18_spill] sm:$0xff] %v13619_v32  ;;  %v4409_v23 = vsel %vm12661_vm14, %v4400_v21, %v4408_v10  ;;  %v4243_v62 = vrot.slane %v13626_v48, 6  ;;  %v4248_v8 = vshrl.u32 %v9091_v60, 16  ;;  %v4251_v61 = vshll.u32 %v9091_v60, 16 }
 0x204   : > { %v9169_v43 = vcombine.low %v4399_v9, %v4409_v23  ;;  %v4236_v38 = vrot.slane %v4234_v5, 5  ;;  %v4239_v36 = vrot.slane %v4237_v14, 6  ;;  %v4242_v31 = vrot.slane %v13630_v29, 5  ;;  %v13642_v23 = vpop.f32.mrb[70].mxu0 }
 0x205   : > { %v4250_v41 = vrot.slane %v4248_v8, 5  ;;  %v4253_v40 = vrot.slane %v4251_v61, 6  ;;  %v4411_v18 = vshrl.u32 %v9104_v12, 16  ;;  %v4414_v45 = vshll.u32 %v9104_v12, 16  ;;  %15500 = vst [vmem:[#allocation48_spill] sm:$0xff] %v13642_v23 }
 0x206   : > { %10723 = vmatmul.mubr.bf16.gmra.mrb[136].mxu1 %v9169_v43  ;;  %v4240_v37 = vor.u32 %v4239_v36, %v4236_v38  ;;  %v4244_v7 = vor.u32 %v4243_v62, %v4242_v31  ;;  %v4419_v21 = vrot.slane %v13541_v25, 6  ;;  %v4420_v10 = vrot.slane %v13539_v4, 7  ;;  %v9075_v43 = vld [vmem:[%s11465_s8 + $0x98] sm:$0x1]  ;;  %v13645_v38 = vpop.f32.mrb[71].mxu0  ;;  %v15502_v36 = vld [vmem:[#allocation22_spill] sm:$0xff] }
 0x207   : > { %v4254_v60 = vor.u32 %v4253_v40, %v4250_v41  ;;  %v4413_v9 = vrot.slane %v4411_v18, 6  ;;  %v4416_v5 = vrot.slane %v4414_v45, 7  ;;  %v4425_v14 = vshrl.u32 %v9105_v55, 16  ;;  %15501 = vst [vmem:[#allocation16_spill] sm:$0xff] %v13645_v38  ;;  %v15503_v4 = vld [vmem:[#allocation24_spill] sm:$0xff] }
 0x208   : > { %v4241_v8 = vrot.slane %v4240_v37, 4  ;;  %v4246_v61 = vrot.slane %v4244_v7, 4  ;;  %v4421_v12 = vor.u32 %v4420_v10, %v4419_v21  ;;  %v4428_v6 = vshll.u32 %v9105_v55, 16  ;;  %v9106_v55 = vld [vmem:[%s11465_s8 + $0x90] sm:$0xc] }
 0x209   : > { %v4417_v62 = vor.u32 %v4416_v5, %v4413_v9  ;;  %v4427_v25 = vrot.slane %v4425_v14, 6  ;;  %v13649_v31 = vadd.f32 %v15503_v4, %v15502_v36  ;;  %v4033_v41 = vshrl.u32 %v9073_v46, 16  ;;  %v13656_v5 = vpop.f32.mrb[72].mxu0 }
 0x20a   : > { %v4245_v40 = vsel %vm11505_vm7, %v4241_v8, %v4244_v7  ;;  %v4255_v18 = vsel %vm11505_vm7, %v4246_v61, %v4254_v60  ;;  %v4423_v45 = vrot.slane %v4421_v12, 4  ;;  %v4430_v37 = vrot.slane %v4428_v6, 7  ;;  %15505 = vst [vmem:[#allocation21_spill] sm:$0xff] %v13656_v5  ;;  %v13660_v7 = vpop.f32.mrb[73].mxu0  ;;  %v9107_v8 = vld [vmem:[%s11465_s8 + $0x98] sm:$0x7] }
 0x20b   : > { %15504 = vst [vmem:[#allocation20_spill] sm:$0xff] %v13649_v31  ;;  %v9163_v21 = vcombine.low %v4245_v40, %v4255_v18  ;;  %v4418_v10 = vrot.slane %v4417_v62, 4  ;;  %v4035_v38 = vrot.slane %v4033_v41, 4  ;;  %v4036_v9 = vshll.u32 %v9073_v46, 16  ;;  %15506 = vst [vmem:[#allocation22_spill] sm:$0xff] %v13660_v7  ;;  %v13665_v41 = vpop.f32.mrb[74].mxu0 }
 0x20c   : > { %v4431_v14 = vor.u32 %v4430_v37, %v4427_v25  ;;  %v4044_v36 = vrot.slane %v13626_v48, 5  ;;  %v4048_v4 = vrot.slane %v13630_v29, 4  ;;  %v4052_v23 = vshll.u32 %v9075_v43, 16  ;;  %15507 = vst [vmem:[#allocation24_spill] sm:$0xff] %v13665_v41  ;;  %v13670_v5 = vpop.f32.mrb[75].mxu0  ;;  %v15526_v41 = vld [vmem:[#allocation32_spill] sm:$0xff] }
 0x20d   : > { %5668 = vmatprep.mubr.bf16.mxu0 %v9163_v21  ;;  %v4422_v60 = vsel %vm12661_vm14, %v4418_v10, %v4421_v12  ;;  %v4038_v6 = vrot.slane %v4036_v9, 5  ;;  %v4434_v61 = vshrl.u32 %v9106_v55, 16  ;;  %v4437_v62 = vshll.u32 %v9106_v55, 16  ;;  %15508 = vst [vmem:[#allocation67_spill] sm:$0xff] %v13670_v5  ;;  %v15551_v31 = vld [vmem:[#allocation49_spill] sm:$0xff] }
 0x20e   : > { %v4432_v46 = vsel %vm12661_vm14, %v4423_v45, %v4431_v14  ;;  %v4049_v25 = vor.u32 %v4048_v4, %v4044_v36  ;;  %v4054_v40 = vrot.slane %v4052_v23, 5  ;;  %v4442_v18 = vrot.slane %v13630_v29, 6  ;;  %v15509_v23 = vld [vmem:[#allocation26_spill] sm:$0xff]  ;;  %v15510_v4 = vld [vmem:[#allocation27_spill] sm:$0xff] }
 0x20f   : > { %v9170_v43 = vcombine.low %v4422_v60, %v4432_v46  ;;  %v4039_v37 = vor.u32 %v4038_v6, %v4035_v38  ;;  %v4436_v7 = vrot.slane %v4434_v61, 6  ;;  %v4439_v21 = vrot.slane %v4437_v62, 7  ;;  %v15511_v38 = vld [vmem:[#allocation30_spill] sm:$0xff]  ;;  %v13677_v6 = vpop.f32.mrb[76].mxu0 }
 0x210   : > { %v4050_v12 = vrot.slane %v4049_v25, 4  ;;  %v4443_v55 = vrot.slane %v13626_v48, 7  ;;  %v4448_v10 = vshrl.u32 %v9107_v8, 16  ;;  %v4451_v9 = vshll.u32 %v9107_v8, 16  ;;  %15512 = vst [vmem:[#allocation26_spill] sm:$0xff] %v13677_v6 }
 0x211   : > { %10726 = vmatprep.mubr.bf16.mxu1 %v9170_v43  ;;  %v4040_v45 = vrot.slane %v4039_v37, 4  ;;  %v4440_v14 = vor.u32 %v4439_v21, %v4436_v7  ;;  %v9993_v29 = vadd.f32 %v15510_v4, %v15509_v23  ;;  %v9996_v60 = vadd.f32 %v15511_v38, %v13166_v22  ;;  %v13682_v8 = vld [vmem:[%s11465_s8 + $0x4] sm:$0xf]  ;;  %v5793_v25 = vld [vmem:[%s11465_s8] sm:$0xe]  ;;  %v15517_v4 = vld [vmem:[#allocation28_spill] sm:$0xff] }
 0x212   : > { %v4055_v61 = vsel %vm12396_vm11, %v4050_v12, %v4054_v40  ;;  %v4444_v62 = vor.u32 %v4443_v55, %v4442_v18  ;;  %v4450_v48 = vrot.slane %v4448_v10, 6  ;;  %v4453_v46 = vrot.slane %v4451_v9, 7  ;;  %v15513_v37 = vld [vmem:[#allocation17_spill] sm:$0xff]  ;;  %v5794_v40 = vld [vmem:[%s11465_s8 + $0x8] sm:$0x3]  ;;  %v13694_v18 = vpop.f32.mrb[77].mxu0 }
 0x213   : > { %v4045_v7 = vsel %vm12396_vm11, %v4040_v45, %v4044_v36  ;;  %v4441_v43 = vrot.slane %v4440_v14, 4  ;;  %v13688_v21 = vadd.f32 %v9993_v29, %v15513_v37  ;;  %v15514_v22 = vld [vmem:[#allocation13_spill] sm:$0xff]  ;;  %15515 = vst [vmem:[#allocation27_spill] sm:$0xff] %v13694_v18  ;;  %v13696_v12 = vpop.f32.mrb[64].mxu1  ;;  %v13700_v36 = vadd.f32 %v15518_v28, %v15517_v4  ;;  %v13705_v14 = vpop.f32.mrb[78].mxu0 }
 0x214   : > { %v13691_v23 = vadd.f32 %v9996_v60, %v15514_v22  ;;  %15516 = vst [vmem:[#allocation30_spill] sm:$0xff] %v13696_v12  ;;  %v9155_v55 = vcombine.low %v4045_v7, %v4055_v61  ;;  %v4446_v10 = vrot.slane %v4444_v62, 4  ;;  %v4454_v9 = vor.u32 %v4453_v46, %v4450_v48  ;;  %v13703_v45 = vld [vmem:[%s11465_s8] sm:$0xf]  ;;  %15519 = vst [vmem:[#allocation17_spill] sm:$0xff] %v13705_v14  ;;  %v13707_v29 = vpop.f32.mrb[65].mxu1 }
 0x215   : > { %15520 = vst [vmem:[#allocation13_spill] sm:$0xff] %v13707_v29  ;;  %v4445_v38 = vsel %vm12661_vm14, %v4441_v43, %v4444_v62  ;;  %v5810_v60 = vshrl.u32 %v5793_v25, 16  ;;  %v5813_v37 = vshll.u32 %v5793_v25, 16  ;;  %v5819_v22 = vshrl.u32 %v13682_v8, 16  ;;  %v11037_v61 = vld [vmem:[%s11465_s8 + $0x24] sm:$0xff]   ;;  %v13714_v48 = vpop.f32.mrb[79].mxu0 }
 0x216   : > { %v6033_v7 = vld [vmem:[%s11465_s8] sm:$0x8]  ;;  %15521 = vst [vmem:[#allocation28_spill] sm:$0xff] %v13714_v48  ;;  %v13716_v46 = vpop.f32.mrb[66].mxu1  ;;  %5669 = vmatmul.mubr.bf16.gmra.mrb[140].mxu0 %v9155_v55  ;;  %v4455_v4 = vsel %vm12661_vm14, %v4446_v10, %v4454_v9  ;;  %v5822_v28 = vshll.u32 %v13682_v8, 16  ;;  %v5829_v14 = vshrl.u32 %v5794_v40, 16 }
 0x217   : > { %15522 = vst [vmem:[#allocation29_spill] sm:$0xff] %v13716_v46  ;;  %v5832_v18 = vshll.u32 %v5794_v40, 16  ;;  %v13721_v62 = vpop.f32.mrb[67].mxu1  ;;  %v9171_v25 = vcombine.low %v4445_v38, %v4455_v4  ;;  %v5812_v43 = vrot.slane %v5810_v60, 5  ;;  %v5815_v29 = vrot.slane %v5813_v37, 6  ;;  %v13723_v6 = vpop.f32.mrb[80].mxu0 }
 0x218   : > { %15523 = vst [vmem:[#allocation68_spill] sm:$0xff] %v13721_v62  ;;  %v5821_v12 = vrot.slane %v5819_v22, 5  ;;  %15524 = vst [vmem:[#allocation69_spill] sm:$0xff] %v13723_v6  ;;  %v5824_v48 = vrot.slane %v5822_v28, 6  ;;  %v5831_v46 = vrot.slane %v5829_v14, 5  ;;  %v15525_v55 = vld [vmem:[#allocation31_spill] sm:$0xff] }
 0x219   : > { %v5834_v5 = vrot.slane %v5832_v18, 6  ;;  %v13727_v27 = vadd.f32 %v15526_v41, %v15525_v55  ;;  %v6034_v10 = vld [vmem:[%s11465_s8 + $0x8] sm:$0x7]  ;;  %v13730_v9 = vpop.f32.mrb[68].mxu1  ;;  %10727 = vmatmul.mubr.bf16.gmra.mrb[140].mxu1 %v9171_v25  ;;  %v5816_v40 = vor.u32 %v5815_v29, %v5812_v43  ;;  %v13735_v60 = vld [vmem:[%s11465_s8 + $0x10] sm:$0xf] }
 0x21a   : > { %15527 = vst [vmem:[#allocation31_spill] sm:$0xff] %v13730_v9  ;;  %v5825_v14 = vor.u32 %v5824_v48, %v5821_v12  ;;  %7578 = vmatprep.mubr.bf16.mxu1 %v11037_v61  ;;  %v9390_v41 = vrot.slane %v6033_v7, 11  ;;  %v6078_v22 = vrot.slane %v13682_v8, 7  ;;  %v5795_v29 = vld [vmem:[%s11465_s8 + $0xc] sm:$0xe]  ;;  %v13743_v4 = vpop.f32.mrb[81].mxu0  ;;  %v9999_v12 = vadd.f32 %v13228_v13, %v13218_v51 }
 0x21b   : > { %v5835_v18 = vor.u32 %v5834_v5, %v5831_v46  ;;  %15530 = vst [vmem:[#allocation32_spill] sm:$0xff] %v13743_v4  ;;  %v13745_v28 = vpop.f32.mrb[69].mxu1  ;;  %v5817_v25 = vrot.slane %v5816_v40, 4  ;;  %v6081_v43 = vrot.slane %v6034_v10, 7  ;;  %v15532_v5 = vld [vmem:[#allocation36_spill] sm:$0xff]  ;;  %v15533_v61 = vld [vmem:[#allocation37_spill] sm:$0xff] }
 0x21c   : > { %15531 = vst [vmem:[#allocation70_spill] sm:$0xff] %v13745_v28  ;;  %v10002_v48 = vadd.f32 %v15533_v61, %v15532_v5  ;;  %v5796_v46 = vld [vmem:[%s11465_s8 + $0x14] sm:$0x3]  ;;  %v13752_v55 = vpop.f32.mrb[82].mxu0  ;;  %v13754_v7 = vpop.f32.mrb[70].mxu1  ;;  %v5827_v38 = vrot.slane %v5825_v14, 4  ;;  %v6079_v9 = vsel %vm13737_vm1, %v9390_v41, %v6078_v22 }
 0x21d   : > { %15534 = vst [vmem:[#allocation36_spill] sm:$0xff] %v13752_v55  ;;  %15535 = vst [vmem:[#allocation37_spill] sm:$0xff] %v13754_v7  ;;  %v6080_v4 = vrot.slane %v6078_v22, 4  ;;  %v15536_v28 = vld [vmem:[#allocation35_spill] sm:$0xff]  ;;  %v15537_v40 = vld [vmem:[#allocation38_spill] sm:$0xff]  ;;  %v13765_v13 = vpop.f32.mrb[83].mxu0  ;;  %v5826_v61 = vsel %vm11505_vm7, %v5817_v25, %v5825_v14 }
 0x21e   : > { %v13760_v10 = vadd.f32 %v15537_v40, %v15536_v28  ;;  %v13763_v51 = vld [vmem:[%s11465_s8 + $0xc] sm:$0xf]  ;;  %15539 = vst [vmem:[#allocation38_spill] sm:$0xff] %v13765_v13  ;;  %v13767_v5 = vpop.f32.mrb[71].mxu1  ;;  %v11040_v41 = vld [vmem:[%s15310_s1 + $0x580] sm:$0xff]   ;;  %v15541_v22 = vld [vmem:[#allocation23_spill] sm:$0xff] }
 0x21f   : > { %15540 = vst [vmem:[#allocation71_spill] sm:$0xff] %v13767_v5  ;;  %v13775_v7 = vadd.f32 %v9999_v12, %v15541_v22  ;;  %v15543_v55 = vld [vmem:[#allocation25_spill] sm:$0xff]  ;;  %v5838_v40 = vshrl.u32 %v5795_v29, 16  ;;  %v6035_v6 = vld [vmem:[%s11465_s8 + $0xc] sm:$0x8]  ;;  %v13781_v62 = vpop.f32.mrb[72].mxu1  ;;  %v5836_v5 = vsel %vm11505_vm7, %v5827_v38, %v5835_v18  ;;  %v6082_v14 = vsel %vm13737_vm1, %v6080_v4, %v6081_v43 }
 0x220   : > { %15538 = vst [vmem:[#allocation35_spill] sm:$0xff] %v13760_v10  ;;  %v13778_v28 = vadd.f32 %v10002_v48, %v15543_v55  ;;  %15545 = vst [vmem:[#allocation72_spill] sm:$0xff] %v13781_v62  ;;  %v5841_v25 = vshll.u32 %v5795_v29, 16  ;;  %v5847_v13 = vshrl.u32 %v13735_v60, 16  ;;  %v13790_v10 = vld [vmem:[%s11465_s8 + $0x14] sm:$0x7]  ;;  %v9496_v48 = vcombine.low %v5826_v61, %v5836_v5 }
 0x221   : > { %15542 = vst [vmem:[#allocation23_spill] sm:$0xff] %v13775_v7  ;;  %v11043_v12 = vld [vmem:[%s15310_s1 + $0x5c8] sm:$0xff]   ;;  %v9504_v55 = vcombine.low %v6079_v9, %v6082_v14  ;;  %v5840_v22 = vrot.slane %v5838_v40, 5  ;;  %v5850_v62 = vshll.u32 %v13735_v60, 16  ;;  %v11054_v38 = vld [vmem:[%s15310_s1 + $0x600] sm:$0xff]   ;;  %v13802_v29 = vpop.f32.mrb[84].mxu0 }
 0x222   : > { %15544 = vst [vmem:[#allocation25_spill] sm:$0xff] %v13778_v28  ;;  %v11059_v18 = vld [vmem:[%s15310_s1 + $0x648] sm:$0xff]   ;;  %15546 = vst [vmem:[#allocation73_spill] sm:$0xff] %v13802_v29  ;;  %v13804_v4 = vpop.f32.mrb[73].mxu1  ;;  %v5843_v43 = vrot.slane %v5841_v25, 6  ;;  %v5849_v28 = vrot.slane %v5847_v13, 5  ;;  %7481 = vmatprep.mubr.bf16.mxu0 %v9496_v48 }
 0x223   : > { %15547 = vst [vmem:[#allocation74_spill] sm:$0xff] %v13804_v4  ;;  %v5857_v5 = vshrl.u32 %v5796_v46, 16  ;;  %v5860_v9 = vshll.u32 %v5796_v46, 16  ;;  %v13806_v61 = vpop.f32.mrb[85].mxu0  ;;  %v13808_v40 = vpop.f32.mrb[74].mxu1  ;;  %7579 = vmatmul.mubr.bf16.vlgmr.msra.gmra.mrb[144].mxu1 %v9504_v55  ;;  %v5852_v14 = vrot.slane %v5850_v62, 6  ;;  %v15554_v62 = vcombine.low %v13703_v45, %v13682_v8 }
 0x224   : > { %15548 = vst [vmem:[#allocation75_spill] sm:$0xff] %v13806_v61  ;;  %15549 = vst [vmem:[#allocation76_spill] sm:$0xff] %v13808_v40  ;;  %v15550_v7 = vld [vmem:[#allocation39_spill] sm:$0xff]  ;;  %v9391_v4 = vrot.slane %v6035_v6, 11  ;;  %v11044_v46 = vld [vmem:[%s15310_s1 + $0x588] sm:$0xff]   ;;  %v13820_v25 = vpop.f32.mrb[86].mxu0  ;;  %7586 = vmatprep.mubr.bf16.mxu1 %v11041_v44  ;;  %v10005_v44 = vadd.f32 %v13295_v2, %v13283_v54  ;;  %10578 = vmatpush3.bf16.msra.mxu1 %v11054_v38 }
 0x225   : > { %v13812_v32 = vadd.f32 %v15551_v31, %v15550_v7  ;;  %v5797_v13 = vld [vmem:[%s11465_s8 + $0x18] sm:$0xe]  ;;  %15552 = vst [vmem:[#allocation39_spill] sm:$0xff] %v13820_v25  ;;  %v13822_v40 = vpop.f32.mrb[75].mxu1  ;;  %7482 = vmatmul.mubr.bf16.vlgmr.msra.gmra.mrb[144].mxu0 %v15554_v62  ;;  %v5844_v31 = vor.u32 %v5843_v43, %v5840_v22  ;;  %v5859_v7 = vrot.slane %v5857_v5, 5  ;;  %v5862_v48 = vrot.slane %v5860_v9, 6  ;;  %10579 = vmatprep.subr.bf16.mxu1 %v11059_v18 }
 0x226   : > { %15553 = vst [vmem:[#allocation49_spill] sm:$0xff] %v13822_v40  ;;  %v6085_v6 = vrot.slane %v13735_v60, 7  ;;  %v13829_v55 = vld [vmem:[%s11465_s8 + $0x1c] sm:$0xf]  ;;  %v11060_v29 = vld [vmem:[%s15310_s1 + $0x608] sm:$0xff]   ;;  %v13834_v25 = vpop.f32.mrb[87].mxu0  ;;  %10514 = vmatpush3.bf16.msra.mxu0 %v11040_v41  ;;  %v5853_v8 = vor.u32 %v5852_v14, %v5849_v28 }
 0x227   : > { %15555 = vst [vmem:[#allocation77_spill] sm:$0xff] %v13834_v25  ;;  %v13836_v40 = vpop.f32.mrb[76].mxu1  ;;  %v6088_v45 = vrot.slane %v13790_v10, 7  ;;  %v15557_v22 = vld [vmem:[#allocation50_spill] sm:$0xff]  ;;  %v13844_v5 = vld [vmem:[%s11465_s8 + $0x20] sm:$0x3]  ;;  %v5863_v25 = vor.u32 %v5862_v48, %v5859_v7  ;;  %10515 = vmatprep.subr.bf16.mxu0 %v11043_v12 }
 0x228   : > { %15556 = vst [vmem:[#allocation78_spill] sm:$0xff] %v13836_v40  ;;  %v10008_v43 = vadd.f32 %v15557_v22, %v13302_v34  ;;  %v13846_v9 = vpop.f32.mrb[77].mxu1  ;;  %v5845_v62 = vrot.slane %v5844_v31, 4  ;;  %v6086_v41 = vsel %vm13737_vm1, %v9391_v4, %v6085_v6  ;;  %v6087_v28 = vrot.slane %v6085_v6, 4  ;;  %v11045_v10 = vld [vmem:[%s11465_s8 + $0x3c] sm:$0xff]   ;;  %v11047_v54 = vld [vmem:[%s15310_s1 + $0x5d0] sm:$0xff]   ;;  %10580 = vmatpush3.bf16.msra.mxu1 %v11060_v29 }
 0x229   : > { %15558 = vst [vmem:[#allocation50_spill] sm:$0xff] %v13846_v9  ;;  %v11065_v2 = vld [vmem:[%s15310_s1 + $0x650] sm:$0xff]   ;;  %v13857_v34 = vpop.f32.mrb[78].mxu1  ;;  %v13859_v38 = vpop.f32.mrb[88].mxu0  ;;  %v5855_v14 = vrot.slane %v5853_v8, 4  ;;  %v15561_v31 = vld [vmem:[#allocation34_spill] sm:$0xff] }
 0x22a   : > { %15559 = vst [vmem:[#allocation79_spill] sm:$0xff] %v13857_v34  ;;  %15560 = vst [vmem:[#allocation80_spill] sm:$0xff] %v13859_v38  ;;  %v13862_v4 = vadd.f32 %v10005_v44, %v15561_v31  ;;  %v15562_v12 = vld [vmem:[#allocation33_spill] sm:$0xff]  ;;  %v15563_v48 = vld [vmem:[#allocation40_spill] sm:$0xff]  ;;  %v13877_v40 = vpop.f32.mrb[79].mxu1  ;;  %v5854_v38 = vsel %vm11505_vm7, %v5845_v62, %v5853_v8  ;;  %v6089_v44 = vsel %vm13737_vm1, %v6087_v28, %v6088_v45  ;;  %v5866_v31 = vshrl.u32 %v5797_v13, 16 }
 0x22b   : > { %v13865_v7 = vadd.f32 %v10008_v43, %v15562_v12  ;;  %v15564_v6 = vld [vmem:[#allocation43_spill] sm:$0xff]  ;;  %v13872_v18 = vld [vmem:[%s11465_s8 + $0x18] sm:$0xf]  ;;  %15565 = vst [vmem:[#allocation34_spill] sm:$0xff] %v13877_v40  ;;  %v5869_v34 = vshll.u32 %v5797_v13, 16  ;;  %v5864_v12 = vsel %vm11505_vm7, %v5855_v14, %v5863_v25  ;;  %10516 = vmatpush3.bf16.msra.mxu0 %v11044_v46  ;;  %v5878_v61 = vshll.u32 %v13829_v55, 16  ;;  %10581 = vmatprep.subr.bf16.mxu1 %v11065_v2 }
 0x22c   : > { %v13869_v22 = vadd.f32 %v15564_v6, %v15563_v48  ;;  %v13875_v9 = vld [vmem:[%s11465_s8 + $0x18] sm:$0x8]  ;;  %v13884_v43 = vld [vmem:[%s11465_s8 + $0x20] sm:$0x7]  ;;  %v9505_v48 = vcombine.low %v6086_v41, %v6089_v44  ;;  %v5875_v6 = vshrl.u32 %v13829_v55, 16  ;;  %v11048_v8 = vld [vmem:[%s15310_s1 + $0x590] sm:$0xff]   ;;  %v9497_v25 = vcombine.low %v5854_v38, %v5864_v12  ;;  %10517 = vmatprep.subr.bf16.mxu0 %v11047_v54 }
 0x22d   : > { %v11066_v13 = vld [vmem:[%s15310_s1 + $0x610] sm:$0xff]   ;;  %v13896_v45 = vpop.f32.mrb[80].mxu1  ;;  %v13898_v62 = vpop.f32.mrb[89].mxu0  ;;  %v5868_v41 = vrot.slane %v5866_v31, 5  ;;  %v5871_v46 = vrot.slane %v5869_v34, 6  ;;  %v5885_v28 = vshrl.u32 %v13844_v5, 16 }
 0x22e   : > { %15566 = vst [vmem:[#allocation33_spill] sm:$0xff] %v13896_v45  ;;  %15567 = vst [vmem:[#allocation40_spill] sm:$0xff] %v13898_v62  ;;  %v11067_v14 = vld [vmem:[%s15310_s1 + $0x658] sm:$0xff]   ;;  %v13904_v29 = vpop.f32.mrb[81].mxu1  ;;  %v13906_v44 = vpop.f32.mrb[90].mxu0  ;;  %7587 = vmatmul.mubr.bf16.gmra.mrb[148].mxu1 %v9505_v48  ;;  %v5877_v45 = vrot.slane %v5875_v6, 5  ;;  %7489 = vmatprep.mubr.bf16.mxu0 %v9497_v25  ;;  %v15575_v25 = vcombine.low %v13763_v51, %v13735_v60  ;;  %v10014_v60 = vadd.f32 %v13340_v50, %v13336_v35 }
 0x22f   : > { %15568 = vst [vmem:[#allocation43_spill] sm:$0xff] %v13904_v29  ;;  %15569 = vst [vmem:[#allocation81_spill] sm:$0xff] %v13906_v44  ;;  %v5880_v62 = vrot.slane %v5878_v61, 6  ;;  %v5888_v38 = vshll.u32 %v13844_v5, 16  ;;  %v15570_v34 = vld [vmem:[#allocation42_spill] sm:$0xff]  ;;  %v15571_v31 = vld [vmem:[#allocation51_spill] sm:$0xff]  ;;  %v5872_v44 = vor.u32 %v5871_v46, %v5868_v41  ;;  %7594 = vmatprep.mubr.bf16.mxu1 %v11045_v10  ;;  %10582 = vmatpush3.bf16.msra.mxu1 %v11066_v13 }
 0x230   : > { %v13911_v12 = vadd.f32 %v15571_v31, %v15570_v34  ;;  %v11051_v54 = vld [vmem:[%s15310_s1 + $0x5d8] sm:$0xff]   ;;  %v13916_v2 = vpop.f32.mrb[82].mxu1  ;;  %v13918_v29 = vpop.f32.mrb[91].mxu0  ;;  %v5887_v40 = vrot.slane %v5885_v28, 5  ;;  %v9392_v5 = vrot.slane %v13875_v9, 11  ;;  %7490 = vmatmul.mubr.bf16.gmra.mrb[148].mxu0 %v15575_v25  ;;  %v6092_v46 = vrot.slane %v13829_v55, 7  ;;  %10583 = vmatprep.subr.bf16.mxu1 %v11067_v14 }
 0x231   : > { %15572 = vst [vmem:[#allocation42_spill] sm:$0xff] %v13916_v2  ;;  %15573 = vst [vmem:[#allocation51_spill] sm:$0xff] %v13918_v29  ;;  %v13924_v48 = vld [vmem:[%s11465_s8 + $0x28] sm:$0xf]  ;;  %v5799_v6 = vld [vmem:[%s11465_s8 + $0x24] sm:$0xe]  ;;  %v5881_v10 = vor.u32 %v5880_v62, %v5877_v45  ;;  %10518 = vmatpush3.bf16.msra.mxu0 %v11048_v8  ;;  %v13945_v51 = vadd.f32 %v13344_v52, %v13338_v58 }
 0x232   : > { %v11069_v34 = vld [vmem:[%s15310_s1 + $0x618] sm:$0xff]   ;;  %v13930_v31 = vpop.f32.mrb[83].mxu1  ;;  %v5890_v41 = vrot.slane %v5888_v38, 6  ;;  %v6095_v9 = vrot.slane %v13884_v43, 7  ;;  %v5873_v61 = vrot.slane %v5872_v44, 4  ;;  %v15578_v2 = vld [vmem:[#allocation53_spill] sm:$0xff]  ;;  %v6093_v35 = vsel %vm13737_vm1, %v9392_v5, %v6092_v46  ;;  %10519 = vmatprep.subr.bf16.mxu0 %v11051_v54 }
 0x233   : > { %15574 = vst [vmem:[#allocation82_spill] sm:$0xff] %v13930_v31  ;;  %v13937_v28 = vpop.f32.mrb[84].mxu1  ;;  %v15577_v29 = vld [vmem:[#allocation52_spill] sm:$0xff]  ;;  %v5800_v45 = vld [vmem:[%s11465_s8 + $0x2c] sm:$0x3]  ;;  %v11073_v8 = vld [vmem:[%s15310_s1 + $0x660] sm:$0xff]   ;;  %10584 = vmatpush3.bf16.msra.mxu1 %v11069_v34 }
 0x234   : > { %15576 = vst [vmem:[#allocation83_spill] sm:$0xff] %v13937_v28  ;;  %v10011_v31 = vadd.f32 %v15578_v2, %v15577_v29  ;;  %15579 = vst [vmem:[#allocation52_spill] sm:$0xff] %v13945_v51  ;;  %v11052_v43 = vld [vmem:[%s15310_s1 + $0x598] sm:$0xff]   ;;  %v13954_v13 = vpop.f32.mrb[85].mxu1  ;;  %v5883_v62 = vrot.slane %v5881_v10, 4  ;;  %v5891_v29 = vor.u32 %v5890_v41, %v5887_v40  ;;  %v6094_v58 = vrot.slane %v6092_v46, 4  ;;  %10585 = vmatprep.subr.bf16.mxu1 %v11073_v8 }
 0x235   : > { %15580 = vst [vmem:[#allocation53_spill] sm:$0xff] %v13954_v13  ;;  %v11049_v50 = vld [vmem:[%s11465_s8 + $0x48] sm:$0xff]   ;;  %v13960_v52 = vld [vmem:[%s11465_s8 + $0x24] sm:$0xf]  ;;  %v13965_v44 = vpop.f32.mrb[86].mxu1  ;;  %v5882_v38 = vsel %vm11505_vm7, %v5873_v61, %v5881_v10  ;;  %v15583_v25 = vld [vmem:[#allocation44_spill] sm:$0xff]  ;;  %10520 = vmatpush3.bf16.msra.mxu0 %v11052_v43 }
 0x236   : > { %v11057_v14 = vld [vmem:[%s15310_s1 + $0x5e0] sm:$0xff]   ;;  %15581 = vst [vmem:[#allocation84_spill] sm:$0xff] %v13965_v44  ;;  %v13973_v5 = vadd.f32 %v10014_v60, %v15583_v25  ;;  %v5894_v41 = vshrl.u32 %v5799_v6, 16  ;;  %v13976_v13 = vpop.f32.mrb[87].mxu1  ;;  %v5892_v54 = vsel %vm11505_vm7, %v5883_v62, %v5891_v29  ;;  %v6096_v28 = vsel %vm13737_vm1, %v6094_v58, %v6095_v9  ;;  %v13984_v61 = vld [vmem:[%s11465_s8 + $0x2c] sm:$0x7] }
 0x237   : > { %v15582_v2 = vld [vmem:[#allocation41_spill] sm:$0xff]  ;;  %15585 = vst [vmem:[#allocation44_spill] sm:$0xff] %v13976_v13  ;;  %v5897_v44 = vshll.u32 %v5799_v6, 16  ;;  %v5903_v51 = vshrl.u32 %v13924_v48, 16  ;;  %v11063_v10 = vld [vmem:[%s15310_s1 + $0x5e8] sm:$0xff]   ;;  %v9498_v60 = vcombine.low %v5882_v38, %v5892_v54  ;;  %v5906_v29 = vshll.u32 %v13924_v48, 16  ;;  %10521 = vmatprep.subr.bf16.mxu0 %v11057_v14 }
 0x238   : > { %v13970_v40 = vadd.f32 %v10011_v31, %v15582_v2  ;;  %15584 = vst [vmem:[#allocation41_spill] sm:$0xff] %v13973_v5  ;;  %v6039_v46 = vld [vmem:[%s11465_s8 + $0x24] sm:$0x8]  ;;  %v9506_v2 = vcombine.low %v6093_v35, %v6096_v28  ;;  %v5896_v62 = vrot.slane %v5894_v41, 5  ;;  %v11075_v9 = vld [vmem:[%s15310_s1 + $0x668] sm:$0xff]   ;;  %v13999_v58 = vpop.f32.mrb[88].mxu1 }
 0x239   : > { %v11058_v31 = vld [vmem:[%s15310_s1 + $0x5a0] sm:$0xff]   ;;  %15586 = vst [vmem:[#allocation85_spill] sm:$0xff] %v13999_v58  ;;  %v14001_v25 = vpop.f32.mrb[92].mxu0  ;;  %v5899_v34 = vrot.slane %v5897_v44, 6  ;;  %v5905_v28 = vrot.slane %v5903_v51, 5  ;;  %v5913_v35 = vshrl.u32 %v5800_v45, 16  ;;  %7497 = vmatprep.mubr.bf16.mxu0 %v9498_v60 }
 0x23a   : > { %v11074_v6 = vld [vmem:[%s15310_s1 + $0x620] sm:$0xff]   ;;  %15587 = vst [vmem:[#allocation86_spill] sm:$0xff] %v14001_v25  ;;  %v5916_v38 = vshll.u32 %v5800_v45, 16  ;;  %v14003_v43 = vpop.f32.mrb[89].mxu1  ;;  %v14005_v8 = vpop.f32.mrb[93].mxu0  ;;  %7595 = vmatmul.mubr.bf16.gmra.mrb[152].mxu1 %v9506_v2  ;;  %v5908_v41 = vrot.slane %v5906_v29, 6  ;;  %10522 = vmatpush3.bf16.msra.mxu0 %v11058_v31 }
 0x23b   : > { %15588 = vst [vmem:[#allocation87_spill] sm:$0xff] %v14003_v43  ;;  %15589 = vst [vmem:[#allocation88_spill] sm:$0xff] %v14005_v8  ;;  %v15590_v54 = vld [vmem:[#allocation45_spill] sm:$0xff]  ;;  %v9393_v44 = vrot.slane %v6039_v46, 11  ;;  %v5801_v51 = vld [vmem:[%s11465_s8 + $0x30] sm:$0xe]  ;;  %v15594_v8 = vcombine.low %v13872_v18, %v13829_v55  ;;  %v5900_v60 = vor.u32 %v5899_v34, %v5896_v62  ;;  %7602 = vmatprep.mubr.bf16.mxu1 %v11049_v50  ;;  %10586 = vmatpush3.bf16.msra.mxu1 %v11074_v6 }
 0x23c   : > { %v14009_v13 = vadd.f32 %v15590_v54, %v13349_v1  ;;  %v14014_v45 = vpop.f32.mrb[90].mxu1  ;;  %v14016_v14 = vpop.f32.mrb[94].mxu0  ;;  %v5915_v2 = vrot.slane %v5913_v35, 5  ;;  %v5918_v29 = vrot.slane %v5916_v38, 6  ;;  %v6099_v1 = vrot.slane %v13924_v48, 7  ;;  %v15597_v43 = vld [vmem:[#allocation56_spill] sm:$0xff]  ;;  %10523 = vmatprep.subr.bf16.mxu0 %v11063_v10  ;;  %10587 = vmatprep.subr.bf16.mxu1 %v11075_v9 }
 0x23d   : > { %15592 = vst [vmem:[#allocation89_spill] sm:$0xff] %v14014_v45  ;;  %15593 = vst [vmem:[#allocation90_spill] sm:$0xff] %v14016_v14  ;;  %7498 = vmatmul.mubr.bf16.gmra.mrb[152].mxu0 %v15594_v8  ;;  %v14023_v54 = vld [vmem:[%s11465_s8 + $0x34] sm:$0xf]  ;;  %v14025_v25 = vpop.f32.mrb[91].mxu1  ;;  %v14027_v46 = vpop.f32.mrb[95].mxu0  ;;  %v5909_v45 = vor.u32 %v5908_v41, %v5905_v28 }
 0x23e   : > { %15591 = vst [vmem:[#allocation45_spill] sm:$0xff] %v14009_v13  ;;  %15595 = vst [vmem:[#allocation91_spill] sm:$0xff] %v14025_v25  ;;  %v6102_v14 = vrot.slane %v13984_v61, 7  ;;  %v15598_v58 = vld [vmem:[#allocation57_spill] sm:$0xff]  ;;  %v15599_v18 = vld [vmem:[#allocation58_spill] sm:$0xff]  ;;  %v14043_v61 = vpop.f32.mrb[92].mxu1  ;;  %v5919_v35 = vor.u32 %v5918_v29, %v5915_v2 }
 0x23f   : > { %15596 = vst [vmem:[#allocation92_spill] sm:$0xff] %v14027_v46  ;;  %v10017_v55 = vadd.f32 %v15598_v58, %v15597_v43  ;;  %v10020_v62 = vadd.f32 %v13394_v16, %v15599_v18  ;;  %v14035_v34 = vld [vmem:[%s11465_s8 + $0x38] sm:$0x3]  ;;  %v11064_v50 = vld [vmem:[%s15310_s1 + $0x5a8] sm:$0xff]   ;;  %15600 = vst [vmem:[#allocation56_spill] sm:$0xff] %v14043_v61  ;;  %v5901_v58 = vrot.slane %v5900_v60, 4  ;;  %v6100_v16 = vsel %vm13737_vm1, %v9393_v44, %v6099_v1 }
 0x240   : > { %v11077_v28 = vld [vmem:[%s15310_s1 + $0x628] sm:$0xff]   ;;  %v6101_v38 = vrot.slane %v6099_v1, 4  ;;  %v11055_v31 = vld [vmem:[%s11465_s8 + $0x54] sm:$0xff]   ;;  %v14054_v8 = vpop.f32.mrb[93].mxu1  ;;  %v5911_v41 = vrot.slane %v5909_v45, 4  ;;  %10524 = vmatpush3.bf16.msra.mxu0 %v11064_v50  ;;  %v15609_v5 = vld [vmem:[#allocation61_spill] sm:$0xff] }
 0x241   : > { %v11071_v6 = vld [vmem:[%s15310_s1 + $0x5f0] sm:$0xff]   ;;  %15601 = vst [vmem:[#allocation57_spill] sm:$0xff] %v14054_v8  ;;  %v15602_v60 = vld [vmem:[#allocation54_spill] sm:$0xff]  ;;  %v15606_v1 = vld [vmem:[#allocation60_spill] sm:$0xff]  ;;  %v14070_v46 = vpop.f32.mrb[94].mxu1  ;;  %v5910_v25 = vsel %vm11505_vm7, %v5901_v58, %v5909_v45  ;;  %v5934_v45 = vshll.u32 %v14023_v54, 16  ;;  %10588 = vmatpush3.bf16.msra.mxu1 %v11077_v28 }
 0x242   : > { %v11081_v43 = vld [vmem:[%s15310_s1 + $0x670] sm:$0xff]   ;;  %v14057_v2 = vadd.f32 %v10017_v55, %v15602_v60  ;;  %15607 = vst [vmem:[#allocation54_spill] sm:$0xff] %v14070_v46  ;;  %v6103_v8 = vsel %vm13737_vm1, %v6101_v38, %v6102_v14  ;;  %v5922_v55 = vshrl.u32 %v5801_v51, 16  ;;  %v5925_v60 = vshll.u32 %v5801_v51, 16  ;;  %v14077_v13 = vld [vmem:[%s11465_s8 + $0x38] sm:$0x7]  ;;  %10525 = vmatprep.subr.bf16.mxu0 %v11071_v6 }
 0x243   : > { %v15603_v44 = vld [vmem:[#allocation55_spill] sm:$0xff]  ;;  %v5931_v46 = vshrl.u32 %v14023_v54, 16  ;;  %v11079_v51 = vld [vmem:[%s15310_s1 + $0x5f8] sm:$0xff]   ;;  %10589 = vmatprep.subr.bf16.mxu1 %v11081_v43  ;;  %vm8436_vm6 = vcmask 785408  }
 0x244   : > { %v14060_v29 = vadd.f32 %v10020_v62, %v15603_v44  ;;  %v15605_v10 = vld [vmem:[#allocation59_spill] sm:$0xff]  ;;  %v14082_v44 = vpop.f32.mrb[95].mxu1  ;;  %v11083_v58 = vld [vmem:[%s15310_s1 + $0x678] sm:$0xff]   ;;  %v5927_v38 = vrot.slane %v5925_v60, 6 }
 0x245   : > { %v14064_v18 = vadd.f32 %v15606_v1, %v15605_v10  ;;  %v14067_v61 = vld [vmem:[%s11465_s8 + $0x30] sm:$0xf]  ;;  %15608 = vst [vmem:[#allocation55_spill] sm:$0xff] %v14082_v44  ;;  %v5920_v10 = vsel %vm11505_vm7, %v5911_v41, %v5919_v35  ;;  %v9507_v1 = vcombine.low %v6100_v16, %v6103_v8  ;;  %v5924_v16 = vrot.slane %v5922_v55, 5  ;;  %v14098_v50 = vpop.f32.mrb[96].mxu1 }
 0x246   : > { %15604 = vst [vmem:[#allocation58_spill] sm:$0xff] %v14060_v29  ;;  %v6041_v9 = vld [vmem:[%s11465_s8 + $0x30] sm:$0x8]  ;;  %v9499_v35 = vcombine.low %v5910_v25, %v5920_v10  ;;  %v5941_v8 = vshrl.u32 %v14035_v34, 16  ;;  %v5933_v28 = vrot.slane %v5931_v46, 5  ;;  %v5936_v41 = vrot.slane %v5934_v45, 6 }
 0x247   : > { %v11072_v62 = vld [vmem:[%s15310_s1 + $0x5b0] sm:$0xff]   ;;  %7603 = vmatmul.mubr.bf16.gmra.mrb[156].mxu1 %v9507_v1  ;;  %v5944_v44 = vshll.u32 %v14035_v34, 16  ;;  %v14103_v29 = vadd.f32 %v13408_v24, %v15609_v5  ;;  %v14105_v25 = vpop.f32.mrb[97].mxu1  ;;  %v5928_v55 = vor.u32 %v5927_v38, %v5924_v16  ;;  %v9492_v6 = vcombine.low %v14067_v61, %v14023_v54  ;;  %v14110_v10 = vld [vmem:[%s11465_s8 + $0x40] sm:$0xf]  ;;  %v11084_v61 = vld [vmem:[%s15310_s1 + $0x638] sm:$0xff]  }
 0x248   : > { %v11082_v14 = vld [vmem:[%s15310_s1 + $0x630] sm:$0xff]   ;;  %7505 = vmatprep.mubr.bf16.mxu0 %v9499_v35  ;;  %v5943_v60 = vrot.slane %v5941_v8, 5  ;;  %7610 = vmatprep.mubr.bf16.mxu1 %v11055_v31  ;;  %v9394_v43 = vrot.slane %v6041_v9, 11  ;;  %v5803_v46 = vld [vmem:[%s11465_s8 + $0x3c] sm:$0xe]  ;;  %v14113_v1 = vpop.f32.mrb[98].mxu1  ;;  %v15611_v34 = vcombine.low %v13960_v52, %v13924_v48  ;;  %v5937_v24 = vor.u32 %v5936_v41, %v5933_v28 }
 0x249   : > { %15610 = vst [vmem:[#allocation59_spill] sm:$0xff] %v14113_v1  ;;  %v5946_v5 = vrot.slane %v5944_v44, 6  ;;  %v6106_v45 = vrot.slane %v14023_v54, 7  ;;  %v6109_v35 = vrot.slane %v14077_v13, 7  ;;  %10590 = vmatpush3.bf16.msra.mxu1 %v11082_v14  ;;  %v14123_v31 = vpop.f32.mrb[99].mxu1  ;;  %v5929_v9 = vrot.slane %v5928_v55, 4  ;;  %10526 = vmatpush3.bf16.msra.mxu0 %v11072_v62 }
 0x24a   : > { %7506 = vmatmul.mubr.bf16.gmra.mrb[156].mxu0 %v15611_v34  ;;  %15612 = vst [vmem:[#allocation60_spill] sm:$0xff] %v14123_v31  ;;  %v10023_v16 = vadd.f32 %v13433_v15, %v13424_v3  ;;  %v10026_v48 = vadd.f32 %v13445_v0, %v13437_v17  ;;  %v14131_v52 = vadd.f32 %v13447_v19, %v13439_v42  ;;  %v11080_v13 = vld [vmem:[%s15310_s1 + $0x5b8] sm:$0xff]   ;;  %v14136_v54 = vpop.f32.mrb[96].mxu0  ;;  %v5939_v44 = vrot.slane %v5937_v24, 4  ;;  %v14143_v17 = vld [vmem:[%s15310_s1 + $0x680] sm:$0xff]   ;;  %v15613_v19 = vld [vmem:[#allocation62_spill] sm:$0xff] }
 0x24b   : > { %10591 = vmatprep.subr.bf16.mxu1 %v11083_v58  ;;  %v5947_v14 = vor.u32 %v5946_v5, %v5943_v60  ;;  %v6107_v3 = vsel %vm13737_vm1, %v9394_v43, %v6106_v45  ;;  %v6108_v15 = vrot.slane %v6106_v45, 4  ;;  %10527 = vmatprep.subr.bf16.mxu0 %v11079_v51  ;;  %v14145_v42 = vpop.f32.mrb[97].mxu0  ;;  %v5938_v0 = vsel %vm11505_vm7, %v5929_v9, %v5937_v24  ;;  %v15614_v58 = vld [vmem:[#allocation47_spill] sm:$0xff]  ;;  %v5804_v8 = vld [vmem:[%s11465_s8 + $0x44] sm:$0x3] }
 0x24c   : > { %v14150_v62 = vadd.f32 %v10023_v16, %v15613_v19  ;;  %v14153_v38 = vadd.f32 %v10026_v48, %v15614_v58  ;;  %v5950_v28 = vshrl.u32 %v5803_v46, 16  ;;  %v14157_v51 = vld [vmem:[%s11465_s8 + $0x3c] sm:$0xf]  ;;  %v14159_v41 = vpop.f32.mrb[98].mxu0  ;;  %v5953_v43 = vshll.u32 %v5803_v46, 16  ;;  %v11061_v24 = vld [vmem:[%s11465_s8 + $0x60] sm:$0xff]  }
 0x24d   : > { %v5948_v55 = vsel %vm11505_vm7, %v5939_v44, %v5947_v14  ;;  %v6110_v60 = vsel %vm13737_vm1, %v6108_v15, %v6109_v35  ;;  %v5959_v34 = vshrl.u32 %v14110_v10, 16  ;;  %v6043_v5 = vld [vmem:[%s11465_s8 + $0x3c] sm:$0x8]  ;;  %10592 = vmatpush3.bf16.msra.mxu1 %v11084_v61  ;;  %v14168_v45 = vpop.f32.mrb[99].mxu0  ;;  %v5962_v19 = vshll.u32 %v14110_v10, 16  ;;  %10528 = vmatpush3.bf16.msra.mxu0 %v11080_v13  ;;  %v15615_v35 = vld [vmem:[#allocation46_spill] sm:$0xff] }
 0x24e   : > { %v9500_v9 = vcombine.low %v5938_v0, %v5948_v55  ;;  %v9508_v16 = vcombine.low %v6107_v3, %v6110_v60  ;;  %v5952_v48 = vrot.slane %v5950_v28, 5  ;;  %v6044_v58 = vld [vmem:[%s11465_s8 + $0x44] sm:$0x7]  ;;  %v5955_v31 = vrot.slane %v5953_v43, 6  ;;  %10730 = vmatprep.subr.bf16.mxu0 %v14143_v17  ;;  %v15616_v61 = vld [vmem:[#allocation63_spill] sm:$0xff] }
 0x24f   : > { %v5961_v44 = vrot.slane %v5959_v34, 5  ;;  %v5969_v14 = vshrl.u32 %v5804_v8, 16  ;;  %v5972_v1 = vshll.u32 %v5804_v8, 16  ;;  %v5964_v46 = vrot.slane %v5962_v19, 6  ;;  %v15617_v34 = vld [vmem:[#allocation64_spill] sm:$0xff] }
 0x250   : > { %7513 = vmatprep.mubr.bf16.mxu0 %v9500_v9  ;;  %7611 = vmatmul.mubr.bf16.gmra.mrb[160].mxu1 %v9508_v16  ;;  %v14175_v15 = vadd.f32 %v15616_v61, %v15615_v35  ;;  %v9493_v3 = vcombine.low %v14157_v51, %v14110_v10  ;;  %v9395_v0 = vrot.slane %v6043_v5, 11  ;;  %v5956_v13 = vor.u32 %v5955_v31, %v5952_v48  ;;  %v14185_v19 = vld [vmem:[%s11465_s8 + $0x4c] sm:$0xf]  ;;  %v5805_v51 = vld [vmem:[%s11465_s8 + $0x48] sm:$0xe] }
 0x251   : > { %v5971_v28 = vrot.slane %v5969_v14, 5  ;;  %v5974_v55 = vrot.slane %v5972_v1, 6  ;;  %7618 = vmatprep.mubr.bf16.mxu1 %v11061_v24  ;;  %v6113_v8 = vrot.slane %v14110_v10, 7  ;;  %v5965_v60 = vor.u32 %v5964_v46, %v5961_v44  ;;  %v14190_v24 = vpop.f32.mrb[100].mxu1  ;;  %v11068_v35 = vld [vmem:[%s11465_s8 + $0x6c] sm:$0xff]  }
 0x252   : > { %7514 = vmatmul.mubr.bf16.gmra.mrb[160].mxu0 %v9492_v6  ;;  %v6116_v43 = vrot.slane %v6044_v58, 7  ;;  %v10029_v9 = vadd.f32 %v13506_v11, %v15617_v34  ;;  %v10032_v16 = vadd.f32 %v13517_v47, %v13511_v57  ;;  %v5957_v6 = vrot.slane %v5956_v13, 4  ;;  %v5806_v47 = vld [vmem:[%s11465_s8 + $0x50] sm:$0x3]  ;;  %v14203_v58 = vpop.f32.mrb[101].mxu1 }
 0x253   : > { %v5975_v31 = vor.u32 %v5974_v55, %v5971_v28  ;;  %v6114_v1 = vsel %vm13737_vm1, %v9395_v0, %v6113_v8  ;;  %v6115_v10 = vrot.slane %v6113_v8, 4  ;;  %v5967_v5 = vrot.slane %v5965_v60, 4  ;;  %v14211_v61 = vld [vmem:[%s11465_s8 + $0x48] sm:$0xf] }
 0x254   : > { %v14193_v48 = vadd.f32 %v10029_v9, %v13535_v59  ;;  %v14196_v11 = vadd.f32 %v10032_v16, %v13553_v30  ;;  %v14200_v57 = vadd.f32 %v13513_v39, %v13508_v26  ;;  %v5966_v44 = vsel %vm11505_vm7, %v5957_v6, %v5965_v60  ;;  %v14213_v30 = vpop.f32.mrb[102].mxu1  ;;  %v6045_v28 = vld [vmem:[%s11465_s8 + $0x48] sm:$0x8]  ;;  %v6046_v9 = vld [vmem:[%s11465_s8 + $0x50] sm:$0x7]  ;;  %v14223_v16 = vpop.f32.mrb[100].mxu0 }
 0x255   : > { %v6117_v14 = vsel %vm13737_vm1, %v6115_v10, %v6116_v43  ;;  %v5978_v59 = vshrl.u32 %v5805_v51, 16  ;;  %v5981_v46 = vshll.u32 %v5805_v51, 16  ;;  %15618 = vst [vmem:[#allocation61_spill] sm:$0xff] %v14213_v30  ;;  %v5976_v26 = vsel %vm11505_vm7, %v5967_v5, %v5975_v31  ;;  %v14220_v55 = vpop.f32.mrb[103].mxu1  ;;  %v15619_v31 = vld [vmem:[#allocation65_spill] sm:$0xff] }
 0x256   : > { %v9509_v39 = vcombine.low %v6114_v1, %v6117_v14  ;;  %v5987_v0 = vshrl.u32 %v14185_v19, 16  ;;  %v5990_v13 = vshll.u32 %v14185_v19, 16  ;;  %v9501_v8 = vcombine.low %v5966_v44, %v5976_v26  ;;  %v15620_v1 = vld [vmem:[#allocation15_spill] sm:$0xff]  ;;  %v14229_v14 = vpop.f32.mrb[101].mxu0 }
 0x257   : > { %v5980_v60 = vrot.slane %v5978_v59, 5  ;;  %v5983_v43 = vrot.slane %v5981_v46, 6  ;;  %v5997_v34 = vshrl.u32 %v5806_v47, 16  ;;  %v6000_v10 = vshll.u32 %v5806_v47, 16  ;;  %v14233_v26 = vpop.f32.mrb[102].mxu0 }
 0x258   : > { %7619 = vmatmul.mubr.bf16.gmra.mrb[164].mxu1 %v9509_v39  ;;  %v5989_v51 = vrot.slane %v5987_v0, 5  ;;  %v5992_v6 = vrot.slane %v5990_v13, 6  ;;  %v14227_v5 = vadd.f32 %v15620_v1, %v15619_v31  ;;  %7521 = vmatprep.mubr.bf16.mxu0 %v9501_v8  ;;  %v9494_v59 = vcombine.low %v14211_v61, %v14185_v19  ;;  %v14236_v31 = vpop.f32.mrb[103].mxu0 }
 0x259   : > { %v5984_v30 = vor.u32 %v5983_v43, %v5980_v60  ;;  %v5999_v44 = vrot.slane %v5997_v34, 5  ;;  %7626 = vmatprep.mubr.bf16.mxu1 %v11068_v35  ;;  %v9396_v46 = vrot.slane %v6045_v28, 11  ;;  %v6002_v39 = vrot.slane %v6000_v10, 6 }
 0x25a   : > { %7522 = vmatmul.mubr.bf16.gmra.mrb[164].mxu0 %v9493_v3  ;;  %v5993_v47 = vor.u32 %v5992_v6, %v5989_v51  ;;  %v6120_v0 = vrot.slane %v14185_v19, 7  ;;  %v6123_v13 = vrot.slane %v6046_v9, 7  ;;  %v2707_v35 = vadd.f32 %v13700_v36, %v13688_v21  ;;  %v5807_v3 = vld [vmem:[%s11465_s8 + $0x54] sm:$0xe]  ;;  %v14248_v9 = vld [vmem:[%s11465_s8 + $0x58] sm:$0xf] }
 0x25b   : > { %v5985_v8 = vrot.slane %v5984_v30, 4  ;;  %v2699_v61 = vadd.f32 %v13624_v63, %v13616_v49  ;;  %v2710_v28 = vadd.f32 %v13727_v27, %v13691_v23  ;;  %v6003_v43 = vor.u32 %v6002_v39, %v5999_v44  ;;  %v5808_v36 = vld [vmem:[%s11465_s8 + $0x5c] sm:$0x3]  ;;  %v15624_v51 = vld [vmem:[#allocation18_spill] sm:$0xff]  ;;  %v14270_v44 = vld [vmem:[%s11465_s8 + $0x54] sm:$0xf] }
 0x25c   : > { %v5995_v60 = vrot.slane %v5993_v47, 4  ;;  %v6121_v19 = vsel %vm13737_vm1, %v9396_v46, %v6120_v0  ;;  %v6122_v34 = vrot.slane %v6120_v0, 4  ;;  %v14253_v49 = vadd.f32 %v13570_v33, %v2707_v35  ;;  %v15625_v6 = vld [vmem:[#allocation20_spill] sm:$0xff]  ;;  %v6047_v39 = vld [vmem:[%s11465_s8 + $0x54] sm:$0x8]  ;;  %v15626_v0 = vld [vmem:[#allocation66_spill] sm:$0xff] }
 0x25d   : > { %v5994_v21 = vsel %vm11505_vm7, %v5985_v8, %v5993_v47  ;;  %v14256_v63 = vadd.f32 %v13580_v53, %v2699_v61  ;;  %v14259_v23 = vadd.f32 %v13584_v20, %v2710_v28  ;;  %v2702_v10 = vadd.f32 %v15625_v6, %v15624_v51  ;;  %v11076_v33 = vld [vmem:[%s11465_s8 + $0x78] sm:$0xff]  }
 0x25e   : > { %15621 = vst [vmem:[#allocation62_spill] sm:$0xff] %v14253_v49  ;;  %v6004_v27 = vsel %vm11505_vm7, %v5995_v60, %v6003_v43  ;;  %v6124_v30 = vsel %vm13737_vm1, %v6122_v34, %v6123_v13  ;;  %v6006_v1 = vshrl.u32 %v5807_v3, 16  ;;  %v6009_v47 = vshll.u32 %v5807_v3, 16  ;;  %v6048_v28 = vld [vmem:[%s11465_s8 + $0x5c] sm:$0x7]  ;;  %v14279_v60 = vpop.f32.mrb[104].mxu1 }
 0x25f   : > { %15622 = vst [vmem:[#allocation47_spill] sm:$0xff] %v14256_v63  ;;  %15623 = vst [vmem:[#allocation46_spill] sm:$0xff] %v14259_v23  ;;  %v9502_v53 = vcombine.low %v5994_v21, %v6004_v27  ;;  %v9510_v46 = vcombine.low %v6121_v19, %v6124_v30  ;;  %v6015_v20 = vshrl.u32 %v14248_v9, 16  ;;  %v14275_v8 = vadd.f32 %v15626_v0, %v2702_v10  ;;  %v14283_v19 = vpop.f32.mrb[105].mxu1  ;;  %v15680_v49 = vld [vmem:[#allocation70_spill] sm:$0xff] }
 0x260   : > { %v6008_v35 = vrot.slane %v6006_v1, 5  ;;  %v6018_v61 = vshll.u32 %v14248_v9, 16  ;;  %v6025_v13 = vshrl.u32 %v5808_v36, 16  ;;  %v6011_v43 = vrot.slane %v6009_v47, 6  ;;  %v14286_v10 = vpop.f32.mrb[106].mxu1  ;;  %v14290_v47 = vpop.f32.mrb[104].mxu0 }
 0x261   : > { %15627 = vst [vmem:[#allocation63_spill] sm:$0xff] %v14275_v8  ;;  %7529 = vmatprep.mubr.bf16.mxu0 %v9502_v53  ;;  %7627 = vmatmul.mubr.bf16.gmra.mrb[168].mxu1 %v9510_v46  ;;  %v6017_v34 = vrot.slane %v6015_v20, 5  ;;  %v6028_v21 = vshll.u32 %v5808_v36, 16  ;;  %v9495_v3 = vcombine.low %v14270_v44, %v14248_v9  ;;  %v9397_v51 = vrot.slane %v6047_v39, 11  ;;  %v14292_v44 = vpop.f32.mrb[107].mxu1  ;;  %v15629_v39 = vld [vmem:[#allocation35_spill] sm:$0xff] }
 0x262   : > { %7530 = vmatmul.mubr.bf16.gmra.mrb[168].mxu0 %v9494_v59  ;;  %v6020_v27 = vrot.slane %v6018_v61, 6  ;;  %v6027_v30 = vrot.slane %v6025_v13, 5  ;;  %7634 = vmatprep.mubr.bf16.mxu1 %v11076_v33  ;;  %v6127_v6 = vrot.slane %v14248_v9, 7  ;;  %v6012_v1 = vor.u32 %v6011_v43, %v6008_v35  ;;  %v15628_v9 = vld [vmem:[#allocation23_spill] sm:$0xff]  ;;  %v9414_v35 = vld [vmem:[%s11465_s8 + $0x24] sm:$0x8] }
 0x263   : > { %v6030_v53 = vrot.slane %v6028_v21, 6  ;;  %v6130_v46 = vrot.slane %v6048_v28, 7  ;;  %v2723_v36 = vadd.f32 %v13869_v22, %v13862_v4  ;;  %v2715_v0 = vadd.f32 %v15629_v39, %v15628_v9  ;;  %v14299_v61 = vpop.f32.mrb[105].mxu0  ;;  %v15630_v22 = vld [vmem:[#allocation12_spill] sm:$0xff] }
 0x264   : > { %v6021_v59 = vor.u32 %v6020_v27, %v6017_v34  ;;  %v6128_v33 = vsel %vm13737_vm1, %v9397_v51, %v6127_v6  ;;  %v6129_v20 = vrot.slane %v6127_v6, 4  ;;  %v6013_v13 = vrot.slane %v6012_v1, 4  ;;  %v14306_v34 = vpop.f32.mrb[106].mxu0  ;;  %v15632_v51 = vld [vmem:[#allocation19_spill] sm:$0xff]  ;;  %v15634_v1 = vld [vmem:[#allocation25_spill] sm:$0xff]  ;;  %v15635_v39 = vld [vmem:[#allocation48_spill] sm:$0xff] }
 0x265   : > { %v6031_v4 = vor.u32 %v6030_v53, %v6027_v30  ;;  %v14302_v28 = vadd.f32 %v15630_v22, %v2723_v36  ;;  %v2726_v43 = vadd.f32 %v13911_v12, %v13865_v7  ;;  %v14311_v6 = vadd.f32 %v15632_v51, %v2715_v0  ;;  %v14316_v53 = vld [vmem:[%s11465_s8 + $0x4c] sm:$0xf]  ;;  %v9448_v36 = vld [vmem:[%s11465_s8 + $0x48] sm:$0xe]  ;;  %v14319_v9 = vpop.f32.mrb[107].mxu0  ;;  %v15637_v51 = vld [vmem:[#allocation16_spill] sm:$0xff] }
 0x266   : > { %v6023_v21 = vrot.slane %v6021_v59, 4  ;;  %v6131_v27 = vsel %vm13737_vm1, %v6129_v20, %v6130_v46  ;;  %v2718_v30 = vadd.f32 %v13812_v32, %v15634_v1  ;;  %v6022_v7 = vsel %vm11505_vm7, %v6013_v13, %v6021_v59  ;;  %v9449_v20 = vld [vmem:[%s11465_s8 + $0x50] sm:$0x3]  ;;  %v11145_v1 = vld [vmem:[%s11465_s8 + $0x28] sm:$0xf] }
 0x267   : > { %15631 = vst [vmem:[#allocation64_spill] sm:$0xff] %v14302_v28  ;;  %15633 = vst [vmem:[#allocation65_spill] sm:$0xff] %v14311_v6  ;;  %v9511_v12 = vcombine.low %v6128_v33, %v6131_v27  ;;  %v14324_v22 = vadd.f32 %v15635_v39, %v2726_v43  ;;  %v9422_v46 = vrot.slane %v9414_v35, 11  ;;  %v6174_v6 = vrot.slane %v11145_v1, 7  ;;  %v11146_v28 = vld [vmem:[%s11465_s8 + $0x2c] sm:$0x7] }
 0x268   : > { %v6032_v0 = vsel %vm11505_vm7, %v6023_v21, %v6031_v4  ;;  %v14330_v32 = vadd.f32 %v15637_v51, %v2718_v30  ;;  %v6177_v8 = vrot.slane %v11146_v28, 7  ;;  %v6265_v59 = vshrl.u32 %v9448_v36, 16  ;;  %v14336_v43 = vld [vmem:[%s11465_s8 + $0x48] sm:$0xf] }
 0x269   : > { %15636 = vst [vmem:[#allocation15_spill] sm:$0xff] %v14324_v22  ;;  %v9503_v23 = vcombine.low %v6022_v7, %v6032_v0  ;;  %7635 = vmatmul.mubr.bf16.gmra.mrb[172].mxu1 %v9511_v12  ;;  %v6268_v13 = vshll.u32 %v9448_v36, 16  ;;  %v6274_v33 = vshrl.u32 %v14316_v53, 16  ;;  %v6175_v35 = vsel %vm13737_vm1, %v9422_v46, %v6174_v6  ;;  %v9415_v46 = vld [vmem:[%s11465_s8 + $0x30] sm:$0x8] }
 0x26a   : > { %15638 = vst [vmem:[#allocation18_spill] sm:$0xff] %v14330_v32  ;;  %v6176_v4 = vrot.slane %v6174_v6, 4  ;;  %v6277_v21 = vshll.u32 %v14316_v53, 16  ;;  %v6284_v27 = vshrl.u32 %v9449_v20, 16  ;;  %v6267_v30 = vrot.slane %v6265_v59, 5 }
 0x26b   : > { %7537 = vmatprep.mubr.bf16.mxu0 %v9503_v23  ;;  %v6270_v39 = vrot.slane %v6268_v13, 6  ;;  %v6276_v28 = vrot.slane %v6274_v33, 5  ;;  %v6287_v7 = vshll.u32 %v9449_v20, 16  ;;  %v9528_v51 = vcombine.low %v14336_v43, %v14316_v53  ;;  %v15639_v20 = vld [vmem:[#allocation52_spill] sm:$0xff]  ;;  %v15640_v13 = vld [vmem:[#allocation58_spill] sm:$0xff]  ;;  %v15641_v33 = vld [vmem:[#allocation41_spill] sm:$0xff] }
 0x26c   : > { %7538 = vmatmul.mubr.bf16.gmra.mrb[172].mxu0 %v9495_v3  ;;  %v6178_v36 = vsel %vm13737_vm1, %v6176_v4, %v6177_v8  ;;  %v6279_v12 = vrot.slane %v6277_v21, 6  ;;  %v6286_v0 = vrot.slane %v6284_v27, 5  ;;  %v2739_v23 = vadd.f32 %v14064_v18, %v14057_v2  ;;  %v15642_v4 = vld [vmem:[#allocation45_spill] sm:$0xff]  ;;  %v9450_v27 = vld [vmem:[%s11465_s8 + $0x54] sm:$0xe]  ;;  %v14355_v43 = vpop.f32.mrb[108].mxu1 }
 0x26d   : > { %v9520_v6 = vcombine.low %v6175_v35, %v6178_v36  ;;  %v6271_v1 = vor.u32 %v6270_v39, %v6267_v30  ;;  %v6289_v32 = vrot.slane %v6287_v7, 6  ;;  %v2731_v3 = vadd.f32 %v15639_v20, %v13970_v40  ;;  %15643 = vst [vmem:[#allocation20_spill] sm:$0xff] %v14355_v43  ;;  %v15644_v39 = vld [vmem:[#allocation21_spill] sm:$0xff]  ;;  %v14361_v40 = vld [vmem:[%s11465_s8 + $0x58] sm:$0xf]  ;;  %v15647_v7 = vld [vmem:[#allocation22_spill] sm:$0xff] }
 0x26e   : > { %v6280_v59 = vor.u32 %v6279_v12, %v6276_v28  ;;  %v2742_v8 = vadd.f32 %v14103_v29, %v15640_v13  ;;  %v2734_v21 = vadd.f32 %v15642_v4, %v15641_v33  ;;  %v14358_v2 = vadd.f32 %v15644_v39, %v2739_v23  ;;  %v14363_v28 = vpop.f32.mrb[109].mxu1  ;;  %v15649_v12 = vld [vmem:[#allocation24_spill] sm:$0xff]  ;;  %v11147_v23 = vld [vmem:[%s11465_s8 + $0x34] sm:$0xf]  ;;  %v15719_v43 = vld [vmem:[#allocation82_spill] sm:$0xff] }
 0x26f   : > { %7675 = vmatprep.mubr.bf16.mxu0 %v9520_v6  ;;  %v6272_v35 = vrot.slane %v6271_v1, 4  ;;  %v6290_v30 = vor.u32 %v6289_v32, %v6286_v0  ;;  %v9423_v18 = vrot.slane %v9415_v46, 11  ;;  %15646 = vst [vmem:[#allocation23_spill] sm:$0xff] %v14363_v28  ;;  %v14366_v36 = vadd.f32 %v15647_v7, %v2731_v3  ;;  %v15651_v6 = vld [vmem:[#allocation67_spill] sm:$0xff]  ;;  %v11087_v32 = vld [vmem:[%s15310_s1 + $0x688] sm:$0xff]   ;;  %v14377_v0 = vpop.f32.mrb[110].mxu1 }
 0x270   : > { %15645 = vst [vmem:[#allocation66_spill] sm:$0xff] %v14358_v2  ;;  %v6282_v29 = vrot.slane %v6280_v59, 4  ;;  %v14369_v20 = vadd.f32 %v15649_v12, %v2742_v8  ;;  %v14372_v1 = vadd.f32 %v15651_v6, %v2734_v21  ;;  %15653 = vst [vmem:[#allocation25_spill] sm:$0xff] %v14377_v0  ;;  %v6181_v13 = vrot.slane %v11147_v23, 7  ;;  %v11148_v3 = vld [vmem:[%s11465_s8 + $0x38] sm:$0x7] }
 0x271   : > { %15648 = vst [vmem:[#allocation35_spill] sm:$0xff] %v14366_v36  ;;  %v6281_v46 = vsel %vm11505_vm7, %v6272_v35, %v6280_v59  ;;  %v6184_v33 = vrot.slane %v11148_v3, 7  ;;  %v9451_v4 = vld [vmem:[%s11465_s8 + $0x5c] sm:$0x3]  ;;  %v6293_v8 = vshrl.u32 %v9450_v27, 16  ;;  %v14384_v39 = vpop.f32.mrb[111].mxu1 }
 0x272   : > { %15650 = vst [vmem:[#allocation12_spill] sm:$0xff] %v14369_v20  ;;  %15652 = vst [vmem:[#allocation19_spill] sm:$0xff] %v14372_v1  ;;  %v6291_v21 = vsel %vm11505_vm7, %v6282_v29, %v6290_v30  ;;  %v6296_v7 = vshll.u32 %v9450_v27, 16  ;;  %v6302_v12 = vshrl.u32 %v14361_v40, 16  ;;  %v6305_v6 = vshll.u32 %v14361_v40, 16  ;;  %v14393_v36 = vpop.f32.mrb[108].mxu0 }
 0x273   : > { %15654 = vst [vmem:[#allocation48_spill] sm:$0xff] %v14384_v39  ;;  %v14391_v1 = vld [vmem:[%s11465_s8 + $0x54] sm:$0xf]  ;;  %15655 = vst [vmem:[#allocation16_spill] sm:$0xff] %v14393_v36  ;;  %v9536_v59 = vcombine.low %v6281_v46, %v6291_v21  ;;  %v6182_v35 = vsel %vm13737_vm1, %v9423_v18, %v6181_v13  ;;  %v6183_v23 = vrot.slane %v6181_v13, 4  ;;  %v6295_v3 = vrot.slane %v6293_v8, 5 }
 0x274   : > { %v14397_v2 = vpop.f32.mrb[109].mxu0  ;;  %v15657_v20 = vld [vmem:[#allocation5_spill] sm:$0xff]  ;;  %v6298_v30 = vrot.slane %v6296_v7, 6  ;;  %v6304_v27 = vrot.slane %v6302_v12, 5  ;;  %v6307_v29 = vrot.slane %v6305_v6, 6  ;;  %v6312_v22 = vshrl.u32 %v9451_v4, 16 }
 0x275   : > { %15656 = vst [vmem:[#allocation52_spill] sm:$0xff] %v14397_v2  ;;  %7676 = vmatmul.mubr.bf16.vlgmr.msra.gmra.mrb[176].mxu0 %v15657_v20  ;;  %v14400_v63 = vpop.f32.mrb[110].mxu0  ;;  %7772 = vmatprep.mubr.bf16.mxu1 %v9536_v59  ;;  %v6185_v46 = vsel %vm13737_vm1, %v6183_v23, %v6184_v33  ;;  %v6315_v18 = vshll.u32 %v9451_v4, 16  ;;  %v9529_v13 = vcombine.low %v14391_v1, %v14361_v40  ;;  %v11089_v33 = vld [vmem:[%s15310_s1 + $0x690] sm:$0xff]   ;;  %v15660_v6 = vld [vmem:[#allocation26_spill] sm:$0xff]  ;;  %v15663_v23 = vld [vmem:[#allocation13_spill] sm:$0xff] }
 0x276   : > { %15658 = vst [vmem:[#allocation58_spill] sm:$0xff] %v14400_v63  ;;  %10731 = vmatpush3.bf16.msra.mxu0 %v14143_v17  ;;  %v2755_v20 = vadd.f32 %v14200_v57, %v14193_v48  ;;  %v14409_v8 = vpop.f32.mrb[111].mxu0  ;;  %7773 = vmatmul.mubr.bf16.vlgmr.msra.gmra.mrb[176].mxu1 %v9528_v51  ;;  %v9521_v21 = vcombine.low %v6182_v35, %v6185_v46  ;;  %v6314_v17 = vrot.slane %v6312_v22, 5  ;;  %v9416_v51 = vld [vmem:[%s11465_s8 + $0x3c] sm:$0x8]  ;;  %v15662_v35 = vld [vmem:[#allocation30_spill] sm:$0xff] }
 0x277   : > { %15659 = vst [vmem:[#allocation41_spill] sm:$0xff] %v14409_v8  ;;  %10732 = vmatprep.subr.bf16.mxu0 %v11087_v32  ;;  %v6299_v7 = vor.u32 %v6298_v30, %v6295_v3  ;;  %v6308_v12 = vor.u32 %v6307_v29, %v6304_v27  ;;  %v6317_v4 = vrot.slane %v6315_v18, 6  ;;  %v2747_v48 = vadd.f32 %v14131_v52, %v14150_v62  ;;  %v9452_v27 = vld [vmem:[%s11465_s8 + $0x60] sm:$0xe]  ;;  %v15664_v52 = vld [vmem:[#allocation27_spill] sm:$0xff]  ;;  %v15669_v18 = vld [vmem:[#allocation68_spill] sm:$0xff] }
 0x278   : > { %v14415_v1 = vadd.f32 %v15660_v6, %v2755_v20  ;;  %v2758_v57 = vadd.f32 %v14227_v5, %v14196_v11  ;;  %7683 = vmatprep.mubr.bf16.mxu0 %v9521_v21  ;;  %v14424_v3 = vadd.f32 %v15663_v23, %v15662_v35  ;;  %v2750_v30 = vadd.f32 %v14175_v15, %v14153_v38  ;;  %v15666_v11 = vld [vmem:[#allocation17_spill] sm:$0xff]  ;;  %v15671_v15 = vld [vmem:[#allocation28_spill] sm:$0xff]  ;;  %v9418_v0 = vld [vmem:[%s11465_s8 + $0x54] sm:$0x8] }
 0x279   : > { %v6300_v59 = vrot.slane %v6299_v7, 4  ;;  %v6310_v22 = vrot.slane %v6308_v12, 4  ;;  %v6318_v29 = vor.u32 %v6317_v4, %v6314_v17  ;;  %v14430_v62 = vadd.f32 %v15664_v52, %v2747_v48  ;;  %v15668_v46 = vld [vmem:[#allocation29_spill] sm:$0xff]  ;;  %v14440_v7 = vpop.f32.mrb[112].mxu1  ;;  %v9453_v48 = vld [vmem:[%s11465_s8 + $0x68] sm:$0x3] }
 0x27a   : > { %15661 = vst [vmem:[#allocation45_spill] sm:$0xff] %v14415_v1  ;;  %10733 = vmatpush3.bf16.msra.mxu0 %v11087_v32  ;;  %v14433_v5 = vadd.f32 %v15666_v11, %v2758_v57  ;;  %v10134_v20 = vadd.f32 %v15669_v18, %v15668_v46  ;;  %v14438_v21 = vld [vmem:[%s11465_s8 + $0x64] sm:$0xf]  ;;  %15670 = vst [vmem:[#allocation24_spill] sm:$0xff] %v14440_v7  ;;  %v14445_v32 = vadd.f32 %v15671_v15, %v2750_v30  ;;  %v11149_v4 = vld [vmem:[%s11465_s8 + $0x40] sm:$0xf] }
 0x27b   : > { %15665 = vst [vmem:[#allocation21_spill] sm:$0xff] %v14430_v62  ;;  %v6309_v38 = vsel %vm11505_vm7, %v6300_v59, %v6308_v12  ;;  %v9424_v17 = vrot.slane %v9416_v51, 11  ;;  %v6188_v6 = vrot.slane %v11149_v4, 7  ;;  %10734 = vmatprep.subr.bf16.mxu0 %v11089_v33  ;;  %v11091_v57 = vld [vmem:[%s15310_s1 + $0x698] sm:$0xff]   ;;  %v14452_v35 = vpop.f32.mrb[113].mxu1  ;;  %v6319_v23 = vsel %vm11505_vm7, %v6310_v22, %v6318_v29  ;;  %v15675_v46 = vld [vmem:[#allocation6_spill] sm:$0xff] }
 0x27c   : > { %15667 = vst [vmem:[#allocation22_spill] sm:$0xff] %v14433_v5  ;;  %15672 = vst [vmem:[#allocation67_spill] sm:$0xff] %v14445_v32  ;;  %v11150_v52 = vld [vmem:[%s11465_s8 + $0x44] sm:$0x7]  ;;  %v6321_v12 = vshrl.u32 %v9452_v27, 16  ;;  %v6324_v59 = vshll.u32 %v9452_v27, 16  ;;  %v9537_v18 = vcombine.low %v6309_v38, %v6319_v23 }
 0x27d   : > { %15673 = vst [vmem:[#allocation5_spill] sm:$0xff] %v14452_v35  ;;  %v6191_v11 = vrot.slane %v11150_v52, 7  ;;  %v14458_v30 = vld [vmem:[%s11465_s8 + $0x60] sm:$0xf]  ;;  %v14460_v51 = vpop.f32.mrb[114].mxu1  ;;  %7684 = vmatmul.mubr.bf16.gmra.mrb[180].mxu0 %v15675_v46  ;;  %v6189_v15 = vsel %vm13737_vm1, %v9424_v17, %v6188_v6  ;;  %v6190_v4 = vrot.slane %v6188_v6, 4 }
 0x27e   : > { %15674 = vst [vmem:[#allocation26_spill] sm:$0xff] %v14460_v51  ;;  %v6330_v5 = vshrl.u32 %v14438_v21, 16  ;;  %v14466_v1 = vpop.f32.mrb[115].mxu1  ;;  %v6323_v22 = vrot.slane %v6321_v12, 5  ;;  %v6326_v29 = vrot.slane %v6324_v59, 6  ;;  %v6333_v27 = vshll.u32 %v14438_v21, 16  ;;  %10735 = vmatpush3.bf16.msra.mxu0 %v11089_v33  ;;  %7780 = vmatprep.mubr.bf16.mxu1 %v9537_v18 }
 0x27f   : > { %15676 = vst [vmem:[#allocation30_spill] sm:$0xff] %v14466_v1  ;;  %v6340_v52 = vshrl.u32 %v9453_v48, 16  ;;  %v6192_v46 = vsel %vm13737_vm1, %v6190_v4, %v6191_v11  ;;  %v6343_v23 = vshll.u32 %v9453_v48, 16  ;;  %v9417_v6 = vld [vmem:[%s11465_s8 + $0x48] sm:$0x8]  ;;  %10736 = vmatprep.subr.bf16.mxu0 %v11091_v57  ;;  %v11093_v12 = vld [vmem:[%s15310_s1 + $0x6a0] sm:$0xff]   ;;  %7781 = vmatmul.mubr.bf16.gmra.mrb[180].mxu1 %v9529_v13 }
 0x280   : > { %v6332_v38 = vrot.slane %v6330_v5, 5  ;;  %v9522_v59 = vcombine.low %v6189_v15, %v6192_v46  ;;  %v6327_v33 = vor.u32 %v6326_v29, %v6323_v22  ;;  %v6335_v18 = vrot.slane %v6333_v27, 6  ;;  %v15677_v11 = vld [vmem:[#allocation69_spill] sm:$0xff]  ;;  %v15678_v4 = vld [vmem:[#allocation32_spill] sm:$0xff]  ;;  %v15679_v48 = vld [vmem:[#allocation31_spill] sm:$0xff]  ;;  %v14486_v13 = vpop.f32.mrb[112].mxu0 }
 0x281   : > { %v6342_v62 = vrot.slane %v6340_v52, 5  ;;  %v6345_v32 = vrot.slane %v6343_v23, 6  ;;  %v10195_v5 = vadd.f32 %v15678_v4, %v15677_v11  ;;  %v14481_v17 = vadd.f32 %v15680_v49, %v15679_v48  ;;  %v15681_v1 = vld [vmem:[#allocation36_spill] sm:$0xff]  ;;  %v15682_v51 = vld [vmem:[#allocation38_spill] sm:$0xff]  ;;  %15683 = vst [vmem:[#allocation13_spill] sm:$0xff] %v14486_v13  ;;  %v15684_v29 = vld [vmem:[#allocation37_spill] sm:$0xff] }
 0x282   : > { %v10198_v35 = vadd.f32 %v15682_v51, %v15681_v1  ;;  %v9454_v7 = vld [vmem:[%s11465_s8 + $0x6c] sm:$0xe]  ;;  %7691 = vmatprep.mubr.bf16.mxu0 %v9522_v59  ;;  %v6328_v15 = vrot.slane %v6327_v33, 4  ;;  %v6336_v22 = vor.u32 %v6335_v18, %v6332_v38  ;;  %v15685_v27 = vld [vmem:[#allocation71_spill] sm:$0xff]  ;;  %v9425_v46 = vrot.slane %v9417_v6, 11  ;;  %10737 = vmatpush3.bf16.msra.mxu0 %v11091_v57  ;;  %v14495_v49 = vpop.f32.mrb[113].mxu0 }
 0x283   : > { %v14490_v52 = vadd.f32 %v15685_v27, %v15684_v29  ;;  %v14493_v23 = vld [vmem:[%s11465_s8 + $0x70] sm:$0xf]  ;;  %15687 = vst [vmem:[#allocation17_spill] sm:$0xff] %v14495_v49  ;;  %v6346_v11 = vor.u32 %v6345_v32, %v6342_v62  ;;  %v14498_v1 = vadd.f32 %v10195_v5, %v14424_v3  ;;  %v11151_v59 = vld [vmem:[%s11465_s8 + $0x4c] sm:$0xf]  ;;  %10738 = vmatprep.subr.bf16.mxu0 %v11093_v12  ;;  %v14507_v6 = vpop.f32.mrb[114].mxu0 }
 0x284   : > { %15686 = vst [vmem:[#allocation27_spill] sm:$0xff] %v14493_v23  ;;  %v14500_v51 = vadd.f32 %v10198_v35, %v10134_v20  ;;  %v6195_v33 = vrot.slane %v11151_v59, 7  ;;  %v9455_v38 = vld [vmem:[%s11465_s8 + $0x74] sm:$0x3]  ;;  %v11096_v18 = vld [vmem:[%s15310_s1 + $0x6a8] sm:$0xff]   ;;  %15688 = vst [vmem:[#allocation29_spill] sm:$0xff] %v14507_v6  ;;  %v6337_v57 = vsel %vm11505_vm7, %v6328_v15, %v6336_v22 }
 0x285   : > { %v6338_v62 = vrot.slane %v6336_v22, 4  ;;  %v11152_v32 = vld [vmem:[%s11465_s8 + $0x50] sm:$0x7]  ;;  %v6349_v4 = vshrl.u32 %v9454_v7, 16  ;;  %v14512_v20 = vpop.f32.mrb[115].mxu0  ;;  %v6352_v29 = vshll.u32 %v9454_v7, 16 }
 0x286   : > { %v6198_v3 = vrot.slane %v11152_v32, 7  ;;  %15689 = vst [vmem:[#allocation68_spill] sm:$0xff] %v14512_v20  ;;  %v15690_v35 = vld [vmem:[#allocation7_spill] sm:$0xff]  ;;  %v6196_v5 = vsel %vm13737_vm1, %v9425_v46, %v6195_v33  ;;  %v6197_v48 = vrot.slane %v6195_v33, 4  ;;  %v6358_v27 = vshrl.u32 %v14493_v23, 16  ;;  %10739 = vmatpush3.bf16.msra.mxu0 %v11093_v12  ;;  %v15717_v28 = vld [vmem:[#allocation40_spill] sm:$0xff] }
 0x287   : > { %7692 = vmatmul.mubr.bf16.gmra.mrb[184].mxu0 %v15690_v35  ;;  %v6347_v59 = vsel %vm11505_vm7, %v6338_v62, %v6346_v11  ;;  %v6351_v15 = vrot.slane %v6349_v4, 5  ;;  %v6361_v22 = vshll.u32 %v14493_v23, 16  ;;  %v6368_v32 = vshrl.u32 %v9455_v38, 16  ;;  %v14522_v6 = vld [vmem:[%s11465_s8 + $0x6c] sm:$0xf]  ;;  %10740 = vmatprep.subr.bf16.mxu0 %v11096_v18  ;;  %v11099_v11 = vld [vmem:[%s15310_s1 + $0x6b0] sm:$0xff]  }
 0x288   : > { %v9538_v20 = vcombine.low %v6337_v57, %v6347_v59  ;;  %v6199_v35 = vsel %vm13737_vm1, %v6197_v48, %v6198_v3  ;;  %v6354_v46 = vrot.slane %v6352_v29, 6  ;;  %v6360_v33 = vrot.slane %v6358_v27, 5  ;;  %v15691_v57 = vld [vmem:[#allocation72_spill] sm:$0xff]  ;;  %v15692_v3 = vld [vmem:[#allocation74_spill] sm:$0xff]  ;;  %v15693_v48 = vld [vmem:[#allocation73_spill] sm:$0xff] }
 0x289   : > { %v9523_v7 = vcombine.low %v6196_v5, %v6199_v35  ;;  %v6363_v49 = vrot.slane %v6361_v22, 6  ;;  %v6370_v13 = vrot.slane %v6368_v32, 5  ;;  %v6371_v39 = vshll.u32 %v9455_v38, 16  ;;  %v15694_v5 = vld [vmem:[#allocation75_spill] sm:$0xff]  ;;  %v14538_v38 = vpop.f32.mrb[116].mxu1  ;;  %v15698_v22 = vld [vmem:[#allocation49_spill] sm:$0xff] }
 0x28a   : > { %7788 = vmatprep.mubr.bf16.mxu1 %v9538_v20  ;;  %v6355_v62 = vor.u32 %v6354_v46, %v6351_v15  ;;  %v9531_v12 = vcombine.low %v14522_v6, %v14493_v23  ;;  %v14534_v4 = vadd.f32 %v15692_v3, %v15691_v57  ;;  %v10201_v29 = vadd.f32 %v15694_v5, %v15693_v48  ;;  %v15697_v15 = vld [vmem:[#allocation76_spill] sm:$0xff]  ;;  %v15699_v32 = vld [vmem:[#allocation39_spill] sm:$0xff]  ;;  %v15700_v35 = vld [vmem:[#allocation77_spill] sm:$0xff]  ;;  %v14552_v3 = vpop.f32.mrb[117].mxu1 }
 0x28b   : > { %15695 = vst [vmem:[#allocation28_spill] sm:$0xff] %v14538_v38  ;;  %v15696_v27 = vcombine.low %v14458_v30, %v14438_v21  ;;  %7699 = vmatprep.mubr.bf16.mxu0 %v9523_v7  ;;  %v6364_v20 = vor.u32 %v6363_v49, %v6360_v33  ;;  %v6373_v59 = vrot.slane %v6371_v39, 6  ;;  %v14545_v6 = vadd.f32 %v15698_v22, %v15697_v15  ;;  %v11094_v57 = vld [vmem:[%s15311_s2] sm:$0xff]   ;;  %v11153_v49 = vld [vmem:[%s11465_s8 + $0x58] sm:$0xf]  ;;  %v14559_v5 = vpop.f32.mrb[118].mxu1 }
 0x28c   : > { %v10204_v46 = vadd.f32 %v15700_v35, %v15699_v32  ;;  %15701 = vst [vmem:[#allocation6_spill] sm:$0xff] %v14552_v3  ;;  %v6356_v30 = vrot.slane %v6355_v62, 4  ;;  %v14555_v7 = vadd.f32 %v10201_v29, %v14481_v17  ;;  %v9426_v39 = vrot.slane %v9418_v0, 11  ;;  %v9456_v48 = vld [vmem:[%s11465_s8 + $0x78] sm:$0xe]  ;;  %10741 = vmatpush3.bf16.msra.mxu0 %v11096_v18  ;;  %15702 = vst [vmem:[#allocation69_spill] sm:$0xff] %v14559_v5 }
 0x28d   : > { %7789 = vmatmul.mubr.bf16.gmra.mrb[184].mxu1 %v15696_v27  ;;  %v6202_v33 = vrot.slane %v11153_v49, 7  ;;  %v6366_v27 = vrot.slane %v6364_v20, 4  ;;  %v6374_v15 = vor.u32 %v6373_v59, %v6370_v13  ;;  %v11154_v32 = vld [vmem:[%s11465_s8 + $0x5c] sm:$0x7]  ;;  %10742 = vmatprep.subr.bf16.mxu0 %v11099_v11  ;;  %v14571_v17 = vpop.f32.mrb[119].mxu1  ;;  %v15706_v29 = vld [vmem:[#allocation78_spill] sm:$0xff] }
 0x28e   : > { %v14562_v22 = vadd.f32 %v10204_v46, %v14490_v52  ;;  %v6205_v35 = vrot.slane %v11154_v32, 7  ;;  %v14566_v3 = vld [vmem:[%s11465_s8 + $0x7c] sm:$0xf]  ;;  %15704 = vst [vmem:[#allocation31_spill] sm:$0xff] %v14571_v17  ;;  %v6365_v13 = vsel %vm11505_vm7, %v6356_v30, %v6364_v20  ;;  %v15707_v59 = vld [vmem:[#allocation50_spill] sm:$0xff]  ;;  %v6377_v5 = vshrl.u32 %v9456_v48, 16 }
 0x28f   : > { %15703 = vst [vmem:[#allocation32_spill] sm:$0xff] %v14566_v3  ;;  %v11102_v0 = vld [vmem:[%s15310_s1 + $0x6b8] sm:$0xff]   ;;  %v6203_v52 = vsel %vm13737_vm1, %v9426_v39, %v6202_v33  ;;  %v6204_v62 = vrot.slane %v6202_v33, 4  ;;  %v14580_v46 = vadd.f32 %v15707_v59, %v15706_v29  ;;  %v9457_v49 = vld [vmem:[%s11465_s8 + $0x80] sm:$0x3]  ;;  %v6375_v32 = vsel %vm11505_vm7, %v6366_v27, %v6374_v15 }
 0x290   : > { %v15705_v18 = vld [vmem:[#allocation8_spill] sm:$0xff]  ;;  %v6380_v17 = vshll.u32 %v9456_v48, 16  ;;  %v9539_v38 = vcombine.low %v6365_v13, %v6375_v32  ;;  %v15333_v8 = vmov 0.0   ;;  %v6386_v20 = vshrl.u32 %v14566_v3, 16  ;;  %10743 = vmatpush3.bf16.msra.mxu0 %v11099_v11  ;;  %v11097_v48 = vld [vmem:[%s15311_s2 + $0x8] sm:$0xff]   ;;  %v15709_v32 = vld [vmem:[#allocation79_spill] sm:$0xff] }
 0x291   : > { %7700 = vmatmul.mubr.bf16.gmra.mrb[188].mxu0 %v15705_v18  ;;  %v6206_v18 = vsel %vm13737_vm1, %v6204_v62, %v6205_v35  ;;  %10762 = vmatprep.subr.bf16.mxu1 %v15333_v8  ;;  %v6389_v30 = vshll.u32 %v14566_v3, 16  ;;  %v14591_v39 = vld [vmem:[%s11465_s8 + $0x78] sm:$0xf]  ;;  %v6379_v29 = vrot.slane %v6377_v5, 5  ;;  %v6396_v15 = vshrl.u32 %v9457_v49, 16  ;;  %v14596_v35 = vpop.f32.mrb[116].mxu0 }
 0x292   : > { %v9524_v33 = vcombine.low %v6203_v52, %v6206_v18  ;;  %v6382_v27 = vrot.slane %v6380_v17, 6  ;;  %10763 = vmatpush3.bf16.msra.mxu1 %v11094_v57  ;;  %10744 = vmatprep.subr.bf16.mxu0 %v11102_v0  ;;  %15708 = vst [vmem:[#allocation70_spill] sm:$0xff] %v14596_v35  ;;  %v6388_v13 = vrot.slane %v6386_v20, 5  ;;  %v6399_v59 = vshll.u32 %v9457_v49, 16  ;;  %v15710_v8 = vld [vmem:[#allocation34_spill] sm:$0xff]  ;;  %v14604_v17 = vpop.f32.mrb[117].mxu0 }
 0x293   : > { %7796 = vmatprep.mubr.bf16.mxu1 %v9539_v38  ;;  %v6391_v62 = vrot.slane %v6389_v30, 6  ;;  %v14600_v63 = vadd.f32 %v15710_v8, %v15709_v32  ;;  %v9419_v11 = vld [vmem:[%s11465_s8 + $0x60] sm:$0x8]  ;;  %v15711_v5 = vmov 0.0   ;;  %15712 = vst [vmem:[#allocation36_spill] sm:$0xff] %v14604_v17  ;;  %v6398_v52 = vrot.slane %v6396_v15, 5 }
 0x294   : > { %10764 = vmatprep.subr.bf16.mxu1 %v15711_v5  ;;  %7707 = vmatprep.mubr.bf16.mxu0 %v9524_v33  ;;  %v6383_v57 = vor.u32 %v6382_v27, %v6379_v29  ;;  %v9532_v38 = vcombine.low %v14591_v39, %v14566_v3  ;;  %v15713_v18 = vld [vmem:[#allocation33_spill] sm:$0xff]  ;;  %v15714_v49 = vld [vmem:[#allocation43_spill] sm:$0xff]  ;;  %v14612_v8 = vpop.f32.mrb[118].mxu0  ;;  %v6401_v32 = vrot.slane %v6399_v59, 6  ;;  %v15716_v35 = vld [vmem:[#allocation80_spill] sm:$0xff] }
 0x295   : > { %7797 = vmatmul.mubr.bf16.gmra.mrb[188].mxu1 %v9531_v12  ;;  %v14610_v20 = vadd.f32 %v15714_v49, %v15713_v18  ;;  %15715 = vst [vmem:[#allocation38_spill] sm:$0xff] %v14612_v8  ;;  %v6392_v30 = vor.u32 %v6391_v62, %v6388_v13  ;;  %v10207_v17 = vadd.f32 %v15717_v28, %v15716_v35  ;;  %v15718_v12 = vld [vmem:[#allocation42_spill] sm:$0xff]  ;;  %v14620_v29 = vpop.f32.mrb[119].mxu0  ;;  %v15721_v27 = vld [vmem:[#allocation81_spill] sm:$0xff]  ;;  %v15722_v15 = vld [vmem:[#allocation51_spill] sm:$0xff]  ;;  %v9427_v49 = vrot.slane %v9419_v11, 11 }
 0x296   : > { %v14618_v33 = vadd.f32 %v15719_v43, %v15718_v12  ;;  %10745 = vmatpush3.bf16.msra.mxu0 %v11102_v0  ;;  %15720 = vst [vmem:[#allocation37_spill] sm:$0xff] %v14620_v29  ;;  %v6384_v39 = vrot.slane %v6383_v57, 4  ;;  %v10210_v18 = vadd.f32 %v15722_v15, %v15721_v27  ;;  %v11155_v8 = vld [vmem:[%s11465_s8 + $0x64] sm:$0xf]  ;;  %10765 = vmatpush3.bf16.msra.mxu1 %v11097_v48  ;;  %v11100_v28 = vld [vmem:[%s15311_s2 + $0x10] sm:$0xff]   ;;  %v15732_v36 = vld [vmem:[#allocation88_spill] sm:$0xff] }
 0x297   : > { %v6209_v13 = vrot.slane %v11155_v8, 7  ;;  %v9458_v62 = vld [vmem:[%s11465_s8 + $0x84] sm:$0xe]  ;;  %v6394_v0 = vrot.slane %v6392_v30, 4  ;;  %v6402_v35 = vor.u32 %v6401_v32, %v6398_v52  ;;  %v14631_v59 = vadd.f32 %v10207_v17, %v14534_v4  ;;  %v11156_v57 = vld [vmem:[%s11465_s8 + $0x68] sm:$0x7]  ;;  %10766 = vmatprep.subr.bf16.mxu1 %v15711_v5 }
 0x298   : > { %v15723_v43 = vld [vmem:[#allocation9_spill] sm:$0xff]  ;;  %v6212_v12 = vrot.slane %v11156_v57, 7  ;;  %v14635_v11 = vld [vmem:[%s11465_s8 + $0x88] sm:$0xf]  ;;  %v6393_v48 = vsel %vm11505_vm7, %v6384_v39, %v6392_v30  ;;  %v14641_v8 = vadd.f32 %v10210_v18, %v14545_v6  ;;  %v9459_v32 = vld [vmem:[%s11465_s8 + $0x8c] sm:$0x3] }
 0x299   : > { %7708 = vmatmul.mubr.bf16.gmra.mrb[192].mxu0 %v15723_v43  ;;  %15724 = vst [vmem:[#allocation71_spill] sm:$0xff] %v14635_v11  ;;  %v6210_v27 = vsel %vm13737_vm1, %v9427_v49, %v6209_v13  ;;  %v6211_v52 = vrot.slane %v6209_v13, 4  ;;  %v6403_v4 = vsel %vm11505_vm7, %v6394_v0, %v6402_v35  ;;  %v15725_v17 = vld [vmem:[#allocation83_spill] sm:$0xff]  ;;  %v15726_v15 = vld [vmem:[#allocation53_spill] sm:$0xff]  ;;  %v6405_v57 = vshrl.u32 %v9458_v62, 16  ;;  %v11103_v49 = vld [vmem:[%s15311_s2 + $0x18] sm:$0xff]  }
 0x29a   : > { %v14650_v43 = vadd.f32 %v15726_v15, %v15725_v17  ;;  %v6408_v29 = vshll.u32 %v9458_v62, 16  ;;  %v9540_v3 = vcombine.low %v6393_v48, %v6403_v4  ;;  %v6414_v6 = vshrl.u32 %v14635_v11, 16  ;;  %v14657_v18 = vld [vmem:[%s11465_s8 + $0x84] sm:$0xf]  ;;  %10767 = vmatpush3.bf16.msra.mxu1 %v11100_v28  ;;  %v15727_v4 = vld [vmem:[#allocation84_spill] sm:$0xff] }
 0x29b   : > { %v6213_v30 = vsel %vm13737_vm1, %v6211_v52, %v6212_v12  ;;  %v6417_v39 = vshll.u32 %v14635_v11, 16  ;;  %v6407_v0 = vrot.slane %v6405_v57, 5  ;;  %v6424_v62 = vshrl.u32 %v9459_v32, 16  ;;  %10768 = vmatprep.subr.bf16.mxu1 %v15711_v5  ;;  %v15728_v17 = vld [vmem:[#allocation44_spill] sm:$0xff]  ;;  %v9420_v2 = vld [vmem:[%s11465_s8 + $0x6c] sm:$0x8] }
 0x29c   : > { %v9525_v13 = vcombine.low %v6210_v27, %v6213_v30  ;;  %v6410_v35 = vrot.slane %v6408_v29, 6  ;;  %7804 = vmatprep.mubr.bf16.mxu1 %v9540_v3  ;;  %v6416_v12 = vrot.slane %v6414_v6, 5  ;;  %v6427_v52 = vshll.u32 %v9459_v32, 16  ;;  %v15729_v57 = vld [vmem:[#allocation85_spill] sm:$0xff]  ;;  %v15730_v30 = vld [vmem:[#allocation87_spill] sm:$0xff] }
 0x29d   : > { %v6419_v48 = vrot.slane %v6417_v39, 6  ;;  %v14665_v15 = vadd.f32 %v15728_v17, %v15727_v4  ;;  %7805 = vmatmul.mubr.bf16.gmra.mrb[192].mxu1 %v9532_v38  ;;  %v6426_v27 = vrot.slane %v6424_v62, 5  ;;  %v9533_v29 = vcombine.low %v14657_v18, %v14635_v11  ;;  %v15731_v39 = vld [vmem:[#allocation86_spill] sm:$0xff]  ;;  %v15733_v17 = vld [vmem:[#allocation89_spill] sm:$0xff]  ;;  %v15734_v38 = vld [vmem:[#allocation91_spill] sm:$0xff] }
 0x29e   : > { %7715 = vmatprep.mubr.bf16.mxu0 %v9525_v13  ;;  %v6411_v28 = vor.u32 %v6410_v35, %v6407_v0  ;;  %v14672_v3 = vadd.f32 %v15730_v30, %v15729_v57  ;;  %v6429_v32 = vrot.slane %v6427_v52, 6  ;;  %v10213_v4 = vadd.f32 %v15732_v36, %v15731_v39  ;;  %10769 = vmatpush3.bf16.msra.mxu1 %v11103_v49  ;;  %v11105_v18 = vld [vmem:[%s15311_s2 + $0x20] sm:$0xff]   ;;  %v15735_v13 = vld [vmem:[#allocation10_spill] sm:$0xff]  ;;  %v15737_v62 = vld [vmem:[#allocation92_spill] sm:$0xff] }
 0x29f   : > { %v6420_v6 = vor.u32 %v6419_v48, %v6416_v12  ;;  %v14678_v23 = vadd.f32 %v15734_v38, %v15733_v17  ;;  %v15736_v35 = vld [vmem:[#allocation90_spill] sm:$0xff]  ;;  %v9428_v48 = vrot.slane %v9420_v2, 11  ;;  %v11157_v52 = vld [vmem:[%s11465_s8 + $0x70] sm:$0xf]  ;;  %10770 = vmatprep.subr.bf16.mxu1 %v15711_v5  ;;  %v11158_v17 = vld [vmem:[%s11465_s8 + $0x74] sm:$0x7] }
 0x2a0   : > { %v6412_v0 = vrot.slane %v6411_v28, 4  ;;  %v10216_v12 = vadd.f32 %v15737_v62, %v15736_v35  ;;  %v6216_v36 = vrot.slane %v11157_v52, 7  ;;  %v9460_v57 = vld [vmem:[%s11465_s8 + $0x90] sm:$0xe]  ;;  %v6430_v39 = vor.u32 %v6429_v32, %v6426_v27  ;;  %v9461_v52 = vld [vmem:[%s11465_s8 + $0x98] sm:$0x3] }
 0x2a1   : > { %7716 = vmatmul.mubr.bf16.gmra.mrb[196].mxu0 %v15735_v13  ;;  %v6422_v30 = vrot.slane %v6420_v6, 4  ;;  %v14690_v49 = vadd.f32 %v10213_v4, %v14580_v46  ;;  %v6219_v38 = vrot.slane %v11158_v17, 7  ;;  %v14694_v13 = vld [vmem:[%s11465_s8 + $0x94] sm:$0xf]  ;;  %v15740_v27 = vld [vmem:[#allocation56_spill] sm:$0xff]  ;;  %v15741_v32 = vld [vmem:[#allocation57_spill] sm:$0xff] }
 0x2a2   : > { %v6421_v28 = vsel %vm11505_vm7, %v6412_v0, %v6420_v6  ;;  %v14699_v2 = vadd.f32 %v10216_v12, %v14600_v63  ;;  %v6217_v35 = vsel %vm13737_vm1, %v9428_v48, %v6216_v36  ;;  %v6218_v62 = vrot.slane %v6216_v36, 4  ;;  %10771 = vmatpush3.bf16.msra.mxu1 %v11105_v18  ;;  %v14715_v12 = vld [vmem:[%s11465_s8 + $0x90] sm:$0xf]  ;;  %v11106_v48 = vld [vmem:[%s15311_s2 + $0x28] sm:$0xff]  }
 0x2a3   : > { %15738 = vst [vmem:[#allocation7_spill] sm:$0xff] %v14690_v49  ;;  %v6431_v46 = vsel %vm11505_vm7, %v6422_v30, %v6430_v39  ;;  %v14708_v4 = vadd.f32 %v15741_v32, %v15740_v27  ;;  %v6433_v17 = vshrl.u32 %v9460_v57, 16  ;;  %v6436_v11 = vshll.u32 %v9460_v57, 16  ;;  %10772 = vmatprep.subr.bf16.mxu1 %v15711_v5  ;;  %v9421_v32 = vld [vmem:[%s11465_s8 + $0x78] sm:$0x8] }
 0x2a4   : > { %15739 = vst [vmem:[#allocation72_spill] sm:$0xff] %v14699_v2  ;;  %v9541_v49 = vcombine.low %v6421_v28, %v6431_v46  ;;  %v6220_v63 = vsel %vm13737_vm1, %v6218_v62, %v6219_v38  ;;  %v6442_v6 = vshrl.u32 %v14694_v13, 16  ;;  %v6445_v0 = vshll.u32 %v14694_v13, 16  ;;  %v15743_v62 = vld [vmem:[#allocation54_spill] sm:$0xff]  ;;  %v15744_v46 = vld [vmem:[#allocation55_spill] sm:$0xff] }
 0x2a5   : > { %15742 = vst [vmem:[#allocation74_spill] sm:$0xff] %v14708_v4  ;;  %v9526_v36 = vcombine.low %v6217_v35, %v6220_v63  ;;  %v6435_v57 = vrot.slane %v6433_v17, 5  ;;  %v6438_v18 = vrot.slane %v6436_v11, 6  ;;  %v6452_v30 = vshrl.u32 %v9461_v52, 16 }
 0x2a6   : > { %7812 = vmatprep.mubr.bf16.mxu1 %v9541_v49  ;;  %v6444_v39 = vrot.slane %v6442_v6, 5  ;;  %v6447_v28 = vrot.slane %v6445_v0, 6  ;;  %v6455_v38 = vshll.u32 %v9461_v52, 16  ;;  %v14723_v27 = vadd.f32 %v15744_v46, %v15743_v62  ;;  %v15745_v49 = vld [vmem:[#allocation11_spill] sm:$0xff]  ;;  %10773 = vmatpush3.bf16.msra.mxu1 %v11106_v48  ;;  %v9463_v62 = vld [vmem:[%s11465_s8 + $0xa4] sm:$0x3] }
 0x2a7   : > { %7813 = vmatmul.mubr.bf16.gmra.mrb[196].mxu1 %v9533_v29  ;;  %7723 = vmatprep.mubr.bf16.mxu0 %v9526_v36  ;;  %v6439_v2 = vor.u32 %v6438_v18, %v6435_v57  ;;  %v6454_v4 = vrot.slane %v6452_v30, 5  ;;  %v9534_v35 = vcombine.low %v14715_v12, %v14694_v13  ;;  %v10219_v11 = vadd.f32 %v14145_v42, %v14136_v54  ;;  %v11107_v6 = vld [vmem:[%s15311_s2 + $0x30] sm:$0xff]   ;;  %v15747_v12 = vld [vmem:[#allocation60_spill] sm:$0xff] }
 0x2a8   : > { %v6448_v52 = vor.u32 %v6447_v28, %v6444_v39  ;;  %v6457_v17 = vrot.slane %v6455_v38, 6  ;;  %v10259_v63 = vadd.f32 %v14105_v25, %v14098_v50  ;;  %v10222_v29 = vadd.f32 %v14168_v45, %v14159_v41  ;;  %v15746_v42 = vld [vmem:[#allocation59_spill] sm:$0xff]  ;;  %v14744_v50 = vld [vmem:[%s11465_s8 + $0xa0] sm:$0xf]  ;;  %v9462_v25 = vld [vmem:[%s11465_s8 + $0x9c] sm:$0xe]  ;;  %10774 = vmatprep.subr.bf16.mxu1 %v15711_v5 }
 0x2a9   : > { %7724 = vmatmul.mubr.bf16.gmra.mrb[200].mxu0 %v15745_v49  ;;  %v6440_v0 = vrot.slane %v6439_v2, 4  ;;  %v14739_v54 = vadd.f32 %v10219_v11, %v14610_v20  ;;  %v10262_v36 = vadd.f32 %v15747_v12, %v15746_v42  ;;  %v9429_v57 = vrot.slane %v9421_v32, 11  ;;  %v11159_v30 = vld [vmem:[%s11465_s8 + $0x7c] sm:$0xf]  ;;  %v11160_v28 = vld [vmem:[%s11465_s8 + $0x80] sm:$0x7] }
 0x2aa   : > { %v6450_v41 = vrot.slane %v6448_v52, 4  ;;  %v6458_v45 = vor.u32 %v6457_v17, %v6454_v4  ;;  %v14749_v48 = vadd.f32 %v10259_v63, %v14498_v1  ;;  %v14752_v2 = vadd.f32 %v10222_v29, %v14618_v33  ;;  %v14766_v33 = vld [vmem:[%s11465_s8 + $0x9c] sm:$0xf]  ;;  %10775 = vmatpush3.bf16.msra.mxu1 %v11107_v6 }
 0x2ab   : > { %v6449_v20 = vsel %vm11505_vm7, %v6440_v0, %v6448_v52  ;;  %v14757_v18 = vadd.f32 %v10262_v36, %v14500_v51  ;;  %v6223_v39 = vrot.slane %v11159_v30, 7  ;;  %v6226_v38 = vrot.slane %v11160_v28, 7  ;;  %10776 = vmatprep.subr.bf16.mxu1 %v15711_v5  ;;  %v11108_v17 = vld [vmem:[%s15311_s2 + $0x38] sm:$0xff]  }
 0x2ac   : > { %v6459_v4 = vsel %vm11505_vm7, %v6450_v41, %v6458_v45  ;;  %v6461_v46 = vshrl.u32 %v9462_v25, 16  ;;  %v6464_v1 = vshll.u32 %v9462_v25, 16  ;;  %v6470_v32 = vshrl.u32 %v14744_v50, 16  ;;  %v9464_v25 = vld [vmem:[%s11465_s8 + $0x48] sm:$0x8] }
 0x2ad   : > { %v9542_v11 = vcombine.low %v6449_v20, %v6459_v4  ;;  %v6224_v51 = vsel %vm13737_vm1, %v9429_v57, %v6223_v39  ;;  %v6225_v49 = vrot.slane %v6223_v39, 4  ;;  %v6473_v52 = vshll.u32 %v14744_v50, 16  ;;  %v9465_v4 = vld [vmem:[%s11465_s8 + $0x50] sm:$0x7] }
 0x2ae   : > { %v6463_v63 = vrot.slane %v6461_v46, 5  ;;  %v6466_v29 = vrot.slane %v6464_v1, 6  ;;  %v6472_v0 = vrot.slane %v6470_v32, 5  ;;  %v6480_v42 = vshrl.u32 %v9463_v62, 16  ;;  %10777 = vmatpush3.bf16.msra.mxu1 %v11108_v17  ;;  %v15748_v1 = vld [vmem:[#allocation61_spill] sm:$0xff] }
 0x2af   : > { %7820 = vmatprep.mubr.bf16.mxu1 %v9542_v11  ;;  %v6227_v6 = vsel %vm13737_vm1, %v6225_v49, %v6226_v38  ;;  %v6475_v12 = vrot.slane %v6473_v52, 6  ;;  %v6483_v36 = vshll.u32 %v9463_v62, 16  ;;  %v9535_v57 = vcombine.low %v14766_v33, %v14744_v50  ;;  %v15749_v11 = vld [vmem:[#allocation14_spill] sm:$0xff] }
 0x2b0   : > { %7821 = vmatmul.mubr.bf16.gmra.mrb[200].mxu1 %v9534_v35  ;;  %v9527_v41 = vcombine.low %v6224_v51, %v6227_v6  ;;  %v6467_v45 = vor.u32 %v6466_v29, %v6463_v63  ;;  %v6482_v20 = vrot.slane %v6480_v42, 5  ;;  %v10225_v30 = vadd.f32 %v14229_v14, %v14223_v16  ;;  %v9466_v16 = vld [vmem:[%s11465_s8 + $0x54] sm:$0x8]  ;;  %v9467_v14 = vld [vmem:[%s11465_s8 + $0x5c] sm:$0x7] }
 0x2b1   : > { %v6476_v39 = vor.u32 %v6475_v12, %v6472_v0  ;;  %v6485_v28 = vrot.slane %v6483_v36, 6  ;;  %v10265_v38 = vadd.f32 %v14203_v58, %v14190_v24  ;;  %v10228_v62 = vadd.f32 %v14236_v31, %v14233_v26  ;;  %v9469_v12 = vld [vmem:[%s11465_s8 + $0x68] sm:$0x7] }
 0x2b2   : > { %7731 = vmatprep.mubr.bf16.mxu0 %v9527_v41  ;;  %v6468_v35 = vrot.slane %v6467_v45, 4  ;;  %v14788_v46 = vadd.f32 %v10225_v30, %v14650_v43  ;;  %v10268_v32 = vadd.f32 %v14220_v55, %v15748_v1  ;;  %v9480_v33 = vrot.slane %v9464_v25, 11  ;;  %v9470_v41 = vld [vmem:[%s11465_s8 + $0x6c] sm:$0x8]  ;;  %v9471_v45 = vld [vmem:[%s11465_s8 + $0x74] sm:$0x7] }
 0x2b3   : > { %7732 = vmatmul.mubr.bf16.gmra.mrb[204].mxu0 %v15749_v11  ;;  %v6478_v24 = vrot.slane %v6476_v39, 4  ;;  %v6486_v58 = vor.u32 %v6485_v28, %v6482_v20  ;;  %v14796_v26 = vadd.f32 %v10265_v38, %v14555_v7  ;;  %v14799_v31 = vadd.f32 %v10228_v62, %v14665_v15  ;;  %v9468_v15 = vld [vmem:[%s11465_s8 + $0x60] sm:$0x8]  ;;  %v15750_v30 = vld [vmem:[#allocation27_spill] sm:$0xff]  ;;  %v15751_v38 = vld [vmem:[#allocation16_spill] sm:$0xff] }
 0x2b4   : > { %v6477_v43 = vsel %vm11505_vm7, %v6468_v35, %v6476_v39  ;;  %v14804_v51 = vadd.f32 %v10268_v32, %v14562_v22  ;;  %v6530_v55 = vrot.slane %v14316_v53, 7  ;;  %v6533_v49 = vrot.slane %v9465_v4, 7  ;;  %v9472_v4 = vld [vmem:[%s11465_s8 + $0x78] sm:$0x8]  ;;  %v15755_v32 = vld [vmem:[#allocation58_spill] sm:$0xff] }
 0x2b5   : > { %v6487_v52 = vsel %vm11505_vm7, %v6478_v24, %v6486_v58  ;;  %v9481_v17 = vrot.slane %v9466_v16, 11  ;;  %v6537_v7 = vrot.slane %v14361_v40, 7  ;;  %v6540_v63 = vrot.slane %v9467_v14, 7  ;;  %v15753_v35 = vld [vmem:[#allocation20_spill] sm:$0xff]  ;;  %v15757_v24 = vld [vmem:[#allocation74_spill] sm:$0xff] }
 0x2b6   : > { %v9543_v29 = vcombine.low %v6477_v43, %v6487_v52  ;;  %v6531_v0 = vsel %vm13737_vm1, %v9480_v33, %v6530_v55  ;;  %v6532_v22 = vrot.slane %v6530_v55, 4  ;;  %v10231_v42 = vadd.f32 %v14299_v61, %v14290_v47  ;;  %v15756_v33 = vld [vmem:[#allocation41_spill] sm:$0xff]  ;;  %v15759_v55 = vld [vmem:[#allocation48_spill] sm:$0xff] }
 0x2b7   : > { %v6538_v53 = vsel %vm13737_vm1, %v9481_v17, %v6537_v7  ;;  %v6539_v56 = vrot.slane %v6537_v7, 4  ;;  %v10271_v6 = vadd.f32 %v14283_v19, %v14279_v60  ;;  %v10234_v40 = vadd.f32 %v14319_v9, %v14306_v34  ;;  %v15758_v43 = vld [vmem:[#allocation25_spill] sm:$0xff] }
 0x2b8   : > { %7828 = vmatprep.mubr.bf16.mxu1 %v9543_v29  ;;  %v6534_v36 = vsel %vm13737_vm1, %v6532_v22, %v6533_v49  ;;  %v14825_v25 = vadd.f32 %v10231_v42, %v14672_v3  ;;  %v10274_v47 = vadd.f32 %v14292_v44, %v14286_v10  ;;  %v9482_v61 = vrot.slane %v9468_v15, 11  ;;  %v9473_v52 = vld [vmem:[%s11465_s8 + $0x80] sm:$0x7]  ;;  %v9474_v17 = vld [vmem:[%s11465_s8 + $0x84] sm:$0x8] }
 0x2b9   : > { %7829 = vmatmul.mubr.bf16.gmra.mrb[204].mxu1 %v9535_v57  ;;  %v9544_v60 = vcombine.low %v6531_v0, %v6534_v36  ;;  %v6541_v19 = vsel %vm13737_vm1, %v6539_v56, %v6540_v63  ;;  %v14834_v34 = vadd.f32 %v10271_v6, %v14631_v59  ;;  %v14837_v9 = vadd.f32 %v10234_v40, %v14678_v23  ;;  %v15752_v59 = vld [vmem:[#allocation52_spill] sm:$0xff]  ;;  %v15760_v63 = vld [vmem:[#allocation7_spill] sm:$0xff]  ;;  %v9475_v22 = vld [vmem:[%s11465_s8 + $0x8c] sm:$0x7] }
 0x2ba   : > { %v9545_v3 = vcombine.low %v6538_v53, %v6541_v19  ;;  %v14840_v20 = vadd.f32 %v10274_v47, %v14641_v8  ;;  %v6544_v10 = vrot.slane %v14438_v21, 7  ;;  %v6547_v44 = vrot.slane %v9469_v12, 7  ;;  %v15754_v21 = vld [vmem:[#allocation23_spill] sm:$0xff]  ;;  %v15761_v56 = vld [vmem:[#allocation72_spill] sm:$0xff]  ;;  %10778 = vmatprep.mubr.msk.bf16.mxu1 %vm11258_vm2, %v15711_v5 }
 0x2bb   : > { %10746 = vmatprep.mubr.bf16.mxu0 %v9544_v60  ;;  %v9483_v57 = vrot.slane %v9470_v41, 11  ;;  %v6551_v39 = vrot.slane %v15750_v30, 7  ;;  %v6554_v28 = vrot.slane %v9471_v45, 7  ;;  %v10237_v62 = vadd.f32 %v15752_v59, %v15751_v38  ;;  %v15762_v40 = vld [vmem:[#allocation32_spill] sm:$0xff]  ;;  %v15763_v41 = vld [vmem:[#allocation71_spill] sm:$0xff]  ;;  %v15767_v38 = vld [vmem:[#allocation17_spill] sm:$0xff] }
 0x2bc   : > { %10747 = vmatmul.mubr.bf16.vlgmr.msra.gmra.mrb[208].mxu0 %v9545_v3  ;;  %v6545_v23 = vsel %vm13737_vm1, %v9482_v61, %v6544_v10  ;;  %v6546_v8 = vrot.slane %v6544_v10, 4  ;;  %v10277_v1 = vadd.f32 %v15754_v21, %v15753_v35  ;;  %v10240_v16 = vadd.f32 %v15756_v33, %v15755_v32  ;;  %v9476_v60 = vld [vmem:[%s11465_s8 + $0x90] sm:$0x8]  ;;  %v15764_v10 = vld [vmem:[#allocation24_spill] sm:$0xff] }
 0x2bd   : > { %v6552_v14 = vsel %vm13737_vm1, %v9483_v57, %v6551_v39  ;;  %v6553_v11 = vrot.slane %v6551_v39, 4  ;;  %v14856_v58 = vadd.f32 %v10237_v62, %v15757_v24  ;;  %v10280_v49 = vadd.f32 %v15759_v55, %v15758_v43  ;;  %v15768_v62 = vld [vmem:[#allocation26_spill] sm:$0xff]  ;;  %v15771_v32 = vld [vmem:[#allocation68_spill] sm:$0xff] }
 0x2be   : > { %v6548_v7 = vsel %vm13737_vm1, %v6546_v8, %v6547_v44  ;;  %v14865_v15 = vadd.f32 %v10277_v1, %v15760_v63  ;;  %v14868_v29 = vadd.f32 %v10240_v16, %v14723_v27  ;;  %v9484_v0 = vrot.slane %v9472_v4, 11  ;;  %v15765_v44 = vld [vmem:[#allocation5_spill] sm:$0xff]  ;;  %v15769_v4 = vld [vmem:[#allocation30_spill] sm:$0xff]  ;;  %v9477_v8 = vld [vmem:[%s11465_s8 + $0x98] sm:$0x7] }
 0x2bf   : > { %v9546_v42 = vcombine.low %v6545_v23, %v6548_v7  ;;  %v6555_v53 = vsel %vm13737_vm1, %v6553_v11, %v6554_v28  ;;  %v14874_v6 = vadd.f32 %v10280_v49, %v15761_v56  ;;  %v6558_v12 = vrot.slane %v15762_v40, 7  ;;  %v15766_v28 = vld [vmem:[#allocation13_spill] sm:$0xff]  ;;  %v15772_v63 = vld [vmem:[#allocation28_spill] sm:$0xff] }
 0x2c0   : > { %v9547_v36 = vcombine.low %v6552_v14, %v6555_v53  ;;  %v6561_v47 = vrot.slane %v9473_v52, 7  ;;  %v9485_v61 = vrot.slane %v9474_v17, 11  ;;  %v6565_v45 = vrot.slane %v15763_v41, 7  ;;  %v15770_v1 = vld [vmem:[#allocation29_spill] sm:$0xff]  ;;  %v9478_v17 = vld [vmem:[%s11465_s8 + $0x9c] sm:$0x8] }
 0x2c1   : > { %10750 = vmatprep.mubr.bf16.mxu0 %v9546_v42  ;;  %v6559_v27 = vsel %vm13737_vm1, %v9484_v0, %v6558_v12  ;;  %v6560_v19 = vrot.slane %v6558_v12, 4  ;;  %v6568_v3 = vrot.slane %v9475_v22, 7  ;;  %v10283_v57 = vadd.f32 %v15765_v44, %v15764_v10  ;;  %v9479_v7 = vld [vmem:[%s11465_s8 + $0xa4] sm:$0x7]  ;;  %v15773_v0 = vld [vmem:[#allocation6_spill] sm:$0xff]  ;;  %v15775_v56 = vld [vmem:[#allocation36_spill] sm:$0xff] }
 0x2c2   : > { %v6566_v30 = vsel %vm13737_vm1, %v9485_v61, %v6565_v45  ;;  %v6567_v39 = vrot.slane %v6565_v45, 4  ;;  %v14887_v59 = vadd.f32 %v15767_v38, %v15766_v28  ;;  %v10286_v23 = vadd.f32 %v15769_v4, %v15768_v62  ;;  %v15774_v53 = vld [vmem:[#allocation70_spill] sm:$0xff]  ;;  %v15776_v40 = vld [vmem:[#allocation69_spill] sm:$0xff]  ;;  %v15777_v12 = vld [vmem:[#allocation31_spill] sm:$0xff]  ;;  %s11259_s8 = smov 32  }
 0x2c3   : > { %v6562_v35 = vsel %vm13737_vm1, %v6560_v19, %v6561_v47  ;;  %v14895_v21 = vadd.f32 %v10283_v57, %v14739_v54  ;;  %v14899_v33 = vadd.f32 %v15771_v32, %v15770_v1  ;;  %v9486_v16 = vrot.slane %v9476_v60, 11  ;;  %v15778_v47 = vld [vmem:[#allocation38_spill] sm:$0xff]  ;;  %v15779_v61 = vld [vmem:[#allocation37_spill] sm:$0xff]  ;;  %v9831_v1 = vld [vmem:[%s11453_s12 + $0x18] sm:$0xff]  }
 0x2c4   : > { %10751 = vmatmul.mubr.bf16.gmra.mrb[212].mxu0 %v9547_v36  ;;  %v9548_v14 = vcombine.low %v6559_v27, %v6562_v35  ;;  %v6569_v11 = vsel %vm13737_vm1, %v6567_v39, %v6568_v3  ;;  %v14904_v24 = vadd.f32 %v10286_v23, %v14752_v2  ;;  %v6572_v43 = vrot.slane %v14694_v13, 7  ;;  %v9788_v44 = vld [vmem:[%s11453_s12] sm:$0xff]   ;;  %v7936_v57 = vld [vmem:[%s11453_s12 + $0x8] sm:$0x7]  ;;  %v7937_v28 = vld [vmem:[%s11453_s12 + $0xc] sm:$0xff]  }
 0x2c5   : > { %v6575_v55 = vrot.slane %v9477_v8, 7  ;;  %v6579_v49 = vrot.slane %v14744_v50, 7  ;;  %v10289_v22 = vadd.f32 %v15773_v0, %v15772_v63  ;;  %v9549_v42 = vcombine.low %v6566_v30, %v6569_v11  ;;  %v7942_v32 = vld [vmem:[%s11453_s12 + $0x20] sm:$0x7] }
 0x2c6   : > { %10754 = vmatprep.mubr.bf16.mxu0 %v9548_v14  ;;  %v6573_v54 = vsel %vm13737_vm1, %v9486_v16, %v6572_v43  ;;  %v6574_v52 = vrot.slane %v6572_v43, 4  ;;  %v10329_v2 = vadd.f32 %v15775_v56, %v15774_v53  ;;  %v10292_v36 = vadd.f32 %v15777_v12, %v15776_v40  ;;  %v9832_v12 = vld [vmem:[%s11453_s12 + $0x30] sm:$0xff]  }
 0x2c7   : > { %v14919_v50 = vadd.f32 %v10289_v22, %v14788_v46  ;;  %v10332_v41 = vadd.f32 %v15779_v61, %v15778_v47  ;;  %v9487_v60 = vrot.slane %v9478_v17, 11  ;;  %v6581_v27 = vrot.slane %v6579_v49, 4  ;;  %v7945_v17 = vld [vmem:[%s11453_s12 + $0x2c] sm:$0x7] }
 0x2c8   : > { %v6576_v13 = vsel %vm13737_vm1, %v6574_v52, %v6575_v55  ;;  %v6582_v19 = vrot.slane %v9479_v7, 7  ;;  %v14927_v3 = vadd.f32 %v10292_v36, %v14799_v31  ;;  %v9789_v30 = vunpack.c.l.bf16 %v9788_v44  ;;  %v7939_v31 = vld [vmem:[%s11453_s12 + $0x14] sm:$0x7]  ;;  %v7943_v52 = vld [vmem:[%s11453_s12 + $0x24] sm:$0xff]   ;;  %v7948_v36 = vld [vmem:[%s11453_s12 + $0x38] sm:$0x7] }
 0x2c9   : > { %v9550_v45 = vcombine.low %v6573_v54, %v6576_v13  ;;  %v6580_v5 = vsel %vm13737_vm1, %v9487_v60, %v6579_v49  ;;  %v9790_v39 = vunpack.c.h.bf16 %v9788_v44  ;;  %v8002_v38 = vunpack.c.l.bf16 %v7936_v57 }
 0x2ca   : > { %v6583_v46 = vsel %vm13737_vm1, %v6581_v27, %v6582_v19  ;;  %v8003_v62 = vunpack.c.l.bf16 %v7937_v28  ;;  %v8005_v23 = vunpack.c.l.bf16 %v7939_v31  ;;  %v8004_v8 = vunpack.c.h.bf16 %v7937_v28  ;;  %v10293_v27 = vpop.f32.mrb[120].mxu1  ;;  %v10333_v19 = vpop.f32.mrb[120].mxu0 }
 0x2cb   : > { %v9551_v10 = vcombine.low %v6580_v5, %v6583_v46  ;;  %v8066_v4 = vadd.f32 %v9790_v39, %v9789_v30  ;;  %v8068_v37 = vsel %vm8067_vm3, %v8002_v38, 0.0  ;;  %v9793_v11 = vunpack.c.l.bf16 %v9831_v1  ;;  %v10294_v46 = vpop.f32.mrb[121].mxu1 }
 0x2cc   : > { %10755 = vmatmul.mubr.bf16.gmra.mrb[216].mxu0 %v9549_v42  ;;  %v8072_v14 = vsel %vm8067_vm3, %v8005_v23, 0.0  ;;  %v8008_v55 = vunpack.c.l.bf16 %v7942_v32  ;;  %v9794_v49 = vunpack.c.h.bf16 %v9831_v1  ;;  %v8009_v0 = vunpack.c.l.bf16 %v7943_v52  ;;  %v10296_v39 = vpop.f32.mrb[122].mxu1 }
 0x2cd   : > { %10758 = vmatprep.mubr.bf16.mxu0 %v9550_v45  ;;  %v8069_v35 = vadd.f32 %v8068_v37, %v8066_v4  ;;  %v14946_v42 = vadd.f32 %v14887_v59, %v14749_v48  ;;  %v8011_v53 = vunpack.c.l.bf16 %v7945_v17  ;;  %v8010_v56 = vunpack.c.h.bf16 %v7943_v52  ;;  %v10297_v38 = vpop.f32.mrb[123].mxu1 }
 0x2ce   : > { %v8076_v63 = vsel %vm8067_vm3, %v8008_v55, 0.0  ;;  %v14950_v40 = vadd.f32 %v14899_v33, %v14757_v18  ;;  %v9797_v45 = vunpack.c.l.bf16 %v9832_v12  ;;  %v5623_v48 = vadd.f32 %v10329_v2, %v14796_v26  ;;  %v7949_v18 = vld [vmem:[%s11453_s12 + $0x3c] sm:$0xff]  }
 0x2cf   : > { %v8070_v16 = vadd.f32 %v8069_v35, %v8003_v62  ;;  %v8080_v61 = vsel %vm8067_vm3, %v8011_v53, 0.0  ;;  %v5626_v59 = vadd.f32 %v10332_v41, %v14804_v51  ;;  %v8014_v5 = vunpack.c.l.bf16 %v7948_v36  ;;  %v7951_v62 = vld [vmem:[%s11453_s12 + $0x44] sm:$0x7]  ;;  %v10299_v51 = vpop.f32.mrb[124].mxu1 }
 0x2d0   : > { %v9798_v44 = vunpack.c.h.bf16 %v9832_v12  ;;  %v10295_v57 = vadd.f32 %v10294_v46, %v10293_v27  ;;  %v10298_v26 = vadd.f32 %v10297_v38, %v10296_v39  ;;  %v8015_v37 = vunpack.c.l.bf16 %v7949_v18  ;;  %v10300_v35 = vpop.f32.mrb[125].mxu1 }
 0x2d1   : > { %v8071_v43 = vadd.f32 %v8070_v16, %v8004_v8  ;;  %v8084_v8 = vsel %vm8067_vm3, %v8014_v5, 0.0 }
 0x2d2   : > { %v14960_v23 = vadd.f32 %v10295_v57, %v14825_v25  ;;  %v10302_v25 = vpop.f32.mrb[126].mxu1 }
 0x2d3   : > { %v8073_v54 = vadd.f32 %v8072_v14, %v8071_v43  ;;  %v14965_v14 = vadd.f32 %v10298_v26, %v14837_v9  ;;  %v10303_v52 = vpop.f32.mrb[127].mxu1 }
 0x2d4   : > { %10759 = vmatmul.mubr.bf16.gmra.mrb[220].mxu0 %v9551_v10  ;;  %v10334_v10 = vpop.f32.mrb[121].mxu0 }
 0x2d5   : > { %v8074_v7 = vadd.f32 %v9793_v11, %v8073_v54  ;;  %v10335_v30 = vadd.f32 %v10334_v10, %v10333_v19  ;;  %v10336_v28 = vpop.f32.mrb[122].mxu0  ;;  %v10301_v11 = vadd.f32 %v10300_v35, %v10299_v51  ;;  %v8017_v54 = vunpack.c.l.bf16 %v7951_v62  ;;  %v7955_v62 = vld [vmem:[%s11453_s12 + $0x54] sm:$0xff]  }
 0x2d6   : > { %v10337_v31 = vpop.f32.mrb[123].mxu0 }
 0x2d7   : > { %v8075_v22 = vadd.f32 %v9794_v49, %v8074_v7  ;;  %v10338_v2 = vadd.f32 %v10337_v31, %v10336_v28  ;;  %v10339_v41 = vpop.f32.mrb[124].mxu0  ;;  %v5631_v32 = vadd.f32 %v10335_v30, %v14834_v34  ;;  %v8016_v49 = vunpack.c.h.bf16 %v7949_v18 }
 0x2d8   : > { %v10340_v1 = vpop.f32.mrb[125].mxu0  ;;  %v10304_v34 = vadd.f32 %v10303_v52, %v10302_v25  ;;  %v8088_v46 = vsel %vm8067_vm3, %v8017_v54, 0.0 }
 0x2d9   : > { %v8077_v13 = vadd.f32 %v8076_v63, %v8075_v22  ;;  %v10341_v43 = vadd.f32 %v10340_v1, %v10339_v41  ;;  %v10342_v55 = vpop.f32.mrb[126].mxu0  ;;  %v5634_v7 = vadd.f32 %v10338_v2, %v14840_v20  ;;  %v9833_v63 = vld [vmem:[%s11453_s12 + $0x48] sm:$0xff]   ;;  %v14970_v22 = vadd.f32 %v10301_v11, %v14856_v58 }
 0x2da   : > { %v10343_v17 = vpop.f32.mrb[127].mxu0  ;;  %v9801_v5 = vunpack.c.l.bf16 %v9833_v63  ;;  %v9802_v39 = vunpack.c.h.bf16 %v9833_v63 }
 0x2db   : > { %v8078_v47 = vadd.f32 %v8077_v13, %v8009_v0  ;;  %v10344_v53 = vadd.f32 %v10343_v17, %v10342_v55  ;;  %v10345_v9 = vpop.f32.mrb[128].mxu0 }
 0x2dc   : > { %v10346_v12 = vpop.f32.mrb[129].mxu0 }
 0x2dd   : > { %v8079_v60 = vadd.f32 %v8078_v47, %v8010_v56  ;;  %v10716_v56 = vpop.f32.mrb[128].mxu1  ;;  %v5639_v47 = vadd.f32 %v10341_v43, %v14865_v15  ;;  %v10347_v20 = vadd.f32 %v10346_v12, %v10345_v9  ;;  %v10348_v19 = vpop.f32.mrb[130].mxu0  ;;  %v5642_v15 = vadd.f32 %v10344_v53, %v14874_v6 }
 0x2de   : > { %v5720_v13 = vadd.f32 %v10716_v56, %v5623_v48  ;;  %v5711_v36 = vpop.f32.mrb[129].mxu1  ;;  %v8022_v53 = vunpack.c.h.bf16 %v7955_v62 }
 0x2df   : > { %v8081_v33 = vadd.f32 %v8080_v61, %v8079_v60  ;;  %v7954_v61 = vld [vmem:[%s11453_s12 + $0x50] sm:$0x7]  ;;  %v14975_v60 = vadd.f32 %v10304_v34, %v14868_v29  ;;  %v5712_v27 = vadd.f32 %v5711_v36, %v14946_v42  ;;  %v10717_v58 = vpop.f32.mrb[130].mxu1  ;;  %v5647_v30 = vadd.f32 %v10347_v20, %v14895_v21  ;;  %v7957_v21 = vld [vmem:[%s11453_s12 + $0x5c] sm:$0x7] }
 0x2e0   : > { %v5723_v10 = vadd.f32 %v10717_v58, %v5626_v59  ;;  %v5714_v48 = vpop.f32.mrb[131].mxu1  ;;  %8290 = vrot.lane.b32.xlu1 %v5720_v13, %s11259_s8  ;;  %v8020_v59 = vunpack.c.l.bf16 %v7954_v61  ;;  %v8023_v9 = vunpack.c.l.bf16 %v7957_v21  ;;  %v9834_v13 = vld [vmem:[%s11453_s12 + $0x60] sm:$0xff]  }
 0x2e1   : > { %v8082_v4 = vadd.f32 %v9797_v45, %v8081_v33  ;;  %v5715_v33 = vadd.f32 %v5714_v48, %v14950_v40  ;;  %8286 = vrot.lane.b32.xlu0 %v5712_v27, %s11259_s8  ;;  %v10720_v57 = vpop.f32.mrb[132].mxu1 }
 0x2e2   : > { %v5736_v28 = vadd.f32 %v10720_v57, %v5639_v47  ;;  %v5727_v31 = vpop.f32.mrb[133].mxu1  ;;  %v8092_v55 = vsel %vm8067_vm3, %v8020_v59, 0.0 }
 0x2e3   : > { %v8083_v16 = vadd.f32 %v9798_v44, %v8082_v4  ;;  %v10349_v44 = vpop.f32.mrb[131].mxu0  ;;  %v5728_v6 = vadd.f32 %v5727_v31, %v5631_v32  ;;  %v10721_v51 = vpop.f32.mrb[134].mxu1  ;;  %v8021_v32 = vunpack.c.l.bf16 %v7955_v62 }
 0x2e4   : > { %v10350_v29 = vadd.f32 %v10349_v44, %v10348_v19  ;;  %v10351_v42 = vpop.f32.mrb[132].mxu0  ;;  %8292 = vrot.lane.b32.xlu1 %v5723_v10, %s11259_s8  ;;  %v5739_v41 = vadd.f32 %v10721_v51, %v5642_v15 }
 0x2e5   : > { %v8085_v0 = vadd.f32 %v8084_v8, %v8083_v16  ;;  %v10352_v38 = vpop.f32.mrb[133].mxu0  ;;  %v5730_v8 = vpop.f32.mrb[135].mxu1  ;;  %8288 = vrot.lane.b32.xlu0 %v5715_v33, %s11259_s8 }
 0x2e6   : > { %v10353_v26 = vadd.f32 %v10352_v38, %v10351_v42  ;;  %v10354_v2 = vpop.f32.mrb[134].mxu0  ;;  %v5650_v40 = vadd.f32 %v10350_v29, %v14904_v24  ;;  %v5731_v16 = vadd.f32 %v5730_v8, %v5634_v7  ;;  %v10724_v25 = vpop.f32.mrb[136].mxu1  ;;  %v8096_v29 = vsel %vm8067_vm3, %v8023_v9, 0.0 }
 0x2e7   : > { %v8086_v45 = vadd.f32 %v8085_v0, %v8015_v37  ;;  %v10355_v37 = vpop.f32.mrb[135].mxu0  ;;  %v9806_v38 = vunpack.c.h.bf16 %v9834_v13 }
 0x2e8   : > { %v10356_v1 = vadd.f32 %v10355_v37, %v10354_v2  ;;  %v10357_v11 = vpop.f32.mrb[136].mxu0  ;;  %v5655_v43 = vadd.f32 %v10353_v26, %v14919_v50  ;;  %8300 = vrot.lane.b32.xlu1 %v5739_v41, %s11259_s8  ;;  %v7961_v2 = vld [vmem:[%s11453_s12 + $0x6c] sm:$0xff]   ;;  %v7963_v41 = vld [vmem:[%s11453_s12 + $0x74] sm:$0x7] }
 0x2e9   : > { %v8087_v18 = vadd.f32 %v8086_v45, %v8016_v49  ;;  %v10358_v24 = vpop.f32.mrb[137].mxu0  ;;  %v5743_v49 = vpop.f32.mrb[137].mxu1  ;;  %8298 = vrot.lane.b32.xlu0 %v5736_v28, %s11259_s8 }
 0x2ea   : > { %v5752_v52 = vadd.f32 %v10724_v25, %v5655_v43  ;;  %v10359_v17 = vadd.f32 %v10358_v24, %v10357_v11  ;;  %v14991_v63 = vadd.f32 %v5743_v49, %v5647_v30  ;;  %v10360_v0 = vpop.f32.mrb[138].mxu0  ;;  %v10725_v34 = vpop.f32.mrb[138].mxu1  ;;  %v5658_v50 = vadd.f32 %v10356_v1, %v14927_v3 }
 0x2eb   : > { %v8089_v4 = vadd.f32 %v8088_v46, %v8087_v18  ;;  %v10361_v7 = vpop.f32.mrb[139].mxu0  ;;  %v5746_v56 = vpop.f32.mrb[139].mxu1  ;;  %v9805_v18 = vunpack.c.l.bf16 %v9834_v13  ;;  %v8027_v11 = vunpack.c.l.bf16 %v7961_v2  ;;  %v8028_v24 = vunpack.c.h.bf16 %v7961_v2 }
 0x2ec   : > { %v10362_v36 = vadd.f32 %v10361_v7, %v10360_v0  ;;  %v5747_v47 = vadd.f32 %v5746_v56, %v5650_v40  ;;  %v10363_v61 = vpop.f32.mrb[140].mxu0  ;;  %v10728_v45 = vpop.f32.mrb[140].mxu1  ;;  %v5663_v20 = vadd.f32 %v10359_v17, %v14960_v23  ;;  %v5755_v27 = vadd.f32 %v10725_v34, %v5658_v50  ;;  %8296 = vrot.lane.b32.xlu1 %v5731_v16, %s11259_s8  ;;  %v7966_v0 = vld [vmem:[%s11453_s12 + $0x80] sm:$0x7] }
 0x2ed   : > { %v8090_v35 = vadd.f32 %v9801_v5, %v8089_v4  ;;  %v10364_v19 = vpop.f32.mrb[141].mxu0  ;;  %v5759_v58 = vpop.f32.mrb[141].mxu1  ;;  %v7960_v5 = vld [vmem:[%s11453_s12 + $0x68] sm:$0x7]  ;;  %8294 = vrot.lane.b32.xlu0 %v5728_v6, %s11259_s8 }
 0x2ee   : > { %v10365_v10 = vadd.f32 %v10364_v19, %v10363_v61  ;;  %v5760_v44 = vadd.f32 %v5759_v58, %v5663_v20  ;;  %v10366_v3 = vpop.f32.mrb[142].mxu0  ;;  %v10729_v48 = vpop.f32.mrb[142].mxu1  ;;  %v5666_v15 = vadd.f32 %v10362_v36, %v14965_v14  ;;  %v8026_v59 = vunpack.c.l.bf16 %v7960_v5  ;;  %v7967_v5 = vld [vmem:[%s11453_s12 + $0x84] sm:$0xff]  }
 0x2ef   : > { %v8091_v54 = vadd.f32 %v9802_v39, %v8090_v35  ;;  %v10367_v33 = vpop.f32.mrb[143].mxu0  ;;  %v5762_v42 = vpop.f32.mrb[143].mxu1 }
 0x2f0   : > { %v5671_v57 = vadd.f32 %v10365_v10, %v14970_v22  ;;  %v10368_v30 = vadd.f32 %v10367_v33, %v10366_v3  ;;  %v5763_v39 = vadd.f32 %v5762_v42, %v5666_v15  ;;  %8308 = vrot.lane.b32.xlu1 %v5755_v27, %s11259_s8  ;;  %v7969_v3 = vld [vmem:[%s11453_s12 + $0x8c] sm:$0x7] }
 0x2f1   : > { %v8093_v12 = vadd.f32 %v8092_v55, %v8091_v54  ;;  %8306 = vrot.lane.b32.xlu0 %v5752_v52, %s11259_s8  ;;  %v8029_v55 = vunpack.c.l.bf16 %v7963_v41  ;;  %v9835_v52 = vld [vmem:[%s11453_s12 + $0x78] sm:$0xff]   ;;  %v8035_v42 = vunpack.c.l.bf16 %v7969_v3 }
 0x2f2   : > { %v5674_v31 = vadd.f32 %v10368_v30, %v14975_v60  ;;  %v5768_v4 = vadd.f32 %v10728_v45, %v5671_v57  ;;  %v8100_v60 = vsel %vm8067_vm3, %v8026_v59, 0.0  ;;  %v9809_v13 = vunpack.c.l.bf16 %v9835_v52 }
 0x2f3   : > { %v8094_v46 = vadd.f32 %v8093_v12, %v8021_v32  ;;  %v8104_v9 = vsel %vm8067_vm3, %v8029_v55, 0.0  ;;  %v9810_v27 = vunpack.c.h.bf16 %v9835_v52  ;;  %v8034_v30 = vunpack.c.h.bf16 %v7967_v5 }
 0x2f4   : > { %v5771_v21 = vadd.f32 %v10729_v48, %v5674_v31  ;;  %8304 = vrot.lane.b32.xlu1 %v5747_v47, %s11259_s8  ;;  %v8032_v47 = vunpack.c.l.bf16 %v7966_v0 }
 0x2f5   : > { %v8095_v23 = vadd.f32 %v8094_v46, %v8022_v53  ;;  %8302 = vrot.lane.b32.xlu0 %v14991_v63, %s11259_s8 }
 0x2f6   : > { %v10465_v28 = vpop.f32.mrb[144].mxu1 }
 0x2f7   : > { %v8097_v14 = vadd.f32 %v8096_v29, %v8095_v23  ;;  %v10466_v26 = vpop.f32.mrb[145].mxu1 }
 0x2f8   : > { %v10401_v62 = vpop.f32.mrb[144].mxu0  ;;  %v10467_v40 = vadd.f32 %v10466_v26, %v10465_v28  ;;  %v10468_v6 = vpop.f32.mrb[146].mxu1  ;;  %8312 = vrot.lane.b32.xlu1 %v5763_v39, %s11259_s8  ;;  %v7972_v26 = vld [vmem:[%s11453_s12 + $0x98] sm:$0x7] }
 0x2f9   : > { %v10402_v51 = vpop.f32.mrb[145].mxu0  ;;  %v8098_v22 = vadd.f32 %v9805_v18, %v8097_v14  ;;  %v10469_v35 = vpop.f32.mrb[147].mxu1  ;;  %8310 = vrot.lane.b32.xlu0 %v5760_v44, %s11259_s8  ;;  %v8108_v44 = vsel %vm8067_vm3, %v8032_v47, 0.0  ;;  %v8033_v18 = vunpack.c.l.bf16 %v7967_v5  ;;  %v9836_v14 = vld [vmem:[%s11453_s12 + $0x90] sm:$0xff]  }
 0x2fa   : > { %v10403_v37 = vadd.f32 %v10402_v51, %v10401_v62  ;;  %v10404_v8 = vpop.f32.mrb[146].mxu0  ;;  %v10470_v16 = vadd.f32 %v10469_v35, %v10468_v6  ;;  %v8112_v6 = vsel %vm8067_vm3, %v8035_v42, 0.0 }
 0x2fb   : > { %v10405_v1 = vpop.f32.mrb[147].mxu0  ;;  %v8099_v43 = vadd.f32 %v9806_v38, %v8098_v22 }
 0x2fc   : > { %v15010_v25 = vadd.f32 %v10467_v40, %v10403_v37  ;;  %v10406_v32 = vadd.f32 %v10405_v1, %v10404_v8  ;;  %8316 = vrot.lane.b32.xlu1 %v5771_v21, %s11259_s8  ;;  %v9813_v37 = vunpack.c.l.bf16 %v9836_v14  ;;  %v8038_v21 = vunpack.c.l.bf16 %v7972_v26 }
 0x2fd   : > { %v8101_v49 = vadd.f32 %v8100_v60, %v8099_v43  ;;  %8314 = vrot.lane.b32.xlu0 %v5768_v4, %s11259_s8  ;;  %v9814_v60 = vunpack.c.h.bf16 %v9836_v14  ;;  %s8548_s8 = sshll.u32 %s15229_s22, 4  ;;  %s15241_s8 = int_to_ptr.vmem [resolvable:$true] %s8548_s8 }
 0x2fe   : > { %v15015_v54 = vadd.f32 %v10470_v16, %v10406_v32  ;;  %v7975_v32 = vld [vmem:[%s11453_s12 + $0xa4] sm:$0x7]  ;;  %s11161_s9 = scalar_lea.vmem %s15241_s8, 2048  ;;  %p11168_p2 = scmp.lt.s32.totalorder %s15241_s8, %s11166_s27 }
 0x2ff   : > { %v8102_v34 = vadd.f32 %v8101_v49, %v8027_v11  ;;  %v7973_v11 = vld [vmem:[%s11453_s12 + $0x9c] sm:$0xff]   ;;  %p11162_p13 = scmp.ne.s32.totalorder %s15241_s8, %s11161_s9  ;;  %p11169_p4 = scmp.lt.s32.totalorder %s11167_s15, %s11161_s9 }
 0x301   : > { %v10471_v17 = vpop.f32.mrb[148].mxu1  ;;  %v8103_v12 = vadd.f32 %v8102_v34, %v8028_v24  ;;  %p11163_p0 = pnand %p11162_p13, %p11346_p3  ;;  %p11170_p5 = por %p11169_p4, %p11168_p2 }
 0x302   : > { %v10472_v53 = vpop.f32.mrb[149].mxu1 }
 0x303   : > { %v10407_v50 = vpop.f32.mrb[148].mxu0  ;;  %v10473_v7 = vadd.f32 %v10472_v53, %v10471_v17  ;;  %v10474_v56 = vpop.f32.mrb[150].mxu1  ;;  %v8105_v19 = vadd.f32 %v8104_v9, %v8103_v12  ;;  %v8116_v17 = vsel %vm8067_vm3, %v8038_v21, 0.0  ;;  %v8039_v53 = vunpack.c.l.bf16 %v7973_v11  ;;  %p11164_p1 = pneg %p11163_p0 }
 0x304   : > { %v10408_v63 = vpop.f32.mrb[149].mxu0  ;;  %v10475_v36 = vpop.f32.mrb[151].mxu1 }
 0x305   : > { %v10409_v61 = vadd.f32 %v10408_v63, %v10407_v50  ;;  %v10410_v45 = vpop.f32.mrb[150].mxu0  ;;  %v10476_v20 = vadd.f32 %v10475_v36, %v10474_v56  ;;  %v8106_v48 = vadd.f32 %v9809_v13, %v8105_v19  ;;  %v8041_v13 = vunpack.c.l.bf16 %v7975_v32  ;;  %v7984_v32 = vld [vmem:[%s11453_s12 + $0xc8] sm:$0x7]  ;;  %p11171_p6 = pnand %p11170_p5, %p11164_p1 }
 0x306   : > { %v10411_v58 = vpop.f32.mrb[151].mxu0  ;;  %v8040_v63 = vunpack.c.h.bf16 %v7973_v11 }
 0x307   : > { %v15024_v46 = vadd.f32 %v10473_v7, %v10409_v61  ;;  %v10412_v10 = vadd.f32 %v10411_v58, %v10410_v45  ;;  %v8107_v29 = vadd.f32 %v9810_v27, %v8106_v48  ;;  %v9837_v45 = vld [vmem:[%s11453_s12 + $0xa8] sm:$0xff]   ;;  %v8120_v58 = vsel %vm8067_vm3, %v8041_v13, 0.0 }
 0x309   : > { %v15029_v15 = vadd.f32 %v10476_v20, %v10412_v10  ;;  %v8109_v39 = vadd.f32 %v8108_v44, %v8107_v29  ;;  %v7978_v20 = vld [vmem:[%s11453_s12 + $0xb0] sm:$0x7]  ;;  %v9817_v10 = vunpack.c.l.bf16 %v9837_v45 }
 0x30b   : > { %v8110_v2 = vadd.f32 %v8109_v39, %v8033_v18  ;;  %v8044_v18 = vunpack.c.l.bf16 %v7978_v20 }
 0x30d   : > { %v10477_v33 = vpop.f32.mrb[152].mxu1  ;;  %v8111_v8 = vadd.f32 %v8110_v2, %v8034_v30  ;;  %v8124_v2 = vsel %vm8067_vm3, %v8044_v18, 0.0 }
 0x30e   : > { %v10478_v57 = vpop.f32.mrb[153].mxu1 }
 0x30f   : > { %v10479_v28 = vadd.f32 %v10478_v57, %v10477_v33  ;;  %v10480_v38 = vpop.f32.mrb[154].mxu1  ;;  %v8113_v1 = vadd.f32 %v8112_v6, %v8111_v8 }
 0x310   : > { %v10413_v23 = vpop.f32.mrb[152].mxu0  ;;  %v10481_v4 = vpop.f32.mrb[155].mxu1 }
 0x311   : > { %v10414_v59 = vpop.f32.mrb[153].mxu0  ;;  %v10482_v40 = vadd.f32 %v10481_v4, %v10480_v38  ;;  %v8114_v55 = vadd.f32 %v9813_v37, %v8113_v1  ;;  %v9838_v1 = vld [vmem:[%s11453_s12 + $0xc0] sm:$0xff]  }
 0x312   : > { %v10415_v31 = vadd.f32 %v10414_v59, %v10413_v23  ;;  %v10416_v62 = vpop.f32.mrb[154].mxu0  ;;  %v9818_v23 = vunpack.c.h.bf16 %v9837_v45  ;;  %v7987_v45 = vld [vmem:[%s11453_s12 + $0xd4] sm:$0x7] }
 0x313   : > { %v10417_v51 = vpop.f32.mrb[155].mxu0  ;;  %v8115_v9 = vadd.f32 %v9814_v60, %v8114_v55 }
 0x314   : > { %v15034_v41 = vadd.f32 %v10479_v28, %v10415_v31  ;;  %v10418_v22 = vadd.f32 %v10417_v51, %v10416_v62  ;;  %v7979_v28 = vld [vmem:[%s11453_s12 + $0xb4] sm:$0xff]   ;;  %v7981_v31 = vld [vmem:[%s11453_s12 + $0xbc] sm:$0x7] }
 0x315   : > { %v8117_v36 = vadd.f32 %v8116_v17, %v8115_v9  ;;  %v8045_v51 = vunpack.c.l.bf16 %v7979_v28  ;;  %v8046_v8 = vunpack.c.h.bf16 %v7979_v28 }
 0x316   : > { %v15036_v35 = vadd.f32 %v10482_v40, %v10418_v22  ;;  %v8047_v22 = vunpack.c.l.bf16 %v7981_v31 }
 0x317   : > { %v8118_v27 = vadd.f32 %v8117_v36, %v8039_v53  ;;  %v9821_v53 = vunpack.c.l.bf16 %v9838_v1  ;;  %v7985_v36 = vld [vmem:[%s11453_s12 + $0xcc] sm:$0xff]  }
 0x319   : > { %v8119_v3 = vadd.f32 %v8118_v27, %v8040_v63 }
 0x31a   : > { %v10483_v16 = vpop.f32.mrb[156].mxu1 }
 0x31b   : > { %v10484_v43 = vpop.f32.mrb[157].mxu1  ;;  %v8121_v57 = vadd.f32 %v8120_v58, %v8119_v3  ;;  %v8051_v3 = vunpack.c.l.bf16 %v7985_v36 }
 0x31c   : > { %v10485_v49 = vadd.f32 %v10484_v43, %v10483_v16  ;;  %v10486_v52 = vpop.f32.mrb[158].mxu1 }
 0x31d   : > { %v10419_v24 = vpop.f32.mrb[156].mxu0  ;;  %v10487_v34 = vpop.f32.mrb[159].mxu1  ;;  %v8122_v62 = vadd.f32 %v9817_v10, %v8121_v57 }
 0x31e   : > { %v10420_v0 = vpop.f32.mrb[157].mxu0  ;;  %v10488_v56 = vadd.f32 %v10487_v34, %v10486_v52  ;;  %v8128_v52 = vsel %vm8067_vm3, %v8047_v22, 0.0 }
 0x31f   : > { %v10421_v50 = vadd.f32 %v10420_v0, %v10419_v24  ;;  %v10422_v7 = vpop.f32.mrb[158].mxu0  ;;  %v8123_v40 = vadd.f32 %v9818_v23, %v8122_v62  ;;  %v7990_v62 = vld [vmem:[%s11453_s12 + $0xe0] sm:$0x7] }
 0x320   : > { %v10423_v12 = vpop.f32.mrb[159].mxu0 }
 0x321   : > { %v15041_v47 = vadd.f32 %v10485_v49, %v10421_v50  ;;  %v10424_v61 = vadd.f32 %v10423_v12, %v10422_v7  ;;  %v8125_v21 = vadd.f32 %v8124_v2, %v8123_v40  ;;  %v8050_v7 = vunpack.c.l.bf16 %v7984_v32 }
 0x322   : > { %v9822_v12 = vunpack.c.h.bf16 %v9838_v1 }
 0x323   : > { %v15045_v19 = vadd.f32 %v10488_v56, %v10424_v61  ;;  %v10489_v5 = vpop.f32.mrb[160].mxu1  ;;  %v8126_v55 = vadd.f32 %v8125_v21, %v8045_v51  ;;  %v8132_v58 = vsel %vm8067_vm3, %v8050_v7, 0.0 }
 0x324   : > { %v10490_v44 = vpop.f32.mrb[161].mxu1 }
 0x325   : > { %v10425_v48 = vpop.f32.mrb[160].mxu0  ;;  %v10491_v33 = vadd.f32 %v10490_v44, %v10489_v5  ;;  %v10492_v42 = vpop.f32.mrb[162].mxu1  ;;  %v8127_v9 = vadd.f32 %v8126_v55, %v8046_v8  ;;  %v8056_v8 = vunpack.c.l.bf16 %v7990_v62 }
 0x326   : > { %v10426_v29 = vpop.f32.mrb[161].mxu0  ;;  %v10493_v59 = vpop.f32.mrb[163].mxu1 }
 0x327   : > { %v10427_v30 = vadd.f32 %v10426_v29, %v10425_v48  ;;  %v10428_v39 = vpop.f32.mrb[162].mxu0  ;;  %v10494_v14 = vadd.f32 %v10493_v59, %v10492_v42  ;;  %v8129_v63 = vadd.f32 %v8128_v52, %v8127_v9 }
 0x328   : > { %v10429_v38 = vpop.f32.mrb[163].mxu0 }
 0x329   : > { %v15050_v4 = vadd.f32 %v10491_v33, %v10427_v30  ;;  %v10430_v26 = vadd.f32 %v10429_v38, %v10428_v39  ;;  %v8130_v20 = vadd.f32 %v9821_v53, %v8129_v63  ;;  %v8053_v33 = vunpack.c.l.bf16 %v7987_v45  ;;  %v9839_v38 = vld [vmem:[%s11453_s12 + $0xd8] sm:$0xff]  }
 0x32a   : > { %v8052_v30 = vunpack.c.h.bf16 %v7985_v36  ;;  %v9825_v40 = vunpack.c.l.bf16 %v9839_v38 }
 0x32b   : > { %v15053_v6 = vadd.f32 %v10494_v14, %v10430_v26  ;;  %v10495_v37 = vpop.f32.mrb[164].mxu1  ;;  %v8131_v48 = vadd.f32 %v9822_v12, %v8130_v20  ;;  %v8136_v2 = vsel %vm8067_vm3, %v8053_v33, 0.0  ;;  %v9840_v20 = vld [vmem:[%s11453_s12 + $0xf0] sm:$0xff]  }
 0x32c   : > { %v10496_v60 = vpop.f32.mrb[165].mxu1 }
 0x32d   : > { %v10431_v16 = vpop.f32.mrb[164].mxu0  ;;  %v10497_v11 = vadd.f32 %v10496_v60, %v10495_v37  ;;  %v10498_v43 = vpop.f32.mrb[166].mxu1  ;;  %v8133_v39 = vadd.f32 %v8132_v58, %v8131_v48  ;;  %v9826_v60 = vunpack.c.h.bf16 %v9839_v38  ;;  %v7996_v58 = vld [vmem:[%s11453_s12 + $0xf8] sm:$0x7]  ;;  %v9829_v48 = vunpack.c.l.bf16 %v9840_v20 }
 0x32e   : > { %v10432_v24 = vpop.f32.mrb[165].mxu0  ;;  %v10499_v49 = vpop.f32.mrb[167].mxu1 }
 0x32f   : > { %v10433_v17 = vadd.f32 %v10432_v24, %v10431_v16  ;;  %v10434_v0 = vpop.f32.mrb[166].mxu0  ;;  %v10500_v34 = vadd.f32 %v10499_v49, %v10498_v43  ;;  %v8134_v26 = vadd.f32 %v8133_v39, %v8051_v3  ;;  %v7991_v43 = vld [vmem:[%s11453_s12 + $0xe4] sm:$0xff]   ;;  %v7993_v24 = vld [vmem:[%s11453_s12 + $0xec] sm:$0x7] }
 0x330   : > { %v10435_v50 = vpop.f32.mrb[167].mxu0  ;;  %v8057_v9 = vunpack.c.l.bf16 %v7991_v43  ;;  %v8058_v36 = vunpack.c.h.bf16 %v7991_v43 }
 0x331   : > { %v15058_v56 = vadd.f32 %v10497_v11, %v10433_v17  ;;  %v10436_v13 = vadd.f32 %v10435_v50, %v10434_v0  ;;  %v8135_v22 = vadd.f32 %v8134_v26, %v8052_v30  ;;  %v8140_v0 = vsel %vm8067_vm3, %v8056_v8, 0.0 }
 0x333   : > { %v15061_v61 = vadd.f32 %v10500_v34, %v10436_v13  ;;  %v8137_v1 = vadd.f32 %v8136_v2, %v8135_v22  ;;  %v8059_v13 = vunpack.c.l.bf16 %v7993_v24  ;;  %v7999_v2 = vld [vmem:[%s11453_s12 + $0x104] sm:$0x7] }
 0x334   : > { %v10501_v27 = vpop.f32.mrb[168].mxu1 }
 0x335   : > { %v10437_v5 = vpop.f32.mrb[168].mxu0  ;;  %v10502_v10 = vpop.f32.mrb[169].mxu1  ;;  %v8138_v49 = vadd.f32 %v9825_v40, %v8137_v1 }
 0x336   : > { %v10438_v44 = vpop.f32.mrb[169].mxu0  ;;  %v10503_v18 = vadd.f32 %v10502_v10, %v10501_v27  ;;  %v10504_v29 = vpop.f32.mrb[170].mxu1  ;;  %v8144_v10 = vsel %vm8067_vm3, %v8059_v13, 0.0 }
 0x337   : > { %v10439_v42 = vadd.f32 %v10438_v44, %v10437_v5  ;;  %v10440_v23 = vpop.f32.mrb[170].mxu0  ;;  %v10505_v57 = vpop.f32.mrb[171].mxu1  ;;  %v8139_v50 = vadd.f32 %v9826_v60, %v8138_v49 }
 0x338   : > { %v10441_v59 = vpop.f32.mrb[171].mxu0  ;;  %v10506_v28 = vadd.f32 %v10505_v57, %v10504_v29  ;;  %v8062_v29 = vunpack.c.l.bf16 %v7996_v58  ;;  %v9830_v57 = vunpack.c.h.bf16 %v9840_v20 }
 0x339   : > { %v15066_v14 = vadd.f32 %v10503_v18, %v10439_v42  ;;  %v10442_v31 = vadd.f32 %v10441_v59, %v10440_v23  ;;  %v8141_v45 = vadd.f32 %v8140_v0, %v8139_v50 }
 0x33b   : > { %v15070_v51 = vadd.f32 %v10506_v28, %v10442_v31  ;;  %v8142_v5 = vadd.f32 %v8141_v45, %v8057_v9  ;;  %v7997_v28 = vld [vmem:[%s11453_s12 + $0xfc] sm:$0xff]   ;;  %s11260_s12 = smov 64  }
 0x33c   : > { %v10507_v37 = vpop.f32.mrb[172].mxu1  ;;  %v8063_v1 = vunpack.c.l.bf16 %v7997_v28 }
 0x33d   : > { %v10508_v21 = vpop.f32.mrb[173].mxu1  ;;  %v8143_v44 = vadd.f32 %v8142_v5, %v8058_v36 }
 0x33e   : > { %v10509_v16 = vadd.f32 %v10508_v21, %v10507_v37  ;;  %v10510_v11 = vpop.f32.mrb[174].mxu1  ;;  %v8148_v37 = vsel %vm8067_vm3, %v8062_v29, 0.0 }
 0x33f   : > { %v10443_v32 = vpop.f32.mrb[172].mxu0  ;;  %v10511_v55 = vpop.f32.mrb[175].mxu1  ;;  %v8145_v30 = vadd.f32 %v8144_v10, %v8143_v44 }
 0x340   : > { %v10444_v52 = vpop.f32.mrb[173].mxu0  ;;  %v10512_v17 = vadd.f32 %v10511_v55, %v10510_v11  ;;  %v8065_v11 = vunpack.c.l.bf16 %v7999_v2 }
 0x341   : > { %v10445_v34 = vadd.f32 %v10444_v52, %v10443_v32  ;;  %v10446_v53 = vpop.f32.mrb[174].mxu0  ;;  %v8146_v40 = vadd.f32 %v9829_v48, %v8145_v30 }
 0x342   : > { %v10447_v7 = vpop.f32.mrb[175].mxu0 }
 0x343   : > { %v15075_v12 = vadd.f32 %v10509_v16, %v10445_v34  ;;  %v10448_v63 = vadd.f32 %v10447_v7, %v10446_v53  ;;  %v8147_v16 = vadd.f32 %v9830_v57, %v8146_v40  ;;  %v8152_v53 = vsel %vm8067_vm3, %v8065_v11, 0.0 }
 0x345   : > { %v15078_v27 = vadd.f32 %v10512_v17, %v10448_v63  ;;  %v8149_v55 = vadd.f32 %v8148_v37, %v8147_v16 }
 0x347   : > { %v8150_v17 = vadd.f32 %v8149_v55, %v8063_v1 }
 0x348   : > { %v10529_v3 = vpop.f32.mrb[176].mxu0 }
 0x349   : > { %v10530_v18 = vpop.f32.mrb[177].mxu0  ;;  %v10593_v23 = vpop.f32.mrb[176].mxu1 }
 0x34a   : > { %v10531_v33 = vadd.f32 %v10530_v18, %v10529_v3  ;;  %v10532_v42 = vpop.f32.mrb[178].mxu0  ;;  %v10594_v59 = vpop.f32.mrb[177].mxu1 }
 0x34b   : > { %v10533_v39 = vpop.f32.mrb[179].mxu0  ;;  %v10595_v62 = vadd.f32 %v10594_v59, %v10593_v23  ;;  %v10596_v26 = vpop.f32.mrb[178].mxu1 }
 0x34c   : > { %v7678_v38 = vadd.f32 %v10531_v33, %v15010_v25  ;;  %v10534_v31 = vadd.f32 %v10533_v39, %v10532_v42  ;;  %v10597_v22 = vpop.f32.mrb[179].mxu1  ;;  %v8064_v25 = vunpack.c.h.bf16 %v7997_v28 }
 0x34d   : > { %v10598_v21 = vadd.f32 %v10597_v22, %v10596_v26 }
 0x34e   : > { %v7681_v8 = vadd.f32 %v10534_v31, %v15015_v54  ;;  %v15087_v60 = vadd.f32 %v10595_v62, %v7678_v38  ;;  %v8151_v7 = vadd.f32 %v8150_v17, %v8064_v25 }
 0x350   : > { %v10535_v43 = vpop.f32.mrb[180].mxu0  ;;  %v15089_v32 = vadd.f32 %v10598_v21, %v7681_v8  ;;  %v8153_v20 = vadd.f32 %v8152_v53, %v8151_v7 }
 0x351   : > { %v10536_v24 = vpop.f32.mrb[181].mxu0 }
 0x352   : > { %v10537_v49 = vadd.f32 %v10536_v24, %v10535_v43  ;;  %v10538_v52 = vpop.f32.mrb[182].mxu0  ;;  %v10599_v0 = vpop.f32.mrb[180].mxu1  ;;  %v8154_v3 = vrot.slane %v8153_v20, 4 }
 0x353   : > { %v10539_v34 = vpop.f32.mrb[183].mxu0  ;;  %v10600_v50 = vpop.f32.mrb[181].mxu1 }
 0x354   : > { %v7686_v54 = vadd.f32 %v10537_v49, %v15024_v46  ;;  %v10540_v9 = vadd.f32 %v10539_v34, %v10538_v52  ;;  %v10601_v13 = vadd.f32 %v10600_v50, %v10599_v0  ;;  %v10602_v63 = vpop.f32.mrb[182].mxu1  ;;  %v8155_v46 = vadd.f32 %v8154_v3, %v8153_v20 }
 0x355   : > { %v10603_v45 = vpop.f32.mrb[183].mxu1 }
 0x356   : > { %v7689_v36 = vadd.f32 %v10540_v9, %v15029_v15  ;;  %v10604_v58 = vadd.f32 %v10603_v45, %v10602_v63  ;;  %v15094_v5 = vadd.f32 %v10601_v13, %v7686_v54  ;;  %v8156_v57 = vrot.slane %v8155_v46, 2 }
 0x358   : > { %v15096_v44 = vadd.f32 %v10604_v58, %v7689_v36  ;;  %v8157_v59 = vadd.f32 %v8156_v57, %v8155_v46 }
 0x35a   : > { %v10541_v10 = vpop.f32.mrb[184].mxu0  ;;  %v8158_v26 = vrot.slane %v8157_v59, 1 }
 0x35b   : > { %v10542_v48 = vpop.f32.mrb[185].mxu0 }
 0x35c   : > { %v10543_v18 = vadd.f32 %v10542_v48, %v10541_v10  ;;  %v10544_v29 = vpop.f32.mrb[186].mxu0  ;;  %v8159_v21 = vadd.f32 %v8158_v26, %v8157_v59 }
 0x35d   : > { %v10545_v33 = vpop.f32.mrb[187].mxu0 }
 0x35e   : > { %v7694_v42 = vadd.f32 %v10543_v18, %v15034_v41  ;;  %v10546_v23 = vadd.f32 %v10545_v33, %v10544_v29  ;;  %v8160_v11 = vmul.f32 0.00390625, %v8159_v21 }
 0x360   : > { %v10605_v30 = vpop.f32.mrb[184].mxu1  ;;  %v7697_v15 = vadd.f32 %v10546_v23, %v15036_v35  ;;  %v8161_v24 = vpack.c.bf16 %v8160_v11, %v8160_v11 }
 0x361   : > { %v10606_v39 = vpop.f32.mrb[185].mxu1 }
 0x362   : > { %v10607_v28 = vadd.f32 %v10606_v39, %v10605_v30  ;;  %v10608_v38 = vpop.f32.mrb[186].mxu1  ;;  %10779 = vmatmul.mubr.bf16.vlgmr.msra.gmra.mrb[208].mxu1 %v8161_v24 }
 0x363   : > { %v10609_v31 = vpop.f32.mrb[187].mxu1 }
 0x364   : > { %v10547_v62 = vpop.f32.mrb[188].mxu0  ;;  %v10610_v2 = vadd.f32 %v10609_v31, %v10608_v38  ;;  %v15100_v22 = vadd.f32 %v10607_v28, %v7694_v42 }
 0x365   : > { %v10548_v40 = vpop.f32.mrb[189].mxu0 }
 0x366   : > { %v10549_v37 = vadd.f32 %v10548_v40, %v10547_v62  ;;  %v10550_v8 = vpop.f32.mrb[190].mxu0  ;;  %v15102_v1 = vadd.f32 %v10610_v2, %v7697_v15 }
 0x367   : > { %v10551_v41 = vpop.f32.mrb[191].mxu0 }
 0x368   : > { %v7702_v16 = vadd.f32 %v10549_v37, %v15041_v47  ;;  %v10552_v35 = vadd.f32 %v10551_v41, %v10550_v8  ;;  %v10611_v43 = vpop.f32.mrb[188].mxu1 }
 0x369   : > { %v10612_v55 = vpop.f32.mrb[189].mxu1 }
 0x36a   : > { %v7705_v25 = vadd.f32 %v10552_v35, %v15045_v19  ;;  %v10613_v49 = vadd.f32 %v10612_v55, %v10611_v43  ;;  %v10614_v52 = vpop.f32.mrb[190].mxu1 }
 0x36b   : > { %v10615_v17 = vpop.f32.mrb[191].mxu1 }
 0x36c   : > { %v10553_v0 = vpop.f32.mrb[192].mxu0  ;;  %v10616_v34 = vadd.f32 %v10615_v17, %v10614_v52  ;;  %v15106_v54 = vadd.f32 %v10613_v49, %v7702_v16 }
 0x36d   : > { %v10554_v53 = vpop.f32.mrb[193].mxu0 }
 0x36e   : > { %v10555_v9 = vadd.f32 %v10554_v53, %v10553_v0  ;;  %v10556_v50 = vpop.f32.mrb[194].mxu0  ;;  %v15108_v47 = vadd.f32 %v10616_v34, %v7705_v25 }
 0x36f   : > { %v10557_v7 = vpop.f32.mrb[195].mxu0 }
 0x370   : > { %v7710_v13 = vadd.f32 %v10555_v9, %v15050_v4  ;;  %v10558_v63 = vadd.f32 %v10557_v7, %v10556_v50  ;;  %v10617_v19 = vpop.f32.mrb[192].mxu1 }
 0x371   : > { %v10618_v45 = vpop.f32.mrb[193].mxu1 }
 0x372   : > { %v7713_v36 = vadd.f32 %v10558_v63, %v15053_v6  ;;  %v10619_v20 = vadd.f32 %v10618_v45, %v10617_v19  ;;  %v10620_v58 = vpop.f32.mrb[194].mxu1 }
 0x373   : > { %v10621_v3 = vpop.f32.mrb[195].mxu1 }
 0x374   : > { %v10559_v10 = vpop.f32.mrb[196].mxu0  ;;  %v10622_v18 = vadd.f32 %v10621_v3, %v10620_v58  ;;  %v15112_v33 = vadd.f32 %v10619_v20, %v7710_v13 }
 0x375   : > { %v10560_v48 = vpop.f32.mrb[197].mxu0 }
 0x376   : > { %v10561_v29 = vadd.f32 %v10560_v48, %v10559_v10  ;;  %v10562_v46 = vpop.f32.mrb[198].mxu0  ;;  %v15115_v4 = vadd.f32 %v10622_v18, %v7713_v36 }
 0x377   : > { %v10563_v42 = vpop.f32.mrb[199].mxu0 }
 0x378   : > { %v7718_v23 = vadd.f32 %v10561_v29, %v15058_v56  ;;  %v10564_v57 = vadd.f32 %v10563_v42, %v10562_v46 }
 0x37a   : > { %v7721_v30 = vadd.f32 %v10564_v57, %v15061_v61  ;;  %v10623_v6 = vpop.f32.mrb[196].mxu1 }
 0x37b   : > { %v10624_v15 = vpop.f32.mrb[197].mxu1 }
 0x37c   : > { %v10565_v39 = vpop.f32.mrb[200].mxu0  ;;  %v10625_v59 = vadd.f32 %v10624_v15, %v10623_v6  ;;  %v10626_v28 = vpop.f32.mrb[198].mxu1 }
 0x37d   : > { %v10566_v38 = vpop.f32.mrb[201].mxu0  ;;  %v10627_v31 = vpop.f32.mrb[199].mxu1 }
 0x37e   : > { %v10567_v62 = vadd.f32 %v10566_v38, %v10565_v39  ;;  %v10628_v26 = vadd.f32 %v10627_v31, %v10626_v28  ;;  %v10568_v2 = vpop.f32.mrb[202].mxu0  ;;  %v7815_v40 = vadd.f32 %v10625_v59, %v7718_v23 }
 0x37f   : > { %v10569_v8 = vpop.f32.mrb[203].mxu0 }
 0x380   : > { %v7726_v37 = vadd.f32 %v10567_v62, %v15066_v14  ;;  %v10570_v56 = vadd.f32 %v10569_v8, %v10568_v2  ;;  %v7818_v21 = vadd.f32 %v10628_v26, %v7721_v30 }
 0x382   : > { %v7729_v41 = vadd.f32 %v10570_v56, %v15070_v51 }
 0x383   : > { %v10629_v16 = vpop.f32.mrb[200].mxu1 }
 0x384   : > { %v10630_v61 = vpop.f32.mrb[201].mxu1 }
 0x385   : > { %v10631_v35 = vadd.f32 %v10630_v61, %v10629_v16  ;;  %v10632_v11 = vpop.f32.mrb[202].mxu1  ;;  %v8287_v16 = vpop.permute.xlu0 %8286 }
 0x386   : > { %v10633_v43 = vpop.f32.mrb[203].mxu1  ;;  %v10571_v55 = vpop.f32.mrb[204].mxu0 }
 0x387   : > { %v10634_v25 = vadd.f32 %v10633_v43, %v10632_v11  ;;  %v7823_v24 = vadd.f32 %v10631_v35, %v7726_v37  ;;  %v10572_v49 = vpop.f32.mrb[205].mxu0  ;;  %v8291_v61 = vpop.permute.xlu1 %8290 }
 0x388   : > { %v10573_v52 = vadd.f32 %v10572_v49, %v10571_v55  ;;  %v10574_v17 = vpop.f32.mrb[206].mxu0 }
 0x389   : > { %v7826_v0 = vadd.f32 %v10634_v25, %v7729_v41  ;;  %v10575_v34 = vpop.f32.mrb[207].mxu0  ;;  %v8289_v35 = vpop.permute.xlu0 %8288 }
 0x38a   : > { %v7734_v14 = vadd.f32 %v10573_v52, %v15075_v12  ;;  %v10576_v53 = vadd.f32 %v10575_v34, %v10574_v17 }
 0x38b   : > { %v8293_v11 = vpop.permute.xlu1 %8292 }
 0x38c   : > { %v10635_v9 = vpop.f32.mrb[204].mxu1  ;;  %v7737_v50 = vadd.f32 %v10576_v53, %v15078_v27 }
 0x38d   : > { %v10636_v51 = vpop.f32.mrb[205].mxu1  ;;  %v8299_v43 = vpop.permute.xlu0 %8298 }
 0x38e   : > { %v10637_v7 = vadd.f32 %v10636_v51, %v10635_v9  ;;  %v10638_v13 = vpop.f32.mrb[206].mxu1 }
 0x38f   : > { %v10639_v63 = vpop.f32.mrb[207].mxu1  ;;  %v10748_v19 = vpop.f32.mrb[208].mxu0 }
 0x390   : > { %v10640_v36 = vadd.f32 %v10639_v63, %v10638_v13  ;;  %v7880_v45 = vadd.f32 %v10748_v19, %v15094_v5  ;;  %v7871_v20 = vpop.f32.mrb[209].mxu0  ;;  %v7831_v58 = vadd.f32 %v10637_v7, %v7734_v14  ;;  %v8301_v25 = vpop.permute.xlu1 %8300 }
 0x391   : > { %v7872_v10 = vadd.f32 %v7871_v20, %v15087_v60  ;;  %v10749_v3 = vpop.f32.mrb[210].mxu0  ;;  %v8295_v55 = vpop.permute.xlu0 %8294 }
 0x392   : > { %v7883_v48 = vadd.f32 %v10749_v3, %v15096_v44  ;;  %v7874_v12 = vpop.f32.mrb[211].mxu0  ;;  %8354 = vrot.lane.b32.xlu0 %v7880_v45, %s11260_s12  ;;  %v7834_v27 = vadd.f32 %v10640_v36, %v7737_v50 }
 0x393   : > { %v7875_v18 = vadd.f32 %v7874_v12, %v15089_v32 }
 0x394   : > { %8356 = vrot.lane.b32.xlu1 %v7883_v48, %s11260_s12 }
 0x395   : > { %v8307_v49 = vpop.permute.xlu0 %8306 }
 0x396   : > { %8350 = vrot.lane.b32.xlu0 %v7872_v10, %s11260_s12 }
 0x397   : > { %v10752_v29 = vpop.f32.mrb[212].mxu0 }
 0x398   : > { %v7896_v5 = vadd.f32 %v10752_v29, %v15106_v54  ;;  %v7887_v46 = vpop.f32.mrb[213].mxu0  ;;  %8352 = vrot.lane.b32.xlu1 %v7875_v18, %s11260_s12  ;;  %v15781_v29 = vld [vmem:[#allocation47_spill] sm:$0xff] }
 0x399   : > { %v7888_v60 = vadd.f32 %v7887_v46, %v15100_v22  ;;  %v10753_v44 = vpop.f32.mrb[214].mxu0  ;;  %v8303_v17 = vpop.permute.xlu0 %8302  ;;  %v15782_v46 = vld [vmem:[#allocation46_spill] sm:$0xff] }
 0x39a   : > { %v7899_v42 = vadd.f32 %v10753_v44, %v15108_v47  ;;  %v7890_v23 = vpop.f32.mrb[215].mxu0  ;;  %8362 = vrot.lane.b32.xlu0 %v7896_v5, %s11260_s12  ;;  %v8403_v5 = vsel %vm8402_vm4, %v15781_v29, %v8287_v16  ;;  %v15783_v44 = vld [vmem:[#allocation63_spill] sm:$0xff] }
 0x39b   : > { %v7891_v32 = vadd.f32 %v7890_v23, %v15102_v1  ;;  %v15784_v23 = vld [vmem:[#allocation64_spill] sm:$0xff] }
 0x39c   : > { %8364 = vrot.lane.b32.xlu1 %v7899_v42, %s11260_s12  ;;  %v8404_v42 = vsel %vm8402_vm4, %v15783_v44, %v8289_v35 }
 0x39d   : > { %v8311_v34 = vpop.permute.xlu0 %8310 }
 0x39e   : > { %8358 = vrot.lane.b32.xlu0 %v7888_v60, %s11260_s12  ;;  %v8406_v60 = vsel %vm8402_vm4, %v15782_v46, %v8293_v11 }
 0x39f   : > { %v10756_v57 = vpop.f32.mrb[216].mxu0 }
 0x3a0   : > { %v7912_v30 = vadd.f32 %v10756_v57, %v7815_v40  ;;  %v7903_v54 = vpop.f32.mrb[217].mxu0  ;;  %8360 = vrot.lane.b32.xlu1 %v7891_v32, %s11260_s12  ;;  %v8409_v32 = vsel %vm8402_vm4, %v15784_v23, %v8299_v43  ;;  %v15785_v57 = vld [vmem:[#allocation15_spill] sm:$0xff]  ;;  %v9777_v23 = vld [vmem:[%s15313_s4] ss:$0 sm:$0xff] }
 0x3a1   : > { %v7904_v6 = vadd.f32 %v7903_v54, %v15112_v33  ;;  %v10757_v22 = vpop.f32.mrb[218].mxu0  ;;  %v8315_v53 = vpop.permute.xlu0 %8314  ;;  %v15786_v54 = vld [vmem:[#allocation65_spill] sm:$0xff] }
 0x3a2   : > { %v7915_v15 = vadd.f32 %v10757_v22, %v7818_v21  ;;  %v7906_v39 = vpop.f32.mrb[219].mxu0  ;;  %8370 = vrot.lane.b32.xlu0 %v7912_v30, %s11260_s12  ;;  %v8410_v30 = vsel %vm8402_vm4, %v15785_v57, %v8301_v25  ;;  %v15787_v22 = vld [vmem:[#allocation18_spill] sm:$0xff] }
 0x3a3   : > { %v7907_v47 = vadd.f32 %v7906_v39, %v15115_v4  ;;  %v8266_v4 = vlaneseq  ;;  %v15788_v39 = vld [vmem:[#allocation12_spill] sm:$0xff] }
 0x3a4   : > { %8372 = vrot.lane.b32.xlu1 %v7915_v15, %s11260_s12 }
 0x3a5   : > { %v8267_v2 = vshrl.u32 %v8266_v4, 7 }
 0x3a6   : > { %8366 = vrot.lane.b32.xlu0 %v7904_v6, %s11260_s12  ;;  %v8407_v6 = vsel %vm8402_vm4, %v15786_v54, %v8295_v55 }
 0x3a7   : > { %v10760_v1 = vpop.f32.mrb[220].mxu0  ;;  %v8268_v40 = vsub.s32 0, %v8267_v2  ;;  %v15793_v2 = vld [vmem:[#allocation21_spill] sm:$0xff] }
 0x3a8   : > { %v7928_v59 = vadd.f32 %v10760_v1, %v7831_v58  ;;  %v7919_v28 = vpop.f32.mrb[221].mxu0  ;;  %8368 = vrot.lane.b32.xlu1 %v7907_v47, %s11260_s12 }
 0x3a9   : > { %v7920_v38 = vadd.f32 %v7919_v28, %v7823_v24  ;;  %v10761_v31 = vpop.f32.mrb[222].mxu0  ;;  %v8297_v24 = vpop.permute.xlu1 %8296 }
 0x3aa   : > { %v7931_v62 = vadd.f32 %v10761_v31, %v7834_v27  ;;  %v7922_v33 = vpop.f32.mrb[223].mxu0  ;;  %8378 = vrot.lane.b32.xlu0 %v7928_v59, %s11260_s12  ;;  %v15780_v27 = vld [vmem:[#allocation62_spill] sm:$0xff]  ;;  %v8408_v15 = vsel %vm8402_vm4, %v15787_v22, %v8297_v24 }
 0x3ab   : > { %v7923_v26 = vadd.f32 %v7922_v33, %v7826_v0  ;;  %v8405_v18 = vsel %vm8402_vm4, %v15780_v27, %v8291_v61  ;;  %v15789_v59 = vld [vmem:[#allocation66_spill] sm:$0xff] }
 0x3ac   : > { %v8413_v28 = vsel %vm8402_vm4, %v15789_v59, %v8307_v49 }
 0x3ad   : > { %8376 = vrot.lane.b32.xlu1 %v7923_v26, %s11260_s12  ;;  %v8309_v52 = vpop.permute.xlu1 %8308  ;;  %v15792_v26 = vld [vmem:[#allocation67_spill] sm:$0xff] }
 0x3ae   : > { %8374 = vrot.lane.b32.xlu0 %v7920_v38, %s11260_s12  ;;  %v8414_v47 = vsel %vm8402_vm4, %v15788_v39, %v8309_v52  ;;  %v15790_v38 = vld [vmem:[#allocation35_spill] sm:$0xff] }
 0x3af   : > { %v8411_v31 = vsel %vm8402_vm4, %v15790_v38, %v8303_v17 }
 0x3b1   : > { %8380 = vrot.lane.b32.xlu1 %v7931_v62, %s11260_s12  ;;  %v8305_v0 = vpop.permute.xlu1 %8304  ;;  %v15791_v62 = vld [vmem:[#allocation19_spill] sm:$0xff] }
 0x3b2   : > { %v8412_v33 = vsel %vm8402_vm4, %v15791_v62, %v8305_v0 }
 0x3b5   : > { %v8313_v14 = vpop.permute.xlu1 %8312 }
 0x3b6   : > { %v8416_v4 = vsel %vm8402_vm4, %v15792_v26, %v8313_v14 }
 0x3b9   : > { %v8317_v9 = vpop.permute.xlu1 %8316 }
 0x404   : > { %v8355_v50 = vpop.permute.xlu0 %8354 }
 0x406   : > { %v8357_v51 = vpop.permute.xlu1 %8356 }
 0x407   : > { %v8423_v16 = vsel %vm8419_vm5, %v8406_v60, %v8357_v51 }
 0x408   : > { %v8351_v7 = vpop.permute.xlu0 %8350 }
 0x409   : > { %v8420_v61 = vsel %vm8419_vm5, %v8403_v5, %v8351_v7 }
 0x40a   : > { %v8353_v13 = vpop.permute.xlu1 %8352 }
 0x40b   : > { %v8421_v35 = vsel %vm8419_vm5, %v8404_v42, %v8353_v13 }
 0x40c   : > { %v8363_v63 = vpop.permute.xlu0 %8362 }
 0x40d   : > { %v8426_v43 = vsel %vm8419_vm5, %v8409_v32, %v8363_v63 }
 0x40e   : > { %v8365_v19 = vpop.permute.xlu1 %8364 }
 0x40f   : > { %v8427_v25 = vsel %vm8419_vm5, %v8410_v30, %v8365_v19  ;;  %v9776_v19 = vld [vmem:[%s15312_s3] ss:$0 sm:$0xff] }
 0x410   : > { %v8359_v36 = vpop.permute.xlu0 %8358 }
 0x411   : > { %v8424_v55 = vsel %vm8419_vm5, %v8407_v6, %v8359_v36 }
 0x412   : > { %v8361_v45 = vpop.permute.xlu1 %8360 }
 0x413   : > { %v8425_v24 = vsel %vm8419_vm5, %v8408_v15, %v8361_v45 }
 0x414   : > { %v8371_v20 = vpop.permute.xlu0 %8370 }
 0x415   : > { %v8430_v49 = vsel %vm8419_vm5, %v8413_v28, %v8371_v20 }
 0x416   : > { %v8373_v58 = vpop.permute.xlu1 %8372 }
 0x417   : > { %v8431_v52 = vsel %vm8419_vm5, %v8414_v47, %v8373_v58 }
 0x418   : > { %v8367_v10 = vpop.permute.xlu0 %8366 }
 0x419   : > { %v8428_v17 = vsel %vm8419_vm5, %v8411_v31, %v8367_v10 }
 0x41a   : > { %v8369_v3 = vpop.permute.xlu1 %8368 }
 0x41b   : > { %v8429_v0 = vsel %vm8419_vm5, %v8412_v33, %v8369_v3 }
 0x41c   : > { %v8379_v48 = vpop.permute.xlu0 %8378 }
 0x41f   : > { %v8377_v12 = vpop.permute.xlu1 %8376 }
 0x420   : > { %v8375_v1 = vpop.permute.xlu0 %8374  ;;  %v8433_v14 = vsel %vm8419_vm5, %v8416_v4, %v8377_v12 }
 0x423   : > { %v8381_v11 = vpop.permute.xlu1 %8380 }
 0x435   : > { %v8260_v37 = vpop.f32.mrb[208].mxu1 }
 0x436   : > { %v8269_v8 = vrot.slane %v8260_v37, %v8268_v40  ;;  %v10780_v56 = vpop.f32.mrb[209].mxu1  ;;  %v8415_v40 = vsel %vm8402_vm4, %v15793_v2, %v8311_v34  ;;  %v15794_v37 = vld [vmem:[#allocation45_spill] sm:$0xff] }
 0x437   : > { %v8263_v21 = vpop.f32.mrb[210].mxu1  ;;  %v15795_v56 = vld [vmem:[#allocation22_spill] sm:$0xff] }
 0x438   : > { %v10781_v41 = vpop.f32.mrb[211].mxu1  ;;  %8399 = vrot.lane.b32.xlu0 %v8269_v8, %s11261_s26  ;;  %v8417_v8 = vsel %vm8402_vm4, %v15794_v37, %v8315_v53  ;;  %v8418_v21 = vsel %vm8402_vm4, %v15795_v56, %v8317_v9  ;;  %v8432_v53 = vsel %vm8419_vm5, %v8415_v40, %v8375_v1 }
 0x439   : > { %v8422_v41 = vsel %vm8419_vm5, %v8405_v18, %v8355_v50  ;;  %v8434_v34 = vsel %vm8419_vm5, %v8417_v8, %v8379_v48  ;;  %v8435_v9 = vsel %vm8419_vm5, %v8418_v21, %v8381_v11 }
 0x4aa   : > { %v8400_v50 = vpop.permute.xlu0 %8399 }
 0x4ab   : > { %v8437_v51 = vsel %vm8436_vm6, %v8420_v61, %v8400_v50  ;;  %v8438_v7 = vsel %vm8436_vm6, %v8421_v35, %v8400_v50  ;;  %v8439_v13 = vsel %vm8436_vm6, %v8422_v41, %v8400_v50  ;;  %v8440_v63 = vsel %vm8436_vm6, %v8423_v16, %v8400_v50 }
 0x4ac   : > { %v8441_v36 = vsel %vm8436_vm6, %v8424_v55, %v8400_v50  ;;  %v8442_v45 = vsel %vm8436_vm6, %v8425_v24, %v8400_v50  ;;  %v8443_v20 = vsel %vm8436_vm6, %v8426_v43, %v8400_v50  ;;  %v8444_v58 = vsel %vm8436_vm6, %v8427_v25, %v8400_v50 }
 0x4ad   : > { %v8445_v10 = vsel %vm8436_vm6, %v8428_v17, %v8400_v50  ;;  %v8446_v3 = vsel %vm8436_vm6, %v8429_v0, %v8400_v50  ;;  %v8447_v48 = vsel %vm8436_vm6, %v8430_v49, %v8400_v50  ;;  %v8448_v12 = vsel %vm8436_vm6, %v8431_v52, %v8400_v50 }
 0x4ae   : > { %v8449_v27 = vsel %vm8436_vm6, %v8432_v53, %v8400_v50  ;;  %v8450_v18 = vsel %vm8436_vm6, %v8433_v14, %v8400_v50  ;;  %v8451_v29 = vsel %vm8436_vm6, %v8434_v34, %v8400_v50  ;;  %v8452_v5 = vsel %vm8436_vm6, %v8435_v9, %v8400_v50 }
 0x4af   : > { %v8460_v46 = vmul.f32 %v9776_v19, %v8437_v51  ;;  %v8461_v60 = vmul.f32 %v9776_v19, %v8438_v7  ;;  %v8462_v44 = vmul.f32 %v9776_v19, %v8439_v13  ;;  %v8463_v42 = vmul.f32 %v9776_v19, %v8440_v63 }
 0x4b0   : > { %v8464_v32 = vmul.f32 %v9776_v19, %v8441_v36  ;;  %v8465_v57 = vmul.f32 %v9776_v19, %v8442_v45  ;;  %v8466_v30 = vmul.f32 %v9776_v19, %v8443_v20  ;;  %v8467_v54 = vmul.f32 %v9776_v19, %v8444_v58 }
 0x4b1   : > { %v8468_v6 = vmul.f32 %v9776_v19, %v8445_v10  ;;  %v8469_v22 = vmul.f32 %v9776_v19, %v8446_v3  ;;  %v8470_v15 = vmul.f32 %v9776_v19, %v8447_v48  ;;  %v8471_v39 = vmul.f32 %v9776_v19, %v8448_v12 }
 0x4b2   : > { %v8472_v47 = vmul.f32 %v9776_v19, %v8449_v27  ;;  %v8473_v1 = vmul.f32 %v9776_v19, %v8450_v18  ;;  %v8474_v59 = vmul.f32 %v9776_v19, %v8451_v29  ;;  %v8475_v28 = vmul.f32 %v9776_v19, %v8452_v5 }
 0x4b3   : > { %v8483_v38 = vadd.f32 %v9777_v23, %v8460_v46  ;;  %v8484_v31 = vadd.f32 %v9777_v23, %v8461_v60  ;;  %v8485_v62 = vadd.f32 %v9777_v23, %v8462_v44  ;;  %v8486_v33 = vadd.f32 %v9777_v23, %v8463_v42 }
 0x4b4   : > { %v8487_v26 = vadd.f32 %v9777_v23, %v8464_v32  ;;  %v8488_v4 = vadd.f32 %v9777_v23, %v8465_v57  ;;  %v8489_v2 = vadd.f32 %v9777_v23, %v8466_v30  ;;  %v8490_v40 = vadd.f32 %v9777_v23, %v8467_v54 }
 0x4b5   : > { %v8491_v37 = vadd.f32 %v9777_v23, %v8468_v6  ;;  %v8492_v8 = vadd.f32 %v9777_v23, %v8469_v22  ;;  %v8493_v56 = vadd.f32 %v9777_v23, %v8470_v15  ;;  %v8494_v21 = vadd.f32 %v9777_v23, %v8471_v39 }
 0x4b6   : > { %v8495_v41 = vadd.f32 %v9777_v23, %v8472_v47  ;;  %v8496_v16 = vadd.f32 %v9777_v23, %v8473_v1  ;;  %v8497_v61 = vadd.f32 %v9777_v23, %v8474_v59  ;;  %v8498_v35 = vadd.f32 %v9777_v23, %v8475_v28 }
 0x4b7   : > { %v8499_v11 = vmax.f32 %v8483_v38, 0.0  ;;  %v8500_v43 = vmax.f32 %v8484_v31, 0.0  ;;  %v8501_v25 = vmax.f32 %v8485_v62, 0.0  ;;  %v8502_v55 = vmax.f32 %v8486_v33, 0.0 }
 0x4b8   : > { %v8503_v24 = vmax.f32 %v8487_v26, 0.0  ;;  %v8504_v49 = vmax.f32 %v8488_v4, 0.0  ;;  %v8505_v52 = vmax.f32 %v8489_v2, 0.0  ;;  %v8506_v17 = vmax.f32 %v8490_v40, 0.0 }
 0x4b9   : > { %v8507_v0 = vmax.f32 %v8491_v37, 0.0  ;;  %v8508_v34 = vmax.f32 %v8492_v8, 0.0  ;;  %v8509_v14 = vmax.f32 %v8493_v56, 0.0  ;;  %v8510_v53 = vmax.f32 %v8494_v21, 0.0  ;;  %8515 = vst [vmem:[%s15229_s22] sm:$0xff] %v8499_v11  ;;  %8516 = vst [vmem:[%s15229_s22 + $0x8] sm:$0xff] %v8500_v43 }
 0x4ba   : > { %8517 = vst [vmem:[%s15229_s22 + $0x10] sm:$0xff] %v8501_v25  ;;  %8518 = vst [vmem:[%s15229_s22 + $0x18] sm:$0xff] %v8502_v55  ;;  %v8511_v9 = vmax.f32 %v8495_v41, 0.0  ;;  %v8512_v50 = vmax.f32 %v8496_v16, 0.0  ;;  %v8513_v51 = vmax.f32 %v8497_v61, 0.0  ;;  %v8514_v7 = vmax.f32 %v8498_v35, 0.0 }
 0x4bb   : > { %8519 = vst [vmem:[%s15229_s22 + $0x20] sm:$0xff] %v8503_v24  ;;  %8520 = vst [vmem:[%s15229_s22 + $0x28] sm:$0xff] %v8504_v49 }
 0x4bc   : > { %8521 = vst [vmem:[%s15229_s22 + $0x30] sm:$0xff] %v8505_v52  ;;  %8522 = vst [vmem:[%s15229_s22 + $0x38] sm:$0xff] %v8506_v17 }
 0x4bd   : > { %8523 = vst [vmem:[%s15229_s22 + $0x40] sm:$0xff] %v8507_v0  ;;  %8524 = vst [vmem:[%s15229_s22 + $0x48] sm:$0xff] %v8508_v34 }
 0x4be   : > { %8525 = vst [vmem:[%s15229_s22 + $0x50] sm:$0xff] %v8509_v14  ;;  %8526 = vst [vmem:[%s15229_s22 + $0x58] sm:$0xff] %v8510_v53 }
 0x4bf   : > { %8527 = vst [vmem:[%s15229_s22 + $0x60] sm:$0xff] %v8511_v9  ;;  %8528 = vst [vmem:[%s15229_s22 + $0x68] sm:$0xff] %v8512_v50 }
 0x4c0   : > { %8529 = vst [vmem:[%s15229_s22 + $0x70] sm:$0xff] %v8513_v51  ;;  %8530 = vst [vmem:[%s15229_s22 + $0x78] sm:$0xff] %v8514_v7 }
 0x4c1   : > { %11174 = shalt.err (!%p11171_p6)
}
 0x4c2   : > { %s11175_s14 = scalar_lea.hbm %s15239_s30, 2048  ;;  %s11179_s21 = scalar_lea.hbm %s15314_s5, 8192 }
 0x4c3   : > { %p11176_p7 = scmp.ne.s32.totalorder %s15239_s30, %s11175_s14  ;;  %p11180_p11 = scmp.lt.u32.totalorder %s15239_s30, %s15314_s5 }
 0x4c4   : > { %p11181_p12 = scmp.lt.u32.totalorder %s11179_s21, %s11175_s14  ;;  %p11183_p0 = scmp.lt.u32.totalorder %s11175_s14, %s15239_s30 }
 0x4c5   : > { %p11177_p9 = pnand %p11176_p7, %p11346_p3 }
 0x4c6   : > { %p11182_p13 = por %p11181_p12, %p11180_p11 }
 0x4c7   : > { %p11178_p10 = pneg %p11177_p9 }
 0x4c8   : > { %p11184_p1 = por %p11183_p0, %p11182_p13 }
 0x4ca   : > { %p11185_p2 = pnand %p11184_p1, %p11178_p10 }
 0x4cc   : > { %11188 = shalt.err (!%p11185_p2)
}
 0x4cd   : > { %s11263_s26 = smov 128   ;;  %s11264_s9 = smov 8  }
 0x4ce   : > { %10783 = dma.vmem_to_hbm [thread:$0]  (%p11346_p3), %s15241_s8, 2048, %s15239_s30, %s15257_s10, %s11263_s26, %s11263_s26, %s11264_s9  }
 0x4cf PF: > { %p10789_p4 = scmp.ge.s32.totalorder %s11255_s25, 2  ;;  %s8563_s13 = sand.u32 1, %s11227_s18  }
 0x4d0   : > { %s8564_s27 = scalar_lea.sflag [#allocation3], %s8563_s13 }
 0x4d1   : > { %p10786_p5 = pnand %p10789_p4, %p11355_p8 }
 0x4d3   : > { %11222 = dma.done.wait (!%p10786_p5), %s8564_s27, 2048  }
 0x4d4   : > { %11224 = vsyncadd (!%p10786_p5), %s8564_s27, 4294965248  ;;  %s18_s25 = sadd.s32 1, %s11255_s25   ;;  %s15796_s18 = smov %s11231_s19 }
 0x4d5   : > { %p15_p6 = scmp.ge.s32.totalorder %s18_s25, 6   ;;  %s15797_s19 = smov %s11235_s20 }
 0x4d6   : > { %s15798_s20 = smov %s11364_s11  ;;  %s15799_s21 = smov %s11247_s23 }
 0x4d7   : > { %s15800_s22 = smov %s11251_s24  ;;  %s15801_s23 = smov %s15804_s28 }
 0x4d8   : > { %s15802_s24 = smov %s15808_s29  ;;  %17 = sbr.rel (!%p15_p6) target bundleno = 5 (0x5), region = 84 }
 0x4df   :  { %8569 = vsyncpa [#allocation3], 1 }
 0x4e0   :  { %8571 = vsyncpa [#allocation3 + $0x1], 1 }

</bundles_post_ra>
